<compile_context>
chip_gen: v5e
topology: v5e:2x2
jax: 0.10.0
libtpu: 0.0.40
codegen_flags: <defaults>
</compile_context>

<pallas_src>
import functools
import numpy as np

import jax
import jax.numpy as jnp
from jax.experimental import pallas as pl
from jax.experimental.pallas import tpu as pltpu

_F32_EPS = float(np.finfo(np.float32).eps)
_K = 5          # every conv in this model is 5x5
_PAD = 2        # every conv uses padding=2
_VMEM_LIMIT = 32 * 1024 * 1024   # explicit VMEM budget (safe on v5e/v6e/v7x)


# ---------------------------------------------------------------------------
# Pallas kernels
# ---------------------------------------------------------------------------
def _conv_band_kernel(x_ref, w_ref, b_ref, o_ref, *, taps, out_rows, relu):
    """o[0] = act( sum_t x[0, taps[t]:taps[t]+out_rows, :] @ w[t] + b )."""
    nd = o_ref.shape[-1]
    xv = x_ref[0].astype(jnp.bfloat16)                    # (Hin, Kd)
    acc = jnp.zeros((out_rows, nd), jnp.float32) + b_ref[...]
    for t, r0 in enumerate(taps):                         # static unroll
        a = xv[r0:r0 + out_rows, :]
        acc = acc + jnp.dot(a, w_ref[t], preferred_element_type=jnp.float32)
    if relu:
        acc = jnp.maximum(acc, 0.0)
    o_ref[0] = acc


def _conv_band_layer(x, wband, brow, taps, out_rows, relu):
    """x: (B, Hin, Kd) f32; wband: (T, Kd, Nd) bf16; brow: (1, Nd) f32."""
    B, Hin, Kd = x.shape
    T, _, Nd = wband.shape
    kernel = functools.partial(
        _conv_band_kernel,
        taps=tuple(int(t) for t in taps),
        out_rows=int(out_rows),
        relu=relu)
    return pl.pallas_call(
        kernel,
        out_shape=jax.ShapeDtypeStruct((B, int(out_rows), Nd), jnp.float32),
        grid_spec=pltpu.PrefetchScalarGridSpec(
            num_scalar_prefetch=0,
            grid=(B,),
            in_specs=[
                pl.BlockSpec((1, Hin, Kd), lambda b: (b, 0, 0)),
                pl.BlockSpec((T, Kd, Nd), lambda b: (0, 0, 0)),
                pl.BlockSpec((1, Nd), lambda b: (0, 0)),
            ],
            out_specs=pl.BlockSpec((1, int(out_rows), Nd), lambda b: (b, 0, 0)),
        ),
        compiler_params=pltpu.CompilerParams(
            dimension_semantics=("parallel",),
            vmem_limit_bytes=_VMEM_LIMIT),
    )(x, wband, brow)


def _vae_head_kernel(h_ref, wmu_ref, wvar_ref, bmu_ref, bvar_ref, eps_ref,
                     mu_ref, lv_ref, std_ref, z_ref):
    """Fused fc_mu + fc_var + reparameterization (exp / clamp / mu+std*eps)."""
    h = h_ref[...].astype(jnp.bfloat16)
    mu = jnp.dot(h, wmu_ref[...], preferred_element_type=jnp.float32) + bmu_ref[...]
    lv = jnp.dot(h, wvar_ref[...], preferred_element_type=jnp.float32) + bvar_ref[...]
    std = jnp.exp(lv * 0.5)
    z = mu + jnp.maximum(std, _F32_EPS) * eps_ref[...]
    mu_ref[...] = mu
    lv_ref[...] = lv
    std_ref[...] = std
    z_ref[...] = z


def _vae_head(h, wmu, wvar, bmu, bvar, eps):
    B, _ = h.shape
    L = wmu.shape[1]

    def full_spec(a):
        return pl.BlockSpec(a.shape, lambda i: (0, 0))

    return pl.pallas_call(
        _vae_head_kernel,
        out_shape=tuple(jax.ShapeDtypeStruct((B, L), jnp.float32) for _ in range(4)),
        grid_spec=pltpu.PrefetchScalarGridSpec(
            num_scalar_prefetch=0,
            grid=(1,),
            in_specs=[full_spec(h), full_spec(wmu), full_spec(wvar),
                      full_spec(bmu), full_spec(bvar), full_spec(eps)],
            out_specs=[pl.BlockSpec((B, L), lambda i: (0, 0)) for _ in range(4)],
        ),
        compiler_params=pltpu.CompilerParams(
            dimension_semantics=("arbitrary",),
            vmem_limit_bytes=_VMEM_LIMIT),
    )(h, wmu, wvar, bmu, bvar, eps)


def _fc_relu_kernel(z_ref, w_ref, b_ref, o_ref):
    acc = jnp.dot(z_ref[...].astype(jnp.bfloat16), w_ref[...],
                  preferred_element_type=jnp.float32) + b_ref[...]
    o_ref[...] = jnp.maximum(acc, 0.0)


def _fc_dec(z, w, b):
    """z: (B, L) f32; w: (L, N) bf16; b: (1, N) f32 -> relu(z @ w + b)."""
    B, L = z.shape
    N = w.shape[1]
    splits = 2 if N % 256 == 0 else 1    # keep both TCs busy on v7x
    Nb = N // splits
    return pl.pallas_call(
        _fc_relu_kernel,
        out_shape=jax.ShapeDtypeStruct((B, N), jnp.float32),
        grid_spec=pltpu.PrefetchScalarGridSpec(
            num_scalar_prefetch=0,
            grid=(splits,),
            in_specs=[
                pl.BlockSpec((B, L), lambda j: (0, 0)),
                pl.BlockSpec((L, Nb), lambda j: (0, j)),
                pl.BlockSpec((1, Nb), lambda j: (0, j)),
            ],
            out_specs=pl.BlockSpec((B, Nb), lambda j: (0, j)),
        ),
        compiler_params=pltpu.CompilerParams(
            dimension_semantics=("parallel",),
            vmem_limit_bytes=_VMEM_LIMIT),
    )(z, w, b)


# ---------------------------------------------------------------------------
# Banded-weight construction (one-time, outside the hot path)
# ---------------------------------------------------------------------------
def _band_weights_conv(wt, w_in, stride):
    """Conv2d weight (Cout, Cin, k, k) -> (k, Wp*Cin, Wo*Cout) bf16.

    Tap dy multiplies padded input row (stride*ho + dy); the 5 column taps and
    channel mixing are folded into a banded matrix over the fused W*C lanes.
    """
    cout, cin, k, _ = wt.shape
    wp = w_in + 2 * _PAD
    wo = (wp - k) // stride + 1
    kd, nd = wp * cin, wo * cout
    j = np.arange(kd)
    n = np.arange(nd)
    col, ci = j // cin, j % cin
    wout, co = n // cout, n % cout
    dx = col[:, None] - stride * wout[None, :]            # (kd, nd)
    valid = jnp.asarray((dx >= 0) & (dx < k))
    dxc = np.clip(dx, 0, k - 1)
    wt_p = jnp.transpose(wt, (2, 3, 1, 0))                # (k, k, Cin, Cout)
    bands = [jnp.where(valid, wt_p[dy, dxc, ci[:, None], co[None, :]], 0.0)
             for dy in range(k)]
    return jnp.stack(bands).astype(jnp.bfloat16), wo


def _band_weights_tconv_s2(wt, w_in):
    """ConvTranspose2d(k=5, stride=2, padding=2, output_padding=1) weight
    (Cin, Cout, k, k) -> (3, (W+2)*Cin, 2*Wo*Cout) bf16 (sub-pixel decomp).

    Input is the UNdilated activation padded by 1; tap a multiplies input rows
    [a, a+H).  Columns [0:Wo*Cout] produce even output rows, the rest odd rows.
    """
    cin, cout, k, _ = wt.shape
    wq = w_in + 2
    wo = 2 * w_in
    kd, nd = wq * cin, wo * cout
    j = np.arange(kd)
    n = np.arange(nd)
    col, ci = j // cin, j % cin
    wout, co = n // cout, n % cout
    dx = wout[None, :] + 4 - 2 * col[:, None]             # (kd, nd)
    valid = jnp.asarray((dx >= 0) & (dx < k))
    dxc = np.clip(dx, 0, k - 1)
    wt_p = jnp.transpose(wt, (2, 3, 0, 1))                # (k, k, Cin, Cout)
    taps = []
    for a in range(3):
        dy_even = 4 - 2 * a
        even = jnp.where(valid, wt_p[dy_even, dxc, ci[:, None], co[None, :]], 0.0)
        dy_odd = 5 - 2 * a
        if dy_odd < k:
            odd = jnp.where(valid, wt_p[dy_odd, dxc, ci[:, None], co[None, :]], 0.0)
        else:
            odd = jnp.zeros((kd, nd), wt.dtype)
        taps.append(jnp.concatenate([even, odd], axis=1))
    return jnp.stack(taps).astype(jnp.bfloat16), wo


# ---------------------------------------------------------------------------
# Layer wrappers (thin JAX-side plumbing; all math happens in the kernels)
# ---------------------------------------------------------------------------
def _conv2d(x, wband, brow, H, W, cin, stride, relu):
    """Conv2d(k=5, padding=2, stride in {1,2}) on (B, H, W*Cin) f32."""
    B = x.shape[0]
    hp, wp = H + 2 * _PAD, W + 2 * _PAD
    xp = jnp.pad(x.reshape(B, H, W, cin),
                 ((0, 0), (_PAD, _PAD), (_PAD, _PAD), (0, 0))
                 ).reshape(B, hp, wp * cin)
    ho = (hp - _K) // stride + 1
    if stride == 2:
        he = hp // 2
        xp = jnp.concatenate([xp[:, 0::2, :], xp[:, 1::2, :]], axis=1)
        taps = tuple((dy // 2) if dy % 2 == 0 else he + dy // 2 for dy in range(_K))
    else:
        taps = tuple(range(_K))
    out = _conv_band_layer(xp, wband, brow, taps, ho, relu)
    wo = (wp - _K) // stride + 1
    return out, ho, wo                                    # (B, ho, wo*Cout)


def _conv_transpose2d_s1(x, wband, brow, H, W, cin, relu):
    # stride-1 / pad-2 transposed conv == 5x5 'same' conv with flipped kernel;
    # flip + channel transpose already folded into wband at prepare time.
    return _conv2d(x, wband, brow, H, W, cin, 1, relu)


def _conv_transpose2d_s2(x, wband, brow2, H, W, cin, relu):
    """ConvTranspose2d(k=5, stride=2, padding=2, output_padding=1)."""
    B = x.shape[0]
    xq = jnp.pad(x.reshape(B, H, W, cin),
                 ((0, 0), (1, 1), (1, 1), (0, 0))).reshape(B, H + 2, (W + 2) * cin)
    out2 = _conv_band_layer(xq, wband, brow2, (0, 1, 2), H, relu)  # (B, H, 2*Wo*Cout)
    wo = 2 * W
    nd = out2.shape[-1] // 2
    return out2.reshape(B, 2 * H, nd), 2 * H, wo


# ---------------------------------------------------------------------------
# Parameters
# ---------------------------------------------------------------------------
def _enc_cfg(in_ch, hid):
    return [(in_ch, hid, 2), (hid, hid, 1), (hid, 2 * hid, 2),
            (2 * hid, 2 * hid, 1), (2 * hid, 4 * hid, 2)]


def _dec_cfg(in_ch, hid):
    return [(4 * hid, 2 * hid, 2), (2 * hid, 2 * hid, 1), (2 * hid, hid, 2),
            (hid, hid, 1), (hid, in_ch, 2)]


def init_params(key, in_ch, hid, latent):
    """Torch-layout parameters (Conv2d: (Cout,Cin,k,k); ConvT: (Cin,Cout,k,k))."""
    keys = iter(jax.random.split(key, 32))

    def w(shape, scale=0.05):
        return scale * jax.random.normal(next(keys), shape, jnp.float32)

    p = {}
    for n, (ci, co, _s) in enumerate(_enc_cfg(in_ch, hid), 1):
        p[f"e{n}_w"] = w((co, ci, _K, _K))
        p[f"e{n}_b"] = w((co,))
    enc_out = 8 * 12 * 4 * hid
    p["fc_mu_w"] = w((latent, enc_out)); p["fc_mu_b"] = w((latent,))
    p["fc_var_w"] = w((latent, enc_out)); p["fc_var_b"] = w((latent,))
    p["fc_dec_w"] = w((enc_out, latent)); p["fc_dec_b"] = w((enc_out,))
    for n, (ci, co, _s) in enumerate(_dec_cfg(in_ch, hid), 1):
        p[f"d{n}_w"] = w((ci, co, _K, _K))
        p[f"d{n}_b"] = w((co,))
    # p["logscale"] exists in the torch module but is unused in forward.
    return p


def prepare_params(params, in_ch, hid, latent, H=64, W=96):
    """One-time weight prep: banded bf16 conv weights, lane-tiled biases and
    permuted fc weights (absorb the NCHW flatten/unflatten ordering), so the
    forward pass never transposes / flips / replicates anything at runtime."""
    prep = {}
    h_cur, w_cur = H, W
    for n, (ci, co, s) in enumerate(_enc_cfg(in_ch, hid), 1):
        band, wo = _band_weights_conv(params[f"e{n}_w"], w_cur, s)
        prep[f"e{n}_w"] = band
        prep[f"e{n}_b"] = jnp.tile(params[f"e{n}_b"], wo).reshape(1, wo * co).astype(jnp.float32)
        h_cur = (h_cur + 2 * _PAD - _K) // s + 1
        w_cur = wo

    c5 = 4 * hid
    hh, ww = h_cur, w_cur                                  # 8, 12

    def head_w(wt):      # torch (L, C*H*W) -> rows in (h, w, c) order, (H*W*C, L)
        L = wt.shape[0]
        return jnp.transpose(wt.reshape(L, c5, hh, ww), (2, 3, 1, 0)).reshape(hh * ww * c5, L)

    prep["fc_mu_w"] = head_w(params["fc_mu_w"]).astype(jnp.bfloat16)
    prep["fc_mu_b"] = params["fc_mu_b"].reshape(1, latent).astype(jnp.float32)
    prep["fc_var_w"] = head_w(params["fc_var_w"]).astype(jnp.bfloat16)
    prep["fc_var_b"] = params["fc_var_b"].reshape(1, latent).astype(jnp.float32)

    wdec = params["fc_dec_w"]                              # (enc_out, L)
    prep["fc_dec_w"] = jnp.transpose(
        wdec.T.reshape(latent, c5, hh, ww), (0, 2, 3, 1)
    ).reshape(latent, hh * ww * c5).astype(jnp.bfloat16)
    prep["fc_dec_b"] = jnp.transpose(
        params["fc_dec_b"].reshape(c5, hh, ww), (1, 2, 0)
    ).reshape(1, hh * ww * c5).astype(jnp.float32)

    h_cur, w_cur = hh, ww
    for n, (ci, co, s) in enumerate(_dec_cfg(in_ch, hid), 1):
        wt = params[f"d{n}_w"]                             # (Cin, Cout, k, k)
        if s == 1:
            w_conv = jnp.transpose(jnp.flip(wt, (2, 3)), (1, 0, 2, 3))
            band, wo = _band_weights_conv(w_conv, w_cur, 1)
            prep[f"d{n}_b"] = jnp.tile(params[f"d{n}_b"], wo).reshape(1, wo * co).astype(jnp.float32)
            w_cur = wo
        else:
            band, wo = _band_weights_tconv_s2(wt, w_cur)
            prep[f"d{n}_b"] = jnp.tile(params[f"d{n}_b"], 2 * wo).reshape(1, 2 * wo * co).astype(jnp.float32)
            h_cur, w_cur = 2 * h_cur, wo
        prep[f"d{n}_w"] = band
    return prep


# ---------------------------------------------------------------------------
# Forward
# ---------------------------------------------------------------------------
def make_vae_forward(in_ch, hid, latent):
    enc_cfg = _enc_cfg(in_ch, hid)
    dec_cfg = _dec_cfg(in_ch, hid)

    def forward(prep, x_nchw, eps_noise):
        B, C, H, W = x_nchw.shape
        assert C == in_ch and (H, W) == (64, 96), "model requires (*, C, 64, 96) inputs"

        # NCHW -> lane-dense (B, H, W*C)
        h_act = jnp.transpose(x_nchw, (0, 2, 3, 1)).reshape(B, H, W * C)

        # ---- encoder ----
        h_cur, w_cur = H, W
        for n, (ci, co, s) in enumerate(enc_cfg, 1):
            h_act, h_cur, w_cur = _conv2d(h_act, prep[f"e{n}_w"], prep[f"e{n}_b"],
                                          h_cur, w_cur, ci, s, relu=True)

        # flatten (torch NCHW flatten order is absorbed into the fc weights)
        h_flat = h_act.reshape(B, h_cur * w_cur * enc_cfg[-1][1])

        # fused fc_mu + fc_var + reparameterization
        mu, logvar, std, z = _vae_head(h_flat, prep["fc_mu_w"], prep["fc_var_w"],
                                       prep["fc_mu_b"], prep["fc_var_b"], eps_noise)

        # ---- decoder ----
        d = _fc_dec(z, prep["fc_dec_w"], prep["fc_dec_b"])           # (B, 8*12*4*hid)
        h_cur, w_cur = 8, 12
        d = d.reshape(B, h_cur, w_cur * 4 * hid)
        for n, (ci, co, s) in enumerate(dec_cfg, 1):
            relu = n < len(dec_cfg)                                  # no act after last
            if s == 1:
                d, h_cur, w_cur = _conv_transpose2d_s1(
                    d, prep[f"d{n}_w"], prep[f"d{n}_b"], h_cur, w_cur, ci, relu)
            else:
                d, h_cur, w_cur = _conv_transpose2d_s2(
                    d, prep[f"d{n}_w"], prep[f"d{n}_b"], h_cur, w_cur, ci, relu)

        x_hat = d.reshape(B, h_cur, w_cur, in_ch).transpose(0, 3, 1, 2)  # -> NCHW
        return x_hat, z, mu, logvar, std

    return forward


# ---------------------------------------------------------------------------
if __name__ == "__main__":
    # small config: input_channel=2, base_filters=4, latent_dimension=16
    IN_CH, HID, LATENT = 2, 4, 16
    B, H, W = 2, 64, 96   # spatial 64x96 is required by the 8x12 decoder reshape

    root = jax.random.PRNGKey(0)
    k_param, k_x, k_eps = jax.random.split(root, 3)

    params = init_params(k_param, IN_CH, HID, LATENT)
    prep = prepare_params(params, IN_CH, HID, LATENT, H, W)   # one-time weight prep

    x = jax.random.normal(k_x, (B, IN_CH, H, W), jnp.float32)        # NCHW input
    eps_noise = jax.random.normal(k_eps, (B, LATENT), jnp.float32)   # rsample noise

    fwd = jax.jit(make_vae_forward(IN_CH, HID, LATENT))
    x_hat, z, mu, logvar, std = fwd(prep, x, eps_noise)
    jax.block_until_ready((x_hat, z, mu, logvar, std))

    assert x_hat.shape == (B, IN_CH, H, W)
    assert z.shape == (B, LATENT) and mu.shape == (B, LATENT)
    assert logvar.shape == (B, LATENT) and std.shape == (B, LATENT)
    assert bool(jnp.all(jnp.isfinite(x_hat)))

    print("KERNEL_OK")
</pallas_src>

<mosaic_0001>
module attributes {stable_mosaic.version = 11 : i64} {
  func.func @_conv_band_kernel(%arg0: i32, %arg1: memref<1x68x200xf32, #tpu.memory_space<vmem>>, %arg2: memref<5x200x192xbf16, #tpu.memory_space<vmem>>, %arg3: memref<1x192xf32, #tpu.memory_space<vmem>>, %arg4: memref<1x32x192xf32, #tpu.memory_space<vmem>>) attributes {dimension_semantics = [#tpu.dimension_semantics<parallel>], iteration_bounds = array<i64: 2>, scalar_prefetch = 0 : i64, scratch_operands = 0 : i64, tpu.core_type = #tpu.core_type<tc>, window_params = [{transform_indices = @transform_0, window_bounds = array<i64: 1, 68, 200>}, {pipeline_mode = #tpu.pipeline_mode<synchronous>, transform_indices = @transform_1, window_bounds = array<i64: 5, 200, 192>}, {pipeline_mode = #tpu.pipeline_mode<synchronous>, transform_indices = @transform_2, window_bounds = array<i64: 1, 192>}, {transform_indices = @transform_3, window_bounds = array<i64: 1, 32, 192>}]} {
    %c0 = arith.constant 0 : index
    %c0_0 = arith.constant 0 : index
    %c0_1 = arith.constant 0 : index
    %0 = vector.load %arg1[%c0, %c0_0, %c0_1] : memref<1x68x200xf32, #tpu.memory_space<vmem>>, vector<1x68x200xf32>
    %1 = vector.shape_cast %0 : vector<1x68x200xf32> to vector<68x200xf32>
    %2 = arith.truncf %1 : vector<68x200xf32> to vector<68x200xbf16>
    %cst = arith.constant 0.000000e+00 : f32
    %3 = vector.broadcast %cst : f32 to vector<32x192xf32>
    %c0_2 = arith.constant 0 : index
    %c0_3 = arith.constant 0 : index
    %4 = vector.load %arg3[%c0_2, %c0_3] : memref<1x192xf32, #tpu.memory_space<vmem>>, vector<1x192xf32>
    %5 = vector.broadcast %4 : vector<1x192xf32> to vector<32x192xf32>
    %6 = arith.addf %3, %5 : vector<32x192xf32>
    %7 = vector.extract_strided_slice %2 {offsets = [0, 0], sizes = [32, 200], strides = [1, 1]} : vector<68x200xbf16> to vector<32x200xbf16>
    %c0_4 = arith.constant 0 : index
    %c0_5 = arith.constant 0 : index
    %c0_6 = arith.constant 0 : index
    %8 = vector.load %arg2[%c0_4, %c0_5, %c0_6] : memref<5x200x192xbf16, #tpu.memory_space<vmem>>, vector<1x200x192xbf16>
    %9 = vector.shape_cast %8 : vector<1x200x192xbf16> to vector<200x192xbf16>
    %cst_7 = arith.constant dense<0.000000e+00> : vector<32x192xf32>
    %10 = tpu.matmul %7, %9, %cst_7 {dimension_numbers = #tpu.dot_dimension_numbers<[1], [0], [0], [1], [0, 0, 1, 1], [], []>} : vector<32x200xbf16>, vector<200x192xbf16>, vector<32x192xf32> -> vector<32x192xf32>
    %11 = arith.addf %6, %10 : vector<32x192xf32>
    %12 = vector.extract_strided_slice %2 {offsets = [34, 0], sizes = [32, 200], strides = [1, 1]} : vector<68x200xbf16> to vector<32x200xbf16>
    %c1 = arith.constant 1 : index
    %c0_8 = arith.constant 0 : index
    %c0_9 = arith.constant 0 : index
    %13 = vector.load %arg2[%c1, %c0_8, %c0_9] : memref<5x200x192xbf16, #tpu.memory_space<vmem>>, vector<1x200x192xbf16>
    %14 = vector.shape_cast %13 : vector<1x200x192xbf16> to vector<200x192xbf16>
    %cst_10 = arith.constant dense<0.000000e+00> : vector<32x192xf32>
    %15 = tpu.matmul %12, %14, %cst_10 {dimension_numbers = #tpu.dot_dimension_numbers<[1], [0], [0], [1], [0, 0, 1, 1], [], []>} : vector<32x200xbf16>, vector<200x192xbf16>, vector<32x192xf32> -> vector<32x192xf32>
    %16 = arith.addf %11, %15 : vector<32x192xf32>
    %17 = vector.extract_strided_slice %2 {offsets = [1, 0], sizes = [32, 200], strides = [1, 1]} : vector<68x200xbf16> to vector<32x200xbf16>
    %c2 = arith.constant 2 : index
    %c0_11 = arith.constant 0 : index
    %c0_12 = arith.constant 0 : index
    %18 = vector.load %arg2[%c2, %c0_11, %c0_12] : memref<5x200x192xbf16, #tpu.memory_space<vmem>>, vector<1x200x192xbf16>
    %19 = vector.shape_cast %18 : vector<1x200x192xbf16> to vector<200x192xbf16>
    %cst_13 = arith.constant dense<0.000000e+00> : vector<32x192xf32>
    %20 = tpu.matmul %17, %19, %cst_13 {dimension_numbers = #tpu.dot_dimension_numbers<[1], [0], [0], [1], [0, 0, 1, 1], [], []>} : vector<32x200xbf16>, vector<200x192xbf16>, vector<32x192xf32> -> vector<32x192xf32>
    %21 = arith.addf %16, %20 : vector<32x192xf32>
    %22 = vector.extract_strided_slice %2 {offsets = [35, 0], sizes = [32, 200], strides = [1, 1]} : vector<68x200xbf16> to vector<32x200xbf16>
    %c3 = arith.constant 3 : index
    %c0_14 = arith.constant 0 : index
    %c0_15 = arith.constant 0 : index
    %23 = vector.load %arg2[%c3, %c0_14, %c0_15] : memref<5x200x192xbf16, #tpu.memory_space<vmem>>, vector<1x200x192xbf16>
    %24 = vector.shape_cast %23 : vector<1x200x192xbf16> to vector<200x192xbf16>
    %cst_16 = arith.constant dense<0.000000e+00> : vector<32x192xf32>
    %25 = tpu.matmul %22, %24, %cst_16 {dimension_numbers = #tpu.dot_dimension_numbers<[1], [0], [0], [1], [0, 0, 1, 1], [], []>} : vector<32x200xbf16>, vector<200x192xbf16>, vector<32x192xf32> -> vector<32x192xf32>
    %26 = arith.addf %21, %25 : vector<32x192xf32>
    %27 = vector.extract_strided_slice %2 {offsets = [2, 0], sizes = [32, 200], strides = [1, 1]} : vector<68x200xbf16> to vector<32x200xbf16>
    %c4 = arith.constant 4 : index
    %c0_17 = arith.constant 0 : index
    %c0_18 = arith.constant 0 : index
    %28 = vector.load %arg2[%c4, %c0_17, %c0_18] : memref<5x200x192xbf16, #tpu.memory_space<vmem>>, vector<1x200x192xbf16>
    %29 = vector.shape_cast %28 : vector<1x200x192xbf16> to vector<200x192xbf16>
    %cst_19 = arith.constant dense<0.000000e+00> : vector<32x192xf32>
    %30 = tpu.matmul %27, %29, %cst_19 {dimension_numbers = #tpu.dot_dimension_numbers<[1], [0], [0], [1], [0, 0, 1, 1], [], []>} : vector<32x200xbf16>, vector<200x192xbf16>, vector<32x192xf32> -> vector<32x192xf32>
    %31 = arith.addf %26, %30 : vector<32x192xf32>
    %cst_20 = arith.constant 0.000000e+00 : f32
    %32 = vector.broadcast %cst_20 : f32 to vector<32x192xf32>
    %33 = arith.maximumf %31, %32 : vector<32x192xf32>
    %c0_21 = arith.constant 0 : index
    %c0_22 = arith.constant 0 : index
    %c0_23 = arith.constant 0 : index
    %34 = vector.load %arg4[%c0_21, %c0_22, %c0_23] : memref<1x32x192xf32, #tpu.memory_space<vmem>>, vector<1x32x192xf32>
    %35 = vector.shape_cast %34 : vector<1x32x192xf32> to vector<32x192xf32>
    %36 = vector.shape_cast %33 : vector<32x192xf32> to vector<1x32x192xf32>
    tpu.vector_store %arg4[%c0_21, %c0_22, %c0_23], %36 {strides = array<i32>} : memref<1x32x192xf32, #tpu.memory_space<vmem>>, vector<1x32x192xf32>,
    return
  }
  func.func @transform_0(%arg0: i32) -> (i32, i32, i32) {
    %c0_i32 = arith.constant 0 : i32
    %c0_i32_0 = arith.constant 0 : i32
    %c0_i32_1 = arith.constant 0 : i32
    return %arg0, %c0_i32, %c0_i32_0 : i32, i32, i32
  }
  func.func @transform_1(%arg0: i32) -> (i32, i32, i32) {
    %c0_i32 = arith.constant 0 : i32
    %c0_i32_0 = arith.constant 0 : i32
    %c0_i32_1 = arith.constant 0 : i32
    %c0_i32_2 = arith.constant 0 : i32
    return %c0_i32, %c0_i32_0, %c0_i32_1 : i32, i32, i32
  }
  func.func @transform_2(%arg0: i32) -> (i32, i32) {
    %c0_i32 = arith.constant 0 : i32
    %c0_i32_0 = arith.constant 0 : i32
    %c0_i32_1 = arith.constant 0 : i32
    return %c0_i32, %c0_i32_0 : i32, i32
  }
  func.func @transform_3(%arg0: i32) -> (i32, i32, i32) {
    %c0_i32 = arith.constant 0 : i32
    %c0_i32_0 = arith.constant 0 : i32
    %c0_i32_1 = arith.constant 0 : i32
    return %arg0, %c0_i32, %c0_i32_0 : i32, i32, i32
  }
}

module attributes {stable_mosaic.version = 11 : i64} {
  func.func @_conv_band_kernel(%arg0: i32, %arg1: memref<1x36x208xf32, #tpu.memory_space<vmem>>, %arg2: memref<5x208x192xbf16, #tpu.memory_space<vmem>>, %arg3: memref<1x192xf32, #tpu.memory_space<vmem>>, %arg4: memref<1x32x192xf32, #tpu.memory_space<vmem>>) attributes {dimension_semantics = [#tpu.dimension_semantics<parallel>], iteration_bounds = array<i64: 2>, scalar_prefetch = 0 : i64, scratch_operands = 0 : i64, tpu.core_type = #tpu.core_type<tc>, window_params = [{transform_indices = @transform_0, window_bounds = array<i64: 1, 36, 208>}, {pipeline_mode = #tpu.pipeline_mode<synchronous>, transform_indices = @transform_1, window_bounds = array<i64: 5, 208, 192>}, {pipeline_mode = #tpu.pipeline_mode<synchronous>, transform_indices = @transform_2, window_bounds = array<i64: 1, 192>}, {transform_indices = @transform_3, window_bounds = array<i64: 1, 32, 192>}]} {
    %c0 = arith.constant 0 : index
    %c0_0 = arith.constant 0 : index
    %c0_1 = arith.constant 0 : index
    %0 = vector.load %arg1[%c0, %c0_0, %c0_1] : memref<1x36x208xf32, #tpu.memory_space<vmem>>, vector<1x36x208xf32>
    %1 = vector.shape_cast %0 : vector<1x36x208xf32> to vector<36x208xf32>
    %2 = arith.truncf %1 : vector<36x208xf32> to vector<36x208xbf16>
    %cst = arith.constant 0.000000e+00 : f32
    %3 = vector.broadcast %cst : f32 to vector<32x192xf32>
    %c0_2 = arith.constant 0 : index
    %c0_3 = arith.constant 0 : index
    %4 = vector.load %arg3[%c0_2, %c0_3] : memref<1x192xf32, #tpu.memory_space<vmem>>, vector<1x192xf32>
    %5 = vector.broadcast %4 : vector<1x192xf32> to vector<32x192xf32>
    %6 = arith.addf %3, %5 : vector<32x192xf32>
    %7 = vector.extract_strided_slice %2 {offsets = [0, 0], sizes = [32, 208], strides = [1, 1]} : vector<36x208xbf16> to vector<32x208xbf16>
    %c0_4 = arith.constant 0 : index
    %c0_5 = arith.constant 0 : index
    %c0_6 = arith.constant 0 : index
    %8 = vector.load %arg2[%c0_4, %c0_5, %c0_6] : memref<5x208x192xbf16, #tpu.memory_space<vmem>>, vector<1x208x192xbf16>
    %9 = vector.shape_cast %8 : vector<1x208x192xbf16> to vector<208x192xbf16>
    %cst_7 = arith.constant dense<0.000000e+00> : vector<32x192xf32>
    %10 = tpu.matmul %7, %9, %cst_7 {dimension_numbers = #tpu.dot_dimension_numbers<[1], [0], [0], [1], [0, 0, 1, 1], [], []>} : vector<32x208xbf16>, vector<208x192xbf16>, vector<32x192xf32> -> vector<32x192xf32>
    %11 = arith.addf %6, %10 : vector<32x192xf32>
    %12 = vector.extract_strided_slice %2 {offsets = [1, 0], sizes = [32, 208], strides = [1, 1]} : vector<36x208xbf16> to vector<32x208xbf16>
    %c1 = arith.constant 1 : index
    %c0_8 = arith.constant 0 : index
    %c0_9 = arith.constant 0 : index
    %13 = vector.load %arg2[%c1, %c0_8, %c0_9] : memref<5x208x192xbf16, #tpu.memory_space<vmem>>, vector<1x208x192xbf16>
    %14 = vector.shape_cast %13 : vector<1x208x192xbf16> to vector<208x192xbf16>
    %cst_10 = arith.constant dense<0.000000e+00> : vector<32x192xf32>
    %15 = tpu.matmul %12, %14, %cst_10 {dimension_numbers = #tpu.dot_dimension_numbers<[1], [0], [0], [1], [0, 0, 1, 1], [], []>} : vector<32x208xbf16>, vector<208x192xbf16>, vector<32x192xf32> -> vector<32x192xf32>
    %16 = arith.addf %11, %15 : vector<32x192xf32>
    %17 = vector.extract_strided_slice %2 {offsets = [2, 0], sizes = [32, 208], strides = [1, 1]} : vector<36x208xbf16> to vector<32x208xbf16>
    %c2 = arith.constant 2 : index
    %c0_11 = arith.constant 0 : index
    %c0_12 = arith.constant 0 : index
    %18 = vector.load %arg2[%c2, %c0_11, %c0_12] : memref<5x208x192xbf16, #tpu.memory_space<vmem>>, vector<1x208x192xbf16>
    %19 = vector.shape_cast %18 : vector<1x208x192xbf16> to vector<208x192xbf16>
    %cst_13 = arith.constant dense<0.000000e+00> : vector<32x192xf32>
    %20 = tpu.matmul %17, %19, %cst_13 {dimension_numbers = #tpu.dot_dimension_numbers<[1], [0], [0], [1], [0, 0, 1, 1], [], []>} : vector<32x208xbf16>, vector<208x192xbf16>, vector<32x192xf32> -> vector<32x192xf32>
    %21 = arith.addf %16, %20 : vector<32x192xf32>
    %22 = vector.extract_strided_slice %2 {offsets = [3, 0], sizes = [32, 208], strides = [1, 1]} : vector<36x208xbf16> to vector<32x208xbf16>
    %c3 = arith.constant 3 : index
    %c0_14 = arith.constant 0 : index
    %c0_15 = arith.constant 0 : index
    %23 = vector.load %arg2[%c3, %c0_14, %c0_15] : memref<5x208x192xbf16, #tpu.memory_space<vmem>>, vector<1x208x192xbf16>
    %24 = vector.shape_cast %23 : vector<1x208x192xbf16> to vector<208x192xbf16>
    %cst_16 = arith.constant dense<0.000000e+00> : vector<32x192xf32>
    %25 = tpu.matmul %22, %24, %cst_16 {dimension_numbers = #tpu.dot_dimension_numbers<[1], [0], [0], [1], [0, 0, 1, 1], [], []>} : vector<32x208xbf16>, vector<208x192xbf16>, vector<32x192xf32> -> vector<32x192xf32>
    %26 = arith.addf %21, %25 : vector<32x192xf32>
    %27 = vector.extract_strided_slice %2 {offsets = [4, 0], sizes = [32, 208], strides = [1, 1]} : vector<36x208xbf16> to vector<32x208xbf16>
    %c4 = arith.constant 4 : index
    %c0_17 = arith.constant 0 : index
    %c0_18 = arith.constant 0 : index
    %28 = vector.load %arg2[%c4, %c0_17, %c0_18] : memref<5x208x192xbf16, #tpu.memory_space<vmem>>, vector<1x208x192xbf16>
    %29 = vector.shape_cast %28 : vector<1x208x192xbf16> to vector<208x192xbf16>
    %cst_19 = arith.constant dense<0.000000e+00> : vector<32x192xf32>
    %30 = tpu.matmul %27, %29, %cst_19 {dimension_numbers = #tpu.dot_dimension_numbers<[1], [0], [0], [1], [0, 0, 1, 1], [], []>} : vector<32x208xbf16>, vector<208x192xbf16>, vector<32x192xf32> -> vector<32x192xf32>
    %31 = arith.addf %26, %30 : vector<32x192xf32>
    %cst_20 = arith.constant 0.000000e+00 : f32
    %32 = vector.broadcast %cst_20 : f32 to vector<32x192xf32>
    %33 = arith.maximumf %31, %32 : vector<32x192xf32>
    %c0_21 = arith.constant 0 : index
    %c0_22 = arith.constant 0 : index
    %c0_23 = arith.constant 0 : index
    %34 = vector.load %arg4[%c0_21, %c0_22, %c0_23] : memref<1x32x192xf32, #tpu.memory_space<vmem>>, vector<1x32x192xf32>
    %35 = vector.shape_cast %34 : vector<1x32x192xf32> to vector<32x192xf32>
    %36 = vector.shape_cast %33 : vector<32x192xf32> to vector<1x32x192xf32>
    tpu.vector_store %arg4[%c0_21, %c0_22, %c0_23], %36 {strides = array<i32>} : memref<1x32x192xf32, #tpu.memory_space<vmem>>, vector<1x32x192xf32>,
    return
  }
  func.func @transform_0(%arg0: i32) -> (i32, i32, i32) {
    %c0_i32 = arith.constant 0 : i32
    %c0_i32_0 = arith.constant 0 : i32
    %c0_i32_1 = arith.constant 0 : i32
    return %arg0, %c0_i32, %c0_i32_0 : i32, i32, i32
  }
  func.func @transform_1(%arg0: i32) -> (i32, i32, i32) {
    %c0_i32 = arith.constant 0 : i32
    %c0_i32_0 = arith.constant 0 : i32
    %c0_i32_1 = arith.constant 0 : i32
    %c0_i32_2 = arith.constant 0 : i32
    return %c0_i32, %c0_i32_0, %c0_i32_1 : i32, i32, i32
  }
  func.func @transform_2(%arg0: i32) -> (i32, i32) {
    %c0_i32 = arith.constant 0 : i32
    %c0_i32_0 = arith.constant 0 : i32
    %c0_i32_1 = arith.constant 0 : i32
    return %c0_i32, %c0_i32_0 : i32, i32
  }
  func.func @transform_3(%arg0: i32) -> (i32, i32, i32) {
    %c0_i32 = arith.constant 0 : i32
    %c0_i32_0 = arith.constant 0 : i32
    %c0_i32_1 = arith.constant 0 : i32
    return %arg0, %c0_i32, %c0_i32_0 : i32, i32, i32
  }
}

module attributes {stable_mosaic.version = 11 : i64} {
  func.func @_conv_band_kernel(%arg0: i32, %arg1: memref<1x36x208xf32, #tpu.memory_space<vmem>>, %arg2: memref<5x208x192xbf16, #tpu.memory_space<vmem>>, %arg3: memref<1x192xf32, #tpu.memory_space<vmem>>, %arg4: memref<1x16x192xf32, #tpu.memory_space<vmem>>) attributes {dimension_semantics = [#tpu.dimension_semantics<parallel>], iteration_bounds = array<i64: 2>, scalar_prefetch = 0 : i64, scratch_operands = 0 : i64, tpu.core_type = #tpu.core_type<tc>, window_params = [{transform_indices = @transform_0, window_bounds = array<i64: 1, 36, 208>}, {pipeline_mode = #tpu.pipeline_mode<synchronous>, transform_indices = @transform_1, window_bounds = array<i64: 5, 208, 192>}, {pipeline_mode = #tpu.pipeline_mode<synchronous>, transform_indices = @transform_2, window_bounds = array<i64: 1, 192>}, {transform_indices = @transform_3, window_bounds = array<i64: 1, 16, 192>}]} {
    %c0 = arith.constant 0 : index
    %c0_0 = arith.constant 0 : index
    %c0_1 = arith.constant 0 : index
    %0 = vector.load %arg1[%c0, %c0_0, %c0_1] : memref<1x36x208xf32, #tpu.memory_space<vmem>>, vector<1x36x208xf32>
    %1 = vector.shape_cast %0 : vector<1x36x208xf32> to vector<36x208xf32>
    %2 = arith.truncf %1 : vector<36x208xf32> to vector<36x208xbf16>
    %cst = arith.constant 0.000000e+00 : f32
    %3 = vector.broadcast %cst : f32 to vector<16x192xf32>
    %c0_2 = arith.constant 0 : index
    %c0_3 = arith.constant 0 : index
    %4 = vector.load %arg3[%c0_2, %c0_3] : memref<1x192xf32, #tpu.memory_space<vmem>>, vector<1x192xf32>
    %5 = vector.broadcast %4 : vector<1x192xf32> to vector<16x192xf32>
    %6 = arith.addf %3, %5 : vector<16x192xf32>
    %7 = vector.extract_strided_slice %2 {offsets = [0, 0], sizes = [16, 208], strides = [1, 1]} : vector<36x208xbf16> to vector<16x208xbf16>
    %c0_4 = arith.constant 0 : index
    %c0_5 = arith.constant 0 : index
    %c0_6 = arith.constant 0 : index
    %8 = vector.load %arg2[%c0_4, %c0_5, %c0_6] : memref<5x208x192xbf16, #tpu.memory_space<vmem>>, vector<1x208x192xbf16>
    %9 = vector.shape_cast %8 : vector<1x208x192xbf16> to vector<208x192xbf16>
    %cst_7 = arith.constant dense<0.000000e+00> : vector<16x192xf32>
    %10 = tpu.matmul %7, %9, %cst_7 {dimension_numbers = #tpu.dot_dimension_numbers<[1], [0], [0], [1], [0, 0, 1, 1], [], []>} : vector<16x208xbf16>, vector<208x192xbf16>, vector<16x192xf32> -> vector<16x192xf32>
    %11 = arith.addf %6, %10 : vector<16x192xf32>
    %12 = vector.extract_strided_slice %2 {offsets = [18, 0], sizes = [16, 208], strides = [1, 1]} : vector<36x208xbf16> to vector<16x208xbf16>
    %c1 = arith.constant 1 : index
    %c0_8 = arith.constant 0 : index
    %c0_9 = arith.constant 0 : index
    %13 = vector.load %arg2[%c1, %c0_8, %c0_9] : memref<5x208x192xbf16, #tpu.memory_space<vmem>>, vector<1x208x192xbf16>
    %14 = vector.shape_cast %13 : vector<1x208x192xbf16> to vector<208x192xbf16>
    %cst_10 = arith.constant dense<0.000000e+00> : vector<16x192xf32>
    %15 = tpu.matmul %12, %14, %cst_10 {dimension_numbers = #tpu.dot_dimension_numbers<[1], [0], [0], [1], [0, 0, 1, 1], [], []>} : vector<16x208xbf16>, vector<208x192xbf16>, vector<16x192xf32> -> vector<16x192xf32>
    %16 = arith.addf %11, %15 : vector<16x192xf32>
    %17 = vector.extract_strided_slice %2 {offsets = [1, 0], sizes = [16, 208], strides = [1, 1]} : vector<36x208xbf16> to vector<16x208xbf16>
    %c2 = arith.constant 2 : index
    %c0_11 = arith.constant 0 : index
    %c0_12 = arith.constant 0 : index
    %18 = vector.load %arg2[%c2, %c0_11, %c0_12] : memref<5x208x192xbf16, #tpu.memory_space<vmem>>, vector<1x208x192xbf16>
    %19 = vector.shape_cast %18 : vector<1x208x192xbf16> to vector<208x192xbf16>
    %cst_13 = arith.constant dense<0.000000e+00> : vector<16x192xf32>
    %20 = tpu.matmul %17, %19, %cst_13 {dimension_numbers = #tpu.dot_dimension_numbers<[1], [0], [0], [1], [0, 0, 1, 1], [], []>} : vector<16x208xbf16>, vector<208x192xbf16>, vector<16x192xf32> -> vector<16x192xf32>
    %21 = arith.addf %16, %20 : vector<16x192xf32>
    %22 = vector.extract_strided_slice %2 {offsets = [19, 0], sizes = [16, 208], strides = [1, 1]} : vector<36x208xbf16> to vector<16x208xbf16>
    %c3 = arith.constant 3 : index
    %c0_14 = arith.constant 0 : index
    %c0_15 = arith.constant 0 : index
    %23 = vector.load %arg2[%c3, %c0_14, %c0_15] : memref<5x208x192xbf16, #tpu.memory_space<vmem>>, vector<1x208x192xbf16>
    %24 = vector.shape_cast %23 : vector<1x208x192xbf16> to vector<208x192xbf16>
    %cst_16 = arith.constant dense<0.000000e+00> : vector<16x192xf32>
    %25 = tpu.matmul %22, %24, %cst_16 {dimension_numbers = #tpu.dot_dimension_numbers<[1], [0], [0], [1], [0, 0, 1, 1], [], []>} : vector<16x208xbf16>, vector<208x192xbf16>, vector<16x192xf32> -> vector<16x192xf32>
    %26 = arith.addf %21, %25 : vector<16x192xf32>
    %27 = vector.extract_strided_slice %2 {offsets = [2, 0], sizes = [16, 208], strides = [1, 1]} : vector<36x208xbf16> to vector<16x208xbf16>
    %c4 = arith.constant 4 : index
    %c0_17 = arith.constant 0 : index
    %c0_18 = arith.constant 0 : index
    %28 = vector.load %arg2[%c4, %c0_17, %c0_18] : memref<5x208x192xbf16, #tpu.memory_space<vmem>>, vector<1x208x192xbf16>
    %29 = vector.shape_cast %28 : vector<1x208x192xbf16> to vector<208x192xbf16>
    %cst_19 = arith.constant dense<0.000000e+00> : vector<16x192xf32>
    %30 = tpu.matmul %27, %29, %cst_19 {dimension_numbers = #tpu.dot_dimension_numbers<[1], [0], [0], [1], [0, 0, 1, 1], [], []>} : vector<16x208xbf16>, vector<208x192xbf16>, vector<16x192xf32> -> vector<16x192xf32>
    %31 = arith.addf %26, %30 : vector<16x192xf32>
    %cst_20 = arith.constant 0.000000e+00 : f32
    %32 = vector.broadcast %cst_20 : f32 to vector<16x192xf32>
    %33 = arith.maximumf %31, %32 : vector<16x192xf32>
    %c0_21 = arith.constant 0 : index
    %c0_22 = arith.constant 0 : index
    %c0_23 = arith.constant 0 : index
    %34 = vector.load %arg4[%c0_21, %c0_22, %c0_23] : memref<1x16x192xf32, #tpu.memory_space<vmem>>, vector<1x16x192xf32>
    %35 = vector.shape_cast %34 : vector<1x16x192xf32> to vector<16x192xf32>
    %36 = vector.shape_cast %33 : vector<16x192xf32> to vector<1x16x192xf32>
    tpu.vector_store %arg4[%c0_21, %c0_22, %c0_23], %36 {strides = array<i32>} : memref<1x16x192xf32, #tpu.memory_space<vmem>>, vector<1x16x192xf32>,
    return
  }
  func.func @transform_0(%arg0: i32) -> (i32, i32, i32) {
    %c0_i32 = arith.constant 0 : i32
    %c0_i32_0 = arith.constant 0 : i32
    %c0_i32_1 = arith.constant 0 : i32
    return %arg0, %c0_i32, %c0_i32_0 : i32, i32, i32
  }
  func.func @transform_1(%arg0: i32) -> (i32, i32, i32) {
    %c0_i32 = arith.constant 0 : i32
    %c0_i32_0 = arith.constant 0 : i32
    %c0_i32_1 = arith.constant 0 : i32
    %c0_i32_2 = arith.constant 0 : i32
    return %c0_i32, %c0_i32_0, %c0_i32_1 : i32, i32, i32
  }
  func.func @transform_2(%arg0: i32) -> (i32, i32) {
    %c0_i32 = arith.constant 0 : i32
    %c0_i32_0 = arith.constant 0 : i32
    %c0_i32_1 = arith.constant 0 : i32
    return %c0_i32, %c0_i32_0 : i32, i32
  }
  func.func @transform_3(%arg0: i32) -> (i32, i32, i32) {
    %c0_i32 = arith.constant 0 : i32
    %c0_i32_0 = arith.constant 0 : i32
    %c0_i32_1 = arith.constant 0 : i32
    return %arg0, %c0_i32, %c0_i32_0 : i32, i32, i32
  }
}

module attributes {stable_mosaic.version = 11 : i64} {
  func.func @_conv_band_kernel(%arg0: i32, %arg1: memref<1x20x224xf32, #tpu.memory_space<vmem>>, %arg2: memref<5x224x192xbf16, #tpu.memory_space<vmem>>, %arg3: memref<1x192xf32, #tpu.memory_space<vmem>>, %arg4: memref<1x16x192xf32, #tpu.memory_space<vmem>>) attributes {dimension_semantics = [#tpu.dimension_semantics<parallel>], iteration_bounds = array<i64: 2>, scalar_prefetch = 0 : i64, scratch_operands = 0 : i64, tpu.core_type = #tpu.core_type<tc>, window_params = [{transform_indices = @transform_0, window_bounds = array<i64: 1, 20, 224>}, {pipeline_mode = #tpu.pipeline_mode<synchronous>, transform_indices = @transform_1, window_bounds = array<i64: 5, 224, 192>}, {pipeline_mode = #tpu.pipeline_mode<synchronous>, transform_indices = @transform_2, window_bounds = array<i64: 1, 192>}, {transform_indices = @transform_3, window_bounds = array<i64: 1, 16, 192>}]} {
    %c0 = arith.constant 0 : index
    %c0_0 = arith.constant 0 : index
    %c0_1 = arith.constant 0 : index
    %0 = vector.load %arg1[%c0, %c0_0, %c0_1] : memref<1x20x224xf32, #tpu.memory_space<vmem>>, vector<1x20x224xf32>
    %1 = vector.shape_cast %0 : vector<1x20x224xf32> to vector<20x224xf32>
    %2 = arith.truncf %1 : vector<20x224xf32> to vector<20x224xbf16>
    %cst = arith.constant 0.000000e+00 : f32
    %3 = vector.broadcast %cst : f32 to vector<16x192xf32>
    %c0_2 = arith.constant 0 : index
    %c0_3 = arith.constant 0 : index
    %4 = vector.load %arg3[%c0_2, %c0_3] : memref<1x192xf32, #tpu.memory_space<vmem>>, vector<1x192xf32>
    %5 = vector.broadcast %4 : vector<1x192xf32> to vector<16x192xf32>
    %6 = arith.addf %3, %5 : vector<16x192xf32>
    %7 = vector.extract_strided_slice %2 {offsets = [0, 0], sizes = [16, 224], strides = [1, 1]} : vector<20x224xbf16> to vector<16x224xbf16>
    %c0_4 = arith.constant 0 : index
    %c0_5 = arith.constant 0 : index
    %c0_6 = arith.constant 0 : index
    %8 = vector.load %arg2[%c0_4, %c0_5, %c0_6] : memref<5x224x192xbf16, #tpu.memory_space<vmem>>, vector<1x224x192xbf16>
    %9 = vector.shape_cast %8 : vector<1x224x192xbf16> to vector<224x192xbf16>
    %cst_7 = arith.constant dense<0.000000e+00> : vector<16x192xf32>
    %10 = tpu.matmul %7, %9, %cst_7 {dimension_numbers = #tpu.dot_dimension_numbers<[1], [0], [0], [1], [0, 0, 1, 1], [], []>} : vector<16x224xbf16>, vector<224x192xbf16>, vector<16x192xf32> -> vector<16x192xf32>
    %11 = arith.addf %6, %10 : vector<16x192xf32>
    %12 = vector.extract_strided_slice %2 {offsets = [1, 0], sizes = [16, 224], strides = [1, 1]} : vector<20x224xbf16> to vector<16x224xbf16>
    %c1 = arith.constant 1 : index
    %c0_8 = arith.constant 0 : index
    %c0_9 = arith.constant 0 : index
    %13 = vector.load %arg2[%c1, %c0_8, %c0_9] : memref<5x224x192xbf16, #tpu.memory_space<vmem>>, vector<1x224x192xbf16>
    %14 = vector.shape_cast %13 : vector<1x224x192xbf16> to vector<224x192xbf16>
    %cst_10 = arith.constant dense<0.000000e+00> : vector<16x192xf32>
    %15 = tpu.matmul %12, %14, %cst_10 {dimension_numbers = #tpu.dot_dimension_numbers<[1], [0], [0], [1], [0, 0, 1, 1], [], []>} : vector<16x224xbf16>, vector<224x192xbf16>, vector<16x192xf32> -> vector<16x192xf32>
    %16 = arith.addf %11, %15 : vector<16x192xf32>
    %17 = vector.extract_strided_slice %2 {offsets = [2, 0], sizes = [16, 224], strides = [1, 1]} : vector<20x224xbf16> to vector<16x224xbf16>
    %c2 = arith.constant 2 : index
    %c0_11 = arith.constant 0 : index
    %c0_12 = arith.constant 0 : index
    %18 = vector.load %arg2[%c2, %c0_11, %c0_12] : memref<5x224x192xbf16, #tpu.memory_space<vmem>>, vector<1x224x192xbf16>
    %19 = vector.shape_cast %18 : vector<1x224x192xbf16> to vector<224x192xbf16>
    %cst_13 = arith.constant dense<0.000000e+00> : vector<16x192xf32>
    %20 = tpu.matmul %17, %19, %cst_13 {dimension_numbers = #tpu.dot_dimension_numbers<[1], [0], [0], [1], [0, 0, 1, 1], [], []>} : vector<16x224xbf16>, vector<224x192xbf16>, vector<16x192xf32> -> vector<16x192xf32>
    %21 = arith.addf %16, %20 : vector<16x192xf32>
    %22 = vector.extract_strided_slice %2 {offsets = [3, 0], sizes = [16, 224], strides = [1, 1]} : vector<20x224xbf16> to vector<16x224xbf16>
    %c3 = arith.constant 3 : index
    %c0_14 = arith.constant 0 : index
    %c0_15 = arith.constant 0 : index
    %23 = vector.load %arg2[%c3, %c0_14, %c0_15] : memref<5x224x192xbf16, #tpu.memory_space<vmem>>, vector<1x224x192xbf16>
    %24 = vector.shape_cast %23 : vector<1x224x192xbf16> to vector<224x192xbf16>
    %cst_16 = arith.constant dense<0.000000e+00> : vector<16x192xf32>
    %25 = tpu.matmul %22, %24, %cst_16 {dimension_numbers = #tpu.dot_dimension_numbers<[1], [0], [0], [1], [0, 0, 1, 1], [], []>} : vector<16x224xbf16>, vector<224x192xbf16>, vector<16x192xf32> -> vector<16x192xf32>
    %26 = arith.addf %21, %25 : vector<16x192xf32>
    %27 = vector.extract_strided_slice %2 {offsets = [4, 0], sizes = [16, 224], strides = [1, 1]} : vector<20x224xbf16> to vector<16x224xbf16>
    %c4 = arith.constant 4 : index
    %c0_17 = arith.constant 0 : index
    %c0_18 = arith.constant 0 : index
    %28 = vector.load %arg2[%c4, %c0_17, %c0_18] : memref<5x224x192xbf16, #tpu.memory_space<vmem>>, vector<1x224x192xbf16>
    %29 = vector.shape_cast %28 : vector<1x224x192xbf16> to vector<224x192xbf16>
    %cst_19 = arith.constant dense<0.000000e+00> : vector<16x192xf32>
    %30 = tpu.matmul %27, %29, %cst_19 {dimension_numbers = #tpu.dot_dimension_numbers<[1], [0], [0], [1], [0, 0, 1, 1], [], []>} : vector<16x224xbf16>, vector<224x192xbf16>, vector<16x192xf32> -> vector<16x192xf32>
    %31 = arith.addf %26, %30 : vector<16x192xf32>
    %cst_20 = arith.constant 0.000000e+00 : f32
    %32 = vector.broadcast %cst_20 : f32 to vector<16x192xf32>
    %33 = arith.maximumf %31, %32 : vector<16x192xf32>
    %c0_21 = arith.constant 0 : index
    %c0_22 = arith.constant 0 : index
    %c0_23 = arith.constant 0 : index
    %34 = vector.load %arg4[%c0_21, %c0_22, %c0_23] : memref<1x16x192xf32, #tpu.memory_space<vmem>>, vector<1x16x192xf32>
    %35 = vector.shape_cast %34 : vector<1x16x192xf32> to vector<16x192xf32>
    %36 = vector.shape_cast %33 : vector<16x192xf32> to vector<1x16x192xf32>
    tpu.vector_store %arg4[%c0_21, %c0_22, %c0_23], %36 {strides = array<i32>} : memref<1x16x192xf32, #tpu.memory_space<vmem>>, vector<1x16x192xf32>,
    return
  }
  func.func @transform_0(%arg0: i32) -> (i32, i32, i32) {
    %c0_i32 = arith.constant 0 : i32
    %c0_i32_0 = arith.constant 0 : i32
    %c0_i32_1 = arith.constant 0 : i32
    return %arg0, %c0_i32, %c0_i32_0 : i32, i32, i32
  }
  func.func @transform_1(%arg0: i32) -> (i32, i32, i32) {
    %c0_i32 = arith.constant 0 : i32
    %c0_i32_0 = arith.constant 0 : i32
    %c0_i32_1 = arith.constant 0 : i32
    %c0_i32_2 = arith.constant 0 : i32
    return %c0_i32, %c0_i32_0, %c0_i32_1 : i32, i32, i32
  }
  func.func @transform_2(%arg0: i32) -> (i32, i32) {
    %c0_i32 = arith.constant 0 : i32
    %c0_i32_0 = arith.constant 0 : i32
    %c0_i32_1 = arith.constant 0 : i32
    return %c0_i32, %c0_i32_0 : i32, i32
  }
  func.func @transform_3(%arg0: i32) -> (i32, i32, i32) {
    %c0_i32 = arith.constant 0 : i32
    %c0_i32_0 = arith.constant 0 : i32
    %c0_i32_1 = arith.constant 0 : i32
    return %arg0, %c0_i32, %c0_i32_0 : i32, i32, i32
  }
}

module attributes {stable_mosaic.version = 11 : i64} {
  func.func @_conv_band_kernel(%arg0: i32, %arg1: memref<1x20x224xf32, #tpu.memory_space<vmem>>, %arg2: memref<5x224x192xbf16, #tpu.memory_space<vmem>>, %arg3: memref<1x192xf32, #tpu.memory_space<vmem>>, %arg4: memref<1x8x192xf32, #tpu.memory_space<vmem>>) attributes {dimension_semantics = [#tpu.dimension_semantics<parallel>], iteration_bounds = array<i64: 2>, scalar_prefetch = 0 : i64, scratch_operands = 0 : i64, tpu.core_type = #tpu.core_type<tc>, window_params = [{transform_indices = @transform_0, window_bounds = array<i64: 1, 20, 224>}, {pipeline_mode = #tpu.pipeline_mode<synchronous>, transform_indices = @transform_1, window_bounds = array<i64: 5, 224, 192>}, {pipeline_mode = #tpu.pipeline_mode<synchronous>, transform_indices = @transform_2, window_bounds = array<i64: 1, 192>}, {transform_indices = @transform_3, window_bounds = array<i64: 1, 8, 192>}]} {
    %c0 = arith.constant 0 : index
    %c0_0 = arith.constant 0 : index
    %c0_1 = arith.constant 0 : index
    %0 = vector.load %arg1[%c0, %c0_0, %c0_1] : memref<1x20x224xf32, #tpu.memory_space<vmem>>, vector<1x20x224xf32>
    %1 = vector.shape_cast %0 : vector<1x20x224xf32> to vector<20x224xf32>
    %2 = arith.truncf %1 : vector<20x224xf32> to vector<20x224xbf16>
    %cst = arith.constant 0.000000e+00 : f32
    %3 = vector.broadcast %cst : f32 to vector<8x192xf32>
    %c0_2 = arith.constant 0 : index
    %c0_3 = arith.constant 0 : index
    %4 = vector.load %arg3[%c0_2, %c0_3] : memref<1x192xf32, #tpu.memory_space<vmem>>, vector<1x192xf32>
    %5 = vector.broadcast %4 : vector<1x192xf32> to vector<8x192xf32>
    %6 = arith.addf %3, %5 : vector<8x192xf32>
    %7 = vector.extract_strided_slice %2 {offsets = [0, 0], sizes = [8, 224], strides = [1, 1]} : vector<20x224xbf16> to vector<8x224xbf16>
    %c0_4 = arith.constant 0 : index
    %c0_5 = arith.constant 0 : index
    %c0_6 = arith.constant 0 : index
    %8 = vector.load %arg2[%c0_4, %c0_5, %c0_6] : memref<5x224x192xbf16, #tpu.memory_space<vmem>>, vector<1x224x192xbf16>
    %9 = vector.shape_cast %8 : vector<1x224x192xbf16> to vector<224x192xbf16>
    %cst_7 = arith.constant dense<0.000000e+00> : vector<8x192xf32>
    %10 = tpu.matmul %7, %9, %cst_7 {dimension_numbers = #tpu.dot_dimension_numbers<[1], [0], [0], [1], [0, 0, 1, 1], [], []>} : vector<8x224xbf16>, vector<224x192xbf16>, vector<8x192xf32> -> vector<8x192xf32>
    %11 = arith.addf %6, %10 : vector<8x192xf32>
    %12 = vector.extract_strided_slice %2 {offsets = [10, 0], sizes = [8, 224], strides = [1, 1]} : vector<20x224xbf16> to vector<8x224xbf16>
    %c1 = arith.constant 1 : index
    %c0_8 = arith.constant 0 : index
    %c0_9 = arith.constant 0 : index
    %13 = vector.load %arg2[%c1, %c0_8, %c0_9] : memref<5x224x192xbf16, #tpu.memory_space<vmem>>, vector<1x224x192xbf16>
    %14 = vector.shape_cast %13 : vector<1x224x192xbf16> to vector<224x192xbf16>
    %cst_10 = arith.constant dense<0.000000e+00> : vector<8x192xf32>
    %15 = tpu.matmul %12, %14, %cst_10 {dimension_numbers = #tpu.dot_dimension_numbers<[1], [0], [0], [1], [0, 0, 1, 1], [], []>} : vector<8x224xbf16>, vector<224x192xbf16>, vector<8x192xf32> -> vector<8x192xf32>
    %16 = arith.addf %11, %15 : vector<8x192xf32>
    %17 = vector.extract_strided_slice %2 {offsets = [1, 0], sizes = [8, 224], strides = [1, 1]} : vector<20x224xbf16> to vector<8x224xbf16>
    %c2 = arith.constant 2 : index
    %c0_11 = arith.constant 0 : index
    %c0_12 = arith.constant 0 : index
    %18 = vector.load %arg2[%c2, %c0_11, %c0_12] : memref<5x224x192xbf16, #tpu.memory_space<vmem>>, vector<1x224x192xbf16>
    %19 = vector.shape_cast %18 : vector<1x224x192xbf16> to vector<224x192xbf16>
    %cst_13 = arith.constant dense<0.000000e+00> : vector<8x192xf32>
    %20 = tpu.matmul %17, %19, %cst_13 {dimension_numbers = #tpu.dot_dimension_numbers<[1], [0], [0], [1], [0, 0, 1, 1], [], []>} : vector<8x224xbf16>, vector<224x192xbf16>, vector<8x192xf32> -> vector<8x192xf32>
    %21 = arith.addf %16, %20 : vector<8x192xf32>
    %22 = vector.extract_strided_slice %2 {offsets = [11, 0], sizes = [8, 224], strides = [1, 1]} : vector<20x224xbf16> to vector<8x224xbf16>
    %c3 = arith.constant 3 : index
    %c0_14 = arith.constant 0 : index
    %c0_15 = arith.constant 0 : index
    %23 = vector.load %arg2[%c3, %c0_14, %c0_15] : memref<5x224x192xbf16, #tpu.memory_space<vmem>>, vector<1x224x192xbf16>
    %24 = vector.shape_cast %23 : vector<1x224x192xbf16> to vector<224x192xbf16>
    %cst_16 = arith.constant dense<0.000000e+00> : vector<8x192xf32>
    %25 = tpu.matmul %22, %24, %cst_16 {dimension_numbers = #tpu.dot_dimension_numbers<[1], [0], [0], [1], [0, 0, 1, 1], [], []>} : vector<8x224xbf16>, vector<224x192xbf16>, vector<8x192xf32> -> vector<8x192xf32>
    %26 = arith.addf %21, %25 : vector<8x192xf32>
    %27 = vector.extract_strided_slice %2 {offsets = [2, 0], sizes = [8, 224], strides = [1, 1]} : vector<20x224xbf16> to vector<8x224xbf16>
    %c4 = arith.constant 4 : index
    %c0_17 = arith.constant 0 : index
    %c0_18 = arith.constant 0 : index
    %28 = vector.load %arg2[%c4, %c0_17, %c0_18] : memref<5x224x192xbf16, #tpu.memory_space<vmem>>, vector<1x224x192xbf16>
    %29 = vector.shape_cast %28 : vector<1x224x192xbf16> to vector<224x192xbf16>
    %cst_19 = arith.constant dense<0.000000e+00> : vector<8x192xf32>
    %30 = tpu.matmul %27, %29, %cst_19 {dimension_numbers = #tpu.dot_dimension_numbers<[1], [0], [0], [1], [0, 0, 1, 1], [], []>} : vector<8x224xbf16>, vector<224x192xbf16>, vector<8x192xf32> -> vector<8x192xf32>
    %31 = arith.addf %26, %30 : vector<8x192xf32>
    %cst_20 = arith.constant 0.000000e+00 : f32
    %32 = vector.broadcast %cst_20 : f32 to vector<8x192xf32>
    %33 = arith.maximumf %31, %32 : vector<8x192xf32>
    %c0_21 = arith.constant 0 : index
    %c0_22 = arith.constant 0 : index
    %c0_23 = arith.constant 0 : index
    %34 = vector.load %arg4[%c0_21, %c0_22, %c0_23] : memref<1x8x192xf32, #tpu.memory_space<vmem>>, vector<1x8x192xf32>
    %35 = vector.shape_cast %34 : vector<1x8x192xf32> to vector<8x192xf32>
    %36 = vector.shape_cast %33 : vector<8x192xf32> to vector<1x8x192xf32>
    tpu.vector_store %arg4[%c0_21, %c0_22, %c0_23], %36 {strides = array<i32>} : memref<1x8x192xf32, #tpu.memory_space<vmem>>, vector<1x8x192xf32>,
    return
  }
  func.func @transform_0(%arg0: i32) -> (i32, i32, i32) {
    %c0_i32 = arith.constant 0 : i32
    %c0_i32_0 = arith.constant 0 : i32
    %c0_i32_1 = arith.constant 0 : i32
    return %arg0, %c0_i32, %c0_i32_0 : i32, i32, i32
  }
  func.func @transform_1(%arg0: i32) -> (i32, i32, i32) {
    %c0_i32 = arith.constant 0 : i32
    %c0_i32_0 = arith.constant 0 : i32
    %c0_i32_1 = arith.constant 0 : i32
    %c0_i32_2 = arith.constant 0 : i32
    return %c0_i32, %c0_i32_0, %c0_i32_1 : i32, i32, i32
  }
  func.func @transform_2(%arg0: i32) -> (i32, i32) {
    %c0_i32 = arith.constant 0 : i32
    %c0_i32_0 = arith.constant 0 : i32
    %c0_i32_1 = arith.constant 0 : i32
    return %c0_i32, %c0_i32_0 : i32, i32
  }
  func.func @transform_3(%arg0: i32) -> (i32, i32, i32) {
    %c0_i32 = arith.constant 0 : i32
    %c0_i32_0 = arith.constant 0 : i32
    %c0_i32_1 = arith.constant 0 : i32
    return %arg0, %c0_i32, %c0_i32_0 : i32, i32, i32
  }
}

module attributes {stable_mosaic.version = 11 : i64} {
  func.func @_vae_head_kernel(%arg0: i32, %arg1: memref<2x1536xf32, #tpu.memory_space<vmem>>, %arg2: memref<1536x16xbf16, #tpu.memory_space<vmem>>, %arg3: memref<1536x16xbf16, #tpu.memory_space<vmem>>, %arg4: memref<1x16xf32, #tpu.memory_space<vmem>>, %arg5: memref<1x16xf32, #tpu.memory_space<vmem>>, %arg6: memref<2x16xf32, #tpu.memory_space<vmem>>, %arg7: memref<2x16xf32, #tpu.memory_space<vmem>>, %arg8: memref<2x16xf32, #tpu.memory_space<vmem>>, %arg9: memref<2x16xf32, #tpu.memory_space<vmem>>, %arg10: memref<2x16xf32, #tpu.memory_space<vmem>>) attributes {dimension_semantics = [#tpu.dimension_semantics<arbitrary>], iteration_bounds = array<i64: 1>, scalar_prefetch = 0 : i64, scratch_operands = 0 : i64, tpu.core_type = #tpu.core_type<tc>, window_params = [{pipeline_mode = #tpu.pipeline_mode<synchronous>, transform_indices = @transform_0, window_bounds = array<i64: 2, 1536>}, {pipeline_mode = #tpu.pipeline_mode<synchronous>, transform_indices = @transform_1, window_bounds = array<i64: 1536, 16>}, {pipeline_mode = #tpu.pipeline_mode<synchronous>, transform_indices = @transform_2, window_bounds = array<i64: 1536, 16>}, {pipeline_mode = #tpu.pipeline_mode<synchronous>, transform_indices = @transform_3, window_bounds = array<i64: 1, 16>}, {pipeline_mode = #tpu.pipeline_mode<synchronous>, transform_indices = @transform_4, window_bounds = array<i64: 1, 16>}, {pipeline_mode = #tpu.pipeline_mode<synchronous>, transform_indices = @transform_5, window_bounds = array<i64: 2, 16>}, {pipeline_mode = #tpu.pipeline_mode<synchronous>, transform_indices = @transform_6, window_bounds = array<i64: 2, 16>}, {pipeline_mode = #tpu.pipeline_mode<synchronous>, transform_indices = @transform_7, window_bounds = array<i64: 2, 16>}, {pipeline_mode = #tpu.pipeline_mode<synchronous>, transform_indices = @transform_8, window_bounds = array<i64: 2, 16>}, {pipeline_mode = #tpu.pipeline_mode<synchronous>, transform_indices = @transform_9, window_bounds = array<i64: 2, 16>}]} {
    %c0 = arith.constant 0 : index
    %c0_0 = arith.constant 0 : index
    %0 = vector.load %arg1[%c0, %c0_0] : memref<2x1536xf32, #tpu.memory_space<vmem>>, vector<2x1536xf32>
    %1 = arith.truncf %0 : vector<2x1536xf32> to vector<2x1536xbf16>
    %c0_1 = arith.constant 0 : index
    %c0_2 = arith.constant 0 : index
    %2 = vector.load %arg2[%c0_1, %c0_2] : memref<1536x16xbf16, #tpu.memory_space<vmem>>, vector<1536x16xbf16>
    %cst = arith.constant dense<0.000000e+00> : vector<2x16xf32>
    %3 = tpu.matmul %1, %2, %cst {dimension_numbers = #tpu.dot_dimension_numbers<[1], [0], [0], [1], [0, 0, 1, 1], [], []>} : vector<2x1536xbf16>, vector<1536x16xbf16>, vector<2x16xf32> -> vector<2x16xf32>
    %c0_3 = arith.constant 0 : index
    %c0_4 = arith.constant 0 : index
    %4 = vector.load %arg4[%c0_3, %c0_4] : memref<1x16xf32, #tpu.memory_space<vmem>>, vector<1x16xf32>
    %5 = vector.broadcast %4 : vector<1x16xf32> to vector<2x16xf32>
    %6 = arith.addf %3, %5 : vector<2x16xf32>
    %c0_5 = arith.constant 0 : index
    %c0_6 = arith.constant 0 : index
    %7 = vector.load %arg3[%c0_5, %c0_6] : memref<1536x16xbf16, #tpu.memory_space<vmem>>, vector<1536x16xbf16>
    %cst_7 = arith.constant dense<0.000000e+00> : vector<2x16xf32>
    %8 = tpu.matmul %1, %7, %cst_7 {dimension_numbers = #tpu.dot_dimension_numbers<[1], [0], [0], [1], [0, 0, 1, 1], [], []>} : vector<2x1536xbf16>, vector<1536x16xbf16>, vector<2x16xf32> -> vector<2x16xf32>
    %c0_8 = arith.constant 0 : index
    %c0_9 = arith.constant 0 : index
    %9 = vector.load %arg5[%c0_8, %c0_9] : memref<1x16xf32, #tpu.memory_space<vmem>>, vector<1x16xf32>
    %10 = vector.broadcast %9 : vector<1x16xf32> to vector<2x16xf32>
    %11 = arith.addf %8, %10 : vector<2x16xf32>
    %cst_10 = arith.constant 5.000000e-01 : f32
    %12 = vector.broadcast %cst_10 : f32 to vector<2x16xf32>
    %13 = arith.mulf %11, %12 : vector<2x16xf32>
    %14 = math.exp %13 : vector<2x16xf32>
    %cst_11 = arith.constant 1.1920929E-7 : f32
    %15 = vector.broadcast %cst_11 : f32 to vector<2x16xf32>
    %16 = arith.maximumf %14, %15 : vector<2x16xf32>
    %c0_12 = arith.constant 0 : index
    %c0_13 = arith.constant 0 : index
    %17 = vector.load %arg6[%c0_12, %c0_13] : memref<2x16xf32, #tpu.memory_space<vmem>>, vector<2x16xf32>
    %18 = arith.mulf %16, %17 : vector<2x16xf32>
    %19 = arith.addf %6, %18 : vector<2x16xf32>
    %c0_14 = arith.constant 0 : index
    %c0_15 = arith.constant 0 : index
    %20 = vector.load %arg7[%c0_14, %c0_15] : memref<2x16xf32, #tpu.memory_space<vmem>>, vector<2x16xf32>
    tpu.vector_store %arg7[%c0_14, %c0_15], %6 {strides = array<i32>} : memref<2x16xf32, #tpu.memory_space<vmem>>, vector<2x16xf32>,
    %c0_16 = arith.constant 0 : index
    %c0_17 = arith.constant 0 : index
    %21 = vector.load %arg8[%c0_16, %c0_17] : memref<2x16xf32, #tpu.memory_space<vmem>>, vector<2x16xf32>
    tpu.vector_store %arg8[%c0_16, %c0_17], %11 {strides = array<i32>} : memref<2x16xf32, #tpu.memory_space<vmem>>, vector<2x16xf32>,
    %c0_18 = arith.constant 0 : index
    %c0_19 = arith.constant 0 : index
    %22 = vector.load %arg9[%c0_18, %c0_19] : memref<2x16xf32, #tpu.memory_space<vmem>>, vector<2x16xf32>
    tpu.vector_store %arg9[%c0_18, %c0_19], %14 {strides = array<i32>} : memref<2x16xf32, #tpu.memory_space<vmem>>, vector<2x16xf32>,
    %c0_20 = arith.constant 0 : index
    %c0_21 = arith.constant 0 : index
    %23 = vector.load %arg10[%c0_20, %c0_21] : memref<2x16xf32, #tpu.memory_space<vmem>>, vector<2x16xf32>
    tpu.vector_store %arg10[%c0_20, %c0_21], %19 {strides = array<i32>} : memref<2x16xf32, #tpu.memory_space<vmem>>, vector<2x16xf32>,
    return
  }
  func.func @transform_0(%arg0: i32) -> (i32, i32) {
    %c0_i32 = arith.constant 0 : i32
    %c0_i32_0 = arith.constant 0 : i32
    %c0_i32_1 = arith.constant 0 : i32
    return %c0_i32, %c0_i32_0 : i32, i32
  }
  func.func @transform_1(%arg0: i32) -> (i32, i32) {
    %c0_i32 = arith.constant 0 : i32
    %c0_i32_0 = arith.constant 0 : i32
    %c0_i32_1 = arith.constant 0 : i32
    return %c0_i32, %c0_i32_0 : i32, i32
  }
  func.func @transform_2(%arg0: i32) -> (i32, i32) {
    %c0_i32 = arith.constant 0 : i32
    %c0_i32_0 = arith.constant 0 : i32
    %c0_i32_1 = arith.constant 0 : i32
    return %c0_i32, %c0_i32_0 : i32, i32
  }
  func.func @transform_3(%arg0: i32) -> (i32, i32) {
    %c0_i32 = arith.constant 0 : i32
    %c0_i32_0 = arith.constant 0 : i32
    %c0_i32_1 = arith.constant 0 : i32
    return %c0_i32, %c0_i32_0 : i32, i32
  }
  func.func @transform_4(%arg0: i32) -> (i32, i32) {
    %c0_i32 = arith.constant 0 : i32
    %c0_i32_0 = arith.constant 0 : i32
    %c0_i32_1 = arith.constant 0 : i32
    return %c0_i32, %c0_i32_0 : i32, i32
  }
  func.func @transform_5(%arg0: i32) -> (i32, i32) {
    %c0_i32 = arith.constant 0 : i32
    %c0_i32_0 = arith.constant 0 : i32
    %c0_i32_1 = arith.constant 0 : i32
    return %c0_i32, %c0_i32_0 : i32, i32
  }
  func.func @transform_6(%arg0: i32) -> (i32, i32) {
    %c0_i32 = arith.constant 0 : i32
    %c0_i32_0 = arith.constant 0 : i32
    %c0_i32_1 = arith.constant 0 : i32
    return %c0_i32, %c0_i32_0 : i32, i32
  }
  func.func @transform_7(%arg0: i32) -> (i32, i32) {
    %c0_i32 = arith.constant 0 : i32
    %c0_i32_0 = arith.constant 0 : i32
    %c0_i32_1 = arith.constant 0 : i32
    return %c0_i32, %c0_i32_0 : i32, i32
  }
  func.func @transform_8(%arg0: i32) -> (i32, i32) {
    %c0_i32 = arith.constant 0 : i32
    %c0_i32_0 = arith.constant 0 : i32
    %c0_i32_1 = arith.constant 0 : i32
    return %c0_i32, %c0_i32_0 : i32, i32
  }
  func.func @transform_9(%arg0: i32) -> (i32, i32) {
    %c0_i32 = arith.constant 0 : i32
    %c0_i32_0 = arith.constant 0 : i32
    %c0_i32_1 = arith.constant 0 : i32
    return %c0_i32, %c0_i32_0 : i32, i32
  }
}

module attributes {stable_mosaic.version = 11 : i64} {
  func.func @_fc_relu_kernel(%arg0: i32, %arg1: memref<2x16xf32, #tpu.memory_space<vmem>>, %arg2: memref<16x768xbf16, #tpu.memory_space<vmem>>, %arg3: memref<1x768xf32, #tpu.memory_space<vmem>>, %arg4: memref<2x768xf32, #tpu.memory_space<vmem>>) attributes {dimension_semantics = [#tpu.dimension_semantics<parallel>], iteration_bounds = array<i64: 2>, scalar_prefetch = 0 : i64, scratch_operands = 0 : i64, tpu.core_type = #tpu.core_type<tc>, window_params = [{pipeline_mode = #tpu.pipeline_mode<synchronous>, transform_indices = @transform_0, window_bounds = array<i64: 2, 16>}, {transform_indices = @transform_1, window_bounds = array<i64: 16, 768>}, {transform_indices = @transform_2, window_bounds = array<i64: 1, 768>}, {transform_indices = @transform_3, window_bounds = array<i64: 2, 768>}]} {
    %c0 = arith.constant 0 : index
    %c0_0 = arith.constant 0 : index
    %0 = vector.load %arg1[%c0, %c0_0] : memref<2x16xf32, #tpu.memory_space<vmem>>, vector<2x16xf32>
    %1 = arith.truncf %0 : vector<2x16xf32> to vector<2x16xbf16>
    %c0_1 = arith.constant 0 : index
    %c0_2 = arith.constant 0 : index
    %2 = vector.load %arg2[%c0_1, %c0_2] : memref<16x768xbf16, #tpu.memory_space<vmem>>, vector<16x768xbf16>
    %cst = arith.constant dense<0.000000e+00> : vector<2x768xf32>
    %3 = tpu.matmul %1, %2, %cst {dimension_numbers = #tpu.dot_dimension_numbers<[1], [0], [0], [1], [0, 0, 1, 1], [], []>} : vector<2x16xbf16>, vector<16x768xbf16>, vector<2x768xf32> -> vector<2x768xf32>
    %c0_3 = arith.constant 0 : index
    %c0_4 = arith.constant 0 : index
    %4 = vector.load %arg3[%c0_3, %c0_4] : memref<1x768xf32, #tpu.memory_space<vmem>>, vector<1x768xf32>
    %5 = vector.broadcast %4 : vector<1x768xf32> to vector<2x768xf32>
    %6 = arith.addf %3, %5 : vector<2x768xf32>
    %cst_5 = arith.constant 0.000000e+00 : f32
    %7 = vector.broadcast %cst_5 : f32 to vector<2x768xf32>
    %8 = arith.maximumf %6, %7 : vector<2x768xf32>
    %c0_6 = arith.constant 0 : index
    %c0_7 = arith.constant 0 : index
    %9 = vector.load %arg4[%c0_6, %c0_7] : memref<2x768xf32, #tpu.memory_space<vmem>>, vector<2x768xf32>
    tpu.vector_store %arg4[%c0_6, %c0_7], %8 {strides = array<i32>} : memref<2x768xf32, #tpu.memory_space<vmem>>, vector<2x768xf32>,
    return
  }
  func.func @transform_0(%arg0: i32) -> (i32, i32) {
    %c0_i32 = arith.constant 0 : i32
    %c0_i32_0 = arith.constant 0 : i32
    %c0_i32_1 = arith.constant 0 : i32
    return %c0_i32, %c0_i32_0 : i32, i32
  }
  func.func @transform_1(%arg0: i32) -> (i32, i32) {
    %c0_i32 = arith.constant 0 : i32
    %c0_i32_0 = arith.constant 0 : i32
    return %c0_i32, %arg0 : i32, i32
  }
  func.func @transform_2(%arg0: i32) -> (i32, i32) {
    %c0_i32 = arith.constant 0 : i32
    %c0_i32_0 = arith.constant 0 : i32
    return %c0_i32, %arg0 : i32, i32
  }
  func.func @transform_3(%arg0: i32) -> (i32, i32) {
    %c0_i32 = arith.constant 0 : i32
    %c0_i32_0 = arith.constant 0 : i32
    return %c0_i32, %arg0 : i32, i32
  }
}

module attributes {stable_mosaic.version = 11 : i64} {
  func.func @_conv_band_kernel(%arg0: i32, %arg1: memref<1x10x224xf32, #tpu.memory_space<vmem>>, %arg2: memref<3x224x384xbf16, #tpu.memory_space<vmem>>, %arg3: memref<1x384xf32, #tpu.memory_space<vmem>>, %arg4: memref<1x8x384xf32, #tpu.memory_space<vmem>>) attributes {dimension_semantics = [#tpu.dimension_semantics<parallel>], iteration_bounds = array<i64: 2>, scalar_prefetch = 0 : i64, scratch_operands = 0 : i64, tpu.core_type = #tpu.core_type<tc>, window_params = [{transform_indices = @transform_0, window_bounds = array<i64: 1, 10, 224>}, {pipeline_mode = #tpu.pipeline_mode<synchronous>, transform_indices = @transform_1, window_bounds = array<i64: 3, 224, 384>}, {pipeline_mode = #tpu.pipeline_mode<synchronous>, transform_indices = @transform_2, window_bounds = array<i64: 1, 384>}, {transform_indices = @transform_3, window_bounds = array<i64: 1, 8, 384>}]} {
    %c0 = arith.constant 0 : index
    %c0_0 = arith.constant 0 : index
    %c0_1 = arith.constant 0 : index
    %0 = vector.load %arg1[%c0, %c0_0, %c0_1] : memref<1x10x224xf32, #tpu.memory_space<vmem>>, vector<1x10x224xf32>
    %1 = vector.shape_cast %0 : vector<1x10x224xf32> to vector<10x224xf32>
    %2 = arith.truncf %1 : vector<10x224xf32> to vector<10x224xbf16>
    %cst = arith.constant 0.000000e+00 : f32
    %3 = vector.broadcast %cst : f32 to vector<8x384xf32>
    %c0_2 = arith.constant 0 : index
    %c0_3 = arith.constant 0 : index
    %4 = vector.load %arg3[%c0_2, %c0_3] : memref<1x384xf32, #tpu.memory_space<vmem>>, vector<1x384xf32>
    %5 = vector.broadcast %4 : vector<1x384xf32> to vector<8x384xf32>
    %6 = arith.addf %3, %5 : vector<8x384xf32>
    %7 = vector.extract_strided_slice %2 {offsets = [0, 0], sizes = [8, 224], strides = [1, 1]} : vector<10x224xbf16> to vector<8x224xbf16>
    %c0_4 = arith.constant 0 : index
    %c0_5 = arith.constant 0 : index
    %c0_6 = arith.constant 0 : index
    %8 = vector.load %arg2[%c0_4, %c0_5, %c0_6] : memref<3x224x384xbf16, #tpu.memory_space<vmem>>, vector<1x224x384xbf16>
    %9 = vector.shape_cast %8 : vector<1x224x384xbf16> to vector<224x384xbf16>
    %cst_7 = arith.constant dense<0.000000e+00> : vector<8x384xf32>
    %10 = tpu.matmul %7, %9, %cst_7 {dimension_numbers = #tpu.dot_dimension_numbers<[1], [0], [0], [1], [0, 0, 1, 1], [], []>} : vector<8x224xbf16>, vector<224x384xbf16>, vector<8x384xf32> -> vector<8x384xf32>
    %11 = arith.addf %6, %10 : vector<8x384xf32>
    %12 = vector.extract_strided_slice %2 {offsets = [1, 0], sizes = [8, 224], strides = [1, 1]} : vector<10x224xbf16> to vector<8x224xbf16>
    %c1 = arith.constant 1 : index
    %c0_8 = arith.constant 0 : index
    %c0_9 = arith.constant 0 : index
    %13 = vector.load %arg2[%c1, %c0_8, %c0_9] : memref<3x224x384xbf16, #tpu.memory_space<vmem>>, vector<1x224x384xbf16>
    %14 = vector.shape_cast %13 : vector<1x224x384xbf16> to vector<224x384xbf16>
    %cst_10 = arith.constant dense<0.000000e+00> : vector<8x384xf32>
    %15 = tpu.matmul %12, %14, %cst_10 {dimension_numbers = #tpu.dot_dimension_numbers<[1], [0], [0], [1], [0, 0, 1, 1], [], []>} : vector<8x224xbf16>, vector<224x384xbf16>, vector<8x384xf32> -> vector<8x384xf32>
    %16 = arith.addf %11, %15 : vector<8x384xf32>
    %17 = vector.extract_strided_slice %2 {offsets = [2, 0], sizes = [8, 224], strides = [1, 1]} : vector<10x224xbf16> to vector<8x224xbf16>
    %c2 = arith.constant 2 : index
    %c0_11 = arith.constant 0 : index
    %c0_12 = arith.constant 0 : index
    %18 = vector.load %arg2[%c2, %c0_11, %c0_12] : memref<3x224x384xbf16, #tpu.memory_space<vmem>>, vector<1x224x384xbf16>
    %19 = vector.shape_cast %18 : vector<1x224x384xbf16> to vector<224x384xbf16>
    %cst_13 = arith.constant dense<0.000000e+00> : vector<8x384xf32>
    %20 = tpu.matmul %17, %19, %cst_13 {dimension_numbers = #tpu.dot_dimension_numbers<[1], [0], [0], [1], [0, 0, 1, 1], [], []>} : vector<8x224xbf16>, vector<224x384xbf16>, vector<8x384xf32> -> vector<8x384xf32>
    %21 = arith.addf %16, %20 : vector<8x384xf32>
    %cst_14 = arith.constant 0.000000e+00 : f32
    %22 = vector.broadcast %cst_14 : f32 to vector<8x384xf32>
    %23 = arith.maximumf %21, %22 : vector<8x384xf32>
    %c0_15 = arith.constant 0 : index
    %c0_16 = arith.constant 0 : index
    %c0_17 = arith.constant 0 : index
    %24 = vector.load %arg4[%c0_15, %c0_16, %c0_17] : memref<1x8x384xf32, #tpu.memory_space<vmem>>, vector<1x8x384xf32>
    %25 = vector.shape_cast %24 : vector<1x8x384xf32> to vector<8x384xf32>
    %26 = vector.shape_cast %23 : vector<8x384xf32> to vector<1x8x384xf32>
    tpu.vector_store %arg4[%c0_15, %c0_16, %c0_17], %26 {strides = array<i32>} : memref<1x8x384xf32, #tpu.memory_space<vmem>>, vector<1x8x384xf32>,
    return
  }
  func.func @transform_0(%arg0: i32) -> (i32, i32, i32) {
    %c0_i32 = arith.constant 0 : i32
    %c0_i32_0 = arith.constant 0 : i32
    %c0_i32_1 = arith.constant 0 : i32
    return %arg0, %c0_i32, %c0_i32_0 : i32, i32, i32
  }
  func.func @transform_1(%arg0: i32) -> (i32, i32, i32) {
    %c0_i32 = arith.constant 0 : i32
    %c0_i32_0 = arith.constant 0 : i32
    %c0_i32_1 = arith.constant 0 : i32
    %c0_i32_2 = arith.constant 0 : i32
    return %c0_i32, %c0_i32_0, %c0_i32_1 : i32, i32, i32
  }
  func.func @transform_2(%arg0: i32) -> (i32, i32) {
    %c0_i32 = arith.constant 0 : i32
    %c0_i32_0 = arith.constant 0 : i32
    %c0_i32_1 = arith.constant 0 : i32
    return %c0_i32, %c0_i32_0 : i32, i32
  }
  func.func @transform_3(%arg0: i32) -> (i32, i32, i32) {
    %c0_i32 = arith.constant 0 : i32
    %c0_i32_0 = arith.constant 0 : i32
    %c0_i32_1 = arith.constant 0 : i32
    return %arg0, %c0_i32, %c0_i32_0 : i32, i32, i32
  }
}

module attributes {stable_mosaic.version = 11 : i64} {
  func.func @_conv_band_kernel(%arg0: i32, %arg1: memref<1x18x208xf32, #tpu.memory_space<vmem>>, %arg2: memref<3x208x384xbf16, #tpu.memory_space<vmem>>, %arg3: memref<1x384xf32, #tpu.memory_space<vmem>>, %arg4: memref<1x16x384xf32, #tpu.memory_space<vmem>>) attributes {dimension_semantics = [#tpu.dimension_semantics<parallel>], iteration_bounds = array<i64: 2>, scalar_prefetch = 0 : i64, scratch_operands = 0 : i64, tpu.core_type = #tpu.core_type<tc>, window_params = [{transform_indices = @transform_0, window_bounds = array<i64: 1, 18, 208>}, {pipeline_mode = #tpu.pipeline_mode<synchronous>, transform_indices = @transform_1, window_bounds = array<i64: 3, 208, 384>}, {pipeline_mode = #tpu.pipeline_mode<synchronous>, transform_indices = @transform_2, window_bounds = array<i64: 1, 384>}, {transform_indices = @transform_3, window_bounds = array<i64: 1, 16, 384>}]} {
    %c0 = arith.constant 0 : index
    %c0_0 = arith.constant 0 : index
    %c0_1 = arith.constant 0 : index
    %0 = vector.load %arg1[%c0, %c0_0, %c0_1] : memref<1x18x208xf32, #tpu.memory_space<vmem>>, vector<1x18x208xf32>
    %1 = vector.shape_cast %0 : vector<1x18x208xf32> to vector<18x208xf32>
    %2 = arith.truncf %1 : vector<18x208xf32> to vector<18x208xbf16>
    %cst = arith.constant 0.000000e+00 : f32
    %3 = vector.broadcast %cst : f32 to vector<16x384xf32>
    %c0_2 = arith.constant 0 : index
    %c0_3 = arith.constant 0 : index
    %4 = vector.load %arg3[%c0_2, %c0_3] : memref<1x384xf32, #tpu.memory_space<vmem>>, vector<1x384xf32>
    %5 = vector.broadcast %4 : vector<1x384xf32> to vector<16x384xf32>
    %6 = arith.addf %3, %5 : vector<16x384xf32>
    %7 = vector.extract_strided_slice %2 {offsets = [0, 0], sizes = [16, 208], strides = [1, 1]} : vector<18x208xbf16> to vector<16x208xbf16>
    %c0_4 = arith.constant 0 : index
    %c0_5 = arith.constant 0 : index
    %c0_6 = arith.constant 0 : index
    %8 = vector.load %arg2[%c0_4, %c0_5, %c0_6] : memref<3x208x384xbf16, #tpu.memory_space<vmem>>, vector<1x208x384xbf16>
    %9 = vector.shape_cast %8 : vector<1x208x384xbf16> to vector<208x384xbf16>
    %cst_7 = arith.constant dense<0.000000e+00> : vector<16x384xf32>
    %10 = tpu.matmul %7, %9, %cst_7 {dimension_numbers = #tpu.dot_dimension_numbers<[1], [0], [0], [1], [0, 0, 1, 1], [], []>} : vector<16x208xbf16>, vector<208x384xbf16>, vector<16x384xf32> -> vector<16x384xf32>
    %11 = arith.addf %6, %10 : vector<16x384xf32>
    %12 = vector.extract_strided_slice %2 {offsets = [1, 0], sizes = [16, 208], strides = [1, 1]} : vector<18x208xbf16> to vector<16x208xbf16>
    %c1 = arith.constant 1 : index
    %c0_8 = arith.constant 0 : index
    %c0_9 = arith.constant 0 : index
    %13 = vector.load %arg2[%c1, %c0_8, %c0_9] : memref<3x208x384xbf16, #tpu.memory_space<vmem>>, vector<1x208x384xbf16>
    %14 = vector.shape_cast %13 : vector<1x208x384xbf16> to vector<208x384xbf16>
    %cst_10 = arith.constant dense<0.000000e+00> : vector<16x384xf32>
    %15 = tpu.matmul %12, %14, %cst_10 {dimension_numbers = #tpu.dot_dimension_numbers<[1], [0], [0], [1], [0, 0, 1, 1], [], []>} : vector<16x208xbf16>, vector<208x384xbf16>, vector<16x384xf32> -> vector<16x384xf32>
    %16 = arith.addf %11, %15 : vector<16x384xf32>
    %17 = vector.extract_strided_slice %2 {offsets = [2, 0], sizes = [16, 208], strides = [1, 1]} : vector<18x208xbf16> to vector<16x208xbf16>
    %c2 = arith.constant 2 : index
    %c0_11 = arith.constant 0 : index
    %c0_12 = arith.constant 0 : index
    %18 = vector.load %arg2[%c2, %c0_11, %c0_12] : memref<3x208x384xbf16, #tpu.memory_space<vmem>>, vector<1x208x384xbf16>
    %19 = vector.shape_cast %18 : vector<1x208x384xbf16> to vector<208x384xbf16>
    %cst_13 = arith.constant dense<0.000000e+00> : vector<16x384xf32>
    %20 = tpu.matmul %17, %19, %cst_13 {dimension_numbers = #tpu.dot_dimension_numbers<[1], [0], [0], [1], [0, 0, 1, 1], [], []>} : vector<16x208xbf16>, vector<208x384xbf16>, vector<16x384xf32> -> vector<16x384xf32>
    %21 = arith.addf %16, %20 : vector<16x384xf32>
    %cst_14 = arith.constant 0.000000e+00 : f32
    %22 = vector.broadcast %cst_14 : f32 to vector<16x384xf32>
    %23 = arith.maximumf %21, %22 : vector<16x384xf32>
    %c0_15 = arith.constant 0 : index
    %c0_16 = arith.constant 0 : index
    %c0_17 = arith.constant 0 : index
    %24 = vector.load %arg4[%c0_15, %c0_16, %c0_17] : memref<1x16x384xf32, #tpu.memory_space<vmem>>, vector<1x16x384xf32>
    %25 = vector.shape_cast %24 : vector<1x16x384xf32> to vector<16x384xf32>
    %26 = vector.shape_cast %23 : vector<16x384xf32> to vector<1x16x384xf32>
    tpu.vector_store %arg4[%c0_15, %c0_16, %c0_17], %26 {strides = array<i32>} : memref<1x16x384xf32, #tpu.memory_space<vmem>>, vector<1x16x384xf32>,
    return
  }
  func.func @transform_0(%arg0: i32) -> (i32, i32, i32) {
    %c0_i32 = arith.constant 0 : i32
    %c0_i32_0 = arith.constant 0 : i32
    %c0_i32_1 = arith.constant 0 : i32
    return %arg0, %c0_i32, %c0_i32_0 : i32, i32, i32
  }
  func.func @transform_1(%arg0: i32) -> (i32, i32, i32) {
    %c0_i32 = arith.constant 0 : i32
    %c0_i32_0 = arith.constant 0 : i32
    %c0_i32_1 = arith.constant 0 : i32
    %c0_i32_2 = arith.constant 0 : i32
    return %c0_i32, %c0_i32_0, %c0_i32_1 : i32, i32, i32
  }
  func.func @transform_2(%arg0: i32) -> (i32, i32) {
    %c0_i32 = arith.constant 0 : i32
    %c0_i32_0 = arith.constant 0 : i32
    %c0_i32_1 = arith.constant 0 : i32
    return %c0_i32, %c0_i32_0 : i32, i32
  }
  func.func @transform_3(%arg0: i32) -> (i32, i32, i32) {
    %c0_i32 = arith.constant 0 : i32
    %c0_i32_0 = arith.constant 0 : i32
    %c0_i32_1 = arith.constant 0 : i32
    return %arg0, %c0_i32, %c0_i32_0 : i32, i32, i32
  }
}

module attributes {stable_mosaic.version = 11 : i64} {
  func.func @_conv_band_kernel(%arg0: i32, %arg1: memref<1x34x200xf32, #tpu.memory_space<vmem>>, %arg2: memref<3x200x384xbf16, #tpu.memory_space<vmem>>, %arg3: memref<1x384xf32, #tpu.memory_space<vmem>>, %arg4: memref<1x32x384xf32, #tpu.memory_space<vmem>>) attributes {dimension_semantics = [#tpu.dimension_semantics<parallel>], iteration_bounds = array<i64: 2>, scalar_prefetch = 0 : i64, scratch_operands = 0 : i64, tpu.core_type = #tpu.core_type<tc>, window_params = [{transform_indices = @transform_0, window_bounds = array<i64: 1, 34, 200>}, {pipeline_mode = #tpu.pipeline_mode<synchronous>, transform_indices = @transform_1, window_bounds = array<i64: 3, 200, 384>}, {pipeline_mode = #tpu.pipeline_mode<synchronous>, transform_indices = @transform_2, window_bounds = array<i64: 1, 384>}, {transform_indices = @transform_3, window_bounds = array<i64: 1, 32, 384>}]} {
    %c0 = arith.constant 0 : index
    %c0_0 = arith.constant 0 : index
    %c0_1 = arith.constant 0 : index
    %0 = vector.load %arg1[%c0, %c0_0, %c0_1] : memref<1x34x200xf32, #tpu.memory_space<vmem>>, vector<1x34x200xf32>
    %1 = vector.shape_cast %0 : vector<1x34x200xf32> to vector<34x200xf32>
    %2 = arith.truncf %1 : vector<34x200xf32> to vector<34x200xbf16>
    %cst = arith.constant 0.000000e+00 : f32
    %3 = vector.broadcast %cst : f32 to vector<32x384xf32>
    %c0_2 = arith.constant 0 : index
    %c0_3 = arith.constant 0 : index
    %4 = vector.load %arg3[%c0_2, %c0_3] : memref<1x384xf32, #tpu.memory_space<vmem>>, vector<1x384xf32>
    %5 = vector.broadcast %4 : vector<1x384xf32> to vector<32x384xf32>
    %6 = arith.addf %3, %5 : vector<32x384xf32>
    %7 = vector.extract_strided_slice %2 {offsets = [0, 0], sizes = [32, 200], strides = [1, 1]} : vector<34x200xbf16> to vector<32x200xbf16>
    %c0_4 = arith.constant 0 : index
    %c0_5 = arith.constant 0 : index
    %c0_6 = arith.constant 0 : index
    %8 = vector.load %arg2[%c0_4, %c0_5, %c0_6] : memref<3x200x384xbf16, #tpu.memory_space<vmem>>, vector<1x200x384xbf16>
    %9 = vector.shape_cast %8 : vector<1x200x384xbf16> to vector<200x384xbf16>
    %cst_7 = arith.constant dense<0.000000e+00> : vector<32x384xf32>
    %10 = tpu.matmul %7, %9, %cst_7 {dimension_numbers = #tpu.dot_dimension_numbers<[1], [0], [0], [1], [0, 0, 1, 1], [], []>} : vector<32x200xbf16>, vector<200x384xbf16>, vector<32x384xf32> -> vector<32x384xf32>
    %11 = arith.addf %6, %10 : vector<32x384xf32>
    %12 = vector.extract_strided_slice %2 {offsets = [1, 0], sizes = [32, 200], strides = [1, 1]} : vector<34x200xbf16> to vector<32x200xbf16>
    %c1 = arith.constant 1 : index
    %c0_8 = arith.constant 0 : index
    %c0_9 = arith.constant 0 : index
    %13 = vector.load %arg2[%c1, %c0_8, %c0_9] : memref<3x200x384xbf16, #tpu.memory_space<vmem>>, vector<1x200x384xbf16>
    %14 = vector.shape_cast %13 : vector<1x200x384xbf16> to vector<200x384xbf16>
    %cst_10 = arith.constant dense<0.000000e+00> : vector<32x384xf32>
    %15 = tpu.matmul %12, %14, %cst_10 {dimension_numbers = #tpu.dot_dimension_numbers<[1], [0], [0], [1], [0, 0, 1, 1], [], []>} : vector<32x200xbf16>, vector<200x384xbf16>, vector<32x384xf32> -> vector<32x384xf32>
    %16 = arith.addf %11, %15 : vector<32x384xf32>
    %17 = vector.extract_strided_slice %2 {offsets = [2, 0], sizes = [32, 200], strides = [1, 1]} : vector<34x200xbf16> to vector<32x200xbf16>
    %c2 = arith.constant 2 : index
    %c0_11 = arith.constant 0 : index
    %c0_12 = arith.constant 0 : index
    %18 = vector.load %arg2[%c2, %c0_11, %c0_12] : memref<3x200x384xbf16, #tpu.memory_space<vmem>>, vector<1x200x384xbf16>
    %19 = vector.shape_cast %18 : vector<1x200x384xbf16> to vector<200x384xbf16>
    %cst_13 = arith.constant dense<0.000000e+00> : vector<32x384xf32>
    %20 = tpu.matmul %17, %19, %cst_13 {dimension_numbers = #tpu.dot_dimension_numbers<[1], [0], [0], [1], [0, 0, 1, 1], [], []>} : vector<32x200xbf16>, vector<200x384xbf16>, vector<32x384xf32> -> vector<32x384xf32>
    %21 = arith.addf %16, %20 : vector<32x384xf32>
    %c0_14 = arith.constant 0 : index
    %c0_15 = arith.constant 0 : index
    %c0_16 = arith.constant 0 : index
    %22 = vector.load %arg4[%c0_14, %c0_15, %c0_16] : memref<1x32x384xf32, #tpu.memory_space<vmem>>, vector<1x32x384xf32>
    %23 = vector.shape_cast %22 : vector<1x32x384xf32> to vector<32x384xf32>
    %24 = vector.shape_cast %21 : vector<32x384xf32> to vector<1x32x384xf32>
    tpu.vector_store %arg4[%c0_14, %c0_15, %c0_16], %24 {strides = array<i32>} : memref<1x32x384xf32, #tpu.memory_space<vmem>>, vector<1x32x384xf32>,
    return
  }
  func.func @transform_0(%arg0: i32) -> (i32, i32, i32) {
    %c0_i32 = arith.constant 0 : i32
    %c0_i32_0 = arith.constant 0 : i32
    %c0_i32_1 = arith.constant 0 : i32
    return %arg0, %c0_i32, %c0_i32_0 : i32, i32, i32
  }
  func.func @transform_1(%arg0: i32) -> (i32, i32, i32) {
    %c0_i32 = arith.constant 0 : i32
    %c0_i32_0 = arith.constant 0 : i32
    %c0_i32_1 = arith.constant 0 : i32
    %c0_i32_2 = arith.constant 0 : i32
    return %c0_i32, %c0_i32_0, %c0_i32_1 : i32, i32, i32
  }
  func.func @transform_2(%arg0: i32) -> (i32, i32) {
    %c0_i32 = arith.constant 0 : i32
    %c0_i32_0 = arith.constant 0 : i32
    %c0_i32_1 = arith.constant 0 : i32
    return %c0_i32, %c0_i32_0 : i32, i32
  }
  func.func @transform_3(%arg0: i32) -> (i32, i32, i32) {
    %c0_i32 = arith.constant 0 : i32
    %c0_i32_0 = arith.constant 0 : i32
    %c0_i32_1 = arith.constant 0 : i32
    return %arg0, %c0_i32, %c0_i32_0 : i32, i32, i32
  }
}

</mosaic_0001>

<bundles_post_ra>
// kernel: forward.12
= control target key start
LH: loop header
LB: loop body
LE: loop exit
PB: predicated region body
PF: predicated region fallthrough
CT: control target
= control target key end

     0   :  { %8 = vsyncpa [#allocation3], 0  ;;  %s2520_s12 = smov 0   ;;  %s3527_s0 = inlined_call_operand.vmem [shape: f32[2,68,200], index: 0, kind: input, shape index: {}]   ;;  %s3528_s1 = inlined_call_operand.vmem [shape: bf16[5,200,192], index: 1, kind: input, shape index: {}]   ;;  %s3529_s2 = inlined_call_operand.hbm [shape: f32[1,192], index: 2, kind: input, shape index: {}]   ;;  %s3530_s3 = inlined_call_operand.vmem [shape: f32[2,32,192], index: 3, kind: output, shape index: {}]  }
   0x1 LB: > { %s1704_s13 = sadd.s32 4294967295, %s2497_s12   ;;  %p1706_p0 = scmp.ge.s32.totalorder %s2497_s12, 1  ;;  %s2497_s12 = sphi %s2520_s12, %s14_s12  }
   0x2   : > { %p113_p1 = scmp.lt.s32.totalorder %s2497_s12, 3  ;;  %s128_s16 = sshll.u32 %s3529_s2, 4  ;;  %s129_s16 = int_to_ptr.hbm [resolvable:$true] %s128_s16 }
   0x3   : > { %p2446_p3 = scmp.eq.s32.totalorder %s1704_s13, 0  ;;  %s2499_s17 = smov [#allocation2]  }
   0x4   : > { %p114_p2 = pnand %p1706_p0, %p113_p1  ;;  %s130_s18 = sshll.u32 %s2499_s17, 4  ;;  %s131_s18 = int_to_ptr.vmem [resolvable:$true] %s130_s18 }
   0x6   : > { %p2442_p4 = pneg %p114_p2  ;;  %151 = sbr.rel (%p114_p2) target bundleno = 338 (0x152), region = 32 }
   0x8   : > { %p2443_p5 = pnand %p2446_p3, %p2442_p4 }
   0xa   : > { %2445 = dma.hbm_to_vmem [thread:$0]  (!%p2443_p5), %s129_s16, 32, %s131_s18, [#allocation3]  }
   0xb   : > { %2492 = dma.done.wait (%p2446_p3), [#allocation3], 32  }
   0xc   : > { %2494 = vsyncadd (%p2446_p3), [#allocation3], 4294967264  ;;  %p176_p6 = scmp.lt.s32.totalorder %s1704_s13, 1  ;;  %v1772_v0 = vld [vmem:[%s3528_s1 + $0x70] sm:$0xf]  ;;  %v246_v5 = vld [vmem:[%s3528_s1 + $0xc0] sm:$0xff] }
   0xd   : > { %v2332_v1 = vld [vmem:[%s3528_s1 + $0x74] sm:$0xf0]  ;;  %v2331_v2 = vld [vmem:[%s3528_s1 + $0x74] sm:$0xf]  ;;  %v1774_v4 = vld [vmem:[%s3528_s1 + $0x78] sm:$0xf0]  ;;  %v339_v8 = vunpack.c.h.b16 %v246_v5  ;;  %v338_v12 = vunpack.c.l.b16 %v246_v5 }
   0xe   : > { %v1773_v3 = vor.u32 %v2332_v1, %v1772_v0  ;;  %v1764_v6 = vld [vmem:[%s3528_s1 + $0x60] sm:$0xf]  ;;  %s3532_s13 = smov (!%p176_p6, %s1704_s13), 1  ;;  %v1777_v7 = vor.u32 %v2331_v2, %v1774_v4  ;;  %v2330_v9 = vld [vmem:[%s3528_s1 + $0x64] sm:$0xf0]  ;;  %vm397_vm0 = vcmask 1043456  }
   0xf   : > { %v2329_v10 = vld [vmem:[%s3528_s1 + $0x64] sm:$0xf]  ;;  %v1766_v11 = vld [vmem:[%s3528_s1 + $0x68] sm:$0xf0]  ;;  %v1765_v13 = vor.u32 %v2330_v9, %v1764_v6  ;;  %v2339_v14 = vld [vmem:[%s3528_s1 + $0xb4] sm:$0xf]  ;;  %v365_v15 = vpack.c.b16 %v339_v8, %v339_v8  ;;  %v364_v20 = vpack.c.b16 %v338_v12, %v338_v12 }
  0x10   : > { %404 = vmatpush.bf16.msra.mxu0 %v1773_v3  ;;  %442 = vmatpush.bf16.msra.mxu2 %v1777_v7  ;;  %v1769_v16 = vor.u32 %v2329_v10, %v1766_v11  ;;  %v1806_v17 = vld [vmem:[%s3528_s1 + $0xb8] sm:$0xf0]  ;;  %v1756_v18 = vld [vmem:[%s3528_s1 + $0x50] sm:$0xf]  ;;  %v2328_v19 = vld [vmem:[%s3528_s1 + $0x54] sm:$0xf0] }
  0x11   : > { %v2327_v21 = vld [vmem:[%s3528_s1 + $0x54] sm:$0xf]  ;;  %v1758_v22 = vld [vmem:[%s3528_s1 + $0x58] sm:$0xf0]  ;;  %v402_v23 = vsel %vm397_vm0, %v365_v15, 0  ;;  %v399_v24 = vsel %vm397_vm0, %v364_v20, 0  ;;  %v1809_v25 = vor.u32 %v2339_v14, %v1806_v17  ;;  %v1757_v26 = vor.u32 %v2328_v19, %v1756_v18 }
  0x12   : > { %s2437_s24 = smul.u32 144, %s3532_s13  ;;  %464 = vmatpush.bf16.msra.mxu3 %v402_v23  ;;  %v2337_v27 = vld [vmem:[%s3528_s1 + $0xa4] sm:$0xf]  ;;  %v1804_v28 = vld [vmem:[%s3528_s1 + $0xb0] sm:$0xf]  ;;  %v1761_v30 = vor.u32 %v2327_v21, %v1758_v22  ;;  %426 = vmatpush.bf16.msra.mxu1 %v399_v24  ;;  %v1838_v9 = vld [vmem:[%s3528_s1 + $0x188] sm:$0xff] }
  0x13   : > { %v2340_v29 = vld [vmem:[%s3528_s1 + $0xb4] sm:$0xf0]  ;;  %v1798_v31 = vld [vmem:[%s3528_s1 + $0xa8] sm:$0xf0]  ;;  %v1748_v32 = vld [vmem:[%s3528_s1 + $0x40] sm:$0xf]  ;;  %v621_v12 = vunpack.c.l.b16 %v1838_v9  ;;  %v622_v21 = vunpack.c.h.b16 %v1838_v9 }
  0x14   : > { %405 = vmatpush.bf16.msra.mxu0 %v1765_v13  ;;  %443 = vmatpush.bf16.msra.mxu2 %v1769_v16  ;;  %v2326_v33 = vld [vmem:[%s3528_s1 + $0x44] sm:$0xf0]  ;;  %v1805_v34 = vor.u32 %v2340_v29, %v1804_v28  ;;  %v2325_v35 = vld [vmem:[%s3528_s1 + $0x44] sm:$0xf]  ;;  %v1750_v36 = vld [vmem:[%s3528_s1 + $0x48] sm:$0xf0]  ;;  %s2617_s25 = scalar_lea.vmem %s3527_s0, %s2437_s24  ;;  %v1801_v40 = vor.u32 %v2337_v27, %v1798_v31 }
  0x15   : > { %v2335_v37 = vld [vmem:[%s3528_s1 + $0x94] sm:$0xf]  ;;  %v1796_v38 = vld [vmem:[%s3528_s1 + $0xa0] sm:$0xf]  ;;  %v2338_v39 = vld [vmem:[%s3528_s1 + $0xa4] sm:$0xf0]  ;;  %v1749_v41 = vor.u32 %v2326_v33, %v1748_v32  ;;  %v1753_v45 = vor.u32 %v2325_v35, %v1750_v36  ;;  %v647_v20 = vpack.c.b16 %v621_v12, %v621_v12  ;;  %v648_v35 = vpack.c.b16 %v622_v21, %v622_v21 }
  0x16   : > { %465 = vmatpush.bf16.msra.mxu3 %v1809_v25  ;;  %v1790_v42 = vld [vmem:[%s3528_s1 + $0x98] sm:$0xf0]  ;;  %v1740_v43 = vld [vmem:[%s3528_s1 + $0x30] sm:$0xf]  ;;  %v2324_v44 = vld [vmem:[%s3528_s1 + $0x34] sm:$0xf0]  ;;  %427 = vmatpush.bf16.msra.mxu1 %v1805_v34  ;;  %v1797_v48 = vor.u32 %v2338_v39, %v1796_v38 }
  0x17   : > { %v2323_v46 = vld [vmem:[%s3528_s1 + $0x34] sm:$0xf]  ;;  %v1742_v47 = vld [vmem:[%s3528_s1 + $0x38] sm:$0xf0]  ;;  %v1788_v49 = vld [vmem:[%s3528_s1 + $0x90] sm:$0xf]  ;;  %v1793_v56 = vor.u32 %v2335_v37, %v1790_v42  ;;  %v1741_v57 = vor.u32 %v2324_v44, %v1740_v43 }
  0x18   : > { %406 = vmatpush.bf16.msra.mxu0 %v1757_v26  ;;  %444 = vmatpush.bf16.msra.mxu2 %v1761_v30  ;;  %v2336_v50 = vld [vmem:[%s3528_s1 + $0x94] sm:$0xf0]  ;;  %v187_v51 = vld [vmem:[%s2617_s25] sm:$0xff]  ;;  %v188_v52 = vld [vmem:[%s2617_s25 + $0x8] sm:$0xff]  ;;  %v1745_v61 = vor.u32 %v2323_v46, %v1742_v47  ;;  %vm390_vm1 = vcmask 588800   ;;  %v680_v28 = vsel %vm397_vm0, %v647_v20, 0 }
  0x19   : > { %v189_v53 = vld [vmem:[%s2617_s25 + $0x10] sm:$0xff]  ;;  %v190_v54 = vld [vmem:[%s2617_s25 + $0x18] sm:$0xff]  ;;  %v2644_v55 = vpack.c.bf16 %v188_v52, %v187_v51  ;;  %v2333_v58 = vld [vmem:[%s3528_s1 + $0x84] sm:$0xf]  ;;  %v1789_v1 = vor.u32 %v2336_v50, %v1788_v49  ;;  %vm535_vm2 = vcmask 1046528   ;;  %s2316_s19 = sshll.u32 %s3532_s13, 6 }
  0x1a   : > { %466 = vmatpush.bf16.msra.mxu3 %v1801_v40  ;;  %v1782_v59 = vld [vmem:[%s3528_s1 + $0x88] sm:$0xf0]  ;;  %v2652_v60 = vpack.c.bf16 %v190_v54, %v189_v53  ;;  %428 = vmatpush.bf16.msra.mxu1 %v1797_v48  ;;  %v1732_v62 = vld [vmem:[%s3528_s1 + $0x20] sm:$0xf]  ;;  %v2322_v63 = vld [vmem:[%s3528_s1 + $0x24] sm:$0xf0]  ;;  %s3495_s22 = scalar_lea.vmem %s3530_s3, %s2316_s19 }
  0x1b   : > { %v2321_v0 = vld [vmem:[%s3528_s1 + $0x24] sm:$0xf]  ;;  %v1734_v2 = vld [vmem:[%s3528_s1 + $0x28] sm:$0xf0]  ;;  %v1780_v3 = vld [vmem:[%s3528_s1 + $0x80] sm:$0xf]  ;;  %v252_v5 = vunpack.c.h.b16 %v2644_v55  ;;  %v1785_v10 = vor.u32 %v2333_v58, %v1782_v59  ;;  %v1733_v11 = vor.u32 %v2322_v63, %v1732_v62 }
  0x1c   : > { %407 = vmatpush.bf16.msra.mxu0 %v1749_v41  ;;  %445 = vmatpush.bf16.msra.mxu2 %v1753_v45  ;;  %v2334_v4 = vld [vmem:[%s3528_s1 + $0x84] sm:$0xf0]  ;;  %v254_v6 = vunpack.c.h.b16 %v2652_v60  ;;  %v1897_v7 = vld [vmem:[%s3528_s1 + $0x138] sm:$0xf]  ;;  %v2356_v8 = vld [vmem:[%s3528_s1 + $0x13c] sm:$0xf0]  ;;  %v1737_v13 = vor.u32 %v2321_v0, %v1734_v2  ;;  %v251_v41 = vunpack.c.l.b16 %v2644_v55  ;;  %v253_v42 = vunpack.c.l.b16 %v2652_v60 }
  0x1d   : > { %v1724_v14 = vld [vmem:[%s3528_s1 + $0x10] sm:$0xf]  ;;  %v2320_v15 = vld [vmem:[%s3528_s1 + $0x14] sm:$0xf0]  ;;  %v1781_v16 = vor.u32 %v2334_v4, %v1780_v3  ;;  %v2319_v17 = vld [vmem:[%s3528_s1 + $0x14] sm:$0xf]  ;;  %v1898_v19 = vor.u32 %v2356_v8, %v1897_v7 }
  0x1e   : > { %467 = vmatpush.bf16.msra.mxu3 %v1793_v56  ;;  %429 = vmatpush.bf16.msra.mxu1 %v1789_v1  ;;  %v1726_v18 = vld [vmem:[%s3528_s1 + $0x18] sm:$0xf0]  ;;  %v2695_v22 = vpack.c.b16 %v254_v6, %v252_v5  ;;  %v1716_v23 = vld [vmem:[%s3528_s1] sm:$0xf]  ;;  %v2318_v24 = vld [vmem:[%s3528_s1 + $0x4] sm:$0xf0]  ;;  %v1725_v27 = vor.u32 %v2320_v15, %v1724_v14 }
  0x1f   : > { %v1889_v25 = vld [vmem:[%s3528_s1 + $0x128] sm:$0xf]  ;;  %v2354_v26 = vld [vmem:[%s3528_s1 + $0x12c] sm:$0xf0]  ;;  %v1929_v29 = vld [vmem:[%s3528_s1 + $0x178] sm:$0xf]  ;;  %v1729_v31 = vor.u32 %v2319_v17, %v1726_v18  ;;  %v1717_v46 = vor.u32 %v2318_v24, %v1716_v23 }
  0x20   : > { %408 = vmatpush.bf16.msra.mxu0 %v1741_v57  ;;  %446 = vmatpush.bf16.msra.mxu2 %v1745_v61  ;;  %v2364_v30 = vld [vmem:[%s3528_s1 + $0x17c] sm:$0xf0]  ;;  %v2317_v32 = vld [vmem:[%s3528_s1 + $0x4] sm:$0xf]  ;;  %v1718_v33 = vld [vmem:[%s3528_s1 + $0x8] sm:$0xf0]  ;;  %v1890_v37 = vor.u32 %v2354_v26, %v1889_v25  ;;  %v2760_v57 = vpack.c.b16 %v253_v42, %v251_v41 }
  0x21   : > { %v2355_v34 = vld [vmem:[%s3528_s1 + $0x13c] sm:$0xf]  ;;  %v1899_v36 = vld [vmem:[%s3528_s1 + $0x140] sm:$0xf0]  ;;  %v1881_v38 = vld [vmem:[%s3528_s1 + $0x118] sm:$0xf]  ;;  %v1930_v40 = vor.u32 %v2364_v30, %v1929_v29  ;;  %v1721_v50 = vor.u32 %v2317_v32, %v1718_v33 }
  0x22   : > { %468 = vmatpush.bf16.msra.mxu3 %v1785_v10  ;;  %430 = vmatpush.bf16.msra.mxu1 %v1781_v16  ;;  %v2352_v39 = vld [vmem:[%s3528_s1 + $0x11c] sm:$0xf0]  ;;  %v192_v44 = vld [vmem:[%s2617_s25 + $0x28] sm:$0xff]  ;;  %v193_v45 = vld [vmem:[%s2617_s25 + $0x30] sm:$0xff]  ;;  %v1902_v51 = vor.u32 %v2355_v34, %v1899_v36  ;;  %v683_v53 = vsel %vm397_vm0, %v648_v35, 0  ;;  %vm1629_vm5 = vcmask 523264  }
  0x23   : > { %v191_v43 = vld [vmem:[%s2617_s25 + $0x20] sm:$0xff]  ;;  %v194_v47 = vld [vmem:[%s2617_s25 + $0x38] sm:$0xff]  ;;  %v1921_v48 = vld [vmem:[%s3528_s1 + $0x168] sm:$0xf]  ;;  %v1882_v55 = vor.u32 %v2352_v39, %v1881_v38  ;;  %vm797_vm3 = vsmask.f32 7424 }
  0x24   : > { %409 = vmatpush.bf16.msra.mxu0 %v1733_v11  ;;  %447 = vmatpush.bf16.msra.mxu2 %v1737_v13  ;;  %v2362_v49 = vld [vmem:[%s3528_s1 + $0x16c] sm:$0xf0]  ;;  %v2353_v52 = vld [vmem:[%s3528_s1 + $0x12c] sm:$0xf]  ;;  %v1891_v54 = vld [vmem:[%s3528_s1 + $0x130] sm:$0xf0]  ;;  %v2762_v58 = vpack.c.bf16 %v192_v44, %v191_v43  ;;  %v2764_v59 = vpack.c.bf16 %v194_v47, %v193_v45 }
  0x25   : > { %1812 = vmatmul.msk.bf16.vlgmr.msra.gmra.mxu3 %vm390_vm1, %v2695_v22  ;;  %1810 = vmatmul.msk.bf16.vlgmr.msra.gmra.mxu1 %vm390_vm1, %v2695_v22  ;;  %v2363_v56 = vld [vmem:[%s3528_s1 + $0x17c] sm:$0xf]  ;;  %v1931_v60 = vld [vmem:[%s3528_s1 + $0x180] sm:$0xf0]  ;;  %v1873_v61 = vld [vmem:[%s3528_s1 + $0x108] sm:$0xf]  ;;  %v1922_v63 = vor.u32 %v2362_v49, %v1921_v48  ;;  %v1894_v2 = vor.u32 %v2353_v52, %v1891_v54 }
  0x26   : > { %685 = vmatpush.bf16.msrb.mxu1 %v1898_v19  ;;  %707 = vmatpush.bf16.msrb.mxu3 %v680_v28  ;;  %v2350_v62 = vld [vmem:[%s3528_s1 + $0x10c] sm:$0xf0]  ;;  %v1913_v0 = vld [vmem:[%s3528_s1 + $0x158] sm:$0xf]  ;;  %v2360_v1 = vld [vmem:[%s3528_s1 + $0x15c] sm:$0xf0]  ;;  %v1934_v8 = vor.u32 %v2363_v56, %v1931_v60  ;;  %v256_v13 = vunpack.c.h.b16 %v2762_v58  ;;  %v258_v14 = vunpack.c.h.b16 %v2764_v59  ;;  %v255_v39 = vunpack.c.l.b16 %v2762_v58 }
  0x27   : > { %v2351_v3 = vld [vmem:[%s3528_s1 + $0x11c] sm:$0xf]  ;;  %v1883_v4 = vld [vmem:[%s3528_s1 + $0x120] sm:$0xf0]  ;;  %v2361_v5 = vld [vmem:[%s3528_s1 + $0x16c] sm:$0xf]  ;;  %v1874_v9 = vor.u32 %v2350_v62, %v1873_v61  ;;  %v1914_v15 = vor.u32 %v2360_v1, %v1913_v0  ;;  %v257_v43 = vunpack.c.l.b16 %v2764_v59 }
  0x28   : > { %410 = vmatpush.bf16.msra.mxu0 %v1725_v27  ;;  %448 = vmatpush.bf16.msra.mxu2 %v1729_v31  ;;  %v195_v6 = vld [vmem:[%s2617_s25 + $0x40] sm:$0xff]  ;;  %v196_v7 = vld [vmem:[%s2617_s25 + $0x48] sm:$0xff]  ;;  %v1923_v10 = vld [vmem:[%s3528_s1 + $0x170] sm:$0xf0]  ;;  %v1886_v23 = vor.u32 %v2351_v3, %v1883_v4  ;;  %v2826_v32 = vpack.c.b16 %v258_v14, %v256_v13  ;;  %vm1085_vm4 = vsmask.f32 6400 }
  0x29   : > { %v1865_v11 = vld [vmem:[%s3528_s1 + $0xf8] sm:$0xf]  ;;  %v2348_v12 = vld [vmem:[%s3528_s1 + $0xfc] sm:$0xf0]  ;;  %v197_v16 = vld [vmem:[%s2617_s25 + $0x50] sm:$0xff]  ;;  %v1926_v28 = vor.u32 %v2361_v5, %v1923_v10  ;;  %v209_v31 = vpack.c.bf16 %v196_v7, %v195_v6  ;;  %v2884_v10 = vpack.c.b16 %v257_v43, %v255_v39 }
  0x2a   : > { %686 = vmatpush.bf16.msrb.mxu1 %v1890_v37  ;;  %708 = vmatpush.bf16.msrb.mxu3 %v1930_v40  ;;  %v198_v17 = vld [vmem:[%s2617_s25 + $0x58] sm:$0xff]  ;;  %v199_v18 = vld [vmem:[%s2617_s25 + $0x60] sm:$0xff]  ;;  %v200_v19 = vld [vmem:[%s2617_s25 + $0x68] sm:$0xff]  ;;  %v1866_v29 = vor.u32 %v2348_v12, %v1865_v11 }
  0x2b   : > { %v201_v20 = vld [vmem:[%s2617_s25 + $0x70] sm:$0xff]  ;;  %v202_v21 = vld [vmem:[%s2617_s25 + $0x78] sm:$0xff]  ;;  %v1905_v24 = vld [vmem:[%s3528_s1 + $0x148] sm:$0xf]  ;;  %v210_v36 = vpack.c.bf16 %v198_v17, %v197_v16  ;;  %v211_v37 = vpack.c.bf16 %v200_v19, %v199_v18  ;;  %v2853_v52 = vunpack.c.l.b16 %v209_v31 }
  0x2c   : > { %411 = vmatpush.bf16.msra.mxu0 %v1717_v46  ;;  %449 = vmatpush.bf16.msra.mxu2 %v1721_v50  ;;  %v2358_v25 = vld [vmem:[%s3528_s1 + $0x14c] sm:$0xf0]  ;;  %v2349_v26 = vld [vmem:[%s3528_s1 + $0x10c] sm:$0xf]  ;;  %v1875_v27 = vld [vmem:[%s3528_s1 + $0x110] sm:$0xf0]  ;;  %v212_v38 = vpack.c.bf16 %v202_v21, %v201_v20 }
  0x2d   : > { %v1857_v30 = vld [vmem:[%s3528_s1 + $0xe8] sm:$0xf]  ;;  %v2346_v33 = vld [vmem:[%s3528_s1 + $0xec] sm:$0xf0]  ;;  %v2359_v34 = vld [vmem:[%s3528_s1 + $0x15c] sm:$0xf]  ;;  %v1906_v40 = vor.u32 %v2358_v25, %v1905_v24  ;;  %v1878_v42 = vor.u32 %v2349_v26, %v1875_v27  ;;  %v522_v54 = vunpack.c.h.b16 %v210_v36  ;;  %v521_v61 = vunpack.c.l.b16 %v210_v36 }
  0x2e   : > { %687 = vmatpush.bf16.msrb.mxu1 %v1882_v55  ;;  %709 = vmatpush.bf16.msrb.mxu3 %v1922_v63  ;;  %v1915_v35 = vld [vmem:[%s3528_s1 + $0x160] sm:$0xf0]  ;;  %v1963_v41 = vld [vmem:[%s3528_s1 + $0x250] sm:$0xff]  ;;  %v2347_v46 = vld [vmem:[%s3528_s1 + $0xfc] sm:$0xf]  ;;  %v1858_v48 = vor.u32 %v2346_v33, %v1857_v30  ;;  %v524_v55 = vunpack.c.h.b16 %v211_v37  ;;  %v526_v56 = vunpack.c.h.b16 %v212_v38  ;;  %v523_v62 = vunpack.c.l.b16 %v211_v37 }
  0x2f   : > { %412 = vmatmul.bf16.vlgmr.msra.gmra.mxu0 %v2760_v57  ;;  %450 = vmatmul.bf16.vlgmr.msra.gmra.mxu2 %v2760_v57  ;;  %v911_v44 = vunpack.c.l.b16 %v1963_v41  ;;  %v912_v45 = vunpack.c.h.b16 %v1963_v41  ;;  %v1867_v47 = vld [vmem:[%s3528_s1 + $0x100] sm:$0xf0]  ;;  %v1918_v49 = vor.u32 %v2359_v34, %v1915_v35  ;;  %v1849_v50 = vld [vmem:[%s3528_s1 + $0xd8] sm:$0xf]  ;;  %v2357_v58 = vld [vmem:[%s3528_s1 + $0x14c] sm:$0xf]  ;;  %v525_v63 = vunpack.c.l.b16 %v212_v38 }
  0x30   : > { %723 = vmatpush.bf16.msrb.mxu0 %v1902_v51  ;;  %745 = vmatpush.bf16.msrb.mxu2 %v683_v53  ;;  %v2851_v51 = vunpack.c.h.b16 %v209_v31  ;;  %v2344_v53 = vld [vmem:[%s3528_s1 + $0xdc] sm:$0xf0]  ;;  %v1907_v59 = vld [vmem:[%s3528_s1 + $0x150] sm:$0xf0]  ;;  %v1870_v1 = vor.u32 %v2347_v46, %v1867_v47  ;;  %v2388_v4 = vld [vmem:[%s3528_s1 + $0x244] sm:$0xf0]  ;;  %v2889_v12 = vpack.c.b16 %v526_v56, %v524_v55  ;;  %v2901_v16 = vpack.c.b16 %v521_v61, %v2853_v52 }
  0x31   : > { %v937_v60 = vpack.c.b16 %v911_v44, %v911_v44  ;;  %v938_v0 = vpack.c.b16 %v912_v45, %v912_v45  ;;  %v2054_v3 = vld [vmem:[%s3528_s1 + $0x240] sm:$0xf]  ;;  %v2345_v5 = vld [vmem:[%s3528_s1 + $0xec] sm:$0xf]  ;;  %v1859_v6 = vld [vmem:[%s3528_s1 + $0xf0] sm:$0xf0]  ;;  %v1850_v7 = vor.u32 %v2344_v53, %v1849_v50  ;;  %v2903_v17 = vpack.c.b16 %v525_v63, %v523_v62 }
  0x32   : > { %688 = vmatpush.bf16.msrb.mxu1 %v1874_v9  ;;  %710 = vmatpush.bf16.msrb.mxu3 %v1914_v15  ;;  %v1910_v9 = vor.u32 %v2357_v58, %v1907_v59  ;;  %v2887_v11 = vpack.c.b16 %v522_v54, %v2851_v51  ;;  %v2342_v13 = vld [vmem:[%s3528_s1 + $0xcc] sm:$0xf0]  ;;  %v2022_v14 = vld [vmem:[%s3528_s1 + $0x200] sm:$0xf]  ;;  %v2380_v15 = vld [vmem:[%s3528_s1 + $0x204] sm:$0xf0]  ;;  %v2055_v19 = vor.u32 %v2388_v4, %v2054_v3 }
  0x33   : > { %v973_v18 = vsel %vm397_vm0, %v938_v0, 0  ;;  %v2387_v20 = vld [vmem:[%s3528_s1 + $0x244] sm:$0xf]  ;;  %v2056_v21 = vld [vmem:[%s3528_s1 + $0x248] sm:$0xf0]  ;;  %v2023_v30 = vor.u32 %v2380_v15, %v2022_v14  ;;  %v540_v35 = vrot.slane %v2889_v12, 1 }
  0x34   : > { %724 = vmatpush.bf16.msrb.mxu0 %v1894_v2  ;;  %746 = vmatpush.bf16.msrb.mxu2 %v1934_v8  ;;  %v970_v2 = vsel %vm397_vm0, %v937_v60, 0  ;;  %v1841_v8 = vld [vmem:[%s3528_s1 + $0xc8] sm:$0xf]  ;;  %v2046_v24 = vld [vmem:[%s3528_s1 + $0x230] sm:$0xf]  ;;  %v2059_v34 = vor.u32 %v2387_v20, %v2056_v21  ;;  %v536_v36 = vrot.slane %v2901_v16, 1 }
  0x35   : > { %1813 = vmatmul.msk.bf16.gmra.mxu3 %vm390_vm1, %v2826_v32  ;;  %1811 = vmatmul.msk.bf16.gmra.mxu1 %vm390_vm1, %v2826_v32  ;;  %v2386_v25 = vld [vmem:[%s3528_s1 + $0x234] sm:$0xf0]  ;;  %v2343_v26 = vld [vmem:[%s3528_s1 + $0xdc] sm:$0xf]  ;;  %v1851_v27 = vld [vmem:[%s3528_s1 + $0xe0] sm:$0xf0] }
  0x36   : > { %689 = vmatpush.bf16.msrb.mxu1 %v1866_v29  ;;  %711 = vmatpush.bf16.msrb.mxu3 %v1906_v40  ;;  %v539_v29 = vrot.slane %v2887_v11, 1  ;;  %v2014_v31 = vld [vmem:[%s3528_s1 + $0x1f0] sm:$0xf]  ;;  %v2378_v33 = vld [vmem:[%s3528_s1 + $0x1f4] sm:$0xf0]  ;;  %v537_v37 = vrot.slane %v2903_v17, 1  ;;  %v2047_v40 = vor.u32 %v2386_v25, %v2046_v24  ;;  %v1854_v41 = vor.u32 %v2343_v26, %v1851_v27 }
  0x37   : > { %v2341_v38 = vld [vmem:[%s3528_s1 + $0xcc] sm:$0xf]  ;;  %v203_v39 = vld [vmem:[%s2617_s25 + $0x80] sm:$0xf]  ;;  %v2385_v43 = vld [vmem:[%s3528_s1 + $0x234] sm:$0xf]  ;;  %v2015_v50 = vor.u32 %v2378_v33, %v2014_v31 }
  0x38   : > { %725 = vmatpush.bf16.msrb.mxu0 %v1886_v23  ;;  %747 = vmatpush.bf16.msrb.mxu2 %v1926_v28  ;;  %v1862_v23 = vor.u32 %v2345_v5, %v1859_v6  ;;  %v1842_v28 = vor.u32 %v2342_v13, %v1841_v8  ;;  %v2048_v44 = vld [vmem:[%s3528_s1 + $0x238] sm:$0xf0]  ;;  %v1843_v45 = vld [vmem:[%s3528_s1 + $0xd0] sm:$0xf0]  ;;  %v2038_v46 = vld [vmem:[%s3528_s1 + $0x220] sm:$0xf]  ;;  %v541_v53 = vsel %vm535_vm2, %v539_v29, %v540_v35 }
  0x39   : > { %v2384_v47 = vld [vmem:[%s3528_s1 + $0x224] sm:$0xf0]  ;;  %v2006_v54 = vld [vmem:[%s3528_s1 + $0x1e0] sm:$0xf]  ;;  %v2051_v58 = vor.u32 %v2385_v43, %v2048_v44  ;;  %v538_v59 = vsel %vm535_vm2, %v536_v36, %v537_v37  ;;  %v1846_v60 = vor.u32 %v2341_v38, %v1843_v45  ;;  %v2383_v62 = vld [vmem:[%s3528_s1 + $0x224] sm:$0xf] }
  0x3a   : > { %690 = vmatpush.bf16.msrb.mxu1 %v1858_v48  ;;  %997 = vmatpush.bf16.msra.mxu3 %v970_v2  ;;  %v2379_v48 = vld [vmem:[%s3528_s1 + $0x204] sm:$0xf]  ;;  %v2376_v55 = vld [vmem:[%s3528_s1 + $0x1e4] sm:$0xf0]  ;;  %v2039_v61 = vor.u32 %v2384_v47, %v2038_v46  ;;  %v2040_v63 = vld [vmem:[%s3528_s1 + $0x228] sm:$0xf0] }
  0x3b   : > { %v2382_v2 = vld [vmem:[%s3528_s1 + $0x214] sm:$0xf0]  ;;  %v2377_v3 = vld [vmem:[%s3528_s1 + $0x1f4] sm:$0xf]  ;;  %v2016_v4 = vld [vmem:[%s3528_s1 + $0x1f8] sm:$0xf0]  ;;  %v2007_v5 = vor.u32 %v2376_v55, %v2006_v54 }
  0x3c   : > { %726 = vmatpush.bf16.msrb.mxu0 %v1878_v42  ;;  %748 = vmatpush.bf16.msrb.mxu2 %v1918_v49  ;;  %v204_v42 = vld [vmem:[%s2617_s25 + $0x88] sm:$0xf]  ;;  %v2024_v49 = vld [vmem:[%s3528_s1 + $0x208] sm:$0xf0]  ;;  %v2374_v8 = vld [vmem:[%s3528_s1 + $0x1d4] sm:$0xf0]  ;;  %v2019_v15 = vor.u32 %v2377_v3, %v2016_v4 }
  0x3d   : > { %v213_v56 = vpack.c.bf16 %v204_v42, %v203_v39  ;;  %v2027_v0 = vor.u32 %v2379_v48, %v2024_v49  ;;  %v2375_v20 = vld [vmem:[%s3528_s1 + $0x1e4] sm:$0xf]  ;;  %v2008_v21 = vld [vmem:[%s3528_s1 + $0x1e8] sm:$0xf0]  ;;  %v1990_v25 = vld [vmem:[%s3528_s1 + $0x1c0] sm:$0xf] }
  0x3e   : > { %691 = vmatpush.bf16.msrb.mxu1 %v1850_v7  ;;  %998 = vmatpush.bf16.msra.mxu3 %v2055_v19  ;;  %v1998_v7 = vld [vmem:[%s3528_s1 + $0x1d0] sm:$0xf]  ;;  %v2032_v19 = vld [vmem:[%s3528_s1 + $0x218] sm:$0xf0]  ;;  %v2372_v26 = vld [vmem:[%s3528_s1 + $0x1c4] sm:$0xf0]  ;;  %v2011_v29 = vor.u32 %v2375_v20, %v2008_v21 }
  0x3f   : > { %417 = vmatmul.bf16.gmra.mxu0 %v2884_v10  ;;  %455 = vmatmul.bf16.gmra.mxu2 %v2884_v10  ;;  %v528_v6 = vunpack.c.h.b16 %v213_v56  ;;  %v527_v13 = vunpack.c.l.b16 %v213_v56  ;;  %v2373_v31 = vld [vmem:[%s3528_s1 + $0x1d4] sm:$0xf]  ;;  %v2000_v33 = vld [vmem:[%s3528_s1 + $0x1d8] sm:$0xf0]  ;;  %v1982_v39 = vld [vmem:[%s3528_s1 + $0x1b0] sm:$0xf] }
  0x40   : > { %727 = vmatpush.bf16.msrb.mxu0 %v1870_v1  ;;  %749 = vmatpush.bf16.msrb.mxu2 %v1910_v9  ;;  %v2030_v1 = vld [vmem:[%s3528_s1 + $0x210] sm:$0xf]  ;;  %v2043_v9 = vor.u32 %v2383_v62, %v2040_v63  ;;  %v2003_v44 = vor.u32 %v2373_v31, %v2000_v33  ;;  %v2371_v46 = vld [vmem:[%s3528_s1 + $0x1c4] sm:$0xf]  ;;  %v1992_v47 = vld [vmem:[%s3528_s1 + $0x1c8] sm:$0xf0] }
  0x41   : > { %v2031_v14 = vor.u32 %v2382_v2, %v2030_v1  ;;  %v3011_v24 = vpack.c.b16 %v528_v6, %v528_v6  ;;  %v3019_v27 = vpack.c.b16 %v527_v13, %v527_v13  ;;  %v2368_v54 = vld [vmem:[%s3528_s1 + $0x1a4] sm:$0xf0]  ;;  %v801_v62 = vshll.u32 %v2760_v57, 16  ;;  %v1966_v1 = vld [vmem:[%s3528_s1 + $0x190] sm:$0xf] }
  0x42   : > { %692 = vmatpush.bf16.msrb.mxu1 %v1842_v28  ;;  %999 = vmatpush.bf16.msra.mxu3 %v2047_v40  ;;  %v2370_v40 = vld [vmem:[%s3528_s1 + $0x1b4] sm:$0xf0]  ;;  %v2411_v2 = vld [vmem:[%s3528_s1 + $0x30c] sm:$0xf]  ;;  %v2181_v3 = vld [vmem:[%s3528_s1 + $0x310] sm:$0xf0] }
  0x43   : > { %v544_v38 = vrot.slane %v3011_v24, 1  ;;  %v542_v42 = vrot.slane %v3019_v27, 1  ;;  %v1983_v48 = vor.u32 %v2370_v40, %v1982_v39  ;;  %v2366_v4 = vld [vmem:[%s3528_s1 + $0x194] sm:$0xf0]  ;;  %v810_v20 = vshrl.u32 %v2695_v22, 16 }
  0x44   : > { %1035 = vmatpush.bf16.msra.mxu2 %v973_v18  ;;  %728 = vmatpush.bf16.msrb.mxu0 %v1862_v23  ;;  %v2381_v18 = vld [vmem:[%s3528_s1 + $0x214] sm:$0xf]  ;;  %v1999_v23 = vor.u32 %v2374_v8, %v1998_v7  ;;  %v2171_v6 = vld [vmem:[%s3528_s1 + $0x2f8] sm:$0xf]  ;;  %v2410_v7 = vld [vmem:[%s3528_s1 + $0x2fc] sm:$0xf0] }
  0x45   : > { %1935 = vmatmul.msk.bf16.vlgmr.msrb.gmra.mxu3 %vm390_vm1, %v541_v53  ;;  %693 = vmatmul.bf16.vlgmr.msrb.gmra.mxu1 %v538_v59  ;;  %v2035_v28 = vor.u32 %v2381_v18, %v2032_v19  ;;  %v543_v56 = vsel %vm535_vm2, %v537_v37, %v542_v42  ;;  %v812_v37 = vshll.u32 %v2695_v22, 16  ;;  %v2147_v8 = vld [vmem:[%s3528_s1 + $0x2c8] sm:$0xf]  ;;  %v2172_v13 = vor.u32 %v2410_v7, %v2171_v6  ;;  %v2409_v18 = vld [vmem:[%s3528_s1 + $0x2fc] sm:$0xf] }
  0x46   : > { %975 = vmatpush.bf16.msra.mxu1 %v2023_v30  ;;  %1000 = vmatpush.bf16.msra.mxu3 %v2039_v61  ;;  %v2088_v30 = vld [vmem:[%s3528_s1 + $0x318] sm:$0xff]  ;;  %v2173_v19 = vld [vmem:[%s3528_s1 + $0x300] sm:$0xf0]  ;;  %v806_v31 = vshll.u32 %v2884_v10, 16  ;;  %v2408_v39 = vld [vmem:[%s3528_s1 + $0x2ec] sm:$0xf0]  ;;  %v3181_v6 = vpack.c.b16 %v2851_v51, %v2851_v51 }
  0x47   : > { %v1213_v36 = vunpack.c.l.b16 %v2088_v30  ;;  %v1984_v61 = vld [vmem:[%s3528_s1 + $0x1b8] sm:$0xf0]  ;;  %v814_v21 = vrot.slane %v812_v37, 1  ;;  %v2365_v42 = vld [vmem:[%s3528_s1 + $0x194] sm:$0xf] }
  0x48   : > { %1036 = vmatpush.bf16.msra.mxu2 %v2059_v34  ;;  %729 = vmatpush.bf16.msrb.mxu0 %v1854_v41  ;;  %v1991_v34 = vor.u32 %v2372_v26, %v1990_v25  ;;  %v1214_v41 = vunpack.c.h.b16 %v2088_v30  ;;  %v1976_v25 = vld [vmem:[%s3528_s1 + $0x1a8] sm:$0xf0]  ;;  %v1967_v26 = vor.u32 %v2366_v4, %v1966_v1  ;;  %v803_v30 = vrot.slane %v801_v62, 1  ;;  %v2398_v4 = vld [vmem:[%s3528_s1 + $0x29c] sm:$0xf0] }
  0x49   : > { %v1239_v43 = vpack.c.b16 %v1213_v36, %v1213_v36  ;;  %v2402_v36 = vld [vmem:[%s3528_s1 + $0x2bc] sm:$0xf0]  ;;  %v2405_v7 = vld [vmem:[%s3528_s1 + $0x2dc] sm:$0xf] }
  0x4a   : > { %976 = vmatpush.bf16.msra.mxu1 %v2015_v50  ;;  %1001 = vmatpush.bf16.msra.mxu3 %v2031_v14  ;;  %v1240_v45 = vpack.c.b16 %v1214_v41, %v1214_v41  ;;  %v3049_v50 = vsel %vm535_vm2, %v540_v35, %v544_v38  ;;  %v2179_v35 = vld [vmem:[%s3528_s1 + $0x308] sm:$0xf] }
  0x4b   : > { %v1272_v49 = vsel %vm397_vm0, %v1239_v43, 0  ;;  %v2163_v38 = vld [vmem:[%s3528_s1 + $0x2e8] sm:$0xf] }
  0x4c   : > { %1037 = vmatpush.bf16.msra.mxu2 %v2051_v58  ;;  %730 = vmatpush.bf16.msrb.mxu0 %v1846_v60  ;;  %v1275_v55 = vsel %vm397_vm0, %v1240_v45, 0  ;;  %v2412_v58 = vld [vmem:[%s3528_s1 + $0x30c] sm:$0xf0]  ;;  %v2369_v60 = vld [vmem:[%s3528_s1 + $0x1b4] sm:$0xf]  ;;  %v2164_v43 = vor.u32 %v2408_v39, %v2163_v38 }
  0x4d   : > { %v2180_v63 = vor.u32 %v2412_v58, %v2179_v35  ;;  %v1987_v14 = vor.u32 %v2369_v60, %v1984_v61  ;;  %v2403_v45 = vld [vmem:[%s3528_s1 + $0x2cc] sm:$0xf]  ;;  %v2165_v35 = vld [vmem:[%s3528_s1 + $0x2f0] sm:$0xf0]  ;;  %v2400_v60 = vld [vmem:[%s3528_s1 + $0x2ac] sm:$0xf0] }
  0x4e   : > { %977 = vmatpush.bf16.msra.mxu1 %v2007_v5  ;;  %1299 = vmatpush.bf16.msrb.mxu3 %v1272_v49  ;;  %v2184_v5 = vor.u32 %v2411_v2, %v2181_v3  ;;  %v2155_v49 = vld [vmem:[%s3528_s1 + $0x2d8] sm:$0xf] }
  0x4f   : > { %731 = vmatmul.bf16.vlgmr.msrb.gmra.mxu0 %v538_v59  ;;  %1937 = vmatmul.msk.bf16.vlgmr.msrb.gmra.mxu2 %vm390_vm1, %v541_v53  ;;  %v1974_v53 = vld [vmem:[%s3528_s1 + $0x1a0] sm:$0xf]  ;;  %v1995_v59 = vor.u32 %v2371_v46, %v1992_v47  ;;  %v2149_v46 = vld [vmem:[%s3528_s1 + $0x2d0] sm:$0xf0]  ;;  %v815_v47 = vor.u32 %v814_v21, %v810_v20  ;;  %v2123_v3 = vld [vmem:[%s3528_s1 + $0x298] sm:$0xf] }
  0x50   : > { %1013 = vmatpush.bf16.msra.mxu0 %v2027_v0  ;;  %1038 = vmatpush.bf16.msra.mxu2 %v2043_v9  ;;  %v1975_v0 = vor.u32 %v2368_v54, %v1974_v53  ;;  %v2404_v9 = vld [vmem:[%s3528_s1 + $0x2cc] sm:$0xf0]  ;;  %v2406_v53 = vld [vmem:[%s3528_s1 + $0x2dc] sm:$0xf0]  ;;  %v2407_v54 = vld [vmem:[%s3528_s1 + $0x2ec] sm:$0xf]  ;;  %v2152_v37 = vor.u32 %v2403_v45, %v2149_v46  ;;  %v2124_v51 = vor.u32 %v2398_v4, %v2123_v3 }
  0x51   : > { %v2148_v33 = vor.u32 %v2404_v9, %v2147_v8  ;;  %v2168_v61 = vor.u32 %v2407_v54, %v2165_v35  ;;  %v2157_v8 = vld [vmem:[%s3528_s1 + $0x2e0] sm:$0xf0]  ;;  %v2399_v9 = vld [vmem:[%s3528_s1 + $0x2ac] sm:$0xf]  ;;  %v828_v20 = vshrl.u32 %v2826_v32, 16  ;;  %v832_v21 = vshll.u32 %v3181_v6, 16 }
  0x52   : > { %978 = vmatpush.bf16.msra.mxu1 %v1999_v23  ;;  %1300 = vmatpush.bf16.msrb.mxu3 %v2180_v63  ;;  %v2367_v23 = vld [vmem:[%s3528_s1 + $0x1a4] sm:$0xf]  ;;  %v2401_v63 = vld [vmem:[%s3528_s1 + $0x2bc] sm:$0xf]  ;;  %v2117_v45 = vld [vmem:[%s3528_s1 + $0x290] sm:$0xf0] }
  0x53   : > { %v1979_v41 = vor.u32 %v2367_v23, %v1976_v25  ;;  %v2393_v54 = vld [vmem:[%s3528_s1 + $0x27c] sm:$0xf]  ;;  %v1104_v35 = vshrl.u32 %v2887_v11, 16  ;;  %v2428_v3 = vld [vmem:[%s3528_s1 + $0x394] sm:$0xf0] }
  0x54   : > { %1014 = vmatpush.bf16.msra.mxu0 %v2019_v15  ;;  %1039 = vmatpush.bf16.msra.mxu2 %v2035_v28  ;;  %v816_v15 = vshll.u32 %v2826_v32, 16  ;;  %v2176_v28 = vor.u32 %v2409_v18, %v2173_v19  ;;  %v2115_v18 = vld [vmem:[%s3528_s1 + $0x288] sm:$0xf]  ;;  %v2396_v19 = vld [vmem:[%s3528_s1 + $0x28c] sm:$0xf0] }
  0x55   : > { %1936 = vmatmul.msk.bf16.gmra.mxu3 %vm390_vm1, %v3049_v50  ;;  %698 = vmatmul.bf16.gmra.mxu1 %v543_v56  ;;  %v2435_v4 = vld [vmem:[%s3528_s1 + $0x3d4] sm:$0xf] }
  0x56   : > { %979 = vmatpush.bf16.msra.mxu1 %v1991_v34  ;;  %v2139_v34 = vld [vmem:[%s3528_s1 + $0x2b8] sm:$0xf]  ;;  %1301 = vmatpush.bf16.msrb.mxu3 %v2172_v13  ;;  %v3129_v40 = vrot.slane %v816_v15, 1  ;;  %v2133_v13 = vld [vmem:[%s3528_s1 + $0x2b0] sm:$0xf0]  ;;  %v2160_v15 = vor.u32 %v2405_v7, %v2157_v8  ;;  %v1087_v8 = vshrl.u32 %v2901_v16, 16 }
  0x57   : > { %v2136_v23 = vor.u32 %v2399_v9, %v2133_v13  ;;  %v1090_v9 = vshll.u32 %v2901_v16, 16  ;;  %v1095_v16 = vshrl.u32 %v2903_v17, 16 }
  0x58   : > { %1015 = vmatpush.bf16.msra.mxu0 %v2011_v29  ;;  %1337 = vmatpush.bf16.msrb.mxu2 %v1275_v55  ;;  %v799_v29 = vshrl.u32 %v2760_v57, 16  ;;  %v819_v62 = vsel %vm797_vm3, %v815_v47, %v3129_v40  ;;  %v2099_v47 = vld [vmem:[%s3528_s1 + $0x268] sm:$0xf] }
  0x5a   : > { %980 = vmatpush.bf16.msra.mxu1 %v1983_v48  ;;  %v2140_v48 = vor.u32 %v2402_v36, %v2139_v34  ;;  %v804_v55 = vor.u32 %v803_v30, %v799_v29  ;;  %1302 = vmatpush.bf16.msrb.mxu3 %v2164_v43  ;;  %v2116_v29 = vor.u32 %v2396_v19, %v2115_v18  ;;  %v2107_v30 = vld [vmem:[%s3528_s1 + $0x278] sm:$0xf]  ;;  %v834_v36 = vrot.slane %v832_v21, 1  ;;  %v2391_v18 = vld [vmem:[%s3528_s1 + $0x26c] sm:$0xf] }
  0x5b   : > { %v830_v34 = vor.u32 %v828_v20, %v3129_v40  ;;  %v2101_v19 = vld [vmem:[%s3528_s1 + $0x270] sm:$0xf0]  ;;  %v1098_v21 = vshll.u32 %v2903_v17, 16  ;;  %v2264_v17 = vld [vmem:[%s3528_s1 + $0x380] sm:$0xf] }
  0x5c   : > { %1016 = vmatpush.bf16.msra.mxu0 %v2003_v44  ;;  %1338 = vmatpush.bf16.msrb.mxu2 %v2184_v5  ;;  %v1968_v44 = vld [vmem:[%s3528_s1 + $0x198] sm:$0xf0] }
  0x5d   : > { %v1971_v58 = vor.u32 %v2365_v42, %v1968_v44  ;;  %v2395_v44 = vld [vmem:[%s3528_s1 + $0x28c] sm:$0xf] }
  0x5e   : > { %981 = vmatpush.bf16.msra.mxu1 %v1975_v0  ;;  %v2141_v0 = vld [vmem:[%s3528_s1 + $0x2c0] sm:$0xf0] }
  0x5f   : > { %736 = vmatmul.bf16.gmra.mxu0 %v543_v56  ;;  %1938 = vmatmul.msk.bf16.gmra.mxu2 %vm390_vm1, %v3049_v50  ;;  %v808_v56 = vrot.slane %v806_v31, 1  ;;  %v2156_v50 = vor.u32 %v2406_v53, %v2155_v49  ;;  %v2144_v5 = vor.u32 %v2401_v63, %v2141_v0  ;;  %v2394_v31 = vld [vmem:[%s3528_s1 + $0x27c] sm:$0xf0]  ;;  %v3239_v53 = vsel %vm797_vm3, %v830_v34, %v834_v36  ;;  %v2304_v63 = vld [vmem:[%s3528_s1 + $0x3d0] sm:$0xf] }
  0x60   : > { %1017 = vmatpush.bf16.msra.mxu0 %v1995_v59  ;;  %1339 = vmatpush.bf16.msrb.mxu2 %v2176_v28  ;;  %v2131_v59 = vld [vmem:[%s3528_s1 + $0x2a8] sm:$0xf]  ;;  %v2125_v28 = vld [vmem:[%s3528_s1 + $0x2a0] sm:$0xf0]  ;;  %v2108_v46 = vor.u32 %v2394_v31, %v2107_v30  ;;  %v2091_v0 = vld [vmem:[%s3528_s1 + $0x258] sm:$0xf]  ;;  %v2104_v36 = vor.u32 %v2391_v18, %v2101_v19 }
  0x61   : > { %v809_v1 = vsel %vm797_vm3, %v804_v55, %v808_v56  ;;  %v2132_v2 = vor.u32 %v2400_v60, %v2131_v59  ;;  %1303 = vmatpush.bf16.msrb.mxu3 %v2156_v50  ;;  %v2109_v50 = vld [vmem:[%s3528_s1 + $0x280] sm:$0xf0]  ;;  %v1130_v18 = vshrl.u32 %v3011_v24, 16  ;;  %v1133_v19 = vshll.u32 %v3011_v24, 16 }
  0x62   : > { %982 = vmatpush.bf16.msra.mxu1 %v1967_v26  ;;  %v2397_v26 = vld [vmem:[%s3528_s1 + $0x29c] sm:$0xf]  ;;  %v2112_v7 = vor.u32 %v2393_v54, %v2109_v50  ;;  %v2256_v54 = vld [vmem:[%s3528_s1 + $0x370] sm:$0xf]  ;;  %v2429_v24 = vld [vmem:[%s3528_s1 + $0x3a4] sm:$0xf] }
  0x63   : > { %v2128_v39 = vor.u32 %v2397_v26, %v2125_v28  ;;  %v2433_v28 = vld [vmem:[%s3528_s1 + $0x3c4] sm:$0xf] }
  0x64   : > { %1018 = vmatpush.bf16.msra.mxu0 %v1987_v14  ;;  %1340 = vmatpush.bf16.msrb.mxu2 %v2168_v61  ;;  %v3197_v14 = vpack.c.b16 %v2853_v52, %v2853_v52  ;;  %v820_v52 = vshrl.u32 %v2884_v10, 16 }
  0x65   : > { %2060 = vmatmul.msk.bf16.vlgmr.msra.gmra.mxu3 %vm390_vm1, %v819_v62  ;;  %983 = vmatmul.bf16.vlgmr.msra.gmra.mxu1 %v809_v1 }
  0x66   : > { %1277 = vmatpush.bf16.msrb.mxu1 %v2148_v33  ;;  %v824_v25 = vshll.u32 %v3197_v14, 16  ;;  %v2213_v33 = vld [vmem:[%s3528_s1 + $0x3e0] sm:$0xff]  ;;  %v822_v42 = vor.u32 %v820_v52, %v808_v56  ;;  %v2120_v56 = vor.u32 %v2395_v44, %v2117_v45  ;;  %v1106_v52 = vrot.slane %v1104_v35, 1  ;;  %v2288_v45 = vld [vmem:[%s3528_s1 + $0x3b0] sm:$0xf] }
  0x67   : > { %v1472_v38 = vunpack.c.l.b16 %v2213_v33  ;;  %v1100_v44 = vrot.slane %v1098_v21, 2  ;;  %v1124_v21 = vshll.u32 %v3019_v27, 16 }
  0x68   : > { %1019 = vmatpush.bf16.msra.mxu0 %v1979_v41  ;;  %1341 = vmatpush.bf16.msrb.mxu2 %v2160_v15  ;;  %v1473_v41 = vunpack.c.h.b16 %v2213_v33  ;;  %v826_v43 = vrot.slane %v824_v25, 1  ;;  %v2434_v15 = vld [vmem:[%s3528_s1 + $0x3c4] sm:$0xf0] }
  0x69   : > { %v1498_v40 = vpack.c.b16 %v1472_v38, %v1472_v38  ;;  %v2426_v33 = vld [vmem:[%s3528_s1 + $0x384] sm:$0xf0]  ;;  %v1089_v38 = vrot.slane %v1087_v8, 1  ;;  %v2423_v8 = vld [vmem:[%s3528_s1 + $0x374] sm:$0xf] }
  0x6a   : > { %1278 = vmatpush.bf16.msrb.mxu1 %v2140_v48  ;;  %v2392_v48 = vld [vmem:[%s3528_s1 + $0x26c] sm:$0xf0]  ;;  %v1499_v49 = vpack.c.b16 %v1473_v41, %v1473_v41  ;;  %v827_v60 = vsel %vm797_vm3, %v822_v42, %v826_v43  ;;  %v2389_v41 = vld [vmem:[%s3528_s1 + $0x25c] sm:$0xf]  ;;  %v2093_v42 = vld [vmem:[%s3528_s1 + $0x260] sm:$0xf0] }
  0x6b   : > { %v1531_v55 = vsel %vm397_vm0, %v1498_v40, 0  ;;  %v2100_v61 = vor.u32 %v2392_v48, %v2099_v47  ;;  %v1097_v43 = vrot.slane %v1095_v16, 1  ;;  %v2427_v40 = vld [vmem:[%s3528_s1 + $0x394] sm:$0xf]  ;;  %v2274_v47 = vld [vmem:[%s3528_s1 + $0x398] sm:$0xf0]  ;;  %v2265_v48 = vor.u32 %v2426_v33, %v2264_v17 }
  0x6c   : > { %1020 = vmatpush.bf16.msra.mxu0 %v1971_v58  ;;  %v1107_v58 = vshll.u32 %v2887_v11, 16  ;;  %1558 = vmatpush.bf16.msra.mxu3 %v1531_v55  ;;  %v1534_v59 = vsel %vm397_vm0, %v1499_v49, 0  ;;  %v2436_v11 = vld [vmem:[%s3528_s1 + $0x3d4] sm:$0xf0]  ;;  %v2096_v35 = vor.u32 %v2389_v41, %v2093_v42  ;;  %v1121_v16 = vshrl.u32 %v3019_v27, 16 }
  0x6d   : > { %v2424_v55 = vld [vmem:[%s3528_s1 + $0x374] sm:$0xf0]  ;;  %v2232_v27 = vld [vmem:[%s3528_s1 + $0x340] sm:$0xf]  ;;  %v1126_v33 = vrot.slane %v1124_v21, 2 }
  0x6e   : > { %1279 = vmatpush.bf16.msrb.mxu1 %v2132_v2  ;;  %v2305_v2 = vor.u32 %v2436_v11, %v2304_v63  ;;  %v1109_v25 = vrot.slane %v1107_v58, 2  ;;  %v2280_v58 = vld [vmem:[%s3528_s1 + $0x3a0] sm:$0xf]  ;;  %v2290_v63 = vld [vmem:[%s3528_s1 + $0x3b8] sm:$0xf0]  ;;  %v1123_v17 = vrot.slane %v1121_v16, 1 }
  0x6f   : > { %1021 = vmatmul.bf16.vlgmr.msra.gmra.mxu0 %v809_v1  ;;  %2062 = vmatmul.msk.bf16.vlgmr.msra.gmra.mxu2 %vm390_vm1, %v819_v62  ;;  %v1115_v62 = vshll.u32 %v2889_v12, 16  ;;  %v2390_v1 = vld [vmem:[%s3528_s1 + $0x25c] sm:$0xf0]  ;;  %v2425_v11 = vld [vmem:[%s3528_s1 + $0x384] sm:$0xf] }
  0x70   : > { %1315 = vmatpush.bf16.msrb.mxu0 %v2152_v37  ;;  %v1112_v37 = vshrl.u32 %v2889_v12, 16  ;;  %1596 = vmatpush.bf16.msra.mxu2 %v1534_v59  ;;  %v2272_v12 = vld [vmem:[%s3528_s1 + $0x390] sm:$0xf]  ;;  %v2092_v20 = vor.u32 %v2390_v1, %v2091_v0  ;;  %v2430_v59 = vld [vmem:[%s3528_s1 + $0x3a4] sm:$0xf0]  ;;  %v2257_v1 = vor.u32 %v2424_v55, %v2256_v54 }
  0x71   : > { %1559 = vmatpush.bf16.msra.mxu3 %v2305_v2  ;;  %v2273_v26 = vor.u32 %v2428_v3, %v2272_v12  ;;  %v1117_v31 = vrot.slane %v1115_v62, 2  ;;  %v2281_v62 = vor.u32 %v2430_v59, %v2280_v58  ;;  %v2266_v0 = vld [vmem:[%s3528_s1 + $0x388] sm:$0xf0]  ;;  %v2248_v2 = vld [vmem:[%s3528_s1 + $0x360] sm:$0xf] }
  0x72   : > { %1280 = vmatpush.bf16.msrb.mxu1 %v2124_v51  ;;  %v2296_v51 = vld [vmem:[%s3528_s1 + $0x3c0] sm:$0xf]  ;;  %v1114_v30 = vrot.slane %v1112_v37, 1  ;;  %v3345_v37 = vor.u32 %v1100_v44, %v1097_v43  ;;  %v2422_v3 = vld [vmem:[%s3528_s1 + $0x364] sm:$0xf0]  ;;  %v1127_v44 = vor.u32 %v1126_v33, %v1123_v17 }
  0x73   : > { %v2224_v41 = vld [vmem:[%s3528_s1 + $0x330] sm:$0xf]  ;;  %v2416_v42 = vld [vmem:[%s3528_s1 + $0x334] sm:$0xf0]  ;;  %v2226_v58 = vld [vmem:[%s3528_s1 + $0x338] sm:$0xf0] }
  0x74   : > { %1316 = vmatpush.bf16.msrb.mxu0 %v2144_v5  ;;  %v2306_v5 = vld [vmem:[%s3528_s1 + $0x3d8] sm:$0xf0]  ;;  %v3334_v50 = vor.u32 %v1117_v31, %v1114_v30  ;;  %v1132_v30 = vrot.slane %v1130_v18, 1  ;;  %v1135_v31 = vrot.slane %v1133_v19, 2  ;;  %v1128_v55 = vsel %vm1085_vm4, %v3345_v37, %v1127_v44 }
  0x75   : > { %2061 = vmatmul.msk.bf16.gmra.mxu3 %vm390_vm1, %v3239_v53  ;;  %988 = vmatmul.bf16.gmra.mxu1 %v827_v60  ;;  %v2309_v13 = vor.u32 %v2435_v4, %v2306_v5 }
  0x76   : > { %1281 = vmatpush.bf16.msrb.mxu1 %v2116_v29  ;;  %v2298_v29 = vld [vmem:[%s3528_s1 + $0x3c8] sm:$0xf0]  ;;  %v1136_v43 = vor.u32 %v1135_v31, %v1132_v30 }
  0x77   : > { %1597 = vmatpush.bf16.msra.mxu2 %v2309_v13  ;;  %v2301_v34 = vor.u32 %v2433_v28, %v2298_v29  ;;  %v2249_v13 = vor.u32 %v2422_v3, %v2248_v2  ;;  %v2418_v28 = vld [vmem:[%s3528_s1 + $0x344] sm:$0xf0] }
  0x78   : > { %1317 = vmatpush.bf16.msrb.mxu0 %v2136_v23  ;;  %v2297_v23 = vor.u32 %v2434_v15, %v2296_v51  ;;  %v2240_v51 = vld [vmem:[%s3528_s1 + $0x350] sm:$0xf]  ;;  %v2420_v15 = vld [vmem:[%s3528_s1 + $0x354] sm:$0xf0]  ;;  %v1137_v54 = vsel %vm1085_vm4, %v3334_v50, %v1136_v43 }
  0x7a   : > { %1282 = vmatpush.bf16.msrb.mxu1 %v2108_v46  ;;  %1560 = vmatpush.bf16.msra.mxu3 %v2297_v23  ;;  %v2432_v46 = vld [vmem:[%s3528_s1 + $0x3b4] sm:$0xf0]  ;;  %v2421_v23 = vld [vmem:[%s3528_s1 + $0x364] sm:$0xf] }
  0x7b   : > { %1598 = vmatpush.bf16.msra.mxu2 %v2301_v34  ;;  %v2289_v49 = vor.u32 %v2432_v46, %v2288_v45  ;;  %v2417_v46 = vld [vmem:[%s3528_s1 + $0x344] sm:$0xf] }
  0x7c   : > { %1318 = vmatpush.bf16.msrb.mxu0 %v2128_v39  ;;  %v1092_v39 = vrot.slane %v1090_v9, 2  ;;  %v2258_v9 = vld [vmem:[%s3528_s1 + $0x378] sm:$0xf0] }
  0x7e   : > { %1283 = vmatpush.bf16.msrb.mxu1 %v2100_v61  ;;  %v1093_v61 = vor.u32 %v1092_v39, %v1089_v38  ;;  %1561 = vmatpush.bf16.msra.mxu3 %v2289_v49  ;;  %v2242_v38 = vld [vmem:[%s3528_s1 + $0x358] sm:$0xf0]  ;;  %v2233_v39 = vor.u32 %v2418_v28, %v2232_v27  ;;  %v2414_v49 = vld [vmem:[%s3528_s1 + $0x324] sm:$0xf0] }
  0x7f   : > { %1026 = vmatmul.bf16.gmra.mxu0 %v827_v60  ;;  %2063 = vmatmul.msk.bf16.gmra.mxu2 %vm390_vm1, %v3239_v53  ;;  %v2431_v60 = vld [vmem:[%s3528_s1 + $0x3b4] sm:$0xf]  ;;  %v2277_v53 = vor.u32 %v2427_v40, %v2274_v47  ;;  %v2234_v40 = vld [vmem:[%s3528_s1 + $0x348] sm:$0xf0]  ;;  %v2225_v47 = vor.u32 %v2416_v42, %v2224_v41 }
  0x80   : > { %1319 = vmatpush.bf16.msrb.mxu0 %v2120_v56  ;;  %v1110_v56 = vor.u32 %v1109_v25, %v1106_v52  ;;  %v2293_v12 = vor.u32 %v2431_v60, %v2290_v63  ;;  %v1102_v5 = vsel %vm1085_vm4, %v1093_v61, %v3345_v37  ;;  %v2250_v52 = vld [vmem:[%s3528_s1 + $0x368] sm:$0xf0]  ;;  %v2241_v25 = vor.u32 %v2420_v15, %v2240_v51  ;;  %v2413_v60 = vld [vmem:[%s3528_s1 + $0x324] sm:$0xf] }
  0x81   : > { %v2253_v34 = vor.u32 %v2421_v23, %v2250_v52  ;;  %v2218_v61 = vld [vmem:[%s3528_s1 + $0x328] sm:$0xf0]  ;;  %v1387_v63 = vrot.slane %v2760_v57, 1  ;;  %v1393_v57 = vrot.slane %v3197_v14, 1  ;;  %v214_v52 = vld [vmem:[#allocation2] sm:$0x3] }
  0x82   : > { %1284 = vmatpush.bf16.msrb.mxu1 %v2092_v20  ;;  %v1119_v4 = vsel %vm1085_vm4, %v1110_v56, %v3334_v50  ;;  %1599 = vmatpush.bf16.msra.mxu2 %v2293_v12  ;;  %v2261_v20 = vor.u32 %v2423_v8, %v2258_v9  ;;  %v2237_v56 = vor.u32 %v2417_v46, %v2234_v40  ;;  %v216_v28 = vperm.slane %v214_v52, 0 }
  0x83   : > { %1562 = vmatpush.bf16.msra.mxu3 %v2281_v62  ;;  %v2221_v37 = vor.u32 %v2413_v60, %v2218_v61  ;;  %v1391_v62 = vrot.slane %v2826_v32, 1 }
  0x84   : > { %1320 = vmatpush.bf16.msrb.mxu0 %v2112_v7  ;;  %v2269_v7 = vor.u32 %v2425_v11, %v2266_v0  ;;  %v1388_v11 = vrot.slane %v2884_v10, 1 }
  0x85   : > { %2185 = vmatmul.msk.bf16.vlgmr.msrb.gmra.mxu3 %vm390_vm1, %v1119_v4  ;;  %1285 = vmatmul.bf16.vlgmr.msrb.gmra.mxu1 %v1102_v5 }
  0x86   : > { %1536 = vmatpush.bf16.msra.mxu1 %v2273_v26  ;;  %v2282_v26 = vld [vmem:[%s3528_s1 + $0x3a8] sm:$0xf0]  ;;  %v1389_v12 = vsel %vm535_vm2, %v1387_v63, %v1388_v11  ;;  %v1394_v15 = vsel %vm535_vm2, %v1388_v11, %v1393_v57 }
  0x87   : > { %v2285_v29 = vor.u32 %v2429_v24, %v2282_v26 }
  0x88   : > { %1321 = vmatpush.bf16.msrb.mxu0 %v2104_v36  ;;  %v2419_v36 = vld [vmem:[%s3528_s1 + $0x354] sm:$0xf] }
  0x89   : > { %1600 = vmatpush.bf16.msra.mxu2 %v2285_v29  ;;  %v2245_v45 = vor.u32 %v2419_v36, %v2242_v38 }
  0x8a   : > { %1537 = vmatpush.bf16.msra.mxu1 %v2265_v48  ;;  %v2216_v48 = vld [vmem:[%s3528_s1 + $0x320] sm:$0xf] }
  0x8b   : > { %v2217_v59 = vor.u32 %v2414_v49, %v2216_v48 }
  0x8c   : > { %1322 = vmatpush.bf16.msrb.mxu0 %v2096_v35  ;;  %v2415_v35 = vld [vmem:[%s3528_s1 + $0x334] sm:$0xf] }
  0x8d   : > { %v2229_v50 = vor.u32 %v2415_v35, %v2226_v58 }
  0x8e   : > { %1538 = vmatpush.bf16.msra.mxu1 %v2257_v1 }
  0x8f   : > { %1323 = vmatmul.bf16.vlgmr.msrb.gmra.mxu0 %v1102_v5  ;;  %2187 = vmatmul.msk.bf16.vlgmr.msrb.gmra.mxu2 %vm390_vm1, %v1119_v4 }
  0x90   : > { %1574 = vmatpush.bf16.msra.mxu0 %v2277_v53  ;;  %v1390_v53 = vrot.slane %v2695_v22, 1  ;;  %v1395_v22 = vrot.slane %v3181_v6, 1 }
  0x92   : > { %1539 = vmatpush.bf16.msra.mxu1 %v2249_v13  ;;  %v1392_v0 = vsel %vm535_vm2, %v1390_v53, %v1391_v62  ;;  %v1396_v9 = vsel %vm535_vm2, %v1391_v62, %v1395_v22 }
  0x94   : > { %1575 = vmatpush.bf16.msra.mxu0 %v2269_v7 }
  0x95   : > { %2186 = vmatmul.msk.bf16.gmra.mxu3 %vm390_vm1, %v1137_v54  ;;  %1290 = vmatmul.bf16.gmra.mxu1 %v1128_v55 }
  0x96   : > { %1540 = vmatpush.bf16.msra.mxu1 %v2241_v25 }
  0x98   : > { %1576 = vmatpush.bf16.msra.mxu0 %v2261_v20 }
  0x9a   : > { %1541 = vmatpush.bf16.msra.mxu1 %v2233_v39  ;;  %v217_v39 = vperm.slane %v214_v52, 1 }
  0x9c   : > { %1577 = vmatpush.bf16.msra.mxu0 %v2253_v34 }
  0x9e   : > { %1542 = vmatpush.bf16.msra.mxu1 %v2225_v47 }
  0x9f   : > { %1328 = vmatmul.bf16.gmra.mxu0 %v1128_v55  ;;  %2188 = vmatmul.msk.bf16.gmra.mxu2 %vm390_vm1, %v1137_v54 }
  0xa0   : > { %1578 = vmatpush.bf16.msra.mxu0 %v2245_v45 }
  0xa2   : > { %1543 = vmatpush.bf16.msra.mxu1 %v2217_v59  ;;  %v432_v1 = vpop.f32.mrf.mxu1 }
  0xa4   : > { %1579 = vmatpush.bf16.msra.mxu0 %v2237_v56 }
  0xa5   : > { %2310 = vmatmul.msk.bf16.vlgmr.msra.gmra.mxu3 %vm390_vm1, %v1392_v0  ;;  %1544 = vmatmul.bf16.vlgmr.msra.gmra.mxu1 %v1389_v12 }
  0xa8   : > { %1580 = vmatpush.bf16.msra.mxu0 %v2229_v50  ;;  %v470_v2 = vpop.f32.mrf.mxu3 }
  0xaa   : > { %v434_v5 = vpop.f32.mrf.mxu1 }
  0xac   : > { %1581 = vmatpush.bf16.msra.mxu0 %v2221_v37  ;;  %v413_v3 = vpop.f32.mrf.mxu0 }
  0xad   : > { %v433_v4 = vadd.f32 %v432_v1, %v413_v3 }
  0xaf   : > { %1582 = vmatmul.bf16.vlgmr.msra.gmra.mxu0 %v1389_v12  ;;  %2312 = vmatmul.msk.bf16.vlgmr.msra.gmra.mxu2 %vm390_vm1, %v1392_v0  ;;  %v480_v30 = vadd.f32 %v433_v4, %v216_v28 }
  0xb0   : > { %v472_v32 = vpop.f32.mrf.mxu3 }
  0xb2   : > { %v451_v10 = vpop.f32.mrf.mxu2  ;;  %v437_v51 = vpop.f32.mrf.mxu1 }
  0xb3   : > { %v471_v7 = vadd.f32 %v470_v2, %v451_v10 }
  0xb4   : > { %v415_v8 = vpop.f32.mrf.mxu0 }
  0xb5   : > { %v435_v13 = vadd.f32 %v434_v5, %v415_v8  ;;  %2311 = vmatmul.msk.bf16.gmra.mxu3 %vm390_vm1, %v1396_v9  ;;  %1549 = vmatmul.bf16.gmra.mxu1 %v1394_v15  ;;  %v481_v45 = vadd.f32 %v471_v7, %v217_v39 }
  0xb7   : > { %v482_v42 = vadd.f32 %v435_v13, %v216_v28 }
  0xb8   : > { %v475_v18 = vpop.f32.mrf.mxu3 }
  0xba   : > { %v453_v19 = vpop.f32.mrf.mxu2  ;;  %v439_v21 = vpop.f32.mrf.mxu1 }
  0xbb   : > { %v473_v20 = vadd.f32 %v472_v32, %v453_v19 }
  0xbc   : > { %v418_v16 = vpop.f32.mrf.mxu0 }
  0xbd   : > { %v438_v6 = vadd.f32 %v437_v51, %v418_v16  ;;  %v483_v58 = vadd.f32 %v473_v20, %v217_v39 }
  0xbf   : > { %1587 = vmatmul.bf16.gmra.mxu0 %v1394_v15  ;;  %2313 = vmatmul.msk.bf16.gmra.mxu2 %vm390_vm1, %v1396_v9  ;;  %v484_v55 = vadd.f32 %v438_v6, %v216_v28 }
  0xc0   : > { %v477_v14 = vpop.f32.mrf.mxu3 }
  0xc2   : > { %v456_v23 = vpop.f32.mrf.mxu2  ;;  %v694_v27 = vpop.f32.mrf.mxu1 }
  0xc3   : > { %v476_v25 = vadd.f32 %v475_v18, %v456_v23 }
  0xc4   : > { %v420_v24 = vpop.f32.mrf.mxu0 }
  0xc5   : > { %v440_v26 = vadd.f32 %v439_v21, %v420_v24  ;;  %v485_v0 = vadd.f32 %v476_v25, %v217_v39 }
  0xc7   : > { %v486_v62 = vadd.f32 %v440_v26, %v216_v28 }
  0xc8   : > { %v713_v29 = vpop.f32.mrf.mxu3 }
  0xc9   : > { %v714_v31 = vadd.f32 %v713_v29, %v694_v27 }
  0xca   : > { %v458_v17 = vpop.f32.mrf.mxu2  ;;  %v696_v38 = vpop.f32.mrf.mxu1 }
  0xcb   : > { %v478_v33 = vadd.f32 %v477_v14, %v458_v17  ;;  %v3458_v36 = vadd.f32 %v714_v31, %v480_v30 }
  0xcc   : > { %v732_v34 = vpop.f32.mrf.mxu0 }
  0xcd   : > { %v487_v57 = vadd.f32 %v478_v33, %v217_v39 }
  0xd0   : > { %v715_v41 = vpop.f32.mrf.mxu3 }
  0xd1   : > { %v716_v43 = vadd.f32 %v715_v41, %v696_v38 }
  0xd2   : > { %v751_v44 = vpop.f32.mrf.mxu2  ;;  %v699_v48 = vpop.f32.mrf.mxu1 }
  0xd3   : > { %v752_v46 = vadd.f32 %v751_v44, %v732_v34  ;;  %v3460_v47 = vadd.f32 %v716_v43, %v482_v42 }
  0xd4   : > { %v734_v40 = vpop.f32.mrf.mxu0 }
  0xd5   : > { %v3462_v49 = vadd.f32 %v752_v46, %v481_v45 }
  0xd8   : > { %v718_v54 = vpop.f32.mrf.mxu3 }
  0xd9   : > { %v719_v56 = vadd.f32 %v718_v54, %v699_v48 }
  0xda   : > { %v753_v35 = vpop.f32.mrf.mxu2  ;;  %v701_v61 = vpop.f32.mrf.mxu1 }
  0xdb   : > { %v754_v59 = vadd.f32 %v753_v35, %v734_v40  ;;  %v3464_v60 = vadd.f32 %v719_v56, %v484_v55 }
  0xdc   : > { %v737_v50 = vpop.f32.mrf.mxu0 }
  0xdd   : > { %v3466_v37 = vadd.f32 %v754_v59, %v483_v58 }
  0xe0   : > { %v720_v53 = vpop.f32.mrf.mxu3 }
  0xe1   : > { %v721_v63 = vadd.f32 %v720_v53, %v701_v61 }
  0xe2   : > { %v756_v11 = vpop.f32.mrf.mxu2  ;;  %v984_v3 = vpop.f32.mrf.mxu1 }
  0xe3   : > { %v757_v1 = vadd.f32 %v756_v11, %v737_v50  ;;  %v3468_v2 = vadd.f32 %v721_v63, %v486_v62 }
  0xe4   : > { %v739_v12 = vpop.f32.mrf.mxu0 }
  0xe5   : > { %v3470_v4 = vadd.f32 %v757_v1, %v485_v0 }
  0xe8   : > { %v1003_v5 = vpop.f32.mrf.mxu3 }
  0xe9   : > { %v1004_v42 = vadd.f32 %v1003_v5, %v984_v3 }
  0xea   : > { %v758_v22 = vpop.f32.mrf.mxu2  ;;  %v986_v7 = vpop.f32.mrf.mxu1 }
  0xeb   : > { %v759_v32 = vadd.f32 %v758_v22, %v739_v12  ;;  %v1051_v45 = vadd.f32 %v1004_v42, %v3458_v36 }
  0xec   : > { %v1022_v10 = vpop.f32.mrf.mxu0 }
  0xed   : > { %v3472_v8 = vadd.f32 %v759_v32, %v487_v57 }
  0xf0   : > { %v1005_v9 = vpop.f32.mrf.mxu3 }
  0xf1   : > { %v1006_v55 = vadd.f32 %v1005_v9, %v986_v7 }
  0xf2   : > { %v1041_v13 = vpop.f32.mrf.mxu2  ;;  %v989_v15 = vpop.f32.mrf.mxu1 }
  0xf3   : > { %v1042_v59 = vadd.f32 %v1041_v13, %v1022_v10  ;;  %v1053_v53 = vadd.f32 %v1006_v55, %v3460_v47 }
  0xf4   : > { %v1024_v51 = vpop.f32.mrf.mxu0 }
  0xf5   : > { %v1052_v62 = vadd.f32 %v1042_v59, %v3462_v49 }
  0xf8   : > { %v1008_v18 = vpop.f32.mrf.mxu3 }
  0xf9   : > { %v1009_v5 = vadd.f32 %v1008_v18, %v989_v15 }
  0xfa   : > { %v1043_v19 = vpop.f32.mrf.mxu2  ;;  %v3476_v16 = vpop.f32.mrf.mxu1 }
  0xfb   : > { %v1044_v57 = vadd.f32 %v1043_v19, %v1024_v51  ;;  %v1055_v49 = vadd.f32 %v1009_v5, %v3464_v60 }
  0xfc   : > { %v3474_v20 = vpop.f32.mrf.mxu0 }
 0x100   : > { %v3478_v6 = vpop.f32.mrf.mxu3 }
 0x102   : > { %v3480_v21 = vpop.f32.mrf.mxu2  ;;  %v1286_v23 = vpop.f32.mrf.mxu1 }
 0x103   : > { %v1047_v60 = vadd.f32 %v3480_v21, %v3474_v20 }
 0x104   : > { %v3482_v14 = vpop.f32.mrf.mxu0 }
 0x108   : > { %v1305_v52 = vpop.f32.mrf.mxu3 }
 0x109   : > { %v1306_v44 = vadd.f32 %v1305_v52, %v1286_v23  ;;  %v1054_v52 = vadd.f32 %v1044_v57, %v3466_v37 }
 0x10a   : > { %v3484_v25 = vpop.f32.mrf.mxu2  ;;  %v1288_v26 = vpop.f32.mrf.mxu1 }
 0x10b   : > { %v1353_v40 = vadd.f32 %v1306_v44, %v1051_v45  ;;  %v1056_v45 = vadd.f32 %v1047_v60, %v3470_v4 }
 0x10c   : > { %v1324_v24 = vpop.f32.mrf.mxu0 }
 0x110   : > { %v1307_v27 = vpop.f32.mrf.mxu3 }
 0x111   : > { %v1308_v50 = vadd.f32 %v1307_v27, %v1288_v26  ;;  %v1011_v27 = vadd.f32 %v3478_v6, %v3476_v16 }
 0x112   : > { %v1343_v28 = vpop.f32.mrf.mxu2  ;;  %v1291_v30 = vpop.f32.mrf.mxu1 }
 0x113   : > { %v1344_v36 = vadd.f32 %v1343_v28, %v1324_v24  ;;  %v1355_v11 = vadd.f32 %v1308_v50, %v1053_v53 }
 0x114   : > { %v1326_v29 = vpop.f32.mrf.mxu0 }
 0x115   : > { %v1354_v12 = vadd.f32 %v1344_v36, %v1052_v62 }
 0x118   : > { %v1310_v31 = vpop.f32.mrf.mxu3 }
 0x119   : > { %v1311_v7 = vadd.f32 %v1310_v31, %v1291_v30 }
 0x11a   : > { %v1345_v17 = vpop.f32.mrf.mxu2  ;;  %v1293_v34 = vpop.f32.mrf.mxu1 }
 0x11b   : > { %v1346_v13 = vadd.f32 %v1345_v17, %v1326_v29  ;;  %v1357_v15 = vadd.f32 %v1311_v7, %v1055_v49 }
 0x11c   : > { %v1329_v33 = vpop.f32.mrf.mxu0 }
 0x11d   : > { %v1356_v19 = vadd.f32 %v1346_v13, %v1054_v52 }
 0x120   : > { %v1312_v38 = vpop.f32.mrf.mxu3 }
 0x121   : > { %v1313_v30 = vadd.f32 %v1312_v38, %v1293_v34  ;;  %v1049_v38 = vadd.f32 %v3484_v25, %v3482_v14 }
 0x122   : > { %v1348_v39 = vpop.f32.mrf.mxu2  ;;  %v1545_v43 = vpop.f32.mrf.mxu1 }
 0x123   : > { %v1349_v31 = vadd.f32 %v1348_v39, %v1329_v33 }
 0x124   : > { %v3486_v41 = vpop.f32.mrf.mxu0 }
 0x125   : > { %v1358_v21 = vadd.f32 %v1349_v31, %v1056_v45 }
 0x128   : > { %v1564_v46 = vpop.f32.mrf.mxu3 }
 0x129   : > { %v1565_v48 = vadd.f32 %v1564_v46, %v1545_v43  ;;  %v1057_v43 = vadd.f32 %v1011_v27, %v3468_v2 }
 0x12a   : > { %v3490_v54 = vpop.f32.mrf.mxu2  ;;  %v1547_v58 = vpop.f32.mrf.mxu1 }
 0x12b   : > { %v1612_v56 = vadd.f32 %v1565_v48, %v1353_v40  ;;  %v1359_v6 = vadd.f32 %v1313_v30, %v1057_v43  ;;  %v1351_v40 = vadd.f32 %v3490_v54, %v3486_v41  ;;  %v1058_v48 = vadd.f32 %v1049_v38, %v3472_v8 }
 0x12c   : > { %v1583_v35 = vpop.f32.mrf.mxu0 }
 0x12d   : > { %v1620_v61 = vmax.f32 %v1612_v56, 0.0 }
 0x12f   : > { %1628 = vst [vmem:[%s3495_s22] sm:$0xff] %v1620_v61 }
 0x130   : > { %v1566_v63 = vpop.f32.mrf.mxu3 }
 0x131   : > { %v1567_v0 = vadd.f32 %v1566_v63, %v1547_v58 }
 0x132   : > { %v1602_v1 = vpop.f32.mrf.mxu2  ;;  %v1550_v10 = vpop.f32.mrf.mxu1 }
 0x133   : > { %v1603_v3 = vadd.f32 %v1602_v1, %v1583_v35  ;;  %v1614_v22 = vadd.f32 %v1567_v0, %v1355_v11  ;;  %v1360_v35 = vadd.f32 %v1351_v40, %v1058_v48 }
 0x134   : > { %v1585_v47 = vpop.f32.mrf.mxu0 }
 0x135   : > { %v1613_v32 = vadd.f32 %v1603_v3, %v1354_v12  ;;  %v1622_v9 = vmax.f32 %v1614_v22, 0.0 }
 0x137   : > { %v1621_v23 = vmax.f32 %v1613_v32, 0.0  ;;  %1631 = vst [vmem:[%s3495_s22 + $0x10] sm:$0xff] %v1622_v9 }
 0x138   : > { %v1569_v24 = vpop.f32.mrf.mxu3 }
 0x139   : > { %1630 = vst.msk [vmem:[%s3495_s22 + $0x8] sm:$0xff] %vm1629_vm5, %v1621_v23  ;;  %v1570_v18 = vadd.f32 %v1569_v24, %v1550_v10 }
 0x13a   : > { %v1604_v51 = vpop.f32.mrf.mxu2  ;;  %v1552_v42 = vpop.f32.mrf.mxu1 }
 0x13b   : > { %v1605_v26 = vadd.f32 %v1604_v51, %v1585_v47  ;;  %v1616_v28 = vadd.f32 %v1570_v18, %v1357_v15 }
 0x13c   : > { %v1588_v44 = vpop.f32.mrf.mxu0 }
 0x13d   : > { %v1615_v29 = vadd.f32 %v1605_v26, %v1356_v19  ;;  %v1624_v37 = vmax.f32 %v1616_v28, 0.0 }
 0x13f   : > { %v1623_v17 = vmax.f32 %v1615_v29, 0.0  ;;  %1633 = vst [vmem:[%s3495_s22 + $0x20] sm:$0xff] %v1624_v37 }
 0x140   : > { %v1571_v16 = vpop.f32.mrf.mxu3 }
 0x141   : > { %1632 = vst.msk [vmem:[%s3495_s22 + $0x18] sm:$0xff] %vm1629_vm5, %v1623_v17  ;;  %v1572_v46 = vadd.f32 %v1571_v16, %v1552_v42 }
 0x142   : > { %v1607_v20 = vpop.f32.mrf.mxu2 }
 0x143   : > { %v1608_v34 = vadd.f32 %v1607_v20, %v1588_v44  ;;  %v1618_v33 = vadd.f32 %v1572_v46, %v1359_v6 }
 0x144   : > { %v1590_v55 = vpop.f32.mrf.mxu0 }
 0x145   : > { %v1617_v2 = vadd.f32 %v1608_v34, %v1358_v21  ;;  %v1626_v39 = vmax.f32 %v1618_v33, 0.0 }
 0x147   : > { %v1625_v4 = vmax.f32 %v1617_v2, 0.0  ;;  %1635 = vst [vmem:[%s3495_s22 + $0x30] sm:$0xff] %v1626_v39 }
 0x149   : > { %1634 = vst.msk [vmem:[%s3495_s22 + $0x28] sm:$0xff] %vm1629_vm5, %v1625_v4 }
 0x14a   : > { %v1609_v56 = vpop.f32.mrf.mxu2 }
 0x14b   : > { %v1610_v58 = vadd.f32 %v1609_v56, %v1590_v55 }
 0x14d   : > { %v1619_v59 = vadd.f32 %v1610_v58, %v1360_v35 }
 0x14f   : > { %v1627_v50 = vmax.f32 %v1619_v59, 0.0 }
 0x151   : > { %1636 = vst.msk [vmem:[%s3495_s22 + $0x38] sm:$0xff] %vm1629_vm5, %v1627_v50 }
 0x152 PF: > { %s14_s12 = sadd.s32 1, %s2497_s12  }
 0x153   : > { %p11_p7 = scmp.ge.s32.totalorder %s14_s12, 4  }
 0x155   :  { %13 = sbr.rel (!%p11_p7) target bundleno = 1 (0x1), region = 71 }
 0x15a   :  { %1658 = vsyncpa [#allocation3], 1 }
 0x15b   :  { %1660 = vsyncpa [#allocation3 + $0x1], 1 }

// kernel: forward.13
= control target key start
LH: loop header
LB: loop body
LE: loop exit
PB: predicated region body
PF: predicated region fallthrough
CT: control target
= control target key end

     0   :  { %s2443_s12 = smov 0   ;;  %s3480_s0 = inlined_call_operand.vmem [shape: f32[2,36,208], index: 0, kind: input, shape index: {}]   ;;  %s3481_s1 = inlined_call_operand.vmem [shape: bf16[5,208,192], index: 1, kind: input, shape index: {}]   ;;  %s3482_s2 = inlined_call_operand.vmem [shape: f32[1,192], index: 2, kind: input, shape index: {}]   ;;  %s3483_s3 = inlined_call_operand.vmem [shape: f32[2,32,192], index: 3, kind: output, shape index: {}]  }
   0x1 LB: > { %s1621_s13 = sadd.s32 4294967295, %s2421_s12   ;;  %p1625_p0 = scmp.ge.s32.totalorder %s2421_s12, 1  ;;  %s2421_s12 = sphi %s2443_s12, %s13_s12  }
   0x2   : > { %p137_p1 = scmp.lt.s32.totalorder %s2421_s12, 3 }
   0x4   : > { %p138_p2 = pnand %p1625_p0, %p137_p1 }
   0x5   : > { %p161_p3 = scmp.lt.s32.totalorder (!%p138_p2), %s1621_s13, 1 }
   0x6   : > { %141 = sbr.rel (%p138_p2) target bundleno = 339 (0x153), region = 32 }
   0xb   : > { %v1687_v0 = vld [vmem:[%s3481_s1 + $0x70] sm:$0xf]  ;;  %v2291_v1 = vld [vmem:[%s3481_s1 + $0x74] sm:$0xf0]  ;;  %v2290_v2 = vld [vmem:[%s3481_s1 + $0x74] sm:$0xf] }
   0xc   : > { %v1688_v3 = vor.u32 %v2291_v1, %v1687_v0  ;;  %v1689_v4 = vld [vmem:[%s3481_s1 + $0x78] sm:$0xf0]  ;;  %v2300_v5 = vld [vmem:[%s3481_s1 + $0xc4] sm:$0xf]  ;;  %v1729_v6 = vld [vmem:[%s3481_s1 + $0xc8] sm:$0xf0] }
   0xd   : > { %v1692_v7 = vor.u32 %v2290_v2, %v1689_v4  ;;  %v1732_v8 = vor.u32 %v2300_v5, %v1729_v6  ;;  %v1679_v9 = vld [vmem:[%s3481_s1 + $0x60] sm:$0xf]  ;;  %v2289_v10 = vld [vmem:[%s3481_s1 + $0x64] sm:$0xf0]  ;;  %v2288_v11 = vld [vmem:[%s3481_s1 + $0x64] sm:$0xf] }
   0xe   : > { %376 = vmatpush.bf16.msra.mxu0 %v1688_v3  ;;  %v1680_v12 = vor.u32 %v2289_v10, %v1679_v9  ;;  %v1681_v13 = vld [vmem:[%s3481_s1 + $0x68] sm:$0xf0]  ;;  %v2298_v14 = vld [vmem:[%s3481_s1 + $0xb4] sm:$0xf]  ;;  %v1721_v15 = vld [vmem:[%s3481_s1 + $0xb8] sm:$0xf0] }
   0xf   : > { %414 = vmatpush.bf16.msra.mxu2 %v1692_v7  ;;  %436 = vmatpush.bf16.msra.mxu3 %v1732_v8  ;;  %v1684_v16 = vor.u32 %v2288_v11, %v1681_v13  ;;  %v1724_v17 = vor.u32 %v2298_v14, %v1721_v15  ;;  %v1727_v18 = vld [vmem:[%s3481_s1 + $0xc0] sm:$0xf]  ;;  %v2301_v19 = vld [vmem:[%s3481_s1 + $0xc4] sm:$0xf0]  ;;  %v1671_v20 = vld [vmem:[%s3481_s1 + $0x50] sm:$0xf] }
  0x10   : > { %v1728_v21 = vor.u32 %v2301_v19, %v1727_v18  ;;  %v2287_v22 = vld [vmem:[%s3481_s1 + $0x54] sm:$0xf0]  ;;  %v2286_v23 = vld [vmem:[%s3481_s1 + $0x54] sm:$0xf]  ;;  %v1673_v24 = vld [vmem:[%s3481_s1 + $0x58] sm:$0xf0] }
  0x11   : > { %v2296_v25 = vld [vmem:[%s3481_s1 + $0xa4] sm:$0xf]  ;;  %v1713_v26 = vld [vmem:[%s3481_s1 + $0xa8] sm:$0xf0]  ;;  %v1719_v27 = vld [vmem:[%s3481_s1 + $0xb0] sm:$0xf]  ;;  %v1672_v28 = vor.u32 %v2287_v22, %v1671_v20  ;;  %v1676_v32 = vor.u32 %v2286_v23, %v1673_v24 }
  0x12   : > { %377 = vmatpush.bf16.msra.mxu0 %v1680_v12  ;;  %398 = vmatpush.bf16.msra.mxu1 %v1728_v21  ;;  %v2299_v29 = vld [vmem:[%s3481_s1 + $0xb4] sm:$0xf0]  ;;  %v1663_v30 = vld [vmem:[%s3481_s1 + $0x40] sm:$0xf]  ;;  %v2285_v31 = vld [vmem:[%s3481_s1 + $0x44] sm:$0xf0]  ;;  %v1716_v33 = vor.u32 %v2296_v25, %v1713_v26 }
  0x13   : > { %415 = vmatpush.bf16.msra.mxu2 %v1684_v16  ;;  %437 = vmatpush.bf16.msra.mxu3 %v1724_v17  ;;  %v1720_v34 = vor.u32 %v2299_v29, %v1719_v27  ;;  %v2284_v35 = vld [vmem:[%s3481_s1 + $0x44] sm:$0xf]  ;;  %v1665_v36 = vld [vmem:[%s3481_s1 + $0x48] sm:$0xf0]  ;;  %v2294_v37 = vld [vmem:[%s3481_s1 + $0x94] sm:$0xf]  ;;  %v1664_v41 = vor.u32 %v2285_v31, %v1663_v30 }
  0x14   : > { %v1705_v38 = vld [vmem:[%s3481_s1 + $0x98] sm:$0xf0]  ;;  %v1711_v39 = vld [vmem:[%s3481_s1 + $0xa0] sm:$0xf]  ;;  %v2297_v40 = vld [vmem:[%s3481_s1 + $0xa4] sm:$0xf0]  ;;  %v1668_v46 = vor.u32 %v2284_v35, %v1665_v36 }
  0x15   : > { %v1712_v42 = vor.u32 %v2297_v40, %v1711_v39  ;;  %v1655_v43 = vld [vmem:[%s3481_s1 + $0x30] sm:$0xf]  ;;  %v2283_v44 = vld [vmem:[%s3481_s1 + $0x34] sm:$0xf0]  ;;  %v2282_v45 = vld [vmem:[%s3481_s1 + $0x34] sm:$0xf]  ;;  %v1708_v47 = vor.u32 %v2294_v37, %v1705_v38 }
  0x16   : > { %378 = vmatpush.bf16.msra.mxu0 %v1672_v28  ;;  %399 = vmatpush.bf16.msra.mxu1 %v1720_v34  ;;  %v1703_v48 = vld [vmem:[%s3481_s1 + $0x90] sm:$0xf]  ;;  %v2295_v49 = vld [vmem:[%s3481_s1 + $0x94] sm:$0xf0]  ;;  %v1657_v50 = vld [vmem:[%s3481_s1 + $0x38] sm:$0xf0]  ;;  %v1656_v53 = vor.u32 %v2283_v44, %v1655_v43 }
  0x17   : > { %416 = vmatpush.bf16.msra.mxu2 %v1676_v32  ;;  %438 = vmatpush.bf16.msra.mxu3 %v1716_v33  ;;  %v2292_v51 = vld [vmem:[%s3481_s1 + $0x84] sm:$0xf]  ;;  %v1697_v52 = vld [vmem:[%s3481_s1 + $0x88] sm:$0xf0]  ;;  %s3485_s13 = smov (!%p161_p3, %s1621_s13), 1  ;;  %v1704_v54 = vor.u32 %v2295_v49, %v1703_v48  ;;  %v1660_v58 = vor.u32 %v2282_v45, %v1657_v50  ;;  %vm369_vm0 = vcmask 654336  }
  0x18   : > { %v1647_v55 = vld [vmem:[%s3481_s1 + $0x20] sm:$0xf]  ;;  %v2281_v56 = vld [vmem:[%s3481_s1 + $0x24] sm:$0xf0]  ;;  %v2280_v57 = vld [vmem:[%s3481_s1 + $0x24] sm:$0xf]  ;;  %v1700_v59 = vor.u32 %v2292_v51, %v1697_v52 }
  0x19   : > { %s2406_s21 = smul.u32 80, %s3485_s13  ;;  %v1695_v60 = vld [vmem:[%s3481_s1 + $0x80] sm:$0xf]  ;;  %v2293_v61 = vld [vmem:[%s3481_s1 + $0x84] sm:$0xf0]  ;;  %v1648_v5 = vor.u32 %v2281_v56, %v1647_v55  ;;  %vm780_vm2 = vcmask 1046528  }
  0x1a   : > { %379 = vmatpush.bf16.msra.mxu0 %v1664_v41  ;;  %400 = vmatpush.bf16.msra.mxu1 %v1712_v42  ;;  %v1649_v62 = vld [vmem:[%s3481_s1 + $0x28] sm:$0xf0]  ;;  %v1821_v63 = vld [vmem:[%s3481_s1 + $0x140] sm:$0xf]  ;;  %v2317_v0 = vld [vmem:[%s3481_s1 + $0x144] sm:$0xf0]  ;;  %v1696_v6 = vor.u32 %v2293_v61, %v1695_v60 }
  0x1b   : > { %417 = vmatpush.bf16.msra.mxu2 %v1668_v46  ;;  %439 = vmatpush.bf16.msra.mxu3 %v1708_v47  ;;  %s2599_s7 = scalar_lea.vmem %s3480_s0, %s2406_s21  ;;  %v1639_v1 = vld [vmem:[%s3481_s1 + $0x10] sm:$0xf]  ;;  %v1652_v9 = vor.u32 %v2280_v57, %v1649_v62  ;;  %v2279_v10 = vld [vmem:[%s3481_s1 + $0x14] sm:$0xf0]  ;;  %v2278_v11 = vld [vmem:[%s3481_s1 + $0x14] sm:$0xf]  ;;  %v1822_v12 = vor.u32 %v2317_v0, %v1821_v63 }
  0x1c   : > { %v172_v2 = vld [vmem:[%s2599_s7] sm:$0xff]  ;;  %v173_v3 = vld [vmem:[%s2599_s7 + $0x8] sm:$0xff]  ;;  %v174_v4 = vld [vmem:[%s2599_s7 + $0x10] sm:$0xff]  ;;  %v1640_v22 = vor.u32 %v2279_v10, %v1639_v1  ;;  %vm492_vm1 = vsmask.f32 7424  ;;  %vm1316_vm4 = vcmask 1045504  }
  0x1d   : > { %v175_v7 = vld [vmem:[%s2599_s7 + $0x18] sm:$0xff]  ;;  %v182_v8 = vpack.c.bf16 %v173_v3, %v172_v2  ;;  %v1861_v15 = vld [vmem:[%s3481_s1 + $0x190] sm:$0xf]  ;;  %v1631_v23 = vld [vmem:[%s3481_s1] sm:$0xf]  ;;  %s2275_s20 = sshll.u32 %s3485_s13, 6 }
  0x1e   : > { %380 = vmatpush.bf16.msra.mxu0 %v1656_v53  ;;  %401 = vmatpush.bf16.msra.mxu1 %v1704_v54  ;;  %v183_v13 = vpack.c.bf16 %v175_v7, %v174_v4  ;;  %v1641_v14 = vld [vmem:[%s3481_s1 + $0x18] sm:$0xf0]  ;;  %v2327_v16 = vld [vmem:[%s3481_s1 + $0x194] sm:$0xf0]  ;;  %v1813_v18 = vld [vmem:[%s3481_s1 + $0x130] sm:$0xf]  ;;  %s3448_s23 = scalar_lea.vmem %s3483_s3, %s2275_s20 }
  0x1f   : > { %418 = vmatpush.bf16.msra.mxu2 %v1660_v58  ;;  %440 = vmatpush.bf16.msra.mxu3 %v1700_v59  ;;  %v226_v17 = vunpack.c.h.b16 %v182_v8  ;;  %v2315_v19 = vld [vmem:[%s3481_s1 + $0x134] sm:$0xf0]  ;;  %v1862_v20 = vor.u32 %v2327_v16, %v1861_v15  ;;  %v2277_v24 = vld [vmem:[%s3481_s1 + $0x4] sm:$0xf0]  ;;  %v2276_v25 = vld [vmem:[%s3481_s1 + $0x4] sm:$0xf]  ;;  %v1644_v26 = vor.u32 %v2278_v11, %v1641_v14  ;;  %v225_v35 = vunpack.c.l.b16 %v182_v8 }
  0x20   : > { %v228_v21 = vunpack.c.h.b16 %v183_v13  ;;  %v1633_v27 = vld [vmem:[%s3481_s1 + $0x8] sm:$0xf0]  ;;  %v2326_v28 = vld [vmem:[%s3481_s1 + $0x194] sm:$0xf]  ;;  %v2316_v29 = vld [vmem:[%s3481_s1 + $0x144] sm:$0xf]  ;;  %v1814_v31 = vor.u32 %v2315_v19, %v1813_v18  ;;  %v227_v36 = vunpack.c.l.b16 %v183_v13  ;;  %v1632_v41 = vor.u32 %v2277_v24, %v1631_v23 }
  0x21   : > { %v1823_v32 = vld [vmem:[%s3481_s1 + $0x148] sm:$0xf0]  ;;  %v1853_v33 = vld [vmem:[%s3481_s1 + $0x180] sm:$0xf]  ;;  %v2325_v34 = vld [vmem:[%s3481_s1 + $0x184] sm:$0xf0]  ;;  %v1636_v45 = vor.u32 %v2276_v25, %v1633_v27 }
  0x22   : > { %381 = vmatpush.bf16.msra.mxu0 %v1648_v5  ;;  %402 = vmatpush.bf16.msra.mxu1 %v1696_v6  ;;  %v2647_v30 = vpack.c.b16 %v228_v21, %v226_v17  ;;  %v1863_v37 = vld [vmem:[%s3481_s1 + $0x198] sm:$0xf0]  ;;  %v1805_v38 = vld [vmem:[%s3481_s1 + $0x120] sm:$0xf]  ;;  %v2313_v39 = vld [vmem:[%s3481_s1 + $0x124] sm:$0xf0]  ;;  %v1854_v40 = vor.u32 %v2325_v34, %v1853_v33  ;;  %v1826_v46 = vor.u32 %v2316_v29, %v1823_v32 }
  0x23   : > { %419 = vmatpush.bf16.msra.mxu2 %v1652_v9  ;;  %691 = vmatpush.bf16.msrb.mxu3 %v1862_v20  ;;  %v176_v42 = vld [vmem:[%s2599_s7 + $0x20] sm:$0xff]  ;;  %v177_v43 = vld [vmem:[%s2599_s7 + $0x28] sm:$0xff]  ;;  %v1845_v44 = vld [vmem:[%s3481_s1 + $0x170] sm:$0xf]  ;;  %v1866_v50 = vor.u32 %v2326_v28, %v1863_v37  ;;  %v1806_v51 = vor.u32 %v2313_v39, %v1805_v38  ;;  %v2690_v55 = vpack.c.b16 %v227_v36, %v225_v35  ;;  %vm1040_vm3 = vsmask.f32 6400 }
  0x24   : > { %1735 = vmatmul.msk.bf16.vlgmr.msra.gmra.mxu3 %vm369_vm0, %v2647_v30  ;;  %v178_v47 = vld [vmem:[%s2599_s7 + $0x30] sm:$0xff]  ;;  %v179_v48 = vld [vmem:[%s2599_s7 + $0x38] sm:$0xff]  ;;  %v2324_v57 = vld [vmem:[%s3481_s1 + $0x184] sm:$0xf]  ;;  %v2701_v60 = vpack.c.bf16 %v177_v43, %v176_v42  ;;  %v507_v34 = vshll.u32 %v2647_v30, 16  ;;  %vm1558_vm5 = vcmask 523264  }
  0x25   : > { %1733 = vmatmul.msk.bf16.vlgmr.msra.gmra.mxu1 %vm369_vm0, %v2647_v30  ;;  %v2323_v49 = vld [vmem:[%s3481_s1 + $0x174] sm:$0xf0]  ;;  %v2314_v52 = vld [vmem:[%s3481_s1 + $0x134] sm:$0xf]  ;;  %v1815_v53 = vld [vmem:[%s3481_s1 + $0x138] sm:$0xf0]  ;;  %v2703_v61 = vpack.c.bf16 %v179_v48, %v178_v47 }
  0x26   : > { %669 = vmatpush.bf16.msrb.mxu1 %v1822_v12  ;;  %382 = vmatpush.bf16.msra.mxu0 %v1640_v22  ;;  %v1797_v54 = vld [vmem:[%s3481_s1 + $0x110] sm:$0xf]  ;;  %v2311_v56 = vld [vmem:[%s3481_s1 + $0x114] sm:$0xf0]  ;;  %v1855_v58 = vld [vmem:[%s3481_s1 + $0x188] sm:$0xf0]  ;;  %v1846_v59 = vor.u32 %v2323_v49, %v1845_v44  ;;  %v1818_v0 = vor.u32 %v2314_v52, %v1815_v53  ;;  %v230_v10 = vunpack.c.h.b16 %v2701_v60 }
  0x27   : > { %420 = vmatpush.bf16.msra.mxu2 %v1644_v26  ;;  %692 = vmatpush.bf16.msrb.mxu3 %v1854_v40  ;;  %v1837_v62 = vld [vmem:[%s3481_s1 + $0x160] sm:$0xf]  ;;  %v2321_v63 = vld [vmem:[%s3481_s1 + $0x164] sm:$0xf0]  ;;  %v1798_v1 = vor.u32 %v2311_v56, %v1797_v54  ;;  %v1858_v2 = vor.u32 %v2324_v57, %v1855_v58  ;;  %v2312_v3 = vld [vmem:[%s3481_s1 + $0x124] sm:$0xf]  ;;  %v232_v11 = vunpack.c.h.b16 %v2703_v61  ;;  %v229_v26 = vunpack.c.l.b16 %v2701_v60 }
  0x28   : > { %v1807_v4 = vld [vmem:[%s3481_s1 + $0x128] sm:$0xf0]  ;;  %v1789_v5 = vld [vmem:[%s3481_s1 + $0x100] sm:$0xf]  ;;  %v2309_v6 = vld [vmem:[%s3481_s1 + $0x104] sm:$0xf0]  ;;  %v1838_v7 = vor.u32 %v2321_v63, %v1837_v62  ;;  %v231_v32 = vunpack.c.l.b16 %v2703_v61 }
  0x29   : > { %v2322_v8 = vld [vmem:[%s3481_s1 + $0x174] sm:$0xf]  ;;  %v1847_v9 = vld [vmem:[%s3481_s1 + $0x178] sm:$0xf0]  ;;  %v1829_v12 = vld [vmem:[%s3481_s1 + $0x150] sm:$0xf]  ;;  %v1810_v14 = vor.u32 %v2312_v3, %v1807_v4  ;;  %v1790_v15 = vor.u32 %v2309_v6, %v1789_v5  ;;  %v2757_v24 = vpack.c.b16 %v232_v11, %v230_v10 }
  0x2a   : > { %670 = vmatpush.bf16.msrb.mxu1 %v1814_v31  ;;  %383 = vmatpush.bf16.msra.mxu0 %v1632_v41  ;;  %v2319_v13 = vld [vmem:[%s3481_s1 + $0x154] sm:$0xf0]  ;;  %v2310_v16 = vld [vmem:[%s3481_s1 + $0x114] sm:$0xf]  ;;  %v1799_v17 = vld [vmem:[%s3481_s1 + $0x118] sm:$0xf0]  ;;  %v1850_v18 = vor.u32 %v2322_v8, %v1847_v9  ;;  %v2802_v48 = vpack.c.b16 %v231_v32, %v229_v26 }
  0x2b   : > { %421 = vmatpush.bf16.msra.mxu2 %v1636_v45  ;;  %693 = vmatpush.bf16.msrb.mxu3 %v1846_v59  ;;  %v1781_v19 = vld [vmem:[%s3481_s1 + $0xf0] sm:$0xf]  ;;  %v2307_v20 = vld [vmem:[%s3481_s1 + $0xf4] sm:$0xf0]  ;;  %v1830_v21 = vor.u32 %v2319_v13, %v1829_v12  ;;  %v2320_v22 = vld [vmem:[%s3481_s1 + $0x164] sm:$0xf]  ;;  %v1802_v25 = vor.u32 %v2310_v16, %v1799_v17 }
  0x2c   : > { %v1839_v23 = vld [vmem:[%s3481_s1 + $0x168] sm:$0xf0]  ;;  %v2308_v27 = vld [vmem:[%s3481_s1 + $0x104] sm:$0xf]  ;;  %v1773_v29 = vld [vmem:[%s3481_s1 + $0xe0] sm:$0xf]  ;;  %v1782_v31 = vor.u32 %v2307_v20, %v1781_v19 }
  0x2d   : > { %384 = vmatmul.bf16.vlgmr.msra.gmra.mxu0 %v2690_v55  ;;  %v1791_v28 = vld [vmem:[%s3481_s1 + $0x108] sm:$0xf0]  ;;  %v2305_v33 = vld [vmem:[%s3481_s1 + $0xe4] sm:$0xf0]  ;;  %v1842_v35 = vor.u32 %v2320_v22, %v1839_v23  ;;  %v2318_v36 = vld [vmem:[%s3481_s1 + $0x154] sm:$0xf] }
  0x2e   : > { %707 = vmatpush.bf16.msrb.mxu0 %v1826_v46  ;;  %671 = vmatpush.bf16.msrb.mxu1 %v1806_v51  ;;  %v1831_v37 = vld [vmem:[%s3481_s1 + $0x158] sm:$0xf0]  ;;  %v1995_v38 = vld [vmem:[%s3481_s1 + $0x260] sm:$0xf]  ;;  %v2353_v39 = vld [vmem:[%s3481_s1 + $0x264] sm:$0xf0]  ;;  %v1794_v44 = vor.u32 %v2308_v27, %v1791_v28  ;;  %v1774_v49 = vor.u32 %v2305_v33, %v1773_v29 }
  0x2f   : > { %729 = vmatpush.bf16.msrb.mxu2 %v1866_v50  ;;  %694 = vmatpush.bf16.msrb.mxu3 %v1838_v7  ;;  %v496_v40 = vshll.u32 %v2690_v55, 16  ;;  %v1996_v41 = vor.u32 %v2353_v39, %v1995_v38  ;;  %v2352_v42 = vld [vmem:[%s3481_s1 + $0x264] sm:$0xf]  ;;  %v1997_v43 = vld [vmem:[%s3481_s1 + $0x268] sm:$0xf0]  ;;  %v505_v45 = vshrl.u32 %v2647_v30, 16  ;;  %v1834_v53 = vor.u32 %v2318_v36, %v1831_v37 }
  0x30   : > { %422 = vmatmul.bf16.vlgmr.msra.gmra.mxu2 %v2690_v55  ;;  %v511_v46 = vshll.u32 %v2757_v24, 16  ;;  %v2306_v47 = vld [vmem:[%s3481_s1 + $0xf4] sm:$0xf]  ;;  %v1783_v50 = vld [vmem:[%s3481_s1 + $0xf8] sm:$0xf0]  ;;  %v509_v54 = vrot.slane %v507_v34, 1  ;;  %v2000_v57 = vor.u32 %v2352_v42, %v1997_v43 }
  0x31   : > { %v1765_v51 = vld [vmem:[%s3481_s1 + $0xd0] sm:$0xf]  ;;  %v2303_v52 = vld [vmem:[%s3481_s1 + $0xd4] sm:$0xf0]  ;;  %v494_v56 = vshrl.u32 %v2690_v55, 16  ;;  %v498_v62 = vrot.slane %v496_v40, 1  ;;  %v1786_v3 = vor.u32 %v2306_v47, %v1783_v50 }
  0x32   : > { %708 = vmatpush.bf16.msrb.mxu0 %v1818_v0  ;;  %672 = vmatpush.bf16.msrb.mxu1 %v1798_v1  ;;  %v1987_v58 = vld [vmem:[%s3481_s1 + $0x250] sm:$0xf]  ;;  %v2351_v59 = vld [vmem:[%s3481_s1 + $0x254] sm:$0xf0]  ;;  %v2304_v60 = vld [vmem:[%s3481_s1 + $0xe4] sm:$0xf]  ;;  %v1766_v7 = vor.u32 %v2303_v52, %v1765_v51  ;;  %v510_v17 = vor.u32 %v509_v54, %v505_v45 }
  0x33   : > { %730 = vmatpush.bf16.msrb.mxu2 %v1858_v2  ;;  %695 = vmatpush.bf16.msrb.mxu3 %v1830_v21  ;;  %v1775_v61 = vld [vmem:[%s3481_s1 + $0xe8] sm:$0xf0]  ;;  %v501_v63 = vshll.u32 %v2802_v48, 16  ;;  %v1955_v0 = vld [vmem:[%s3481_s1 + $0x210] sm:$0xf]  ;;  %v1988_v2 = vor.u32 %v2351_v59, %v1987_v58  ;;  %v2855_v13 = vrot.slane %v511_v46, 1  ;;  %v499_v23 = vor.u32 %v498_v62, %v494_v56 }
  0x34   : > { %1736 = vmatmul.msk.bf16.gmra.mxu3 %vm369_vm0, %v2757_v24  ;;  %v2343_v1 = vld [vmem:[%s3481_s1 + $0x214] sm:$0xf0]  ;;  %v2350_v4 = vld [vmem:[%s3481_s1 + $0x254] sm:$0xf]  ;;  %v1989_v5 = vld [vmem:[%s3481_s1 + $0x258] sm:$0xf0] }
  0x35   : > { %1734 = vmatmul.msk.bf16.gmra.mxu1 %vm369_vm0, %v2757_v24  ;;  %v1979_v6 = vld [vmem:[%s3481_s1 + $0x240] sm:$0xf]  ;;  %v181_v9 = vld [vmem:[%s2599_s7 + $0x48] sm:$0xf]  ;;  %v1956_v11 = vor.u32 %v2343_v1, %v1955_v0  ;;  %v1992_v12 = vor.u32 %v2350_v4, %v1989_v5  ;;  %v2867_v19 = vrot.slane %v501_v63, 1  ;;  %v514_v37 = vsel %vm492_vm1, %v510_v17, %v2855_v13 }
  0x36   : > { %709 = vmatpush.bf16.msrb.mxu0 %v1810_v14  ;;  %673 = vmatpush.bf16.msrb.mxu1 %v1790_v15  ;;  %v180_v8 = vld [vmem:[%s2599_s7 + $0x40] sm:$0xf]  ;;  %v2349_v10 = vld [vmem:[%s3481_s1 + $0x244] sm:$0xf0]  ;;  %v2302_v20 = vld [vmem:[%s3481_s1 + $0xd4] sm:$0xf] }
  0x37   : > { %731 = vmatpush.bf16.msrb.mxu2 %v1850_v18  ;;  %951 = vmatpush.bf16.msra.mxu3 %v1996_v41  ;;  %v1947_v14 = vld [vmem:[%s3481_s1 + $0x200] sm:$0xf]  ;;  %v2341_v15 = vld [vmem:[%s3481_s1 + $0x204] sm:$0xf0]  ;;  %v1980_v16 = vor.u32 %v2349_v10, %v1979_v6  ;;  %v1778_v18 = vor.u32 %v2304_v60, %v1775_v61  ;;  %v186_v21 = vpack.c.bf16 %v181_v9, %v180_v8  ;;  %v2348_v22 = vld [vmem:[%s3481_s1 + $0x244] sm:$0xf] }
  0x38   : > { %v2342_v26 = vld [vmem:[%s3481_s1 + $0x214] sm:$0xf]  ;;  %v1981_v27 = vld [vmem:[%s3481_s1 + $0x248] sm:$0xf0]  ;;  %v1948_v28 = vor.u32 %v2341_v15, %v1947_v14  ;;  %v1957_v29 = vld [vmem:[%s3481_s1 + $0x218] sm:$0xf0]  ;;  %v504_v41 = vsel %vm492_vm1, %v499_v23, %v2867_v19 }
  0x39   : > { %v2347_v32 = vld [vmem:[%s3481_s1 + $0x234] sm:$0xf0]  ;;  %v1984_v33 = vor.u32 %v2348_v22, %v1981_v27  ;;  %v489_v39 = vunpack.c.h.b16 %v186_v21  ;;  %v1960_v42 = vor.u32 %v2342_v26, %v1957_v29  ;;  %v2340_v43 = vld [vmem:[%s3481_s1 + $0x204] sm:$0xf]  ;;  %v488_v47 = vunpack.c.l.b16 %v186_v21  ;;  %v1931_v51 = vld [vmem:[%s3481_s1 + $0x1e0] sm:$0xf] }
  0x3a   : > { %710 = vmatpush.bf16.msrb.mxu0 %v1802_v25  ;;  %674 = vmatpush.bf16.msrb.mxu1 %v1782_v31  ;;  %v1767_v25 = vld [vmem:[%s3481_s1 + $0xd8] sm:$0xf0]  ;;  %v1971_v31 = vld [vmem:[%s3481_s1 + $0x230] sm:$0xf]  ;;  %v2339_v36 = vld [vmem:[%s3481_s1 + $0x1f4] sm:$0xf0] }
  0x3b   : > { %732 = vmatpush.bf16.msrb.mxu2 %v1842_v35  ;;  %952 = vmatpush.bf16.msra.mxu3 %v1988_v2  ;;  %v1939_v35 = vld [vmem:[%s3481_s1 + $0x1f0] sm:$0xf]  ;;  %v1770_v38 = vor.u32 %v2302_v20, %v1767_v25  ;;  %v1963_v52 = vld [vmem:[%s3481_s1 + $0x220] sm:$0xf]  ;;  %v2337_v54 = vld [vmem:[%s3481_s1 + $0x1e4] sm:$0xf0]  ;;  %v2930_v59 = vpack.c.b16 %v489_v39, %v489_v39  ;;  %v2932_v62 = vpack.c.b16 %v488_v47, %v488_v47 }
  0x3c   : > { %v1940_v50 = vor.u32 %v2339_v36, %v1939_v35  ;;  %v1973_v58 = vld [vmem:[%s3481_s1 + $0x238] sm:$0xf0]  ;;  %v2344_v1 = vld [vmem:[%s3481_s1 + $0x224] sm:$0xf]  ;;  %v1965_v2 = vld [vmem:[%s3481_s1 + $0x228] sm:$0xf0] }
  0x3d   : > { %389 = vmatmul.bf16.gmra.mxu0 %v2802_v48  ;;  %v2338_v4 = vld [vmem:[%s3481_s1 + $0x1f4] sm:$0xf]  ;;  %v1941_v5 = vld [vmem:[%s3481_s1 + $0x1f8] sm:$0xf0]  ;;  %v1923_v6 = vld [vmem:[%s3481_s1 + $0x1d0] sm:$0xf]  ;;  %v1968_v10 = vor.u32 %v2344_v1, %v1965_v2 }
  0x3e   : > { %711 = vmatpush.bf16.msrb.mxu0 %v1794_v44  ;;  %675 = vmatpush.bf16.msrb.mxu1 %v1774_v49  ;;  %v1949_v44 = vld [vmem:[%s3481_s1 + $0x208] sm:$0xf0]  ;;  %v1972_v49 = vor.u32 %v2347_v32, %v1971_v31  ;;  %v523_v8 = vshrl.u32 %v2757_v24, 16  ;;  %v527_v9 = vshll.u32 %v2930_v59, 16  ;;  %v519_v14 = vshll.u32 %v2932_v62, 16 }
  0x3f   : > { %733 = vmatpush.bf16.msrb.mxu2 %v1834_v53  ;;  %953 = vmatpush.bf16.msra.mxu3 %v1980_v16  ;;  %v2345_v53 = vld [vmem:[%s3481_s1 + $0x224] sm:$0xf0]  ;;  %v1952_v61 = vor.u32 %v2340_v43, %v1949_v44  ;;  %v2336_v15 = vld [vmem:[%s3481_s1 + $0x1e4] sm:$0xf]  ;;  %v1933_v17 = vld [vmem:[%s3481_s1 + $0x1e8] sm:$0xf0] }
  0x40   : > { %427 = vmatmul.bf16.gmra.mxu2 %v2802_v48  ;;  %v1964_v0 = vor.u32 %v2345_v53, %v1963_v52  ;;  %v2333_v20 = vld [vmem:[%s3481_s1 + $0x1c4] sm:$0xf0]  ;;  %v2129_v21 = vld [vmem:[%s3481_s1 + $0x330] sm:$0xf]  ;;  %v2379_v22 = vld [vmem:[%s3481_s1 + $0x334] sm:$0xf0]  ;;  %v525_v25 = vor.u32 %v523_v8, %v2855_v13  ;;  %v1936_v32 = vor.u32 %v2336_v15, %v1933_v17 }
  0x41   : > { %v2378_v23 = vld [vmem:[%s3481_s1 + $0x334] sm:$0xf]  ;;  %v529_v26 = vrot.slane %v527_v9, 1  ;;  %v2130_v27 = vor.u32 %v2379_v22, %v2129_v21  ;;  %v521_v31 = vrot.slane %v519_v14, 1  ;;  %v1925_v36 = vld [vmem:[%s3481_s1 + $0x1d8] sm:$0xf0] }
  0x42   : > { %712 = vmatpush.bf16.msrb.mxu0 %v1786_v3  ;;  %676 = vmatpush.bf16.msrb.mxu1 %v1766_v7  ;;  %v1932_v3 = vor.u32 %v2337_v54, %v1931_v51  ;;  %v2335_v7 = vld [vmem:[%s3481_s1 + $0x1d4] sm:$0xf0]  ;;  %v2334_v35 = vld [vmem:[%s3481_s1 + $0x1d4] sm:$0xf]  ;;  %v2121_v43 = vld [vmem:[%s3481_s1 + $0x320] sm:$0xf] }
  0x43   : > { %989 = vmatpush.bf16.msra.mxu2 %v2000_v57  ;;  %v2346_v57 = vld [vmem:[%s3481_s1 + $0x234] sm:$0xf]  ;;  %954 = vmatpush.bf16.msra.mxu3 %v1972_v49  ;;  %v1924_v16 = vor.u32 %v2335_v7, %v1923_v6  ;;  %v2377_v44 = vld [vmem:[%s3481_s1 + $0x324] sm:$0xf0]  ;;  %v1917_v49 = vld [vmem:[%s3481_s1 + $0x1c8] sm:$0xf0] }
  0x44   : > { %1867 = vmatmul.msk.bf16.vlgmr.msrb.gmra.mxu3 %vm369_vm0, %v514_v37  ;;  %v1976_v60 = vor.u32 %v2346_v57, %v1973_v58  ;;  %v2329_v51 = vld [vmem:[%s3481_s1 + $0x1a4] sm:$0xf0]  ;;  %v2122_v52 = vor.u32 %v2377_v44, %v2121_v43  ;;  %v2089_v53 = vld [vmem:[%s3481_s1 + $0x2e0] sm:$0xf]  ;;  %v2376_v57 = vld [vmem:[%s3481_s1 + $0x324] sm:$0xf] }
  0x45   : > { %677 = vmatmul.bf16.vlgmr.msrb.gmra.mxu1 %v504_v41  ;;  %v2369_v54 = vld [vmem:[%s3481_s1 + $0x2e4] sm:$0xf0]  ;;  %v2123_v58 = vld [vmem:[%s3481_s1 + $0x328] sm:$0xf0]  ;;  %v2105_v6 = vld [vmem:[%s3481_s1 + $0x300] sm:$0xf] }
  0x46   : > { %929 = vmatpush.bf16.msra.mxu1 %v1956_v11  ;;  %713 = vmatpush.bf16.msrb.mxu0 %v1778_v18  ;;  %v1944_v11 = vor.u32 %v2338_v4, %v1941_v5  ;;  %v1915_v18 = vld [vmem:[%s3481_s1 + $0x1c0] sm:$0xf]  ;;  %v2126_v1 = vor.u32 %v2376_v57, %v2123_v58  ;;  %v2330_v4 = vld [vmem:[%s3481_s1 + $0x1b4] sm:$0xf]  ;;  %v1909_v5 = vld [vmem:[%s3481_s1 + $0x1b8] sm:$0xf0]  ;;  %v2090_v7 = vor.u32 %v2369_v54, %v2089_v53 }
  0x47   : > { %990 = vmatpush.bf16.msra.mxu2 %v1992_v12  ;;  %v515_v12 = vshrl.u32 %v2802_v48, 16  ;;  %955 = vmatpush.bf16.msra.mxu3 %v1964_v0  ;;  %v1916_v13 = vor.u32 %v2333_v20, %v1915_v18  ;;  %v2367_v15 = vld [vmem:[%s3481_s1 + $0x2d4] sm:$0xf0]  ;;  %v2374_v17 = vld [vmem:[%s3481_s1 + $0x314] sm:$0xf]  ;;  %v1912_v20 = vor.u32 %v2330_v4, %v1909_v5 }
  0x48   : > { %v2115_v18 = vld [vmem:[%s3481_s1 + $0x318] sm:$0xf0]  ;;  %v2328_v22 = vld [vmem:[%s3481_s1 + $0x1a4] sm:$0xf]  ;;  %v2065_v44 = vld [vmem:[%s3481_s1 + $0x2b0] sm:$0xf] }
  0x49   : > { %v517_v29 = vor.u32 %v515_v12, %v2867_v19  ;;  %v1907_v19 = vld [vmem:[%s3481_s1 + $0x1b0] sm:$0xf]  ;;  %v2118_v21 = vor.u32 %v2374_v17, %v2115_v18  ;;  %v2107_v53 = vld [vmem:[%s3481_s1 + $0x308] sm:$0xf0]  ;;  %v2364_v54 = vld [vmem:[%s3481_s1 + $0x2c4] sm:$0xf] }
  0x4a   : > { %930 = vmatpush.bf16.msra.mxu1 %v1948_v28  ;;  %714 = vmatpush.bf16.msrb.mxu0 %v1770_v38  ;;  %v2131_v28 = vld [vmem:[%s3481_s1 + $0x338] sm:$0xf0]  ;;  %v530_v38 = vsel %vm492_vm1, %v525_v25, %v529_v26  ;;  %v2368_v25 = vld [vmem:[%s3481_s1 + $0x2e4] sm:$0xf]  ;;  %v2075_v57 = vld [vmem:[%s3481_s1 + $0x2c8] sm:$0xf0] }
  0x4b   : > { %991 = vmatpush.bf16.msra.mxu2 %v1984_v33  ;;  %v2134_v33 = vor.u32 %v2378_v23, %v2131_v28  ;;  %1227 = vmatpush.bf16.msrb.mxu3 %v2130_v27  ;;  %v522_v39 = vsel %vm492_vm1, %v517_v29, %v521_v31  ;;  %v1901_v23 = vld [vmem:[%s3481_s1 + $0x1a8] sm:$0xf0]  ;;  %v2097_v28 = vld [vmem:[%s3481_s1 + $0x2f0] sm:$0xf]  ;;  %v2371_v29 = vld [vmem:[%s3481_s1 + $0x2f4] sm:$0xf0] }
  0x4c   : > { %v2091_v27 = vld [vmem:[%s3481_s1 + $0x2e8] sm:$0xf0]  ;;  %v784_v31 = vrot.slane %v2647_v30, 1  ;;  %v2057_v58 = vld [vmem:[%s3481_s1 + $0x2a0] sm:$0xf] }
  0x4d   : > { %715 = vmatmul.bf16.vlgmr.msrb.gmra.mxu0 %v504_v41  ;;  %v1928_v41 = vor.u32 %v2334_v35, %v1925_v36  ;;  %v2098_v35 = vor.u32 %v2371_v29, %v2097_v28  ;;  %v781_v36 = vrot.slane %v2690_v55, 1  ;;  %v2362_v5 = vld [vmem:[%s3481_s1 + $0x2b4] sm:$0xf]  ;;  %v2405_v17 = vld [vmem:[%s3481_s1 + $0x404] sm:$0xf0] }
  0x4e   : > { %967 = vmatpush.bf16.msra.mxu0 %v1960_v42  ;;  %931 = vmatpush.bf16.msra.mxu1 %v1940_v50  ;;  %v2332_v42 = vld [vmem:[%s3481_s1 + $0x1c4] sm:$0xf]  ;;  %v1899_v50 = vld [vmem:[%s3481_s1 + $0x1a0] sm:$0xf]  ;;  %v2357_v29 = vld [vmem:[%s3481_s1 + $0x284] sm:$0xf0] }
  0x4f   : > { %992 = vmatpush.bf16.msra.mxu2 %v1976_v60  ;;  %1228 = vmatpush.bf16.msrb.mxu3 %v2122_v52  ;;  %v2113_v60 = vld [vmem:[%s3481_s1 + $0x310] sm:$0xf]  ;;  %v1920_v0 = vor.u32 %v2332_v42, %v1917_v49  ;;  %v2083_v42 = vld [vmem:[%s3481_s1 + $0x2d8] sm:$0xf0]  ;;  %v2372_v52 = vld [vmem:[%s3481_s1 + $0x304] sm:$0xf] }
  0x50   : > { %1869 = vmatmul.msk.bf16.vlgmr.msrb.gmra.mxu2 %vm369_vm0, %v514_v37  ;;  %v2331_v37 = vld [vmem:[%s3481_s1 + $0x1b4] sm:$0xf0]  ;;  %v2404_v18 = vld [vmem:[%s3481_s1 + $0x404] sm:$0xf]  ;;  %v2041_v28 = vld [vmem:[%s3481_s1 + $0x280] sm:$0xf] }
  0x51   : > { %v1908_v47 = vor.u32 %v2331_v37, %v1907_v19  ;;  %v782_v19 = vrot.slane %v2802_v48, 1  ;;  %v1904_v37 = vor.u32 %v2328_v22, %v1901_v23  ;;  %v2059_v22 = vld [vmem:[%s3481_s1 + $0x2a8] sm:$0xf0] }
  0x52   : > { %968 = vmatpush.bf16.msra.mxu0 %v1952_v61  ;;  %932 = vmatpush.bf16.msra.mxu1 %v1932_v3  ;;  %v2375_v61 = vld [vmem:[%s3481_s1 + $0x314] sm:$0xf0]  ;;  %v1900_v3 = vor.u32 %v2329_v51, %v1899_v50 }
  0x53   : > { %993 = vmatpush.bf16.msra.mxu2 %v1968_v10  ;;  %v2114_v2 = vor.u32 %v2375_v61, %v2113_v60  ;;  %v2081_v10 = vld [vmem:[%s3481_s1 + $0x2d0] sm:$0xf]  ;;  %v783_v49 = vsel %vm780_vm2, %v781_v36, %v782_v19  ;;  %v2110_v60 = vor.u32 %v2372_v52, %v2107_v53  ;;  %v2361_v61 = vld [vmem:[%s3481_s1 + $0x2a4] sm:$0xf0]  ;;  %v2247_v52 = vld [vmem:[%s3481_s1 + $0x3e0] sm:$0xf] }
  0x54   : > { %1868 = vmatmul.msk.bf16.gmra.mxu3 %vm369_vm0, %v530_v38  ;;  %v2082_v26 = vor.u32 %v2367_v15, %v2081_v10  ;;  %v2058_v4 = vor.u32 %v2361_v61, %v2057_v58  ;;  %v2359_v10 = vld [vmem:[%s3481_s1 + $0x294] sm:$0xf0]  ;;  %v2401_v53 = vld [vmem:[%s3481_s1 + $0x3e4] sm:$0xf0]  ;;  %v1049_v61 = vrot.slane %v507_v34, 2 }
  0x55   : > { %682 = vmatmul.bf16.gmra.mxu1 %v522_v39  ;;  %1229 = vmatpush.bf16.msrb.mxu3 %v2114_v2  ;;  %v2393_v34 = vld [vmem:[%s3481_s1 + $0x3a4] sm:$0xf0] }
  0x56   : > { %969 = vmatpush.bf16.msra.mxu0 %v1944_v11  ;;  %933 = vmatpush.bf16.msra.mxu1 %v1924_v16  ;;  %v2373_v11 = vld [vmem:[%s3481_s1 + $0x304] sm:$0xf0] }
  0x57   : > { %1265 = vmatpush.bf16.msrb.mxu2 %v2134_v33  ;;  %v2106_v16 = vor.u32 %v2373_v11, %v2105_v6  ;;  %v2073_v33 = vld [vmem:[%s3481_s1 + $0x2c0] sm:$0xf]  ;;  %v2067_v6 = vld [vmem:[%s3481_s1 + $0x2b8] sm:$0xf0]  ;;  %v789_v11 = vrot.slane %v2930_v59, 1 }
  0x58   : > { %v2070_v15 = vor.u32 %v2362_v5, %v2067_v6  ;;  %v2035_v5 = vld [vmem:[%s3481_s1 + $0x278] sm:$0xf0] }
  0x59   : > { %1230 = vmatpush.bf16.msrb.mxu3 %v2106_v16  ;;  %v2263_v16 = vld [vmem:[%s3481_s1 + $0x400] sm:$0xf] }
  0x5a   : > { %970 = vmatpush.bf16.msra.mxu0 %v1936_v32  ;;  %934 = vmatpush.bf16.msra.mxu1 %v1916_v13  ;;  %v785_v32 = vrot.slane %v2757_v24, 1  ;;  %v2365_v13 = vld [vmem:[%s3481_s1 + $0x2c4] sm:$0xf0]  ;;  %v2264_v23 = vor.u32 %v2405_v17, %v2263_v16  ;;  %v2394_v16 = vld [vmem:[%s3481_s1 + $0x3b4] sm:$0xf] }
  0x5b   : > { %1266 = vmatpush.bf16.msrb.mxu2 %v2126_v1  ;;  %v2099_v1 = vld [vmem:[%s3481_s1 + $0x2f8] sm:$0xf0] }
  0x5c   : > { %v786_v43 = vsel %vm780_vm2, %v784_v31, %v785_v32  ;;  %v3179_v31 = vrot.slane %v505_v45, 1  ;;  %v790_v36 = vsel %vm780_vm2, %v785_v32, %v789_v11  ;;  %v2051_v45 = vld [vmem:[%s3481_s1 + $0x298] sm:$0xf0]  ;;  %v2255_v32 = vld [vmem:[%s3481_s1 + $0x3f0] sm:$0xf]  ;;  %v1042_v11 = vrot.slane %v496_v40, 2 }
  0x5d   : > { %720 = vmatmul.bf16.gmra.mxu0 %v522_v39  ;;  %v2074_v39 = vor.u32 %v2365_v13, %v2073_v33  ;;  %1231 = vmatpush.bf16.msrb.mxu3 %v2098_v35  ;;  %v1052_v13 = vrot.slane %v511_v46, 2  ;;  %v1051_v35 = vrot.slane %v523_v8, 1  ;;  %v2033_v8 = vld [vmem:[%s3481_s1 + $0x270] sm:$0xf]  ;;  %v2225_v17 = vld [vmem:[%s3481_s1 + $0x3b8] sm:$0xf0] }
  0x5e   : > { %971 = vmatpush.bf16.msra.mxu0 %v1928_v41  ;;  %935 = vmatpush.bf16.msra.mxu1 %v1908_v47  ;;  %v2366_v41 = vld [vmem:[%s3481_s1 + $0x2d4] sm:$0xf]  ;;  %v2363_v47 = vld [vmem:[%s3481_s1 + $0x2b4] sm:$0xf0] }
  0x5f   : > { %1267 = vmatpush.bf16.msrb.mxu2 %v2118_v21  ;;  %v2086_v50 = vor.u32 %v2366_v41, %v2083_v42  ;;  %v2066_v51 = vor.u32 %v2363_v47, %v2065_v44  ;;  %v2360_v21 = vld [vmem:[%s3481_s1 + $0x2a4] sm:$0xf]  ;;  %v2355_v41 = vld [vmem:[%s3481_s1 + $0x274] sm:$0xf0]  ;;  %v2043_v42 = vld [vmem:[%s3481_s1 + $0x288] sm:$0xf0]  ;;  %v3278_v40 = vor.u32 %v1052_v13, %v1051_v35 }
  0x60   : > { %1870 = vmatmul.msk.bf16.gmra.mxu2 %vm369_vm0, %v530_v38  ;;  %v2094_v38 = vor.u32 %v2368_v25, %v2091_v27  ;;  %v2265_v25 = vld [vmem:[%s3481_s1 + $0x408] sm:$0xf0]  ;;  %v2062_v33 = vor.u32 %v2360_v21, %v2059_v22  ;;  %v2223_v47 = vld [vmem:[%s3481_s1 + $0x3b0] sm:$0xf]  ;;  %v2391_v22 = vld [vmem:[%s3481_s1 + $0x394] sm:$0xf0] }
  0x61   : > { %v2268_v27 = vor.u32 %v2404_v18, %v2265_v25  ;;  %v2207_v21 = vld [vmem:[%s3481_s1 + $0x390] sm:$0xf]  ;;  %v2397_v25 = vld [vmem:[%s3481_s1 + $0x3c4] sm:$0xf0]  ;;  %v2392_v13 = vld [vmem:[%s3481_s1 + $0x3a4] sm:$0xf] }
  0x62   : > { %972 = vmatpush.bf16.msra.mxu0 %v1920_v0  ;;  %936 = vmatpush.bf16.msra.mxu1 %v1900_v3  ;;  %v2370_v0 = vld [vmem:[%s3481_s1 + $0x2f4] sm:$0xf]  ;;  %v2078_v3 = vor.u32 %v2364_v54, %v2075_v57  ;;  %v1044_v54 = vrot.slane %v515_v12, 1  ;;  %v2034_v57 = vor.u32 %v2355_v41, %v2033_v8  ;;  %v2217_v35 = vld [vmem:[%s3481_s1 + $0x3a8] sm:$0xf0] }
  0x63   : > { %1268 = vmatpush.bf16.msrb.mxu2 %v2110_v60  ;;  %v2102_v2 = vor.u32 %v2370_v0, %v2099_v1  ;;  %v2248_v60 = vor.u32 %v2401_v53, %v2247_v52  ;;  %v1041_v0 = vrot.slane %v494_v56, 1  ;;  %v2399_v56 = vld [vmem:[%s3481_s1 + $0x3d4] sm:$0xf0]  ;;  %v2390_v8 = vld [vmem:[%s3481_s1 + $0x394] sm:$0xf] }
  0x64   : > { %2001 = vmatmul.msk.bf16.vlgmr.msra.gmra.mxu3 %vm369_vm0, %v786_v43  ;;  %v2191_v41 = vld [vmem:[%s3481_s1 + $0x370] sm:$0xf]  ;;  %v2201_v52 = vld [vmem:[%s3481_s1 + $0x388] sm:$0xf0] }
  0x65   : > { %937 = vmatmul.bf16.vlgmr.msra.gmra.mxu1 %v783_v49  ;;  %1487 = vmatpush.bf16.msra.mxu3 %v2264_v23  ;;  %v2231_v23 = vld [vmem:[%s3481_s1 + $0x3c0] sm:$0xf] }
  0x66   : > { %1205 = vmatpush.bf16.msrb.mxu1 %v2090_v7  ;;  %973 = vmatpush.bf16.msra.mxu0 %v1912_v20  ;;  %v2049_v7 = vld [vmem:[%s3481_s1 + $0x290] sm:$0xf] }
  0x67   : > { %1269 = vmatpush.bf16.msrb.mxu2 %v2102_v2  ;;  %v2050_v20 = vor.u32 %v2359_v10, %v2049_v7  ;;  %v2354_v2 = vld [vmem:[%s3481_s1 + $0x274] sm:$0xf]  ;;  %v2400_v7 = vld [vmem:[%s3481_s1 + $0x3e4] sm:$0xf]  ;;  %v2249_v10 = vld [vmem:[%s3481_s1 + $0x3e8] sm:$0xf0] }
  0x68   : > { %v2252_v18 = vor.u32 %v2400_v7, %v2249_v10  ;;  %v2384_v10 = vld [vmem:[%s3481_s1 + $0x364] sm:$0xf] }
  0x6a   : > { %1206 = vmatpush.bf16.msrb.mxu1 %v2082_v26  ;;  %974 = vmatpush.bf16.msra.mxu0 %v1904_v37  ;;  %v787_v26 = vrot.slane %v2932_v62, 1  ;;  %v2358_v37 = vld [vmem:[%s3481_s1 + $0x294] sm:$0xf] }
  0x6b   : > { %v2054_v44 = vor.u32 %v2358_v37, %v2051_v45  ;;  %v2389_v37 = vld [vmem:[%s3481_s1 + $0x384] sm:$0xf0] }
  0x6c   : > { %v788_v46 = vsel %vm780_vm2, %v782_v19, %v787_v26  ;;  %v2356_v19 = vld [vmem:[%s3481_s1 + $0x284] sm:$0xf]  ;;  %v1050_v26 = vor.u32 %v1049_v61, %v3179_v31  ;;  %v2199_v31 = vld [vmem:[%s3481_s1 + $0x380] sm:$0xf] }
  0x6d   : > { %975 = vmatmul.bf16.vlgmr.msra.gmra.mxu0 %v783_v49  ;;  %v2395_v49 = vld [vmem:[%s3481_s1 + $0x3b4] sm:$0xf0]  ;;  %v2046_v12 = vor.u32 %v2356_v19, %v2043_v42  ;;  %v2398_v42 = vld [vmem:[%s3481_s1 + $0x3d4] sm:$0xf] }
  0x6e   : > { %1243 = vmatpush.bf16.msrb.mxu0 %v2094_v38  ;;  %1207 = vmatpush.bf16.msrb.mxu1 %v2074_v39  ;;  %v2042_v38 = vor.u32 %v2357_v29, %v2041_v28  ;;  %v2403_v39 = vld [vmem:[%s3481_s1 + $0x3f4] sm:$0xf0]  ;;  %v2224_v1 = vor.u32 %v2395_v49, %v2223_v47  ;;  %v2232_v28 = vor.u32 %v2397_v25, %v2231_v23  ;;  %v2380_v25 = vld [vmem:[%s3481_s1 + $0x344] sm:$0xf] }
  0x6f   : > { %v1043_v29 = vor.u32 %v1042_v11, %v1041_v0  ;;  %v1054_v45 = vsel %vm1040_vm3, %v1050_v26, %v3278_v40  ;;  %v2387_v19 = vld [vmem:[%s3481_s1 + $0x374] sm:$0xf0]  ;;  %v1064_v0 = vrot.slane %v527_v9, 2  ;;  %v2175_v9 = vld [vmem:[%s3481_s1 + $0x350] sm:$0xf] }
  0x70   : > { %2003 = vmatmul.msk.bf16.vlgmr.msra.gmra.mxu2 %vm369_vm0, %v786_v43  ;;  %v2256_v43 = vor.u32 %v2403_v39, %v2255_v32  ;;  %v2209_v32 = vld [vmem:[%s3481_s1 + $0x398] sm:$0xf0]  ;;  %v2200_v39 = vor.u32 %v2389_v37, %v2199_v31  ;;  %v2192_v53 = vor.u32 %v2387_v19, %v2191_v41  ;;  %v2185_v11 = vld [vmem:[%s3481_s1 + $0x368] sm:$0xf0] }
  0x71   : > { %1525 = vmatpush.bf16.msra.mxu2 %v2268_v27  ;;  %v2228_v27 = vor.u32 %v2394_v16, %v2225_v17  ;;  %v2212_v47 = vor.u32 %v2390_v8, %v2209_v32  ;;  %v2167_v16 = vld [vmem:[%s3481_s1 + $0x340] sm:$0xf]  ;;  %v2381_v17 = vld [vmem:[%s3481_s1 + $0x344] sm:$0xf0]  ;;  %v2169_v26 = vld [vmem:[%s3481_s1 + $0x348] sm:$0xf0] }
  0x72   : > { %1244 = vmatpush.bf16.msrb.mxu0 %v2086_v50  ;;  %1208 = vmatpush.bf16.msrb.mxu1 %v2066_v51  ;;  %v2402_v50 = vld [vmem:[%s3481_s1 + $0x3f4] sm:$0xf]  ;;  %v2257_v51 = vld [vmem:[%s3481_s1 + $0x3f8] sm:$0xf0]  ;;  %v2168_v23 = vor.u32 %v2381_v17, %v2167_v16 }
  0x73   : > { %1488 = vmatpush.bf16.msra.mxu3 %v2256_v43  ;;  %v2260_v58 = vor.u32 %v2402_v50, %v2257_v51  ;;  %v2241_v43 = vld [vmem:[%s3481_s1 + $0x3d8] sm:$0xf0]  ;;  %v1055_v50 = vshrl.u32 %v2932_v62, 16  ;;  %v2388_v51 = vld [vmem:[%s3481_s1 + $0x384] sm:$0xf] }
  0x74   : > { %2002 = vmatmul.msk.bf16.gmra.mxu3 %vm369_vm0, %v790_v36  ;;  %v2244_v49 = vor.u32 %v2398_v42, %v2241_v43 }
  0x75   : > { %942 = vmatmul.bf16.gmra.mxu1 %v788_v46  ;;  %1526 = vmatpush.bf16.msra.mxu2 %v2260_v58  ;;  %v2183_v58 = vld [vmem:[%s3481_s1 + $0x360] sm:$0xf] }
  0x76   : > { %1245 = vmatpush.bf16.msrb.mxu0 %v2078_v3  ;;  %1209 = vmatpush.bf16.msrb.mxu1 %v2058_v4  ;;  %v2239_v3 = vld [vmem:[%s3481_s1 + $0x3d0] sm:$0xf]  ;;  %v2215_v4 = vld [vmem:[%s3481_s1 + $0x3a0] sm:$0xf] }
  0x77   : > { %1489 = vmatpush.bf16.msra.mxu3 %v2248_v60  ;;  %v2240_v6 = vor.u32 %v2399_v56, %v2239_v3  ;;  %v2385_v60 = vld [vmem:[%s3481_s1 + $0x364] sm:$0xf0]  ;;  %v1057_v3 = vrot.slane %v1055_v50, 1 }
  0x78   : > { %v2184_v56 = vor.u32 %v2385_v60, %v2183_v58 }
  0x79   : > { %1527 = vmatpush.bf16.msra.mxu2 %v2252_v18 }
  0x7a   : > { %1246 = vmatpush.bf16.msrb.mxu0 %v2070_v15  ;;  %1210 = vmatpush.bf16.msrb.mxu1 %v2050_v20  ;;  %v1045_v15 = vrot.slane %v501_v63, 2  ;;  %v2216_v20 = vor.u32 %v2393_v34, %v2215_v4  ;;  %v2038_v63 = vor.u32 %v2354_v2, %v2035_v5  ;;  %v2386_v4 = vld [vmem:[%s3481_s1 + $0x374] sm:$0xf]  ;;  %v2193_v34 = vld [vmem:[%s3481_s1 + $0x378] sm:$0xf0] }
  0x7b   : > { %1490 = vmatpush.bf16.msra.mxu3 %v2240_v6  ;;  %v2196_v6 = vor.u32 %v2386_v4, %v2193_v34 }
  0x7d   : > { %980 = vmatmul.bf16.gmra.mxu0 %v788_v46  ;;  %v2220_v46 = vor.u32 %v2392_v13, %v2217_v35  ;;  %1528 = vmatpush.bf16.msra.mxu2 %v2244_v49  ;;  %v1318_v13 = vrot.slane %v2802_v48, 2 }
  0x7e   : > { %1247 = vmatpush.bf16.msrb.mxu0 %v2062_v33  ;;  %1211 = vmatpush.bf16.msrb.mxu1 %v2042_v38  ;;  %v3290_v33 = vor.u32 %v1045_v15, %v1044_v54  ;;  %v2396_v54 = vld [vmem:[%s3481_s1 + $0x3c4] sm:$0xf] }
  0x7f   : > { %1491 = vmatpush.bf16.msra.mxu3 %v2232_v28  ;;  %v1320_v28 = vrot.slane %v2647_v30, 2 }
  0x80   : > { %2004 = vmatmul.msk.bf16.gmra.mxu2 %vm369_vm0, %v790_v36  ;;  %v2208_v36 = vor.u32 %v2391_v22, %v2207_v21  ;;  %v1047_v38 = vsel %vm1040_vm3, %v1043_v29, %v3290_v33  ;;  %v2177_v22 = vld [vmem:[%s3481_s1 + $0x358] sm:$0xf0]  ;;  %v1321_v29 = vrot.slane %v2757_v24, 2  ;;  %v1325_v24 = vrot.slane %v2930_v59, 2 }
  0x82   : > { %1248 = vmatpush.bf16.msrb.mxu0 %v2054_v44  ;;  %1212 = vmatpush.bf16.msrb.mxu1 %v2034_v57  ;;  %v1061_v44 = vshrl.u32 %v2930_v59, 16  ;;  %v2233_v57 = vld [vmem:[%s3481_s1 + $0x3c8] sm:$0xf0]  ;;  %v1322_v35 = vsel %vm1316_vm4, %v1320_v28, %v1321_v29 }
  0x83   : > { %v2236_v2 = vor.u32 %v2396_v54, %v2233_v57  ;;  %v187_v54 = vld [vmem:[%s3482_s2] sm:$0x3] }
  0x84   : > { %2135 = vmatmul.msk.bf16.vlgmr.msrb.gmra.mxu3 %vm369_vm0, %v1054_v45  ;;  %v1063_v61 = vrot.slane %v1061_v44, 1  ;;  %v189_v60 = vperm.slane %v187_v54, 0 }
  0x85   : > { %1213 = vmatmul.bf16.vlgmr.msrb.gmra.mxu1 %v1047_v38  ;;  %1529 = vmatpush.bf16.msra.mxu2 %v2236_v2 }
  0x86   : > { %1465 = vmatpush.bf16.msra.mxu1 %v2224_v1  ;;  %1249 = vmatpush.bf16.msrb.mxu0 %v2046_v12  ;;  %v2204_v1 = vor.u32 %v2388_v51, %v2201_v52  ;;  %v1058_v12 = vrot.slane %v519_v14, 2  ;;  %v2383_v14 = vld [vmem:[%s3481_s1 + $0x354] sm:$0xf0]  ;;  %v1065_v5 = vor.u32 %v1064_v0, %v1063_v61 }
  0x87   : > { %v2176_v15 = vor.u32 %v2383_v14, %v2175_v9 }
  0x88   : > { %v1059_v7 = vor.u32 %v1058_v12, %v1057_v3  ;;  %v1066_v18 = vsel %vm1040_vm3, %v3278_v40, %v1065_v5 }
  0x8a   : > { %1466 = vmatpush.bf16.msra.mxu1 %v2216_v20  ;;  %1250 = vmatpush.bf16.msrb.mxu0 %v2038_v63  ;;  %v2188_v20 = vor.u32 %v2384_v10, %v2185_v11  ;;  %v1060_v21 = vsel %vm1040_vm3, %v3290_v33, %v1059_v7  ;;  %v2382_v63 = vld [vmem:[%s3481_s1 + $0x354] sm:$0xf]  ;;  %v1317_v33 = vrot.slane %v2690_v55, 2  ;;  %v1323_v55 = vrot.slane %v2932_v62, 2 }
  0x8b   : > { %v2180_v40 = vor.u32 %v2382_v63, %v2177_v22 }
  0x8c   : > { %v1319_v31 = vsel %vm1316_vm4, %v1317_v33, %v1318_v13  ;;  %v1324_v42 = vsel %vm1316_vm4, %v1318_v13, %v1323_v55 }
  0x8d   : > { %1251 = vmatmul.bf16.vlgmr.msrb.gmra.mxu0 %v1047_v38 }
  0x8e   : > { %1503 = vmatpush.bf16.msra.mxu0 %v2228_v27  ;;  %1467 = vmatpush.bf16.msra.mxu1 %v2208_v36  ;;  %v2172_v27 = vor.u32 %v2380_v25, %v2169_v26 }
  0x90   : > { %2137 = vmatmul.msk.bf16.vlgmr.msrb.gmra.mxu2 %vm369_vm0, %v1054_v45 }
  0x92   : > { %1504 = vmatpush.bf16.msra.mxu0 %v2220_v46  ;;  %1468 = vmatpush.bf16.msra.mxu1 %v2200_v39  ;;  %v1326_v39 = vsel %vm1316_vm4, %v1321_v29, %v1325_v24 }
  0x94   : > { %2136 = vmatmul.msk.bf16.gmra.mxu3 %vm369_vm0, %v1066_v18 }
  0x95   : > { %1218 = vmatmul.bf16.gmra.mxu1 %v1060_v21 }
  0x96   : > { %1505 = vmatpush.bf16.msra.mxu0 %v2212_v47  ;;  %1469 = vmatpush.bf16.msra.mxu1 %v2192_v53 }
  0x9a   : > { %1506 = vmatpush.bf16.msra.mxu0 %v2204_v1  ;;  %1470 = vmatpush.bf16.msra.mxu1 %v2184_v56  ;;  %v190_v56 = vperm.slane %v187_v54, 1 }
  0x9d   : > { %1256 = vmatmul.bf16.gmra.mxu0 %v1060_v21 }
  0x9e   : > { %1507 = vmatpush.bf16.msra.mxu0 %v2196_v6  ;;  %1471 = vmatpush.bf16.msra.mxu1 %v2176_v15 }
  0xa0   : > { %2138 = vmatmul.msk.bf16.gmra.mxu2 %vm369_vm0, %v1066_v18 }
  0xa2   : > { %1508 = vmatpush.bf16.msra.mxu0 %v2188_v20  ;;  %1472 = vmatpush.bf16.msra.mxu1 %v2168_v23  ;;  %v404_v36 = vpop.f32.mrf.mxu1 }
  0xa4   : > { %2269 = vmatmul.msk.bf16.vlgmr.msra.gmra.mxu3 %vm369_vm0, %v1322_v35 }
  0xa5   : > { %1473 = vmatmul.bf16.vlgmr.msra.gmra.mxu1 %v1319_v31 }
  0xa6   : > { %1509 = vmatpush.bf16.msra.mxu0 %v2180_v40 }
  0xa7   : > { %v442_v37 = vpop.f32.mrf.mxu3 }
  0xaa   : > { %1510 = vmatpush.bf16.msra.mxu0 %v2172_v27  ;;  %v385_v45 = vpop.f32.mrf.mxu0  ;;  %v406_v30 = vpop.f32.mrf.mxu1 }
  0xab   : > { %v405_v46 = vadd.f32 %v404_v36, %v385_v45 }
  0xad   : > { %1511 = vmatmul.bf16.vlgmr.msra.gmra.mxu0 %v1319_v31  ;;  %v452_v1 = vadd.f32 %v405_v46, %v189_v60 }
  0xaf   : > { %v444_v48 = vpop.f32.mrf.mxu3 }
  0xb0   : > { %2271 = vmatmul.msk.bf16.vlgmr.msra.gmra.mxu2 %vm369_vm0, %v1322_v35 }
  0xb2   : > { %v387_v32 = vpop.f32.mrf.mxu0  ;;  %v409_v19 = vpop.f32.mrf.mxu1 }
  0xb3   : > { %v423_v38 = vpop.f32.mrf.mxu2  ;;  %v407_v41 = vadd.f32 %v406_v30, %v387_v32 }
  0xb4   : > { %v443_v8 = vadd.f32 %v442_v37, %v423_v38  ;;  %2270 = vmatmul.msk.bf16.gmra.mxu3 %vm369_vm0, %v1326_v39 }
  0xb5   : > { %1478 = vmatmul.bf16.gmra.mxu1 %v1324_v42  ;;  %v454_v6 = vadd.f32 %v407_v41, %v189_v60 }
  0xb6   : > { %v453_v5 = vadd.f32 %v443_v8, %v190_v56 }
  0xb7   : > { %v447_v43 = vpop.f32.mrf.mxu3 }
  0xba   : > { %v390_v49 = vpop.f32.mrf.mxu0  ;;  %v411_v50 = vpop.f32.mrf.mxu1 }
  0xbb   : > { %v425_v44 = vpop.f32.mrf.mxu2  ;;  %v410_v59 = vadd.f32 %v409_v19, %v390_v49 }
  0xbc   : > { %v445_v47 = vadd.f32 %v444_v48, %v425_v44 }
  0xbd   : > { %1516 = vmatmul.bf16.gmra.mxu0 %v1324_v42  ;;  %v456_v63 = vadd.f32 %v410_v59, %v189_v60 }
  0xbe   : > { %v455_v21 = vadd.f32 %v445_v47, %v190_v56 }
  0xbf   : > { %v449_v62 = vpop.f32.mrf.mxu3 }
  0xc0   : > { %2272 = vmatmul.msk.bf16.gmra.mxu2 %vm369_vm0, %v1326_v39 }
  0xc2   : > { %v392_v53 = vpop.f32.mrf.mxu0  ;;  %v678_v58 = vpop.f32.mrf.mxu1 }
  0xc3   : > { %v428_v51 = vpop.f32.mrf.mxu2  ;;  %v412_v57 = vadd.f32 %v411_v50, %v392_v53 }
  0xc4   : > { %v448_v52 = vadd.f32 %v447_v43, %v428_v51 }
  0xc5   : > { %v458_v13 = vadd.f32 %v412_v57, %v189_v60 }
  0xc6   : > { %v457_v33 = vadd.f32 %v448_v52, %v190_v56 }
  0xc7   : > { %v697_v61 = vpop.f32.mrf.mxu3 }
  0xc8   : > { %v698_v2 = vadd.f32 %v697_v61, %v678_v58 }
  0xca   : > { %v716_v12 = vpop.f32.mrf.mxu0  ;;  %v3411_v4 = vadd.f32 %v698_v2, %v452_v1  ;;  %v680_v34 = vpop.f32.mrf.mxu1 }
  0xcb   : > { %v430_v0 = vpop.f32.mrf.mxu2 }
  0xcc   : > { %v450_v3 = vadd.f32 %v449_v62, %v430_v0 }
  0xce   : > { %v459_v55 = vadd.f32 %v450_v3, %v190_v56 }
  0xcf   : > { %v699_v9 = vpop.f32.mrf.mxu3 }
  0xd0   : > { %v700_v7 = vadd.f32 %v699_v9, %v680_v34 }
  0xd2   : > { %v718_v11 = vpop.f32.mrf.mxu0  ;;  %v3413_v15 = vadd.f32 %v700_v7, %v454_v6  ;;  %v683_v17 = vpop.f32.mrf.mxu1 }
  0xd3   : > { %v735_v14 = vpop.f32.mrf.mxu2 }
  0xd4   : > { %v736_v10 = vadd.f32 %v735_v14, %v716_v12 }
  0xd6   : > { %v3415_v16 = vadd.f32 %v736_v10, %v453_v5 }
  0xd7   : > { %v702_v18 = vpop.f32.mrf.mxu3 }
  0xd8   : > { %v703_v22 = vadd.f32 %v702_v18, %v683_v17 }
  0xda   : > { %v721_v40 = vpop.f32.mrf.mxu0  ;;  %v3417_v25 = vadd.f32 %v703_v22, %v456_v63  ;;  %v685_v27 = vpop.f32.mrf.mxu1 }
  0xdb   : > { %v737_v20 = vpop.f32.mrf.mxu2 }
  0xdc   : > { %v738_v23 = vadd.f32 %v737_v20, %v718_v11 }
  0xde   : > { %v3419_v26 = vadd.f32 %v738_v23, %v455_v21 }
  0xdf   : > { %v704_v28 = vpop.f32.mrf.mxu3 }
  0xe0   : > { %v705_v35 = vadd.f32 %v704_v28, %v685_v27 }
  0xe2   : > { %v723_v31 = vpop.f32.mrf.mxu0  ;;  %v3421_v37 = vadd.f32 %v705_v35, %v458_v13  ;;  %v938_v46 = vpop.f32.mrf.mxu1 }
  0xe3   : > { %v740_v29 = vpop.f32.mrf.mxu2 }
  0xe4   : > { %v741_v36 = vadd.f32 %v740_v29, %v721_v40 }
  0xe6   : > { %v3423_v45 = vadd.f32 %v741_v36, %v457_v33 }
  0xe7   : > { %v957_v30 = vpop.f32.mrf.mxu3 }
  0xe8   : > { %v958_v14 = vadd.f32 %v957_v30, %v938_v46 }
  0xea   : > { %v976_v38 = vpop.f32.mrf.mxu0  ;;  %v940_v32 = vpop.f32.mrf.mxu1  ;;  %v1005_v7 = vadd.f32 %v958_v14, %v3411_v4 }
  0xeb   : > { %v742_v24 = vpop.f32.mrf.mxu2 }
  0xec   : > { %v743_v48 = vadd.f32 %v742_v24, %v723_v31 }
  0xee   : > { %v3425_v8 = vadd.f32 %v743_v48, %v459_v55 }
  0xef   : > { %v959_v39 = vpop.f32.mrf.mxu3 }
  0xf0   : > { %v960_v21 = vadd.f32 %v959_v39, %v940_v32 }
  0xf2   : > { %v978_v19 = vpop.f32.mrf.mxu0  ;;  %v943_v42 = vpop.f32.mrf.mxu1  ;;  %v1007_v28 = vadd.f32 %v960_v21, %v3413_v15 }
  0xf3   : > { %v995_v41 = vpop.f32.mrf.mxu2 }
  0xf4   : > { %v996_v63 = vadd.f32 %v995_v41, %v976_v38 }
  0xf6   : > { %v1006_v29 = vadd.f32 %v996_v63, %v3415_v16 }
  0xf7   : > { %v962_v43 = vpop.f32.mrf.mxu3 }
  0xf8   : > { %v963_v30 = vadd.f32 %v962_v43, %v943_v42 }
  0xfa   : > { %v3427_v47 = vpop.f32.mrf.mxu0  ;;  %v3429_v49 = vpop.f32.mrf.mxu1 }
  0xfb   : > { %v997_v44 = vpop.f32.mrf.mxu2 }
  0xfc   : > { %v998_v24 = vadd.f32 %v997_v44, %v978_v19 }
  0xff   : > { %v3431_v59 = vpop.f32.mrf.mxu3 }
 0x102   : > { %v3435_v62 = vpop.f32.mrf.mxu0  ;;  %v1214_v51 = vpop.f32.mrf.mxu1 }
 0x103   : > { %v3433_v50 = vpop.f32.mrf.mxu2 }
 0x107   : > { %v1233_v52 = vpop.f32.mrf.mxu3 }
 0x108   : > { %v1234_v6 = vadd.f32 %v1233_v52, %v1214_v51  ;;  %v1009_v51 = vadd.f32 %v963_v30, %v3417_v25  ;;  %v1008_v52 = vadd.f32 %v998_v24, %v3419_v26 }
 0x10a   : > { %v1252_v54 = vpop.f32.mrf.mxu0  ;;  %v1216_v57 = vpop.f32.mrf.mxu1  ;;  %v1281_v17 = vadd.f32 %v1234_v6, %v1005_v7 }
 0x10b   : > { %v3437_v53 = vpop.f32.mrf.mxu2 }
 0x10f   : > { %v1235_v58 = vpop.f32.mrf.mxu3 }
 0x110   : > { %v1236_v40 = vadd.f32 %v1235_v58, %v1216_v57  ;;  %v965_v58 = vadd.f32 %v3431_v59, %v3429_v49 }
 0x112   : > { %v1254_v61 = vpop.f32.mrf.mxu0  ;;  %v1219_v0 = vpop.f32.mrf.mxu1  ;;  %v1283_v35 = vadd.f32 %v1236_v40, %v1007_v28  ;;  %v1011_v6 = vadd.f32 %v965_v58, %v3421_v37 }
 0x113   : > { %v1271_v60 = vpop.f32.mrf.mxu2 }
 0x114   : > { %v1272_v27 = vadd.f32 %v1271_v60, %v1252_v54  ;;  %v1001_v60 = vadd.f32 %v3433_v50, %v3427_v47 }
 0x116   : > { %v1282_v36 = vadd.f32 %v1272_v27, %v1006_v29  ;;  %v1010_v7 = vadd.f32 %v1001_v60, %v3423_v45 }
 0x117   : > { %v1238_v1 = vpop.f32.mrf.mxu3 }
 0x118   : > { %v1239_v39 = vadd.f32 %v1238_v1, %v1219_v0 }
 0x11a   : > { %v1257_v3 = vpop.f32.mrf.mxu0  ;;  %v1221_v12 = vpop.f32.mrf.mxu1  ;;  %v1285_v42 = vadd.f32 %v1239_v39, %v1009_v51 }
 0x11b   : > { %v1273_v2 = vpop.f32.mrf.mxu2 }
 0x11c   : > { %v1274_v15 = vadd.f32 %v1273_v2, %v1254_v61 }
 0x11e   : > { %v1284_v19 = vadd.f32 %v1274_v15, %v1008_v52 }
 0x11f   : > { %v1240_v34 = vpop.f32.mrf.mxu3 }
 0x120   : > { %v1241_v26 = vadd.f32 %v1240_v34, %v1221_v12 }
 0x122   : > { %v3439_v9 = vpop.f32.mrf.mxu0  ;;  %v1474_v5 = vpop.f32.mrf.mxu1  ;;  %v1287_v47 = vadd.f32 %v1241_v26, %v1011_v6 }
 0x123   : > { %v1276_v56 = vpop.f32.mrf.mxu2 }
 0x124   : > { %v1277_v0 = vadd.f32 %v1276_v56, %v1257_v3  ;;  %v1003_v3 = vadd.f32 %v3437_v53, %v3435_v62 }
 0x126   : > { %v1286_v50 = vadd.f32 %v1277_v0, %v1010_v7 }
 0x127   : > { %v1493_v10 = vpop.f32.mrf.mxu3 }
 0x128   : > { %v1494_v18 = vadd.f32 %v1493_v10, %v1474_v5 }
 0x12a   : > { %v1512_v20 = vpop.f32.mrf.mxu0  ;;  %v1541_v22 = vadd.f32 %v1494_v18, %v1281_v17  ;;  %v1476_v23 = vpop.f32.mrf.mxu1  ;;  %v1012_v18 = vadd.f32 %v1003_v3, %v3425_v8 }
 0x12b   : > { %v3442_v11 = vpop.f32.mrf.mxu2 }
 0x12c   : > { %v1549_v4 = vmax.f32 %v1541_v22, 0.0  ;;  %v1279_v37 = vadd.f32 %v3442_v11, %v3439_v9 }
 0x12e   : > { %1557 = vst [vmem:[%s3448_s23] sm:$0xff] %v1549_v4  ;;  %v1288_v63 = vadd.f32 %v1279_v37, %v1012_v18 }
 0x12f   : > { %v1495_v33 = vpop.f32.mrf.mxu3 }
 0x130   : > { %v1496_v31 = vadd.f32 %v1495_v33, %v1476_v23 }
 0x132   : > { %v1543_v55 = vadd.f32 %v1496_v31, %v1283_v35  ;;  %v1514_v38 = vpop.f32.mrf.mxu0  ;;  %v1479_v32 = vpop.f32.mrf.mxu1 }
 0x133   : > { %v1531_v13 = vpop.f32.mrf.mxu2 }
 0x134   : > { %v1532_v46 = vadd.f32 %v1531_v13, %v1512_v20  ;;  %v1551_v41 = vmax.f32 %v1543_v55, 0.0 }
 0x136   : > { %v1542_v48 = vadd.f32 %v1532_v46, %v1282_v36  ;;  %1560 = vst [vmem:[%s3448_s23 + $0x10] sm:$0xff] %v1551_v41 }
 0x137   : > { %v1498_v54 = vpop.f32.mrf.mxu3 }
 0x138   : > { %v1550_v16 = vmax.f32 %v1542_v48, 0.0  ;;  %v1499_v43 = vadd.f32 %v1498_v54, %v1479_v32 }
 0x13a   : > { %1559 = vst.msk [vmem:[%s3448_s23 + $0x8] sm:$0xff] %vm1558_vm5, %v1550_v16  ;;  %v1545_v25 = vadd.f32 %v1499_v43, %v1285_v42  ;;  %v1517_v14 = vpop.f32.mrf.mxu0  ;;  %v1481_v5 = vpop.f32.mrf.mxu1 }
 0x13b   : > { %v1533_v57 = vpop.f32.mrf.mxu2 }
 0x13c   : > { %v1534_v44 = vadd.f32 %v1533_v57, %v1514_v38  ;;  %v1553_v1 = vmax.f32 %v1545_v25, 0.0 }
 0x13e   : > { %v1544_v61 = vadd.f32 %v1534_v44, %v1284_v19  ;;  %1562 = vst [vmem:[%s3448_s23 + $0x20] sm:$0xff] %v1553_v1 }
 0x13f   : > { %v1500_v49 = vpop.f32.mrf.mxu3 }
 0x140   : > { %v1552_v2 = vmax.f32 %v1544_v61, 0.0  ;;  %v1501_v10 = vadd.f32 %v1500_v49, %v1481_v5 }
 0x142   : > { %1561 = vst.msk [vmem:[%s3448_s23 + $0x18] sm:$0xff] %vm1558_vm5, %v1552_v2  ;;  %v1547_v34 = vadd.f32 %v1501_v10, %v1287_v47  ;;  %v1519_v20 = vpop.f32.mrf.mxu0 }
 0x143   : > { %v1536_v59 = vpop.f32.mrf.mxu2 }
 0x144   : > { %v1537_v12 = vadd.f32 %v1536_v59, %v1517_v14  ;;  %v1555_v45 = vmax.f32 %v1547_v34, 0.0 }
 0x146   : > { %v1546_v56 = vadd.f32 %v1537_v12, %v1286_v50  ;;  %1564 = vst [vmem:[%s3448_s23 + $0x30] sm:$0xff] %v1555_v45 }
 0x148   : > { %v1554_v17 = vmax.f32 %v1546_v56, 0.0 }
 0x14a   : > { %1563 = vst.msk [vmem:[%s3448_s23 + $0x28] sm:$0xff] %vm1558_vm5, %v1554_v17 }
 0x14b   : > { %v1538_v21 = vpop.f32.mrf.mxu2 }
 0x14c   : > { %v1539_v22 = vadd.f32 %v1538_v21, %v1519_v20 }
 0x14e   : > { %v1548_v23 = vadd.f32 %v1539_v22, %v1288_v63 }
 0x150   : > { %v1556_v40 = vmax.f32 %v1548_v23, 0.0 }
 0x152   : > { %1565 = vst.msk [vmem:[%s3448_s23 + $0x38] sm:$0xff] %vm1558_vm5, %v1556_v40 }
 0x153 PF: > { %s13_s12 = sadd.s32 1, %s2421_s12  }
 0x154   : > { %p10_p4 = scmp.ge.s32.totalorder %s13_s12, 4  }
 0x156   :  { %12 = sbr.rel (!%p10_p4) target bundleno = 1 (0x1), region = 66 }

// kernel: forward.14
= control target key start
LH: loop header
LB: loop body
LE: loop exit
PB: predicated region body
PF: predicated region fallthrough
CT: control target
= control target key end

     0   :  { %s2271_s12 = smov 0   ;;  %s3182_s0 = inlined_call_operand.vmem [shape: f32[2,36,208], index: 0, kind: input, shape index: {}]   ;;  %s3183_s1 = inlined_call_operand.vmem [shape: bf16[5,208,192], index: 1, kind: input, shape index: {}]   ;;  %s3184_s2 = inlined_call_operand.vmem [shape: f32[1,192], index: 2, kind: input, shape index: {}]   ;;  %s3185_s3 = inlined_call_operand.vmem [shape: f32[2,16,192], index: 3, kind: output, shape index: {}]  }
   0x1 LB: > { %s1459_s13 = sadd.s32 4294967295, %s2249_s12   ;;  %p1463_p0 = scmp.ge.s32.totalorder %s2249_s12, 1  ;;  %s2249_s12 = sphi %s2271_s12, %s13_s12  }
   0x2   : > { %p137_p1 = scmp.lt.s32.totalorder %s2249_s12, 3 }
   0x4   : > { %p138_p2 = pnand %p1463_p0, %p137_p1 }
   0x5   : > { %p161_p3 = scmp.lt.s32.totalorder (!%p138_p2), %s1459_s13, 1 }
   0x6   : > { %141 = sbr.rel (%p138_p2) target bundleno = 297 (0x129), region = 32 }
   0xb   : > { %v1525_v0 = vld [vmem:[%s3183_s1 + $0x70] sm:$0xf]  ;;  %v2119_v1 = vld [vmem:[%s3183_s1 + $0x74] sm:$0xf0]  ;;  %v1565_v2 = vld [vmem:[%s3183_s1 + $0xc0] sm:$0xf] }
   0xc   : > { %v1526_v3 = vor.u32 %v2119_v1, %v1525_v0  ;;  %v2129_v4 = vld [vmem:[%s3183_s1 + $0xc4] sm:$0xf0]  ;;  %v2118_v5 = vld [vmem:[%s3183_s1 + $0x74] sm:$0xf]  ;;  %v1527_v6 = vld [vmem:[%s3183_s1 + $0x78] sm:$0xf0] }
   0xd   : > { %v1566_v7 = vor.u32 %v2129_v4, %v1565_v2  ;;  %v1530_v8 = vor.u32 %v2118_v5, %v1527_v6  ;;  %v2128_v9 = vld [vmem:[%s3183_s1 + $0xc4] sm:$0xf]  ;;  %v1567_v10 = vld [vmem:[%s3183_s1 + $0xc8] sm:$0xf0]  ;;  %v1517_v11 = vld [vmem:[%s3183_s1 + $0x60] sm:$0xf] }
   0xe   : > { %364 = vmatpush.bf16.msra.mxu0 %v1526_v3  ;;  %v1570_v12 = vor.u32 %v2128_v9, %v1567_v10  ;;  %v2117_v13 = vld [vmem:[%s3183_s1 + $0x64] sm:$0xf0]  ;;  %v1557_v14 = vld [vmem:[%s3183_s1 + $0xb0] sm:$0xf]  ;;  %v2127_v15 = vld [vmem:[%s3183_s1 + $0xb4] sm:$0xf0] }
   0xf   : > { %381 = vmatpush.bf16.msra.mxu1 %v1566_v7  ;;  %392 = vmatpush.bf16.msra.mxu2 %v1530_v8  ;;  %v1518_v16 = vor.u32 %v2117_v13, %v1517_v11  ;;  %v1558_v17 = vor.u32 %v2127_v15, %v1557_v14  ;;  %v2116_v18 = vld [vmem:[%s3183_s1 + $0x64] sm:$0xf]  ;;  %v1519_v19 = vld [vmem:[%s3183_s1 + $0x68] sm:$0xf0]  ;;  %v2126_v20 = vld [vmem:[%s3183_s1 + $0xb4] sm:$0xf] }
  0x10   : > { %409 = vmatpush.bf16.msra.mxu3 %v1570_v12  ;;  %v1522_v21 = vor.u32 %v2116_v18, %v1519_v19  ;;  %v1559_v22 = vld [vmem:[%s3183_s1 + $0xb8] sm:$0xf0]  ;;  %v1509_v23 = vld [vmem:[%s3183_s1 + $0x50] sm:$0xf]  ;;  %v2115_v24 = vld [vmem:[%s3183_s1 + $0x54] sm:$0xf0] }
  0x11   : > { %v1562_v25 = vor.u32 %v2126_v20, %v1559_v22  ;;  %v1549_v26 = vld [vmem:[%s3183_s1 + $0xa0] sm:$0xf]  ;;  %v2125_v27 = vld [vmem:[%s3183_s1 + $0xa4] sm:$0xf0]  ;;  %v2114_v28 = vld [vmem:[%s3183_s1 + $0x54] sm:$0xf]  ;;  %v1510_v29 = vor.u32 %v2115_v24, %v1509_v23 }
  0x12   : > { %365 = vmatpush.bf16.msra.mxu0 %v1518_v16  ;;  %v1511_v30 = vld [vmem:[%s3183_s1 + $0x58] sm:$0xf0]  ;;  %v2124_v31 = vld [vmem:[%s3183_s1 + $0xa4] sm:$0xf]  ;;  %v1551_v32 = vld [vmem:[%s3183_s1 + $0xa8] sm:$0xf0]  ;;  %v1550_v33 = vor.u32 %v2125_v27, %v1549_v26 }
  0x13   : > { %382 = vmatpush.bf16.msra.mxu1 %v1558_v17  ;;  %393 = vmatpush.bf16.msra.mxu2 %v1522_v21  ;;  %v1514_v34 = vor.u32 %v2114_v28, %v1511_v30  ;;  %v1501_v35 = vld [vmem:[%s3183_s1 + $0x40] sm:$0xf]  ;;  %v2113_v36 = vld [vmem:[%s3183_s1 + $0x44] sm:$0xf0]  ;;  %v1541_v37 = vld [vmem:[%s3183_s1 + $0x90] sm:$0xf]  ;;  %v1554_v38 = vor.u32 %v2124_v31, %v1551_v32 }
  0x14   : > { %410 = vmatpush.bf16.msra.mxu3 %v1562_v25  ;;  %v2123_v39 = vld [vmem:[%s3183_s1 + $0x94] sm:$0xf0]  ;;  %v2112_v40 = vld [vmem:[%s3183_s1 + $0x44] sm:$0xf]  ;;  %v1503_v41 = vld [vmem:[%s3183_s1 + $0x48] sm:$0xf0]  ;;  %v1502_v44 = vor.u32 %v2113_v36, %v1501_v35 }
  0x15   : > { %v2122_v42 = vld [vmem:[%s3183_s1 + $0x94] sm:$0xf]  ;;  %v1543_v43 = vld [vmem:[%s3183_s1 + $0x98] sm:$0xf0]  ;;  %v1493_v45 = vld [vmem:[%s3183_s1 + $0x30] sm:$0xf]  ;;  %v1542_v46 = vor.u32 %v2123_v39, %v1541_v37  ;;  %v1506_v47 = vor.u32 %v2112_v40, %v1503_v41 }
  0x16   : > { %366 = vmatpush.bf16.msra.mxu0 %v1510_v29  ;;  %v2111_v48 = vld [vmem:[%s3183_s1 + $0x34] sm:$0xf0]  ;;  %v1533_v49 = vld [vmem:[%s3183_s1 + $0x80] sm:$0xf]  ;;  %v2121_v50 = vld [vmem:[%s3183_s1 + $0x84] sm:$0xf0]  ;;  %v1546_v51 = vor.u32 %v2122_v42, %v1543_v43 }
  0x17   : > { %383 = vmatpush.bf16.msra.mxu1 %v1550_v33  ;;  %394 = vmatpush.bf16.msra.mxu2 %v1514_v34  ;;  %v2110_v52 = vld [vmem:[%s3183_s1 + $0x34] sm:$0xf]  ;;  %v1495_v53 = vld [vmem:[%s3183_s1 + $0x38] sm:$0xf0]  ;;  %v2120_v54 = vld [vmem:[%s3183_s1 + $0x84] sm:$0xf]  ;;  %v1494_v58 = vor.u32 %v2111_v48, %v1493_v45  ;;  %v1534_v61 = vor.u32 %v2121_v50, %v1533_v49 }
  0x18   : > { %411 = vmatpush.bf16.msra.mxu3 %v1554_v38  ;;  %v1535_v55 = vld [vmem:[%s3183_s1 + $0x88] sm:$0xf0]  ;;  %v1657_v56 = vld [vmem:[%s3183_s1 + $0x140] sm:$0xf]  ;;  %v2145_v57 = vld [vmem:[%s3183_s1 + $0x144] sm:$0xf0]  ;;  %v1498_v62 = vor.u32 %v2110_v52, %v1495_v53 }
  0x19   : > { %v1697_v59 = vld [vmem:[%s3183_s1 + $0x190] sm:$0xf]  ;;  %v2155_v60 = vld [vmem:[%s3183_s1 + $0x194] sm:$0xf0]  ;;  %v1485_v63 = vld [vmem:[%s3183_s1 + $0x20] sm:$0xf]  ;;  %v1538_v1 = vor.u32 %v2120_v54, %v1535_v55  ;;  %v1658_v2 = vor.u32 %v2145_v57, %v1657_v56 }
  0x1a   : > { %367 = vmatpush.bf16.msra.mxu0 %v1502_v44  ;;  %v2109_v0 = vld [vmem:[%s3183_s1 + $0x24] sm:$0xf0]  ;;  %v2108_v3 = vld [vmem:[%s3183_s1 + $0x24] sm:$0xf]  ;;  %v1487_v4 = vld [vmem:[%s3183_s1 + $0x28] sm:$0xf0]  ;;  %v1698_v5 = vor.u32 %v2155_v60, %v1697_v59 }
  0x1b   : > { %384 = vmatpush.bf16.msra.mxu1 %v1542_v46  ;;  %395 = vmatpush.bf16.msra.mxu2 %v1506_v47  ;;  %v1649_v6 = vld [vmem:[%s3183_s1 + $0x130] sm:$0xf]  ;;  %v2143_v7 = vld [vmem:[%s3183_s1 + $0x134] sm:$0xf0]  ;;  %v1486_v8 = vor.u32 %v2109_v0, %v1485_v63  ;;  %v1689_v9 = vld [vmem:[%s3183_s1 + $0x180] sm:$0xf]  ;;  %v1490_v11 = vor.u32 %v2108_v3, %v1487_v4 }
  0x1c   : > { %412 = vmatpush.bf16.msra.mxu3 %v1546_v51  ;;  %v2153_v10 = vld [vmem:[%s3183_s1 + $0x184] sm:$0xf0]  ;;  %v1477_v12 = vld [vmem:[%s3183_s1 + $0x10] sm:$0xf]  ;;  %v2107_v13 = vld [vmem:[%s3183_s1 + $0x14] sm:$0xf0]  ;;  %v1650_v14 = vor.u32 %v2143_v7, %v1649_v6 }
  0x1d   : > { %v2106_v15 = vld [vmem:[%s3183_s1 + $0x14] sm:$0xf]  ;;  %v1479_v16 = vld [vmem:[%s3183_s1 + $0x18] sm:$0xf0]  ;;  %v1641_v17 = vld [vmem:[%s3183_s1 + $0x120] sm:$0xf]  ;;  %v1690_v18 = vor.u32 %v2153_v10, %v1689_v9  ;;  %v1478_v22 = vor.u32 %v2107_v13, %v1477_v12 }
  0x1e   : > { %368 = vmatpush.bf16.msra.mxu0 %v1494_v58  ;;  %v2141_v19 = vld [vmem:[%s3183_s1 + $0x124] sm:$0xf0]  ;;  %v1681_v20 = vld [vmem:[%s3183_s1 + $0x170] sm:$0xf]  ;;  %v2151_v21 = vld [vmem:[%s3183_s1 + $0x174] sm:$0xf0]  ;;  %v1482_v26 = vor.u32 %v2106_v15, %v1479_v16 }
  0x1f   : > { %385 = vmatpush.bf16.msra.mxu1 %v1534_v61  ;;  %396 = vmatpush.bf16.msra.mxu2 %v1498_v62  ;;  %v1469_v23 = vld [vmem:[%s3183_s1] sm:$0xf]  ;;  %v2105_v24 = vld [vmem:[%s3183_s1 + $0x4] sm:$0xf0]  ;;  %v2104_v25 = vld [vmem:[%s3183_s1 + $0x4] sm:$0xf]  ;;  %v1642_v29 = vor.u32 %v2141_v19, %v1641_v17  ;;  %v1682_v33 = vor.u32 %v2151_v21, %v1681_v20 }
  0x20   : > { %413 = vmatpush.bf16.msra.mxu3 %v1538_v1  ;;  %v1471_v27 = vld [vmem:[%s3183_s1 + $0x8] sm:$0xf0]  ;;  %v1633_v28 = vld [vmem:[%s3183_s1 + $0x110] sm:$0xf]  ;;  %v2139_v30 = vld [vmem:[%s3183_s1 + $0x114] sm:$0xf0]  ;;  %v1470_v36 = vor.u32 %v2105_v24, %v1469_v23 }
  0x21   : > { %v2144_v31 = vld [vmem:[%s3183_s1 + $0x144] sm:$0xf]  ;;  %v1659_v32 = vld [vmem:[%s3183_s1 + $0x148] sm:$0xf0]  ;;  %v2154_v34 = vld [vmem:[%s3183_s1 + $0x194] sm:$0xf]  ;;  %v1474_v39 = vor.u32 %v2104_v25, %v1471_v27  ;;  %v1634_v43 = vor.u32 %v2139_v30, %v1633_v28 }
  0x22   : > { %369 = vmatpush.bf16.msra.mxu0 %v1486_v8  ;;  %v1699_v35 = vld [vmem:[%s3183_s1 + $0x198] sm:$0xf0]  ;;  %s3187_s13 = smov (!%p161_p3, %s1459_s13), 1  ;;  %v1673_v37 = vld [vmem:[%s3183_s1 + $0x160] sm:$0xf]  ;;  %v1662_v40 = vor.u32 %v2144_v31, %v1659_v32  ;;  %vm360_vm0 = vcmask 654336  }
  0x23   : > { %605 = vmatpush.bf16.msrb.mxu1 %v1658_v2  ;;  %397 = vmatpush.bf16.msra.mxu2 %v1490_v11  ;;  %v2149_v38 = vld [vmem:[%s3183_s1 + $0x164] sm:$0xf0]  ;;  %s2234_s6 = smul.u32 80, %s3187_s13  ;;  %v1625_v41 = vld [vmem:[%s3183_s1 + $0x100] sm:$0xf]  ;;  %v1702_v44 = vor.u32 %v2154_v34, %v1699_v35  ;;  %vm464_vm1 = vcmask 1046528  }
  0x24   : > { %622 = vmatpush.bf16.msrb.mxu3 %v1698_v5  ;;  %v2137_v42 = vld [vmem:[%s3183_s1 + $0x104] sm:$0xf0]  ;;  %v1665_v45 = vld [vmem:[%s3183_s1 + $0x150] sm:$0xf]  ;;  %v2142_v46 = vld [vmem:[%s3183_s1 + $0x134] sm:$0xf]  ;;  %v1674_v48 = vor.u32 %v2149_v38, %v1673_v37 }
  0x25   : > { %v1651_v47 = vld [vmem:[%s3183_s1 + $0x138] sm:$0xf0]  ;;  %s2520_s21 = scalar_lea.vmem %s3182_s0, %s2234_s6  ;;  %v2147_v49 = vld [vmem:[%s3183_s1 + $0x154] sm:$0xf0]  ;;  %v2152_v50 = vld [vmem:[%s3183_s1 + $0x184] sm:$0xf]  ;;  %v1626_v62 = vor.u32 %v2137_v42, %v1625_v41 }
  0x26   : > { %370 = vmatpush.bf16.msra.mxu0 %v1478_v22  ;;  %v1691_v51 = vld [vmem:[%s3183_s1 + $0x188] sm:$0xf0]  ;;  %v172_v52 = vld [vmem:[%s2520_s21] sm:$0xff]  ;;  %v174_v54 = vld [vmem:[%s2520_s21 + $0x10] sm:$0xff]  ;;  %v1654_v58 = vor.u32 %v2142_v46, %v1651_v47  ;;  %v1666_v4 = vor.u32 %v2147_v49, %v1665_v45  ;;  %vm694_vm2 = vsmask.f32 7424 }
  0x27   : > { %606 = vmatpush.bf16.msrb.mxu1 %v1650_v14  ;;  %398 = vmatpush.bf16.msra.mxu2 %v1482_v26  ;;  %v173_v53 = vld [vmem:[%s2520_s21 + $0x8] sm:$0xff]  ;;  %v1789_v55 = vld [vmem:[%s3183_s1 + $0x210] sm:$0xf]  ;;  %v175_v56 = vld [vmem:[%s2520_s21 + $0x18] sm:$0xff]  ;;  %v1694_v63 = vor.u32 %v2152_v50, %v1691_v51  ;;  %vm939_vm3 = vsmask.f32 6400 }
  0x28   : > { %623 = vmatpush.bf16.msrb.mxu3 %v1690_v18  ;;  %v182_v57 = vpack.c.bf16 %v173_v53, %v172_v52  ;;  %v2171_v59 = vld [vmem:[%s3183_s1 + $0x214] sm:$0xf0]  ;;  %v1617_v60 = vld [vmem:[%s3183_s1 + $0xf0] sm:$0xf]  ;;  %v183_v61 = vpack.c.bf16 %v175_v56, %v174_v54  ;;  %v2140_v1 = vld [vmem:[%s3183_s1 + $0x124] sm:$0xf] }
  0x29   : > { %v2135_v0 = vld [vmem:[%s3183_s1 + $0xf4] sm:$0xf0]  ;;  %v1643_v2 = vld [vmem:[%s3183_s1 + $0x128] sm:$0xf0]  ;;  %v2150_v5 = vld [vmem:[%s3183_s1 + $0x174] sm:$0xf]  ;;  %v1790_v12 = vor.u32 %v2171_v59, %v1789_v55 }
  0x2a   : > { %371 = vmatpush.bf16.msra.mxu0 %v1470_v36  ;;  %v224_v3 = vunpack.c.h.b16 %v182_v57  ;;  %v1683_v6 = vld [vmem:[%s3183_s1 + $0x178] sm:$0xf0]  ;;  %v223_v7 = vunpack.c.l.b16 %v182_v57  ;;  %v226_v8 = vunpack.c.h.b16 %v183_v61  ;;  %v225_v9 = vunpack.c.l.b16 %v183_v61  ;;  %v1781_v10 = vld [vmem:[%s3183_s1 + $0x200] sm:$0xf]  ;;  %v2169_v11 = vld [vmem:[%s3183_s1 + $0x204] sm:$0xf0] }
  0x2b   : > { %607 = vmatpush.bf16.msrb.mxu1 %v1642_v29  ;;  %399 = vmatpush.bf16.msra.mxu2 %v1474_v39  ;;  %v1618_v13 = vor.u32 %v2135_v0, %v1617_v60  ;;  %v1646_v14 = vor.u32 %v2140_v1, %v1643_v2  ;;  %v1609_v15 = vld [vmem:[%s3183_s1 + $0xe0] sm:$0xf]  ;;  %v2133_v16 = vld [vmem:[%s3183_s1 + $0xe4] sm:$0xf0]  ;;  %v2138_v17 = vld [vmem:[%s3183_s1 + $0x114] sm:$0xf]  ;;  %v1686_v19 = vor.u32 %v2150_v5, %v1683_v6 }
  0x2c   : > { %624 = vmatpush.bf16.msrb.mxu3 %v1682_v33  ;;  %v2574_v18 = vpack.c.b16 %v226_v8, %v224_v3  ;;  %v2576_v20 = vpack.c.b16 %v225_v9, %v223_v7  ;;  %v1635_v21 = vld [vmem:[%s3183_s1 + $0x118] sm:$0xf0]  ;;  %v2148_v22 = vld [vmem:[%s3183_s1 + $0x164] sm:$0xf]  ;;  %v1675_v23 = vld [vmem:[%s3183_s1 + $0x168] sm:$0xf0]  ;;  %v1782_v28 = vor.u32 %v2169_v11, %v1781_v10  ;;  %v1610_v32 = vor.u32 %v2133_v16, %v1609_v15 }
  0x2d   : > { %v1773_v24 = vld [vmem:[%s3183_s1 + $0x1f0] sm:$0xf]  ;;  %v2167_v25 = vld [vmem:[%s3183_s1 + $0x1f4] sm:$0xf0]  ;;  %v176_v29 = vld [vmem:[%s2520_s21 + $0x20] sm:$0xff]  ;;  %v1638_v33 = vor.u32 %v2138_v17, %v1635_v21  ;;  %v1678_v38 = vor.u32 %v2148_v22, %v1675_v23  ;;  %s2103_s16 = sshll.u32 %s3187_s13, 5 }
  0x2e   : > { %633 = vmatpush.bf16.msrb.mxu0 %v1662_v40  ;;  %v2596_v26 = vld [vmem:[%s3183_s1 + $0xd0] sm:$0xf]  ;;  %v2601_v27 = vld [vmem:[%s3183_s1 + $0xd4] sm:$0xf0]  ;;  %1572 = vmatmul.msk.bf16.vlgmr.msra.gmra.mxu3 %vm360_vm0, %v2574_v18  ;;  %v177_v30 = vld [vmem:[%s2520_s21 + $0x28] sm:$0xff]  ;;  %v698_v22 = vshll.u32 %v2576_v20, 16  ;;  %s3172_s19 = scalar_lea.vmem %s3185_s3, %s2103_s16 }
  0x2f   : > { %608 = vmatpush.bf16.msrb.mxu1 %v1634_v43  ;;  %650 = vmatpush.bf16.msrb.mxu2 %v1702_v44  ;;  %v178_v31 = vld [vmem:[%s2520_s21 + $0x30] sm:$0xff]  ;;  %v179_v34 = vld [vmem:[%s2520_s21 + $0x38] sm:$0xff]  ;;  %v180_v35 = vld [vmem:[%s2520_s21 + $0x40] sm:$0xf]  ;;  %v184_v37 = vpack.c.bf16 %v177_v30, %v176_v29  ;;  %v1602_v49 = vor.u32 %v2601_v27, %v2596_v26  ;;  %vm1400_vm4 = vcmask 523264  }
  0x30   : > { %625 = vmatpush.bf16.msrb.mxu3 %v1674_v48  ;;  %400 = vmatmul.bf16.vlgmr.msra.gmra.mxu2 %v2576_v20  ;;  %v181_v36 = vld [vmem:[%s2520_s21 + $0x48] sm:$0xf]  ;;  %v2136_v39 = vld [vmem:[%s3183_s1 + $0x104] sm:$0xf]  ;;  %v1627_v40 = vld [vmem:[%s3183_s1 + $0x108] sm:$0xf0]  ;;  %v185_v42 = vpack.c.bf16 %v179_v34, %v178_v31  ;;  %v1774_v48 = vor.u32 %v2167_v25, %v1773_v24 }
  0x31   : > { %v2146_v41 = vld [vmem:[%s3183_s1 + $0x154] sm:$0xf]  ;;  %v186_v43 = vpack.c.bf16 %v181_v36, %v180_v35  ;;  %1571 = vmatmul.msk.bf16.vlgmr.msra.gmra.mxu1 %vm360_vm0, %v2574_v18  ;;  %372 = vmatmul.bf16.vlgmr.msra.gmra.mxu0 %v2576_v20  ;;  %v1667_v44 = vld [vmem:[%s3183_s1 + $0x158] sm:$0xf0]  ;;  %v1765_v45 = vld [vmem:[%s3183_s1 + $0x1e0] sm:$0xf]  ;;  %v2633_v47 = vunpack.c.h.b16 %v184_v37  ;;  %v1630_v55 = vor.u32 %v2136_v39, %v1627_v40  ;;  %v454_v59 = vunpack.c.l.b16 %v184_v37 }
  0x32   : > { %634 = vmatpush.bf16.msrb.mxu0 %v1654_v58  ;;  %v1829_v46 = vld [vmem:[%s3183_s1 + $0x260] sm:$0xf]  ;;  %v2181_v50 = vld [vmem:[%s3183_s1 + $0x264] sm:$0xf0]  ;;  %v2170_v51 = vld [vmem:[%s3183_s1 + $0x214] sm:$0xf]  ;;  %v457_v53 = vunpack.c.h.b16 %v185_v42  ;;  %v456_v60 = vunpack.c.l.b16 %v185_v42 }
  0x33   : > { %609 = vmatpush.bf16.msrb.mxu1 %v1626_v62  ;;  %651 = vmatpush.bf16.msrb.mxu2 %v1694_v63  ;;  %v1791_v52 = vld [vmem:[%s3183_s1 + $0x218] sm:$0xf0]  ;;  %v459_v54 = vunpack.c.h.b16 %v186_v43  ;;  %v2165_v56 = vld [vmem:[%s3183_s1 + $0x1e4] sm:$0xf0]  ;;  %v2134_v57 = vld [vmem:[%s3183_s1 + $0xf4] sm:$0xf]  ;;  %v458_v61 = vunpack.c.l.b16 %v186_v43  ;;  %v1670_v62 = vor.u32 %v2146_v41, %v1667_v44  ;;  %v1830_v1 = vor.u32 %v2181_v50, %v1829_v46 }
  0x34   : > { %626 = vmatpush.bf16.msrb.mxu3 %v1666_v4  ;;  %v1619_v58 = vld [vmem:[%s3183_s1 + $0xf8] sm:$0xf0]  ;;  %v2656_v63 = vpack.c.b16 %v457_v53, %v2633_v47  ;;  %v1794_v2 = vor.u32 %v2170_v51, %v1791_v52  ;;  %v1821_v3 = vld [vmem:[%s3183_s1 + $0x250] sm:$0xf]  ;;  %v1766_v4 = vor.u32 %v2165_v56, %v1765_v45  ;;  %v2179_v6 = vld [vmem:[%s3183_s1 + $0x254] sm:$0xf0]  ;;  %v2738_v43 = vpack.c.b16 %v454_v59, %v454_v59 }
  0x35   : > { %v2658_v0 = vpack.c.b16 %v459_v54, %v459_v54  ;;  %v1622_v5 = vor.u32 %v2134_v57, %v1619_v58  ;;  %v2168_v7 = vld [vmem:[%s3183_s1 + $0x204] sm:$0xf]  ;;  %v1783_v8 = vld [vmem:[%s3183_s1 + $0x208] sm:$0xf0]  ;;  %v1757_v11 = vld [vmem:[%s3183_s1 + $0x1d0] sm:$0xf]  ;;  %v1822_v17 = vor.u32 %v2179_v6, %v1821_v3 }
  0x36   : > { %635 = vmatpush.bf16.msrb.mxu0 %v1646_v14  ;;  %v468_v9 = vrot.slane %v2656_v63, 1  ;;  %v2682_v14 = vpack.c.b16 %v458_v61, %v458_v61  ;;  %v2132_v15 = vld [vmem:[%s3183_s1 + $0xe4] sm:$0xf]  ;;  %v1611_v16 = vld [vmem:[%s3183_s1 + $0xe8] sm:$0xf0]  ;;  %v696_v61 = vshrl.u32 %v2576_v20, 16 }
  0x37   : > { %610 = vmatpush.bf16.msrb.mxu1 %v1618_v13  ;;  %652 = vmatpush.bf16.msrb.mxu2 %v1686_v19  ;;  %v469_v10 = vrot.slane %v2658_v0, 1  ;;  %v2680_v13 = vpack.c.b16 %v456_v60, %v454_v59  ;;  %v1786_v19 = vor.u32 %v2168_v7, %v1783_v8  ;;  %v1813_v21 = vld [vmem:[%s3183_s1 + $0x240] sm:$0xf]  ;;  %v2177_v24 = vld [vmem:[%s3183_s1 + $0x244] sm:$0xf0]  ;;  %v709_v6 = vshll.u32 %v2574_v18, 16 }
  0x38   : > { %852 = vmatpush.bf16.msra.mxu3 %v1790_v12  ;;  %v2163_v12 = vld [vmem:[%s3183_s1 + $0x1d4] sm:$0xf0]  ;;  %v2166_v25 = vld [vmem:[%s3183_s1 + $0x1f4] sm:$0xf]  ;;  %v1775_v26 = vld [vmem:[%s3183_s1 + $0x1f8] sm:$0xf0]  ;;  %v1814_v35 = vor.u32 %v2177_v24, %v1813_v21 }
  0x39   : > { %v1758_v23 = vor.u32 %v2163_v12, %v1757_v11  ;;  %v470_v27 = vsel %vm464_vm1, %v468_v9, %v469_v10  ;;  %v1749_v29 = vld [vmem:[%s3183_s1 + $0x1c0] sm:$0xf]  ;;  %v465_v30 = vrot.slane %v2680_v13, 1  ;;  %v466_v31 = vrot.slane %v2682_v14, 1  ;;  %v1603_v34 = vld [vmem:[%s3183_s1 + $0xd8] sm:$0xf0] }
  0x3a   : > { %636 = vmatpush.bf16.msrb.mxu0 %v1638_v33  ;;  %v2130_v33 = vld [vmem:[%s3183_s1 + $0xd4] sm:$0xf]  ;;  %v1778_v36 = vor.u32 %v2166_v25, %v1775_v26  ;;  %v1805_v37 = vld [vmem:[%s3183_s1 + $0x230] sm:$0xf]  ;;  %v1831_v39 = vld [vmem:[%s3183_s1 + $0x268] sm:$0xf0] }
  0x3b   : > { %611 = vmatpush.bf16.msrb.mxu1 %v1610_v32  ;;  %653 = vmatpush.bf16.msrb.mxu2 %v1678_v38  ;;  %v2161_v32 = vld [vmem:[%s3183_s1 + $0x1c4] sm:$0xf0]  ;;  %v2180_v38 = vld [vmem:[%s3183_s1 + $0x264] sm:$0xf]  ;;  %v2175_v40 = vld [vmem:[%s3183_s1 + $0x234] sm:$0xf0]  ;;  %v467_v45 = vsel %vm464_vm1, %v465_v30, %v466_v31  ;;  %v1606_v46 = vor.u32 %v2130_v33, %v1603_v34 }
  0x3c   : > { %853 = vmatpush.bf16.msra.mxu3 %v1782_v28  ;;  %v1614_v28 = vor.u32 %v2132_v15, %v1611_v16  ;;  %v2164_v41 = vld [vmem:[%s3183_s1 + $0x1e4] sm:$0xf]  ;;  %v1767_v42 = vld [vmem:[%s3183_s1 + $0x1e8] sm:$0xf0]  ;;  %v1750_v44 = vor.u32 %v2161_v32, %v1749_v29  ;;  %v1834_v50 = vor.u32 %v2180_v38, %v1831_v39  ;;  %v1797_v51 = vld [vmem:[%s3183_s1 + $0x220] sm:$0xf]  ;;  %v1806_v52 = vor.u32 %v2175_v40, %v1805_v37 }
  0x3d   : > { %v1770_v53 = vor.u32 %v2164_v41, %v1767_v42  ;;  %v1733_v54 = vld [vmem:[%s3183_s1 + $0x1a0] sm:$0xf]  ;;  %v2173_v56 = vld [vmem:[%s3183_s1 + $0x224] sm:$0xf0]  ;;  %v2178_v57 = vld [vmem:[%s3183_s1 + $0x254] sm:$0xf] }
  0x3e   : > { %637 = vmatpush.bf16.msrb.mxu0 %v1630_v55  ;;  %1703 = vmatmul.msk.bf16.vlgmr.msrb.gmra.mxu3 %vm360_vm0, %v470_v27  ;;  %v2157_v55 = vld [vmem:[%s3183_s1 + $0x1a4] sm:$0xf0]  ;;  %v1823_v58 = vld [vmem:[%s3183_s1 + $0x258] sm:$0xf0]  ;;  %v2162_v59 = vld [vmem:[%s3183_s1 + $0x1d4] sm:$0xf]  ;;  %v1798_v9 = vor.u32 %v2173_v56, %v1797_v51 }
  0x3f   : > { %612 = vmatpush.bf16.msrb.mxu1 %v1602_v49  ;;  %654 = vmatpush.bf16.msrb.mxu2 %v1670_v62  ;;  %v2159_v49 = vld [vmem:[%s3183_s1 + $0x1b4] sm:$0xf0]  ;;  %v1759_v60 = vld [vmem:[%s3183_s1 + $0x1d8] sm:$0xf0]  ;;  %v700_v62 = vrot.slane %v698_v22, 1  ;;  %v1826_v7 = vor.u32 %v2178_v57, %v1823_v58  ;;  %v1734_v15 = vor.u32 %v2157_v55, %v1733_v54  ;;  %v707_v25 = vshrl.u32 %v2574_v18, 16 }
  0x40   : > { %854 = vmatpush.bf16.msra.mxu3 %v1774_v48  ;;  %v1741_v48 = vld [vmem:[%s3183_s1 + $0x1b0] sm:$0xf]  ;;  %v2197_v3 = vld [vmem:[%s3183_s1 + $0x2e4] sm:$0xf0]  ;;  %v1762_v10 = vor.u32 %v2162_v59, %v1759_v60  ;;  %v2207_v11 = vld [vmem:[%s3183_s1 + $0x334] sm:$0xf0] }
  0x41   : > { %v1961_v8 = vld [vmem:[%s3183_s1 + $0x330] sm:$0xf]  ;;  %v1815_v12 = vld [vmem:[%s3183_s1 + $0x248] sm:$0xf0]  ;;  %v2195_v24 = vld [vmem:[%s3183_s1 + $0x2d4] sm:$0xf0] }
  0x42   : > { %638 = vmatpush.bf16.msrb.mxu0 %v1622_v5  ;;  %1704 = vmatmul.msk.bf16.vlgmr.msrb.gmra.mxu2 %vm360_vm0, %v470_v27  ;;  %v2781_v5 = vpack.c.b16 %v2633_v47, %v2633_v47  ;;  %v2176_v47 = vld [vmem:[%s3183_s1 + $0x244] sm:$0xf]  ;;  %v1751_v21 = vld [vmem:[%s3183_s1 + $0x1c8] sm:$0xf0]  ;;  %v1913_v22 = vld [vmem:[%s3183_s1 + $0x2d0] sm:$0xf] }
  0x43   : > { %869 = vmatpush.bf16.msra.mxu1 %v1830_v1  ;;  %880 = vmatpush.bf16.msra.mxu2 %v1794_v2  ;;  %v1742_v1 = vor.u32 %v2159_v49, %v1741_v48  ;;  %v1921_v2 = vld [vmem:[%s3183_s1 + $0x2e0] sm:$0xf]  ;;  %v711_v26 = vrot.slane %v709_v6, 1  ;;  %v1818_v29 = vor.u32 %v2176_v47, %v1815_v12  ;;  %v2205_v32 = vld [vmem:[%s3183_s1 + $0x324] sm:$0xf0]  ;;  %v958_v49 = vshrl.u32 %v2656_v63, 16 }
  0x44   : > { %855 = vmatpush.bf16.msra.mxu3 %v1766_v4  ;;  %613 = vmatmul.bf16.vlgmr.msrb.gmra.mxu1 %v467_v45  ;;  %v703_v4 = vshll.u32 %v2738_v43, 16  ;;  %v1922_v16 = vor.u32 %v2197_v3, %v1921_v2  ;;  %v714_v27 = vshll.u32 %v2781_v5, 16  ;;  %v1953_v30 = vld [vmem:[%s3183_s1 + $0x320] sm:$0xf]  ;;  %v2174_v33 = vld [vmem:[%s3183_s1 + $0x234] sm:$0xf] }
  0x45   : > { %v1807_v34 = vld [vmem:[%s3183_s1 + $0x238] sm:$0xf0]  ;;  %v712_v39 = vor.u32 %v711_v26, %v707_v25  ;;  %v1905_v41 = vld [vmem:[%s3183_s1 + $0x2c0] sm:$0xf]  ;;  %v2193_v42 = vld [vmem:[%s3183_s1 + $0x2c4] sm:$0xf0] }
  0x46   : > { %639 = vmatpush.bf16.msrb.mxu0 %v1614_v28  ;;  %v1962_v28 = vor.u32 %v2207_v11, %v1961_v8  ;;  %v1743_v37 = vld [vmem:[%s3183_s1 + $0x1b8] sm:$0xf0]  ;;  %v716_v40 = vrot.slane %v714_v27, 1  ;;  %v2203_v48 = vld [vmem:[%s3183_s1 + $0x314] sm:$0xf0]  ;;  %v1906_v58 = vor.u32 %v2193_v42, %v1905_v41  ;;  %v2876_v3 = vrot.slane %v958_v49, 1 }
  0x47   : > { %870 = vmatpush.bf16.msra.mxu1 %v1822_v17  ;;  %881 = vmatpush.bf16.msra.mxu2 %v1786_v19  ;;  %v701_v17 = vor.u32 %v700_v62, %v696_v61  ;;  %v2160_v19 = vld [vmem:[%s3183_s1 + $0x1c4] sm:$0xf]  ;;  %v1735_v54 = vld [vmem:[%s3183_s1 + $0x1a8] sm:$0xf0]  ;;  %v2206_v59 = vld [vmem:[%s3183_s1 + $0x334] sm:$0xf] }
  0x48   : > { %856 = vmatpush.bf16.msra.mxu3 %v1758_v23  ;;  %v705_v23 = vrot.slane %v703_v4, 1  ;;  %v1754_v31 = vor.u32 %v2160_v19, %v1751_v21  ;;  %v2156_v51 = vld [vmem:[%s3183_s1 + $0x1a4] sm:$0xf]  ;;  %v1923_v56 = vld [vmem:[%s3183_s1 + $0x2e8] sm:$0xf0]  ;;  %v717_v57 = vsel %vm694_vm2, %v712_v39, %v716_v40  ;;  %v961_v4 = vshll.u32 %v2656_v63, 16 }
  0x49   : > { %v2196_v55 = vld [vmem:[%s3183_s1 + $0x2e4] sm:$0xf]  ;;  %v1963_v60 = vld [vmem:[%s3183_s1 + $0x338] sm:$0xf0]  ;;  %v2191_v2 = vld [vmem:[%s3183_s1 + $0x2b4] sm:$0xf0]  ;;  %v1738_v6 = vor.u32 %v2156_v51, %v1735_v54 }
  0x4a   : > { %640 = vmatpush.bf16.msrb.mxu0 %v1606_v46  ;;  %v2829_v38 = vsel %vm694_vm2, %v701_v17, %v705_v23  ;;  %v1945_v46 = vld [vmem:[%s3183_s1 + $0x310] sm:$0xf]  ;;  %v2201_v8 = vld [vmem:[%s3183_s1 + $0x304] sm:$0xf0]  ;;  %v969_v11 = vshll.u32 %v2658_v0, 16  ;;  %v1966_v47 = vor.u32 %v2206_v59, %v1963_v60  ;;  %v963_v23 = vrot.slane %v961_v4, 2 }
  0x4b   : > { %871 = vmatpush.bf16.msra.mxu1 %v1814_v35  ;;  %882 = vmatpush.bf16.msra.mxu2 %v1778_v36  ;;  %v1914_v35 = vor.u32 %v2195_v24, %v1913_v22  ;;  %v2158_v36 = vld [vmem:[%s3183_s1 + $0x1b4] sm:$0xf]  ;;  %v1946_v61 = vor.u32 %v2203_v48, %v1945_v46  ;;  %v1889_v63 = vld [vmem:[%s3183_s1 + $0x2a0] sm:$0xf]  ;;  %v2204_v17 = vld [vmem:[%s3183_s1 + $0x324] sm:$0xf] }
  0x4c   : > { %857 = vmatpush.bf16.msra.mxu3 %v1750_v44  ;;  %v1954_v44 = vor.u32 %v2205_v32, %v1953_v30  ;;  %v2194_v12 = vld [vmem:[%s3183_s1 + $0x2d4] sm:$0xf]  ;;  %v1955_v19 = vld [vmem:[%s3183_s1 + $0x328] sm:$0xf0]  ;;  %v1929_v22 = vld [vmem:[%s3183_s1 + $0x2f0] sm:$0xf]  ;;  %v964_v42 = vor.u32 %v963_v23, %v2876_v3 }
  0x4d   : > { %641 = vmatmul.bf16.vlgmr.msrb.gmra.mxu0 %v467_v45  ;;  %v1810_v45 = vor.u32 %v2174_v33, %v1807_v34  ;;  %v971_v25 = vrot.slane %v969_v11, 2  ;;  %v2199_v26 = vld [vmem:[%s3183_s1 + $0x2f4] sm:$0xf0]  ;;  %v1958_v30 = vor.u32 %v2204_v17, %v1955_v19  ;;  %v2192_v32 = vld [vmem:[%s3183_s1 + $0x2c4] sm:$0xf] }
  0x4e   : > { %897 = vmatpush.bf16.msra.mxu0 %v1834_v50  ;;  %v1746_v50 = vor.u32 %v2158_v36, %v1743_v37  ;;  %v1907_v33 = vld [vmem:[%s3183_s1 + $0x2c8] sm:$0xf0]  ;;  %v2202_v36 = vld [vmem:[%s3183_s1 + $0x314] sm:$0xf]  ;;  %v1947_v37 = vld [vmem:[%s3183_s1 + $0x318] sm:$0xf0]  ;;  %v1930_v39 = vor.u32 %v2199_v26, %v1929_v22 }
  0x4f   : > { %872 = vmatpush.bf16.msra.mxu1 %v1806_v52  ;;  %883 = vmatpush.bf16.msra.mxu2 %v1770_v53  ;;  %v2172_v52 = vld [vmem:[%s3183_s1 + $0x224] sm:$0xf]  ;;  %v1799_v53 = vld [vmem:[%s3183_s1 + $0x228] sm:$0xf0]  ;;  %v2045_v40 = vld [vmem:[%s3183_s1 + $0x3a0] sm:$0xf]  ;;  %v1910_v46 = vor.u32 %v2192_v32, %v1907_v33 }
  0x50   : > { %858 = vmatpush.bf16.msra.mxu3 %v1742_v1  ;;  %v1802_v62 = vor.u32 %v2172_v52, %v1799_v53  ;;  %v1897_v1 = vld [vmem:[%s3183_s1 + $0x2b0] sm:$0xf]  ;;  %v2221_v41 = vld [vmem:[%s3183_s1 + $0x3a4] sm:$0xf0]  ;;  %v1873_v48 = vld [vmem:[%s3183_s1 + $0x280] sm:$0xf] }
  0x51   : > { %v2190_v51 = vld [vmem:[%s3183_s1 + $0x2b4] sm:$0xf]  ;;  %v1899_v52 = vld [vmem:[%s3183_s1 + $0x2b8] sm:$0xf0]  ;;  %v2200_v53 = vld [vmem:[%s3183_s1 + $0x304] sm:$0xf]  ;;  %v2046_v60 = vor.u32 %v2221_v41, %v2045_v40 }
  0x52   : > { %898 = vmatpush.bf16.msra.mxu0 %v1826_v7  ;;  %v1937_v7 = vld [vmem:[%s3183_s1 + $0x300] sm:$0xf]  ;;  %v1939_v54 = vld [vmem:[%s3183_s1 + $0x308] sm:$0xf0]  ;;  %v2188_v3 = vld [vmem:[%s3183_s1 + $0x2a4] sm:$0xf] }
  0x53   : > { %873 = vmatpush.bf16.msra.mxu1 %v1798_v9  ;;  %884 = vmatpush.bf16.msra.mxu2 %v1762_v10  ;;  %v1926_v9 = vor.u32 %v2196_v55, %v1923_v56  ;;  %v966_v10 = vshrl.u32 %v2658_v0, 16  ;;  %v2189_v0 = vld [vmem:[%s3183_s1 + $0x2a4] sm:$0xf0]  ;;  %v1938_v21 = vor.u32 %v2201_v8, %v1937_v7  ;;  %v941_v55 = vshrl.u32 %v2680_v13, 16  ;;  %v1891_v4 = vld [vmem:[%s3183_s1 + $0x2a8] sm:$0xf0] }
  0x54   : > { %859 = vmatpush.bf16.msra.mxu3 %v1734_v15  ;;  %v1915_v15 = vld [vmem:[%s3183_s1 + $0x2d8] sm:$0xf0]  ;;  %v1890_v34 = vor.u32 %v2189_v0, %v1889_v63  ;;  %v944_v56 = vshll.u32 %v2680_v13, 16  ;;  %v2219_v13 = vld [vmem:[%s3183_s1 + $0x394] sm:$0xf0] }
  0x55   : > { %v968_v24 = vrot.slane %v966_v10, 1  ;;  %v1918_v27 = vor.u32 %v2194_v12, %v1915_v15  ;;  %v1931_v7 = vld [vmem:[%s3183_s1 + $0x2f8] sm:$0xf0]  ;;  %v943_v8 = vrot.slane %v941_v55, 1  ;;  %v2222_v63 = vld [vmem:[%s3183_s1 + $0x3b4] sm:$0xf] }
  0x56   : > { %899 = vmatpush.bf16.msra.mxu0 %v1818_v29  ;;  %1835 = vmatmul.msk.bf16.vlgmr.msra.gmra.mxu1 %vm360_vm0, %v717_v57  ;;  %v2223_v29 = vld [vmem:[%s3183_s1 + $0x3b4] sm:$0xf0]  ;;  %v2055_v12 = vld [vmem:[%s3183_s1 + $0x3b8] sm:$0xf0]  ;;  %v2029_v0 = vld [vmem:[%s3183_s1 + $0x380] sm:$0xf] }
  0x57   : > { %1108 = vmatpush.bf16.msrb.mxu1 %v1922_v16  ;;  %885 = vmatpush.bf16.msra.mxu2 %v1754_v31  ;;  %v1898_v16 = vor.u32 %v2191_v2, %v1897_v1  ;;  %v1881_v31 = vld [vmem:[%s3183_s1 + $0x290] sm:$0xf]  ;;  %v1942_v2 = vor.u32 %v2200_v53, %v1939_v54  ;;  %v2093_v17 = vld [vmem:[%s3183_s1 + $0x400] sm:$0xf]  ;;  %v2233_v19 = vld [vmem:[%s3183_s1 + $0x404] sm:$0xf0]  ;;  %v2058_v26 = vor.u32 %v2222_v63, %v2055_v12 }
  0x58   : > { %1125 = vmatpush.bf16.msrb.mxu3 %v1962_v28  ;;  %v2053_v28 = vld [vmem:[%s3183_s1 + $0x3b0] sm:$0xf]  ;;  %v2217_v22 = vld [vmem:[%s3183_s1 + $0x384] sm:$0xf0]  ;;  %v2186_v23 = vld [vmem:[%s3183_s1 + $0x294] sm:$0xf] }
  0x59   : > { %860 = vmatmul.bf16.vlgmr.msra.gmra.mxu3 %v2829_v38  ;;  %v2030_v32 = vor.u32 %v2217_v22, %v2029_v0  ;;  %v1875_v40 = vld [vmem:[%s3183_s1 + $0x288] sm:$0xf0]  ;;  %v2182_v53 = vld [vmem:[%s3183_s1 + $0x274] sm:$0xf]  ;;  %v1867_v54 = vld [vmem:[%s3183_s1 + $0x278] sm:$0xf0] }
  0x5a   : > { %900 = vmatpush.bf16.msra.mxu0 %v1810_v45  ;;  %v2054_v45 = vor.u32 %v2223_v29, %v2053_v28  ;;  %v2220_v29 = vld [vmem:[%s3183_s1 + $0x3a4] sm:$0xf]  ;;  %v2225_v63 = vld [vmem:[%s3183_s1 + $0x3c4] sm:$0xf0]  ;;  %v1997_v12 = vld [vmem:[%s3183_s1 + $0x340] sm:$0xf] }
  0x5b   : > { %1109 = vmatpush.bf16.msrb.mxu1 %v1914_v35  ;;  %886 = vmatpush.bf16.msra.mxu2 %v1746_v50  ;;  %v2187_v35 = vld [vmem:[%s3183_s1 + $0x294] sm:$0xf0]  ;;  %v1950_v50 = vor.u32 %v2202_v36, %v1947_v37  ;;  %v2015_v22 = vld [vmem:[%s3183_s1 + $0x368] sm:$0xf0] }
  0x5c   : > { %1126 = vmatpush.bf16.msrb.mxu3 %v1954_v44  ;;  %v972_v44 = vor.u32 %v971_v25, %v968_v24  ;;  %v1882_v49 = vor.u32 %v2187_v35, %v1881_v31  ;;  %v1883_v24 = vld [vmem:[%s3183_s1 + $0x298] sm:$0xf0]  ;;  %v2094_v31 = vor.u32 %v2233_v19, %v2093_v17  ;;  %v2085_v35 = vld [vmem:[%s3183_s1 + $0x3f0] sm:$0xf]  ;;  %v2231_v36 = vld [vmem:[%s3183_s1 + $0x3f4] sm:$0xf0] }
  0x5d   : > { %v1886_v33 = vor.u32 %v2186_v23, %v1883_v24  ;;  %v2215_v37 = vld [vmem:[%s3183_s1 + $0x374] sm:$0xf0]  ;;  %v2228_v17 = vld [vmem:[%s3183_s1 + $0x3e4] sm:$0xf]  ;;  %v2079_v19 = vld [vmem:[%s3183_s1 + $0x3e8] sm:$0xf0] }
  0x5e   : > { %901 = vmatpush.bf16.msra.mxu0 %v1802_v62  ;;  %v2968_v59 = vsel %vm939_vm3, %v964_v42, %v972_v44  ;;  %v2037_v62 = vld [vmem:[%s3183_s1 + $0x390] sm:$0xf]  ;;  %v2218_v44 = vld [vmem:[%s3183_s1 + $0x394] sm:$0xf]  ;;  %v1198_v24 = vrot.slane %v2574_v18, 1 }
  0x5f   : > { %1110 = vmatpush.bf16.msrb.mxu1 %v1906_v58  ;;  %887 = vmatpush.bf16.msra.mxu2 %v1738_v6  ;;  %v952_v58 = vshll.u32 %v2682_v14, 16  ;;  %v2198_v6 = vld [vmem:[%s3183_s1 + $0x2f4] sm:$0xf]  ;;  %v2038_v15 = vor.u32 %v2219_v13, %v2037_v62  ;;  %v1870_v62 = vor.u32 %v2182_v53, %v1867_v54  ;;  %v2069_v13 = vld [vmem:[%s3183_s1 + $0x3d0] sm:$0xf] }
  0x60   : > { %1127 = vmatpush.bf16.msrb.mxu3 %v1946_v61  ;;  %v1902_v61 = vor.u32 %v2190_v51, %v1899_v52  ;;  %v2229_v51 = vld [vmem:[%s3183_s1 + $0x3e4] sm:$0xf0]  ;;  %v2071_v18 = vld [vmem:[%s3183_s1 + $0x3d8] sm:$0xf0] }
  0x61   : > { %1836 = vmatmul.msk.bf16.vlgmr.msra.gmra.mxu0 %vm360_vm0, %v717_v57  ;;  %v949_v57 = vshrl.u32 %v2682_v14, 16  ;;  %v1865_v14 = vld [vmem:[%s3183_s1 + $0x270] sm:$0xf]  ;;  %v954_v11 = vrot.slane %v952_v58, 2  ;;  %v2213_v52 = vld [vmem:[%s3183_s1 + $0x364] sm:$0xf0] }
  0x62   : > { %1136 = vmatpush.bf16.msrb.mxu0 %v1926_v9  ;;  %888 = vmatmul.bf16.vlgmr.msra.gmra.mxu2 %v2829_v38  ;;  %v2185_v38 = vld [vmem:[%s3183_s1 + $0x284] sm:$0xf0]  ;;  %v946_v9 = vrot.slane %v944_v56, 2  ;;  %v2232_v56 = vld [vmem:[%s3183_s1 + $0x404] sm:$0xf] }
  0x63   : > { %1153 = vmatpush.bf16.msrb.mxu2 %v1966_v47  ;;  %1111 = vmatpush.bf16.msrb.mxu1 %v1898_v16  ;;  %v1874_v1 = vor.u32 %v2185_v38, %v1873_v48  ;;  %v951_v10 = vrot.slane %v949_v57, 1  ;;  %v2183_v47 = vld [vmem:[%s3183_s1 + $0x274] sm:$0xf0]  ;;  %v1894_v16 = vor.u32 %v2188_v3, %v1891_v4  ;;  %v2095_v57 = vld [vmem:[%s3183_s1 + $0x408] sm:$0xf0] }
  0x64   : > { %1128 = vmatpush.bf16.msrb.mxu3 %v1938_v21  ;;  %v1934_v21 = vor.u32 %v2198_v6, %v1931_v7  ;;  %v1866_v25 = vor.u32 %v2183_v47, %v1865_v14  ;;  %v2216_v58 = vld [vmem:[%s3183_s1 + $0x384] sm:$0xf]  ;;  %v2211_v14 = vld [vmem:[%s3183_s1 + $0x354] sm:$0xf0]  ;;  %v2098_v3 = vor.u32 %v2232_v56, %v2095_v57  ;;  %v2230_v6 = vld [vmem:[%s3183_s1 + $0x3f4] sm:$0xf] }
  0x65   : > { %v955_v28 = vor.u32 %v954_v11, %v951_v10  ;;  %v2087_v7 = vld [vmem:[%s3183_s1 + $0x3f8] sm:$0xf0]  ;;  %v2061_v47 = vld [vmem:[%s3183_s1 + $0x3c0] sm:$0xf] }
  0x66   : > { %1137 = vmatpush.bf16.msrb.mxu0 %v1918_v27  ;;  %v947_v27 = vor.u32 %v946_v9, %v943_v8  ;;  %v2214_v8 = vld [vmem:[%s3183_s1 + $0x374] sm:$0xf]  ;;  %v2023_v9 = vld [vmem:[%s3183_s1 + $0x378] sm:$0xf0]  ;;  %v2062_v23 = vor.u32 %v2225_v63, %v2061_v47 }
  0x67   : > { %1154 = vmatpush.bf16.msrb.mxu2 %v1958_v30  ;;  %1112 = vmatpush.bf16.msrb.mxu1 %v1890_v34  ;;  %v2047_v30 = vld [vmem:[%s3183_s1 + $0x3a8] sm:$0xf0]  ;;  %v2021_v34 = vld [vmem:[%s3183_s1 + $0x370] sm:$0xf]  ;;  %v2026_v0 = vor.u32 %v2214_v8, %v2023_v9 }
  0x68   : > { %1129 = vmatpush.bf16.msrb.mxu3 %v1930_v39  ;;  %v2184_v39 = vld [vmem:[%s3183_s1 + $0x284] sm:$0xf]  ;;  %v956_v41 = vsel %vm939_vm3, %v947_v27, %v955_v28  ;;  %v2050_v42 = vor.u32 %v2220_v29, %v2047_v30  ;;  %v2022_v48 = vor.u32 %v2215_v37, %v2021_v34  ;;  %v1195_v27 = vrot.slane %v2576_v20, 1  ;;  %v2007_v20 = vld [vmem:[%s3183_s1 + $0x358] sm:$0xf0] }
  0x69   : > { %v1878_v38 = vor.u32 %v2184_v39, %v1875_v40  ;;  %v1196_v28 = vrot.slane %v2738_v43, 1  ;;  %v2082_v29 = vor.u32 %v2228_v17, %v2079_v19  ;;  %v2208_v37 = vld [vmem:[%s3183_s1 + $0x344] sm:$0xf]  ;;  %v1999_v39 = vld [vmem:[%s3183_s1 + $0x348] sm:$0xf0] }
  0x6a   : > { %1138 = vmatpush.bf16.msrb.mxu0 %v1910_v46  ;;  %v2086_v46 = vor.u32 %v2231_v36, %v2085_v35  ;;  %v2224_v35 = vld [vmem:[%s3183_s1 + $0x3c4] sm:$0xf]  ;;  %v2063_v36 = vld [vmem:[%s3183_s1 + $0x3c8] sm:$0xf0] }
  0x6b   : > { %1155 = vmatpush.bf16.msrb.mxu2 %v1950_v50  ;;  %1113 = vmatpush.bf16.msrb.mxu1 %v1882_v49  ;;  %v2013_v49 = vld [vmem:[%s3183_s1 + $0x360] sm:$0xf]  ;;  %v2066_v40 = vor.u32 %v2224_v35, %v2063_v36 }
  0x6c   : > { %1335 = vmatpush.bf16.msra.mxu3 %v2054_v45  ;;  %v2039_v45 = vld [vmem:[%s3183_s1 + $0x398] sm:$0xf0]  ;;  %v2077_v50 = vld [vmem:[%s3183_s1 + $0x3e0] sm:$0xf] }
  0x6d   : > { %1967 = vmatmul.msk.bf16.vlgmr.msrb.gmra.mxu3 %vm360_vm0, %v2968_v59  ;;  %v2042_v55 = vor.u32 %v2218_v44, %v2039_v45 }
  0x6e   : > { %1139 = vmatpush.bf16.msrb.mxu0 %v1902_v61  ;;  %v2014_v61 = vor.u32 %v2213_v52, %v2013_v49 }
  0x6f   : > { %1156 = vmatpush.bf16.msrb.mxu2 %v1942_v2  ;;  %1114 = vmatpush.bf16.msrb.mxu1 %v1874_v1  ;;  %v2227_v1 = vld [vmem:[%s3183_s1 + $0x3d4] sm:$0xf0]  ;;  %v2005_v2 = vld [vmem:[%s3183_s1 + $0x350] sm:$0xf] }
  0x70   : > { %1336 = vmatpush.bf16.msra.mxu3 %v2046_v60  ;;  %v2078_v60 = vor.u32 %v2229_v51, %v2077_v50  ;;  %v2070_v10 = vor.u32 %v2227_v1, %v2069_v13  ;;  %v2006_v11 = vor.u32 %v2211_v14, %v2005_v2 }
  0x72   : > { %1140 = vmatpush.bf16.msrb.mxu0 %v1894_v16  ;;  %v2090_v16 = vor.u32 %v2230_v6, %v2087_v7  ;;  %v187_v6 = vld [vmem:[%s3184_s2] sm:$0x3] }
  0x73   : > { %1157 = vmatpush.bf16.msrb.mxu2 %v1934_v21  ;;  %1115 = vmatpush.bf16.msrb.mxu1 %v1866_v25  ;;  %v2212_v21 = vld [vmem:[%s3183_s1 + $0x364] sm:$0xf]  ;;  %v1199_v25 = vrot.slane %v2781_v5, 1  ;;  %v2210_v5 = vld [vmem:[%s3183_s1 + $0x354] sm:$0xf]  ;;  %v189_v9 = vperm.slane %v187_v6, 0 }
  0x74   : > { %1337 = vmatpush.bf16.msra.mxu3 %v2038_v15  ;;  %v2209_v15 = vld [vmem:[%s3183_s1 + $0x344] sm:$0xf0]  ;;  %v2018_v30 = vor.u32 %v2212_v21, %v2015_v22  ;;  %v2010_v34 = vor.u32 %v2210_v5, %v2007_v20 }
  0x75   : > { %v1200_v43 = vsel %vm464_vm1, %v1198_v24, %v1199_v25 }
  0x76   : > { %1141 = vmatpush.bf16.msrb.mxu0 %v1886_v33  ;;  %1116 = vmatmul.bf16.vlgmr.msrb.gmra.mxu1 %v956_v41 }
  0x77   : > { %1363 = vmatpush.bf16.msra.mxu2 %v2058_v26  ;;  %1352 = vmatpush.bf16.msra.mxu1 %v2094_v31  ;;  %v1998_v26 = vor.u32 %v2209_v15, %v1997_v12  ;;  %v2226_v31 = vld [vmem:[%s3183_s1 + $0x3d4] sm:$0xf] }
  0x78   : > { %1338 = vmatpush.bf16.msra.mxu3 %v2030_v32  ;;  %1968 = vmatmul.msk.bf16.vlgmr.msrb.gmra.mxu2 %vm360_vm0, %v2968_v59  ;;  %v2031_v59 = vld [vmem:[%s3183_s1 + $0x388] sm:$0xf0]  ;;  %v1197_v32 = vsel %vm464_vm1, %v1195_v27, %v1196_v28  ;;  %v2074_v33 = vor.u32 %v2226_v31, %v2071_v18 }
  0x79   : > { %v2034_v4 = vor.u32 %v2216_v58, %v2031_v59 }
  0x7a   : > { %1142 = vmatpush.bf16.msrb.mxu0 %v1878_v38 }
  0x7b   : > { %1364 = vmatpush.bf16.msra.mxu2 %v2050_v42  ;;  %1353 = vmatpush.bf16.msra.mxu1 %v2086_v46 }
  0x7c   : > { %1339 = vmatpush.bf16.msra.mxu3 %v2022_v48 }
  0x7e   : > { %1143 = vmatpush.bf16.msrb.mxu0 %v1870_v62 }
  0x7f   : > { %1365 = vmatpush.bf16.msra.mxu2 %v2042_v55  ;;  %1354 = vmatpush.bf16.msra.mxu1 %v2078_v60 }
  0x80   : > { %1340 = vmatpush.bf16.msra.mxu3 %v2014_v61 }
  0x81   : > { %1144 = vmatmul.bf16.vlgmr.msrb.gmra.mxu0 %v956_v41  ;;  %v2002_v41 = vor.u32 %v2208_v37, %v1999_v39 }
  0x82   : > { %1380 = vmatpush.bf16.msra.mxu0 %v2098_v3 }
  0x83   : > { %1366 = vmatpush.bf16.msra.mxu2 %v2034_v4  ;;  %1355 = vmatpush.bf16.msra.mxu1 %v2070_v10 }
  0x84   : > { %1341 = vmatpush.bf16.msra.mxu3 %v2006_v11 }
  0x86   : > { %1381 = vmatpush.bf16.msra.mxu0 %v2090_v16 }
  0x87   : > { %1367 = vmatpush.bf16.msra.mxu2 %v2026_v0  ;;  %1356 = vmatpush.bf16.msra.mxu1 %v2062_v23  ;;  %v190_v23 = vperm.slane %v187_v6, 1 }
  0x88   : > { %1342 = vmatpush.bf16.msra.mxu3 %v1998_v26 }
  0x8a   : > { %1382 = vmatpush.bf16.msra.mxu0 %v2082_v29  ;;  %2099 = vmatmul.msk.bf16.vlgmr.msra.gmra.mxu1 %vm360_vm0, %v1200_v43 }
  0x8b   : > { %1368 = vmatpush.bf16.msra.mxu2 %v2018_v30  ;;  %1343 = vmatmul.bf16.vlgmr.msra.gmra.mxu3 %v1197_v32 }
  0x8e   : > { %1383 = vmatpush.bf16.msra.mxu0 %v2074_v33 }
  0x8f   : > { %1369 = vmatpush.bf16.msra.mxu2 %v2010_v34 }
  0x92   : > { %1384 = vmatpush.bf16.msra.mxu0 %v2066_v40 }
  0x93   : > { %1370 = vmatpush.bf16.msra.mxu2 %v2002_v41 }
  0x95   : > { %2100 = vmatmul.msk.bf16.vlgmr.msra.gmra.mxu0 %vm360_vm0, %v1200_v43 }
  0x96   : > { %1371 = vmatmul.bf16.vlgmr.msra.gmra.mxu2 %v1197_v32 }
  0xae   : > { %v387_v42 = vpop.f32.mrf.mxu1  ;;  %v373_v46 = vpop.f32.mrf.mxu0 }
  0xaf   : > { %v388_v10 = vadd.f32 %v387_v42, %v373_v46 }
  0xb1   : > { %v415_v44 = vpop.f32.mrf.mxu3  ;;  %v420_v63 = vadd.f32 %v388_v10, %v189_v9 }
  0xb3   : > { %v401_v38 = vpop.f32.mrf.mxu2 }
  0xb4   : > { %v416_v24 = vadd.f32 %v415_v44, %v401_v38 }
  0xb6   : > { %v389_v45 = vpop.f32.mrf.mxu1  ;;  %v375_v50 = vpop.f32.mrf.mxu0  ;;  %v421_v20 = vadd.f32 %v416_v24, %v190_v23 }
  0xb7   : > { %v390_v0 = vadd.f32 %v389_v45, %v375_v50 }
  0xb9   : > { %v3163_v48 = vpop.f32.mrf.mxu3  ;;  %v422_v26 = vadd.f32 %v390_v0, %v189_v9 }
  0xbb   : > { %v403_v52 = vpop.f32.mrf.mxu2 }
  0xbc   : > { %v418_v42 = vadd.f32 %v3163_v48, %v403_v52 }
  0xc1   : > { %v614_v49 = vpop.f32.mrf.mxu1  ;;  %v628_v51 = vpop.f32.mrf.mxu3 }
  0xc2   : > { %v629_v12 = vadd.f32 %v628_v51, %v614_v49 }
  0xc4   : > { %v661_v17 = vadd.f32 %v629_v12, %v420_v63 }
  0xc5   : > { %v656_v56 = vpop.f32.mrf.mxu2 }
  0xc9   : > { %v616_v53 = vpop.f32.mrf.mxu1  ;;  %v630_v55 = vpop.f32.mrf.mxu3 }
  0xca   : > { %v642_v54 = vpop.f32.mrf.mxu0  ;;  %v631_v27 = vadd.f32 %v630_v55, %v616_v53 }
  0xcb   : > { %v657_v31 = vadd.f32 %v656_v56, %v642_v54  ;;  %v423_v54 = vadd.f32 %v418_v42, %v190_v23 }
  0xcc   : > { %v663_v43 = vadd.f32 %v631_v27, %v422_v26 }
  0xcd   : > { %v658_v60 = vpop.f32.mrf.mxu2  ;;  %v662_v36 = vadd.f32 %v657_v31, %v421_v20 }
  0xd2   : > { %v644_v58 = vpop.f32.mrf.mxu0 }
  0xd3   : > { %v875_v57 = vpop.f32.mrf.mxu1  ;;  %v659_v49 = vadd.f32 %v658_v60, %v644_v58 }
  0xdb   : > { %v877_v61 = vpop.f32.mrf.mxu1 }
  0xdc   : > { %v861_v59 = vpop.f32.mrf.mxu3 }
  0xdd   : > { %v876_v15 = vadd.f32 %v875_v57, %v861_v59  ;;  %v664_v59 = vadd.f32 %v659_v49, %v423_v54 }
  0xde   : > { %v903_v62 = vpop.f32.mrf.mxu0 }
  0xdf   : > { %v908_v22 = vadd.f32 %v876_v15, %v661_v17 }
  0xe4   : > { %v863_v13 = vpop.f32.mrf.mxu3 }
  0xe5   : > { %v889_v1 = vpop.f32.mrf.mxu2  ;;  %v878_v18 = vadd.f32 %v877_v61, %v863_v13 }
  0xe6   : > { %v905_v14 = vpop.f32.mrf.mxu0  ;;  %v904_v32 = vadd.f32 %v903_v62, %v889_v1 }
  0xe7   : > { %v910_v37 = vadd.f32 %v878_v18, %v663_v43 }
  0xe8   : > { %v909_v44 = vadd.f32 %v904_v32, %v662_v36 }
  0xed   : > { %v891_v4 = vpop.f32.mrf.mxu2 }
  0xee   : > { %v906_v55 = vadd.f32 %v905_v14, %v891_v4 }
  0xf0   : > { %v1131_v3 = vpop.f32.mrf.mxu3  ;;  %v911_v52 = vadd.f32 %v906_v55, %v664_v59 }
  0xf3   : > { %v1117_v2 = vpop.f32.mrf.mxu1 }
  0xf4   : > { %v1132_v19 = vadd.f32 %v1131_v3, %v1117_v2 }
  0xf6   : > { %v1164_v28 = vadd.f32 %v1132_v19, %v908_v22 }
  0xf8   : > { %v1133_v11 = vpop.f32.mrf.mxu3 }
  0xfb   : > { %v1119_v7 = vpop.f32.mrf.mxu1  ;;  %v1159_v47 = vpop.f32.mrf.mxu2 }
  0xfc   : > { %v1134_v33 = vadd.f32 %v1133_v11, %v1119_v7 }
  0xfe   : > { %v1145_v8 = vpop.f32.mrf.mxu0  ;;  %v1166_v45 = vadd.f32 %v1134_v33, %v910_v37 }
  0xff   : > { %v1160_v39 = vadd.f32 %v1159_v47, %v1145_v8 }
 0x101   : > { %v1165_v50 = vadd.f32 %v1160_v39, %v909_v44 }
 0x103   : > { %v1161_v30 = vpop.f32.mrf.mxu2 }
 0x106   : > { %v1147_v21 = vpop.f32.mrf.mxu0 }
 0x107   : > { %v1358_v16 = vpop.f32.mrf.mxu1  ;;  %v1162_v61 = vadd.f32 %v1161_v30, %v1147_v21 }
 0x109   : > { %v1167_v1 = vadd.f32 %v1162_v61, %v911_v52 }
 0x10e   : > { %v1344_v25 = vpop.f32.mrf.mxu3 }
 0x10f   : > { %v1359_v29 = vadd.f32 %v1358_v16, %v1344_v25  ;;  %v1360_v35 = vpop.f32.mrf.mxu1 }
 0x111   : > { %v1391_v5 = vadd.f32 %v1359_v29, %v1164_v28 }
 0x112   : > { %v1386_v40 = vpop.f32.mrf.mxu0 }
 0x113   : > { %v1395_v34 = vmax.f32 %v1391_v5, 0.0 }
 0x115   : > { %1399 = vst [vmem:[%s3172_s19] sm:$0xff] %v1395_v34 }
 0x116   : > { %v1346_v41 = vpop.f32.mrf.mxu3 }
 0x117   : > { %v1361_v46 = vadd.f32 %v1360_v35, %v1346_v41 }
 0x119   : > { %v1372_v38 = vpop.f32.mrf.mxu2  ;;  %v1393_v51 = vadd.f32 %v1361_v46, %v1166_v45 }
 0x11a   : > { %v1387_v53 = vadd.f32 %v1386_v40, %v1372_v38  ;;  %v1388_v62 = vpop.f32.mrf.mxu0 }
 0x11b   : > { %v1397_v56 = vmax.f32 %v1393_v51, 0.0 }
 0x11c   : > { %v1392_v57 = vadd.f32 %v1387_v53, %v1165_v50 }
 0x11d   : > { %1402 = vst [vmem:[%s3172_s19 + $0x10] sm:$0xff] %v1397_v56 }
 0x11e   : > { %v1396_v48 = vmax.f32 %v1392_v57, 0.0 }
 0x120   : > { %1401 = vst.msk [vmem:[%s3172_s19 + $0x8] sm:$0xff] %vm1400_vm4, %v1396_v48 }
 0x121   : > { %v1374_v13 = vpop.f32.mrf.mxu2 }
 0x122   : > { %v1389_v2 = vadd.f32 %v1388_v62, %v1374_v13 }
 0x124   : > { %v1394_v58 = vadd.f32 %v1389_v2, %v1167_v1 }
 0x126   : > { %v1398_v60 = vmax.f32 %v1394_v58, 0.0 }
 0x128   : > { %1403 = vst.msk [vmem:[%s3172_s19 + $0x18] sm:$0xff] %vm1400_vm4, %v1398_v60 }
 0x129 PF: > { %s13_s12 = sadd.s32 1, %s2249_s12  }
 0x12a   : > { %p10_p4 = scmp.ge.s32.totalorder %s13_s12, 4  }
 0x12c   :  { %12 = sbr.rel (!%p10_p4) target bundleno = 1 (0x1), region = 66 }

// kernel: forward.15
= control target key start
LH: loop header
LB: loop body
LE: loop exit
PB: predicated region body
PF: predicated region fallthrough
CT: control target
= control target key end

     0   :  { %s2358_s12 = smov 0   ;;  %s3328_s0 = inlined_call_operand.vmem [shape: f32[2,20,224], index: 0, kind: input, shape index: {}]   ;;  %s3329_s1 = inlined_call_operand.vmem [shape: bf16[5,224,192], index: 1, kind: input, shape index: {}]   ;;  %s3330_s2 = inlined_call_operand.vmem [shape: f32[1,192], index: 2, kind: input, shape index: {}]   ;;  %s3331_s3 = inlined_call_operand.vmem [shape: f32[2,16,192], index: 3, kind: output, shape index: {}]  }
   0x1 LB: > { %s1488_s13 = sadd.s32 4294967295, %s2336_s12   ;;  %p1492_p0 = scmp.ge.s32.totalorder %s2336_s12, 1  ;;  %s2336_s12 = sphi %s2358_s12, %s13_s12  }
   0x2   : > { %p137_p1 = scmp.lt.s32.totalorder %s2336_s12, 3 }
   0x4   : > { %p138_p2 = pnand %p1492_p0, %p137_p1 }
   0x5   : > { %p161_p3 = scmp.lt.s32.totalorder (!%p138_p2), %s1488_s13, 1 }
   0x6   : > { %141 = sbr.rel (%p138_p2) target bundleno = 306 (0x132), region = 32 }
   0xb   : > { %v1554_v0 = vld [vmem:[%s3329_s1 + $0x70] sm:$0xf]  ;;  %v2196_v1 = vld [vmem:[%s3329_s1 + $0x74] sm:$0xf0]  ;;  %v2195_v5 = vld [vmem:[%s3329_s1 + $0x74] sm:$0xf] }
   0xc   : > { %v1602_v2 = vld [vmem:[%s3329_s1 + $0xd0] sm:$0xf]  ;;  %v1555_v3 = vor.u32 %v2196_v1, %v1554_v0  ;;  %v2208_v4 = vld [vmem:[%s3329_s1 + $0xd4] sm:$0xf0]  ;;  %v1556_v6 = vld [vmem:[%s3329_s1 + $0x78] sm:$0xf0] }
   0xd   : > { %v1603_v7 = vor.u32 %v2208_v4, %v1602_v2  ;;  %v1559_v8 = vor.u32 %v2195_v5, %v1556_v6  ;;  %v2207_v9 = vld [vmem:[%s3329_s1 + $0xd4] sm:$0xf]  ;;  %v1604_v10 = vld [vmem:[%s3329_s1 + $0xd8] sm:$0xf0]  ;;  %v1546_v11 = vld [vmem:[%s3329_s1 + $0x60] sm:$0xf] }
   0xe   : > { %370 = vmatpush.bf16.msra.mxu0 %v1555_v3  ;;  %v1607_v12 = vor.u32 %v2207_v9, %v1604_v10  ;;  %v2194_v13 = vld [vmem:[%s3329_s1 + $0x64] sm:$0xf0]  ;;  %v1594_v14 = vld [vmem:[%s3329_s1 + $0xc0] sm:$0xf]  ;;  %v2193_v18 = vld [vmem:[%s3329_s1 + $0x64] sm:$0xf] }
   0xf   : > { %v2206_v15 = vld [vmem:[%s3329_s1 + $0xc4] sm:$0xf0]  ;;  %386 = vmatpush.bf16.msra.mxu1 %v1603_v7  ;;  %398 = vmatpush.bf16.msra.mxu2 %v1559_v8  ;;  %v1547_v16 = vor.u32 %v2194_v13, %v1546_v11  ;;  %v1548_v19 = vld [vmem:[%s3329_s1 + $0x68] sm:$0xf0]  ;;  %v2205_v20 = vld [vmem:[%s3329_s1 + $0xc4] sm:$0xf] }
  0x10   : > { %v1595_v17 = vor.u32 %v2206_v15, %v1594_v14  ;;  %414 = vmatpush.bf16.msra.mxu3 %v1607_v12  ;;  %v1551_v21 = vor.u32 %v2193_v18, %v1548_v19  ;;  %v1596_v22 = vld [vmem:[%s3329_s1 + $0xc8] sm:$0xf0]  ;;  %v1538_v23 = vld [vmem:[%s3329_s1 + $0x50] sm:$0xf]  ;;  %v2192_v24 = vld [vmem:[%s3329_s1 + $0x54] sm:$0xf0] }
  0x11   : > { %v1599_v25 = vor.u32 %v2205_v20, %v1596_v22  ;;  %v1586_v26 = vld [vmem:[%s3329_s1 + $0xb0] sm:$0xf]  ;;  %v2204_v27 = vld [vmem:[%s3329_s1 + $0xb4] sm:$0xf0]  ;;  %v2191_v28 = vld [vmem:[%s3329_s1 + $0x54] sm:$0xf]  ;;  %v1539_v29 = vor.u32 %v2192_v24, %v1538_v23 }
  0x12   : > { %371 = vmatpush.bf16.msra.mxu0 %v1547_v16  ;;  %v1540_v30 = vld [vmem:[%s3329_s1 + $0x58] sm:$0xf0]  ;;  %v2203_v31 = vld [vmem:[%s3329_s1 + $0xb4] sm:$0xf]  ;;  %v1587_v33 = vor.u32 %v2204_v27, %v1586_v26  ;;  %v1530_v35 = vld [vmem:[%s3329_s1 + $0x40] sm:$0xf] }
  0x13   : > { %v1588_v32 = vld [vmem:[%s3329_s1 + $0xb8] sm:$0xf0]  ;;  %387 = vmatpush.bf16.msra.mxu1 %v1595_v17  ;;  %399 = vmatpush.bf16.msra.mxu2 %v1551_v21  ;;  %v1543_v34 = vor.u32 %v2191_v28, %v1540_v30  ;;  %v2190_v36 = vld [vmem:[%s3329_s1 + $0x44] sm:$0xf0]  ;;  %v1578_v37 = vld [vmem:[%s3329_s1 + $0xa0] sm:$0xf] }
  0x14   : > { %415 = vmatpush.bf16.msra.mxu3 %v1599_v25  ;;  %v1591_v38 = vor.u32 %v2203_v31, %v1588_v32  ;;  %v2202_v39 = vld [vmem:[%s3329_s1 + $0xa4] sm:$0xf0]  ;;  %v2189_v40 = vld [vmem:[%s3329_s1 + $0x44] sm:$0xf]  ;;  %v1532_v41 = vld [vmem:[%s3329_s1 + $0x48] sm:$0xf0]  ;;  %v1531_v44 = vor.u32 %v2190_v36, %v1530_v35 }
  0x15   : > { %v2201_v42 = vld [vmem:[%s3329_s1 + $0xa4] sm:$0xf]  ;;  %v1580_v43 = vld [vmem:[%s3329_s1 + $0xa8] sm:$0xf0]  ;;  %v1579_v45 = vor.u32 %v2202_v39, %v1578_v37  ;;  %v1535_v46 = vor.u32 %v2189_v40, %v1532_v41  ;;  %v1522_v47 = vld [vmem:[%s3329_s1 + $0x30] sm:$0xf] }
  0x16   : > { %372 = vmatpush.bf16.msra.mxu0 %v1539_v29  ;;  %v2188_v48 = vld [vmem:[%s3329_s1 + $0x34] sm:$0xf0]  ;;  %v1570_v49 = vld [vmem:[%s3329_s1 + $0x90] sm:$0xf]  ;;  %v1583_v50 = vor.u32 %v2201_v42, %v1580_v43  ;;  %v2187_v52 = vld [vmem:[%s3329_s1 + $0x34] sm:$0xf] }
  0x17   : > { %388 = vmatpush.bf16.msra.mxu1 %v1587_v33  ;;  %400 = vmatpush.bf16.msra.mxu2 %v1543_v34  ;;  %v2200_v51 = vld [vmem:[%s3329_s1 + $0x94] sm:$0xf0]  ;;  %v1524_v53 = vld [vmem:[%s3329_s1 + $0x38] sm:$0xf0]  ;;  %v2199_v54 = vld [vmem:[%s3329_s1 + $0x94] sm:$0xf]  ;;  %v1523_v56 = vor.u32 %v2188_v48, %v1522_v47 }
  0x18   : > { %416 = vmatpush.bf16.msra.mxu3 %v1591_v38  ;;  %v1572_v55 = vld [vmem:[%s3329_s1 + $0x98] sm:$0xf0]  ;;  %v1514_v57 = vld [vmem:[%s3329_s1 + $0x20] sm:$0xf]  ;;  %v1571_v58 = vor.u32 %v2200_v51, %v1570_v49  ;;  %v1527_v59 = vor.u32 %v2187_v52, %v1524_v53  ;;  %v2186_v60 = vld [vmem:[%s3329_s1 + $0x24] sm:$0xf0] }
  0x19   : > { %v1562_v61 = vld [vmem:[%s3329_s1 + $0x80] sm:$0xf]  ;;  %v2198_v62 = vld [vmem:[%s3329_s1 + $0x84] sm:$0xf0]  ;;  %v1575_v63 = vor.u32 %v2199_v54, %v1572_v55  ;;  %v2185_v0 = vld [vmem:[%s3329_s1 + $0x24] sm:$0xf]  ;;  %v1515_v6 = vor.u32 %v2186_v60, %v1514_v57 }
  0x1a   : > { %373 = vmatpush.bf16.msra.mxu0 %v1531_v44  ;;  %v1516_v1 = vld [vmem:[%s3329_s1 + $0x28] sm:$0xf0]  ;;  %v2197_v2 = vld [vmem:[%s3329_s1 + $0x84] sm:$0xf]  ;;  %v1696_v4 = vld [vmem:[%s3329_s1 + $0x150] sm:$0xf]  ;;  %v1563_v9 = vor.u32 %v2198_v62, %v1562_v61 }
  0x1b   : > { %389 = vmatpush.bf16.msra.mxu1 %v1579_v45  ;;  %401 = vmatpush.bf16.msra.mxu2 %v1535_v46  ;;  %v1564_v3 = vld [vmem:[%s3329_s1 + $0x88] sm:$0xf0]  ;;  %v2224_v5 = vld [vmem:[%s3329_s1 + $0x154] sm:$0xf0]  ;;  %v1744_v7 = vld [vmem:[%s3329_s1 + $0x1b0] sm:$0xf]  ;;  %v1519_v10 = vor.u32 %v2185_v0, %v1516_v1 }
  0x1c   : > { %417 = vmatpush.bf16.msra.mxu3 %v1583_v50  ;;  %v2236_v8 = vld [vmem:[%s3329_s1 + $0x1b4] sm:$0xf0]  ;;  %v1506_v11 = vld [vmem:[%s3329_s1 + $0x10] sm:$0xf]  ;;  %v1567_v13 = vor.u32 %v2197_v2, %v1564_v3  ;;  %v1697_v14 = vor.u32 %v2224_v5, %v1696_v4  ;;  %v2183_v15 = vld [vmem:[%s3329_s1 + $0x14] sm:$0xf] }
  0x1d   : > { %v2184_v12 = vld [vmem:[%s3329_s1 + $0x14] sm:$0xf0]  ;;  %v1508_v16 = vld [vmem:[%s3329_s1 + $0x18] sm:$0xf0]  ;;  %v1745_v17 = vor.u32 %v2236_v8, %v1744_v7  ;;  %v1688_v18 = vld [vmem:[%s3329_s1 + $0x140] sm:$0xf] }
  0x1e   : > { %374 = vmatpush.bf16.msra.mxu0 %v1523_v56  ;;  %v2222_v19 = vld [vmem:[%s3329_s1 + $0x144] sm:$0xf0]  ;;  %v1736_v20 = vld [vmem:[%s3329_s1 + $0x1a0] sm:$0xf]  ;;  %v1507_v21 = vor.u32 %v2184_v12, %v1506_v11  ;;  %v1511_v25 = vor.u32 %v2183_v15, %v1508_v16  ;;  %v2181_v26 = vld [vmem:[%s3329_s1 + $0x4] sm:$0xf] }
  0x1f   : > { %390 = vmatpush.bf16.msra.mxu1 %v1571_v58  ;;  %402 = vmatpush.bf16.msra.mxu2 %v1527_v59  ;;  %v2234_v22 = vld [vmem:[%s3329_s1 + $0x1a4] sm:$0xf0]  ;;  %v1498_v23 = vld [vmem:[%s3329_s1] sm:$0xf]  ;;  %v1500_v27 = vld [vmem:[%s3329_s1 + $0x8] sm:$0xf0]  ;;  %v1689_v29 = vor.u32 %v2222_v19, %v1688_v18 }
  0x20   : > { %418 = vmatpush.bf16.msra.mxu3 %v1575_v63  ;;  %v2182_v24 = vld [vmem:[%s3329_s1 + $0x4] sm:$0xf0]  ;;  %v1680_v28 = vld [vmem:[%s3329_s1 + $0x130] sm:$0xf]  ;;  %v2220_v30 = vld [vmem:[%s3329_s1 + $0x134] sm:$0xf0]  ;;  %v1737_v33 = vor.u32 %v2234_v22, %v1736_v20  ;;  %v1503_v39 = vor.u32 %v2181_v26, %v1500_v27 }
  0x21   : > { %v2223_v31 = vld [vmem:[%s3329_s1 + $0x154] sm:$0xf]  ;;  %v1698_v32 = vld [vmem:[%s3329_s1 + $0x158] sm:$0xf0]  ;;  %v1499_v36 = vor.u32 %v2182_v24, %v1498_v23  ;;  %v1728_v37 = vld [vmem:[%s3329_s1 + $0x190] sm:$0xf]  ;;  %v1681_v42 = vor.u32 %v2220_v30, %v1680_v28 }
  0x22   : > { %375 = vmatpush.bf16.msra.mxu0 %v1515_v6  ;;  %v2235_v34 = vld [vmem:[%s3329_s1 + $0x1b4] sm:$0xf]  ;;  %v1746_v35 = vld [vmem:[%s3329_s1 + $0x1b8] sm:$0xf0]  ;;  %v2232_v38 = vld [vmem:[%s3329_s1 + $0x194] sm:$0xf0]  ;;  %v1701_v40 = vor.u32 %v2223_v31, %v1698_v32 }
  0x23   : > { %391 = vmatpush.bf16.msra.mxu1 %v1563_v9  ;;  %403 = vmatpush.bf16.msra.mxu2 %v1519_v10  ;;  %v1672_v41 = vld [vmem:[%s3329_s1 + $0x120] sm:$0xf]  ;;  %s3333_s13 = smov (!%p161_p3, %s1488_s13), 1  ;;  %v1749_v43 = vor.u32 %v2235_v34, %v1746_v35  ;;  %v2218_v44 = vld [vmem:[%s3329_s1 + $0x124] sm:$0xf0]  ;;  %v1729_v47 = vor.u32 %v2232_v38, %v1728_v37  ;;  %vm366_vm0 = vcmask 785408  }
  0x24   : > { %419 = vmatpush.bf16.msra.mxu3 %v1567_v13  ;;  %v2221_v45 = vld [vmem:[%s3329_s1 + $0x144] sm:$0xf]  ;;  %v1690_v46 = vld [vmem:[%s3329_s1 + $0x148] sm:$0xf0]  ;;  %s2321_s20 = smul.u32 48, %s3333_s13  ;;  %v1673_v56 = vor.u32 %v2218_v44, %v1672_v41  ;;  %vm721_vm2 = vcmask 1046528  }
  0x25   : > { %v2233_v48 = vld [vmem:[%s3329_s1 + $0x1a4] sm:$0xf]  ;;  %v1738_v49 = vld [vmem:[%s3329_s1 + $0x1a8] sm:$0xf0]  ;;  %v1720_v50 = vld [vmem:[%s3329_s1 + $0x180] sm:$0xf]  ;;  %v1693_v52 = vor.u32 %v2221_v45, %v1690_v46 }
  0x26   : > { %376 = vmatpush.bf16.msra.mxu0 %v1507_v21  ;;  %v2230_v51 = vld [vmem:[%s3329_s1 + $0x184] sm:$0xf0]  ;;  %s2616_s27 = scalar_lea.vmem %s3328_s0, %s2321_s20  ;;  %v1664_v53 = vld [vmem:[%s3329_s1 + $0x110] sm:$0xf]  ;;  %v2219_v54 = vld [vmem:[%s3329_s1 + $0x134] sm:$0xf]  ;;  %v1741_v57 = vor.u32 %v2233_v48, %v1738_v49 }
  0x27   : > { %632 = vmatpush.bf16.msrb.mxu1 %v1697_v14  ;;  %404 = vmatpush.bf16.msra.mxu2 %v1511_v25  ;;  %v1682_v55 = vld [vmem:[%s3329_s1 + $0x138] sm:$0xf0]  ;;  %v172_v58 = vld [vmem:[%s2616_s27] sm:$0xff]  ;;  %v173_v59 = vld [vmem:[%s2616_s27 + $0x8] sm:$0xff]  ;;  %v1721_v61 = vor.u32 %v2230_v51, %v1720_v50  ;;  %vm464_vm1 = vsmask.f32 7424 }
  0x28   : > { %648 = vmatpush.bf16.msrb.mxu3 %v1745_v17  ;;  %v174_v60 = vld [vmem:[%s2616_s27 + $0x10] sm:$0xff]  ;;  %v175_v62 = vld [vmem:[%s2616_s27 + $0x18] sm:$0xff]  ;;  %v178_v63 = vpack.c.bf16 %v173_v59, %v172_v58  ;;  %v1685_v7 = vor.u32 %v2219_v54, %v1682_v55  ;;  %v1656_v12 = vld [vmem:[%s3329_s1 + $0x100] sm:$0xf]  ;;  %vm961_vm3 = vsmask.f32 6400 }
  0x29   : > { %v2216_v0 = vld [vmem:[%s3329_s1 + $0x114] sm:$0xf0]  ;;  %v1712_v1 = vld [vmem:[%s3329_s1 + $0x170] sm:$0xf]  ;;  %v179_v2 = vpack.c.bf16 %v175_v62, %v174_v60  ;;  %v2231_v4 = vld [vmem:[%s3329_s1 + $0x194] sm:$0xf] }
  0x2a   : > { %377 = vmatpush.bf16.msra.mxu0 %v1499_v36  ;;  %v2228_v3 = vld [vmem:[%s3329_s1 + $0x174] sm:$0xf0]  ;;  %v1730_v5 = vld [vmem:[%s3329_s1 + $0x198] sm:$0xf0]  ;;  %v220_v6 = vunpack.c.h.b16 %v178_v63  ;;  %v219_v8 = vunpack.c.l.b16 %v178_v63  ;;  %v1665_v10 = vor.u32 %v2216_v0, %v1664_v53  ;;  %v2217_v13 = vld [vmem:[%s3329_s1 + $0x124] sm:$0xf] }
  0x2b   : > { %633 = vmatpush.bf16.msrb.mxu1 %v1689_v29  ;;  %405 = vmatpush.bf16.msra.mxu2 %v1503_v39  ;;  %v222_v9 = vunpack.c.h.b16 %v179_v2  ;;  %v221_v11 = vunpack.c.l.b16 %v179_v2  ;;  %v1674_v14 = vld [vmem:[%s3329_s1 + $0x128] sm:$0xf0]  ;;  %v1713_v15 = vor.u32 %v2228_v3, %v1712_v1  ;;  %v1733_v16 = vor.u32 %v2231_v4, %v1730_v5  ;;  %v2214_v17 = vld [vmem:[%s3329_s1 + $0x104] sm:$0xf0]  ;;  %v1704_v18 = vld [vmem:[%s3329_s1 + $0x160] sm:$0xf] }
  0x2c   : > { %649 = vmatpush.bf16.msrb.mxu3 %v1737_v33  ;;  %v2226_v19 = vld [vmem:[%s3329_s1 + $0x164] sm:$0xf0]  ;;  %v2229_v22 = vld [vmem:[%s3329_s1 + $0x184] sm:$0xf]  ;;  %v1722_v23 = vld [vmem:[%s3329_s1 + $0x188] sm:$0xf0]  ;;  %v1677_v25 = vor.u32 %v2217_v13, %v1674_v14  ;;  %v1657_v29 = vor.u32 %v2214_v17, %v1656_v12 }
  0x2d   : > { %v2664_v20 = vpack.c.b16 %v222_v9, %v220_v6  ;;  %v2666_v21 = vpack.c.b16 %v221_v11, %v219_v8  ;;  %v1838_v24 = vld [vmem:[%s3329_s1 + $0x230] sm:$0xf]  ;;  %v2252_v26 = vld [vmem:[%s3329_s1 + $0x234] sm:$0xf0]  ;;  %v2215_v30 = vld [vmem:[%s3329_s1 + $0x114] sm:$0xf]  ;;  %v1705_v33 = vor.u32 %v2226_v19, %v1704_v18  ;;  %v1725_v34 = vor.u32 %v2229_v22, %v1722_v23 }
  0x2e   : > { %660 = vmatpush.bf16.msrb.mxu0 %v1701_v40  ;;  %v1648_v27 = vld [vmem:[%s3329_s1 + $0xf0] sm:$0xf]  ;;  %v2212_v28 = vld [vmem:[%s3329_s1 + $0xf4] sm:$0xf0]  ;;  %v1666_v31 = vld [vmem:[%s3329_s1 + $0x118] sm:$0xf0]  ;;  %v1839_v38 = vor.u32 %v2252_v26, %v1838_v24 }
  0x2f   : > { %634 = vmatpush.bf16.msrb.mxu1 %v1681_v42  ;;  %676 = vmatpush.bf16.msrb.mxu2 %v1749_v43  ;;  %v176_v32 = vld [vmem:[%s2616_s27 + $0x20] sm:$0xf]  ;;  %v2227_v35 = vld [vmem:[%s3329_s1 + $0x174] sm:$0xf]  ;;  %v177_v36 = vld [vmem:[%s2616_s27 + $0x28] sm:$0xf]  ;;  %v1669_v43 = vor.u32 %v2215_v30, %v1666_v31  ;;  %v1649_v48 = vor.u32 %v2212_v28, %v1648_v27 }
  0x30   : > { %650 = vmatpush.bf16.msrb.mxu3 %v1729_v47  ;;  %v479_v37 = vshll.u32 %v2664_v20, 16  ;;  %406 = vmatmul.bf16.vlgmr.msra.gmra.mxu2 %v2666_v21  ;;  %v1714_v39 = vld [vmem:[%s3329_s1 + $0x178] sm:$0xf0]  ;;  %v1830_v40 = vld [vmem:[%s3329_s1 + $0x220] sm:$0xf]  ;;  %v180_v42 = vpack.c.bf16 %v177_v36, %v176_v32  ;;  %v468_v58 = vshll.u32 %v2666_v21, 16 }
  0x31   : > { %1609 = vmatmul.msk.bf16.vlgmr.msra.gmra.mxu3 %vm366_vm0, %v2664_v20  ;;  %1608 = vmatmul.msk.bf16.vlgmr.msra.gmra.mxu1 %vm366_vm0, %v2664_v20  ;;  %v2250_v41 = vld [vmem:[%s3329_s1 + $0x224] sm:$0xf0]  ;;  %v1640_v44 = vld [vmem:[%s3329_s1 + $0xe0] sm:$0xf]  ;;  %v2213_v46 = vld [vmem:[%s3329_s1 + $0x104] sm:$0xf]  ;;  %v1717_v54 = vor.u32 %v2227_v35, %v1714_v39 }
  0x32   : > { %661 = vmatpush.bf16.msrb.mxu0 %v1693_v52  ;;  %v2210_v45 = vld [vmem:[%s3329_s1 + $0xe4] sm:$0xf0]  ;;  %v1658_v47 = vld [vmem:[%s3329_s1 + $0x108] sm:$0xf0]  ;;  %v2225_v49 = vld [vmem:[%s3329_s1 + $0x164] sm:$0xf]  ;;  %v461_v52 = vunpack.c.h.b16 %v180_v42  ;;  %v460_v53 = vunpack.c.l.b16 %v180_v42  ;;  %v1831_v59 = vor.u32 %v2250_v41, %v1830_v40 }
  0x33   : > { %635 = vmatpush.bf16.msrb.mxu1 %v1673_v56  ;;  %677 = vmatpush.bf16.msrb.mxu2 %v1741_v57  ;;  %v1706_v50 = vld [vmem:[%s3329_s1 + $0x168] sm:$0xf0]  ;;  %v1886_v51 = vld [vmem:[%s3329_s1 + $0x290] sm:$0xf]  ;;  %v2264_v55 = vld [vmem:[%s3329_s1 + $0x294] sm:$0xf0]  ;;  %v1661_v63 = vor.u32 %v2213_v46, %v1658_v47  ;;  %v1641_v3 = vor.u32 %v2210_v45, %v1640_v44 }
  0x34   : > { %651 = vmatpush.bf16.msrb.mxu3 %v1721_v61  ;;  %378 = vmatmul.bf16.vlgmr.msra.gmra.mxu0 %v2666_v21  ;;  %v477_v56 = vshrl.u32 %v2664_v20, 16  ;;  %v481_v57 = vrot.slane %v479_v37, 1  ;;  %v1822_v60 = vld [vmem:[%s3329_s1 + $0x210] sm:$0xf]  ;;  %v2744_v61 = vpack.c.b16 %v461_v52, %v461_v52  ;;  %v2746_v62 = vpack.c.b16 %v460_v53, %v460_v53  ;;  %v2248_v0 = vld [vmem:[%s3329_s1 + $0x214] sm:$0xf0] }
  0x35   : > { %v2251_v1 = vld [vmem:[%s3329_s1 + $0x234] sm:$0xf]  ;;  %v1840_v2 = vld [vmem:[%s3329_s1 + $0x238] sm:$0xf0]  ;;  %v1709_v4 = vor.u32 %v2225_v49, %v1706_v50  ;;  %v1887_v5 = vor.u32 %v2264_v55, %v1886_v51  ;;  %v470_v11 = vrot.slane %v468_v58, 1  ;;  %v1823_v13 = vor.u32 %v2248_v0, %v1822_v60  ;;  %s2180_s27 = sshll.u32 %s3333_s13, 5 }
  0x36   : > { %662 = vmatpush.bf16.msrb.mxu0 %v1685_v7  ;;  %v484_v6 = vshll.u32 %v2744_v61, 16  ;;  %v2211_v7 = vld [vmem:[%s3329_s1 + $0xf4] sm:$0xf]  ;;  %v1650_v8 = vld [vmem:[%s3329_s1 + $0xf8] sm:$0xf0]  ;;  %v482_v9 = vor.u32 %v481_v57, %v477_v56  ;;  %v473_v12 = vshll.u32 %v2746_v62, 16  ;;  %v1843_v14 = vor.u32 %v2251_v1, %v1840_v2  ;;  %s3319_s7 = scalar_lea.vmem %s3331_s3, %s2180_s27 }
  0x37   : > { %636 = vmatpush.bf16.msrb.mxu1 %v1665_v10  ;;  %678 = vmatpush.bf16.msrb.mxu2 %v1733_v16  ;;  %v466_v10 = vshrl.u32 %v2666_v21, 16  ;;  %v1878_v16 = vld [vmem:[%s3329_s1 + $0x280] sm:$0xf]  ;;  %v2262_v17 = vld [vmem:[%s3329_s1 + $0x284] sm:$0xf0]  ;;  %v1653_v18 = vor.u32 %v2211_v7, %v1650_v8  ;;  %vm1213_vm4 = vcmask 1045504  }
  0x38   : > { %652 = vmatpush.bf16.msrb.mxu3 %v1713_v15  ;;  %v486_v15 = vrot.slane %v484_v6, 1  ;;  %v1814_v19 = vld [vmem:[%s3329_s1 + $0x200] sm:$0xf]  ;;  %v2246_v22 = vld [vmem:[%s3329_s1 + $0x204] sm:$0xf0]  ;;  %v1879_v28 = vor.u32 %v2262_v17, %v1878_v16  ;;  %v475_v30 = vrot.slane %v473_v12, 1 }
  0x39   : > { %v2249_v23 = vld [vmem:[%s3329_s1 + $0x224] sm:$0xf]  ;;  %v1832_v24 = vld [vmem:[%s3329_s1 + $0x228] sm:$0xf0]  ;;  %v2263_v31 = vld [vmem:[%s3329_s1 + $0x294] sm:$0xf] }
  0x3a   : > { %663 = vmatpush.bf16.msrb.mxu0 %v1677_v25  ;;  %v2209_v25 = vld [vmem:[%s3329_s1 + $0xe4] sm:$0xf]  ;;  %v1642_v26 = vld [vmem:[%s3329_s1 + $0xe8] sm:$0xf0]  ;;  %v487_v27 = vsel %vm464_vm1, %v482_v9, %v486_v15  ;;  %v1888_v32 = vld [vmem:[%s3329_s1 + $0x298] sm:$0xf0]  ;;  %v1835_v36 = vor.u32 %v2249_v23, %v1832_v24 }
  0x3b   : > { %637 = vmatpush.bf16.msrb.mxu1 %v1657_v29  ;;  %679 = vmatpush.bf16.msrb.mxu2 %v1725_v34  ;;  %v471_v29 = vor.u32 %v470_v11, %v466_v10  ;;  %v1870_v34 = vld [vmem:[%s3329_s1 + $0x270] sm:$0xf]  ;;  %v2260_v35 = vld [vmem:[%s3329_s1 + $0x274] sm:$0xf0]  ;;  %v2247_v41 = vld [vmem:[%s3329_s1 + $0x214] sm:$0xf] }
  0x3c   : > { %653 = vmatpush.bf16.msrb.mxu3 %v1705_v33  ;;  %v1815_v33 = vor.u32 %v2246_v22, %v1814_v19  ;;  %v1806_v39 = vld [vmem:[%s3329_s1 + $0x1f0] sm:$0xf]  ;;  %v2244_v40 = vld [vmem:[%s3329_s1 + $0x1f4] sm:$0xf0]  ;;  %v1824_v42 = vld [vmem:[%s3329_s1 + $0x218] sm:$0xf0]  ;;  %v1871_v45 = vor.u32 %v2260_v35, %v1870_v34 }
  0x3d   : > { %v476_v44 = vsel %vm464_vm1, %v471_v29, %v475_v30  ;;  %v2261_v46 = vld [vmem:[%s3329_s1 + $0x284] sm:$0xf]  ;;  %v1880_v47 = vld [vmem:[%s3329_s1 + $0x288] sm:$0xf0]  ;;  %v1862_v49 = vld [vmem:[%s3329_s1 + $0x260] sm:$0xf]  ;;  %v1827_v51 = vor.u32 %v2247_v41, %v1824_v42 }
  0x3e   : > { %664 = vmatpush.bf16.msrb.mxu0 %v1669_v43  ;;  %v1891_v43 = vor.u32 %v2263_v31, %v1888_v32  ;;  %v2258_v50 = vld [vmem:[%s3329_s1 + $0x264] sm:$0xf0]  ;;  %v1798_v52 = vld [vmem:[%s3329_s1 + $0x1e0] sm:$0xf]  ;;  %v1816_v55 = vld [vmem:[%s3329_s1 + $0x208] sm:$0xf0]  ;;  %v1883_v57 = vor.u32 %v2261_v46, %v1880_v47 }
  0x3f   : > { %638 = vmatpush.bf16.msrb.mxu1 %v1649_v48  ;;  %680 = vmatpush.bf16.msrb.mxu2 %v1717_v54  ;;  %v1807_v48 = vor.u32 %v2244_v40, %v1806_v39  ;;  %v2242_v53 = vld [vmem:[%s3329_s1 + $0x1e4] sm:$0xf0]  ;;  %v2245_v54 = vld [vmem:[%s3329_s1 + $0x204] sm:$0xf]  ;;  %v2259_v60 = vld [vmem:[%s3329_s1 + $0x274] sm:$0xf] }
  0x40   : > { %872 = vmatpush.bf16.msra.mxu3 %v1839_v38  ;;  %v1645_v38 = vor.u32 %v2209_v25, %v1642_v26  ;;  %v1799_v0 = vor.u32 %v2242_v53, %v1798_v52  ;;  %v1854_v1 = vld [vmem:[%s3329_s1 + $0x250] sm:$0xf]  ;;  %v2256_v2 = vld [vmem:[%s3329_s1 + $0x254] sm:$0xf0]  ;;  %v2243_v7 = vld [vmem:[%s3329_s1 + $0x1f4] sm:$0xf] }
  0x41   : > { %1750 = vmatmul.msk.bf16.vlgmr.msrb.gmra.mxu3 %vm366_vm0, %v487_v27  ;;  %v1808_v8 = vld [vmem:[%s3329_s1 + $0x1f8] sm:$0xf0]  ;;  %v1855_v11 = vor.u32 %v2256_v2, %v1854_v1  ;;  %v1864_v15 = vld [vmem:[%s3329_s1 + $0x268] sm:$0xf0]  ;;  %v2238_v17 = vld [vmem:[%s3329_s1 + $0x1c4] sm:$0xf0] }
  0x42   : > { %665 = vmatpush.bf16.msrb.mxu0 %v1661_v63  ;;  %v1872_v63 = vld [vmem:[%s3329_s1 + $0x278] sm:$0xf0]  ;;  %v2254_v19 = vld [vmem:[%s3329_s1 + $0x244] sm:$0xf0]  ;;  %v1811_v22 = vor.u32 %v2243_v7, %v1808_v8  ;;  %v2241_v23 = vld [vmem:[%s3329_s1 + $0x1e4] sm:$0xf] }
  0x43   : > { %639 = vmatpush.bf16.msrb.mxu1 %v1641_v3  ;;  %681 = vmatpush.bf16.msrb.mxu2 %v1709_v4  ;;  %v1819_v3 = vor.u32 %v2245_v54, %v1816_v55  ;;  %v1790_v4 = vld [vmem:[%s3329_s1 + $0x1d0] sm:$0xf]  ;;  %v1875_v9 = vor.u32 %v2259_v60, %v1872_v63  ;;  %v2280_v25 = vld [vmem:[%s3329_s1 + $0x314] sm:$0xf0]  ;;  %v1800_v26 = vld [vmem:[%s3329_s1 + $0x1e8] sm:$0xf0] }
  0x44   : > { %873 = vmatpush.bf16.msra.mxu3 %v1831_v59  ;;  %v1863_v59 = vor.u32 %v2258_v50, %v1862_v49  ;;  %v1980_v24 = vld [vmem:[%s3329_s1 + $0x310] sm:$0xf]  ;;  %v2292_v29 = vld [vmem:[%s3329_s1 + $0x374] sm:$0xf0]  ;;  %v2255_v31 = vld [vmem:[%s3329_s1 + $0x254] sm:$0xf]  ;;  %v1803_v40 = vor.u32 %v2241_v23, %v1800_v26 }
  0x45   : > { %v1856_v32 = vld [vmem:[%s3329_s1 + $0x258] sm:$0xf0]  ;;  %v726_v34 = vrot.slane %v2744_v61, 1  ;;  %v723_v39 = vrot.slane %v2746_v62, 1  ;;  %v2239_v42 = vld [vmem:[%s3329_s1 + $0x1d4] sm:$0xf] }
  0x46   : > { %666 = vmatpush.bf16.msrb.mxu0 %v1653_v18  ;;  %1751 = vmatmul.msk.bf16.vlgmr.msrb.gmra.mxu2 %vm366_vm0, %v487_v27  ;;  %v1846_v18 = vld [vmem:[%s3329_s1 + $0x240] sm:$0xf]  ;;  %v1859_v46 = vor.u32 %v2255_v31, %v1856_v32  ;;  %v2253_v49 = vld [vmem:[%s3329_s1 + $0x244] sm:$0xf]  ;;  %v1848_v50 = vld [vmem:[%s3329_s1 + $0x248] sm:$0xf0] }
  0x47   : > { %888 = vmatpush.bf16.msra.mxu1 %v1887_v5  ;;  %900 = vmatpush.bf16.msra.mxu2 %v1843_v14  ;;  %v2240_v5 = vld [vmem:[%s3329_s1 + $0x1d4] sm:$0xf0]  ;;  %v2257_v14 = vld [vmem:[%s3329_s1 + $0x264] sm:$0xf]  ;;  %v1847_v30 = vor.u32 %v2254_v19, %v1846_v18  ;;  %v2020_v47 = vld [vmem:[%s3329_s1 + $0x360] sm:$0xf]  ;;  %v1851_v2 = vor.u32 %v2253_v49, %v1848_v50 }
  0x48   : > { %874 = vmatpush.bf16.msra.mxu3 %v1823_v13  ;;  %640 = vmatmul.bf16.vlgmr.msrb.gmra.mxu1 %v476_v44  ;;  %v1782_v13 = vld [vmem:[%s3329_s1 + $0x1c0] sm:$0xf]  ;;  %v1791_v16 = vor.u32 %v2240_v5, %v1790_v4  ;;  %v1867_v27 = vor.u32 %v2257_v14, %v1864_v15  ;;  %v2279_v54 = vld [vmem:[%s3329_s1 + $0x314] sm:$0xf]  ;;  %v1982_v55 = vld [vmem:[%s3329_s1 + $0x318] sm:$0xf0] }
  0x49   : > { %v1783_v35 = vor.u32 %v2238_v17, %v1782_v13  ;;  %v2237_v60 = vld [vmem:[%s3329_s1 + $0x1c4] sm:$0xf]  ;;  %v1964_v63 = vld [vmem:[%s3329_s1 + $0x2f0] sm:$0xf]  ;;  %v1784_v1 = vld [vmem:[%s3329_s1 + $0x1c8] sm:$0xf0]  ;;  %v1985_v5 = vor.u32 %v2279_v54, %v1982_v55 }
  0x4a   : > { %667 = vmatpush.bf16.msrb.mxu0 %v1645_v38  ;;  %v722_v38 = vrot.slane %v2666_v21, 1  ;;  %v2288_v4 = vld [vmem:[%s3329_s1 + $0x354] sm:$0xf0]  ;;  %v2291_v7 = vld [vmem:[%s3329_s1 + $0x374] sm:$0xf]  ;;  %v1787_v14 = vor.u32 %v2237_v60, %v1784_v1  ;;  %v974_v32 = vshrl.u32 %v2744_v61, 16 }
  0x4b   : > { %889 = vmatpush.bf16.msra.mxu1 %v1879_v28  ;;  %901 = vmatpush.bf16.msra.mxu2 %v1835_v36  ;;  %v2028_v28 = vld [vmem:[%s3329_s1 + $0x370] sm:$0xf]  ;;  %v1981_v36 = vor.u32 %v2280_v25, %v1980_v24  ;;  %v2030_v8 = vld [vmem:[%s3329_s1 + $0x378] sm:$0xf0]  ;;  %v1974_v13 = vld [vmem:[%s3329_s1 + $0x308] sm:$0xf0] }
  0x4c   : > { %875 = vmatpush.bf16.msra.mxu3 %v1815_v33  ;;  %v725_v33 = vrot.slane %v2664_v20, 1  ;;  %v2029_v41 = vor.u32 %v2292_v29, %v2028_v28  ;;  %v724_v52 = vsel %vm721_vm2, %v722_v38, %v723_v39  ;;  %v2274_v17 = vld [vmem:[%s3329_s1 + $0x2e4] sm:$0xf0]  ;;  %v2033_v18 = vor.u32 %v2291_v7, %v2030_v8  ;;  %v2004_v19 = vld [vmem:[%s3329_s1 + $0x340] sm:$0xf] }
  0x4d   : > { %668 = vmatmul.bf16.vlgmr.msrb.gmra.mxu0 %v476_v44  ;;  %v2278_v44 = vld [vmem:[%s3329_s1 + $0x304] sm:$0xf0]  ;;  %v2289_v24 = vld [vmem:[%s3329_s1 + $0x364] sm:$0xf]  ;;  %v2022_v25 = vld [vmem:[%s3329_s1 + $0x368] sm:$0xf0] }
  0x4e   : > { %916 = vmatpush.bf16.msra.mxu0 %v1891_v43  ;;  %v1972_v43 = vld [vmem:[%s3329_s1 + $0x300] sm:$0xf]  ;;  %v1966_v28 = vld [vmem:[%s3329_s1 + $0x2f8] sm:$0xf0]  ;;  %v2272_v31 = vld [vmem:[%s3329_s1 + $0x2d4] sm:$0xf0] }
  0x4f   : > { %890 = vmatpush.bf16.msra.mxu1 %v1871_v45  ;;  %902 = vmatpush.bf16.msra.mxu2 %v1827_v51  ;;  %v1792_v45 = vld [vmem:[%s3329_s1 + $0x1d8] sm:$0xf0]  ;;  %v727_v51 = vsel %vm721_vm2, %v725_v33, %v726_v34  ;;  %v1973_v53 = vor.u32 %v2278_v44, %v1972_v43  ;;  %v3018_v33 = vrot.slane %v477_v56, 1  ;;  %v3022_v34 = vrot.slane %v484_v6, 2  ;;  %v2284_v38 = vld [vmem:[%s3329_s1 + $0x334] sm:$0xf0] }
  0x50   : > { %876 = vmatpush.bf16.msra.mxu3 %v1807_v48  ;;  %v2290_v48 = vld [vmem:[%s3329_s1 + $0x364] sm:$0xf0]  ;;  %v2287_v56 = vld [vmem:[%s3329_s1 + $0x354] sm:$0xf]  ;;  %v2014_v6 = vld [vmem:[%s3329_s1 + $0x358] sm:$0xf0] }
  0x51   : > { %v2273_v43 = vld [vmem:[%s3329_s1 + $0x2e4] sm:$0xf]  ;;  %v1958_v44 = vld [vmem:[%s3329_s1 + $0x2e8] sm:$0xf0]  ;;  %v976_v49 = vrot.slane %v974_v32, 1  ;;  %v2017_v50 = vor.u32 %v2287_v56, %v2014_v6  ;;  %v1214_v32 = vrot.slane %v2666_v21, 2 }
  0x52   : > { %917 = vmatpush.bf16.msra.mxu0 %v1883_v57  ;;  %v1795_v57 = vor.u32 %v2239_v42, %v1792_v45  ;;  %v2270_v42 = vld [vmem:[%s3329_s1 + $0x2c4] sm:$0xf0]  ;;  %v1961_v54 = vor.u32 %v2273_v43, %v1958_v44  ;;  %v1932_v55 = vld [vmem:[%s3329_s1 + $0x2b0] sm:$0xf]  ;;  %v2271_v60 = vld [vmem:[%s3329_s1 + $0x2d4] sm:$0xf] }
  0x53   : > { %891 = vmatpush.bf16.msra.mxu1 %v1863_v59  ;;  %903 = vmatpush.bf16.msra.mxu2 %v1819_v3  ;;  %v2021_v59 = vor.u32 %v2290_v48, %v2020_v47  ;;  %v2012_v3 = vld [vmem:[%s3329_s1 + $0x350] sm:$0xf]  ;;  %v2282_v47 = vld [vmem:[%s3329_s1 + $0x324] sm:$0xf0]  ;;  %v972_v48 = vrot.slane %v479_v37, 2  ;;  %vm1429_vm5 = vcmask 523264  }
  0x54   : > { %877 = vmatpush.bf16.msra.mxu3 %v1799_v0  ;;  %v2276_v0 = vld [vmem:[%s3329_s1 + $0x2f4] sm:$0xf0]  ;;  %v2013_v15 = vor.u32 %v2288_v4, %v2012_v3  ;;  %v978_v4 = vor.u32 %v3022_v34, %v976_v49  ;;  %v1998_v8 = vld [vmem:[%s3329_s1 + $0x338] sm:$0xf0]  ;;  %v2267_v21 = vld [vmem:[%s3329_s1 + $0x2b4] sm:$0xf] }
  0x55   : > { %v2308_v37 = vld [vmem:[%s3329_s1 + $0x3f4] sm:$0xf0]  ;;  %v973_v3 = vor.u32 %v972_v48, %v3018_v33  ;;  %v1215_v33 = vrot.slane %v2746_v62, 2  ;;  %v2318_v43 = vld [vmem:[%s3329_s1 + $0x444] sm:$0xf0]  ;;  %v1218_v48 = vrot.slane %v2744_v61, 2 }
  0x56   : > { %918 = vmatpush.bf16.msra.mxu0 %v1875_v9  ;;  %v1965_v9 = vor.u32 %v2276_v0, %v1964_v63  ;;  %v1950_v63 = vld [vmem:[%s3329_s1 + $0x2d8] sm:$0xf0]  ;;  %v965_v0 = vshrl.u32 %v2746_v62, 16  ;;  %v2319_v61 = vld [vmem:[%s3329_s1 + $0x454] sm:$0xf] }
  0x57   : > { %892 = vmatpush.bf16.msra.mxu1 %v1855_v11  ;;  %904 = vmatpush.bf16.msra.mxu2 %v1811_v22  ;;  %v2277_v11 = vld [vmem:[%s3329_s1 + $0x304] sm:$0xf]  ;;  %v2286_v22 = vld [vmem:[%s3329_s1 + $0x344] sm:$0xf0]  ;;  %v1934_v62 = vld [vmem:[%s3329_s1 + $0x2b8] sm:$0xf0]  ;;  %v3152_v6 = vsel %vm1213_vm4, %v1214_v32, %v1215_v33 }
  0x58   : > { %878 = vmatpush.bf16.msra.mxu3 %v1791_v16  ;;  %v1956_v16 = vld [vmem:[%s3329_s1 + $0x2e0] sm:$0xf]  ;;  %v1977_v23 = vor.u32 %v2277_v11, %v1974_v13  ;;  %v2005_v29 = vor.u32 %v2286_v22, %v2004_v19  ;;  %v1953_v13 = vor.u32 %v2271_v60, %v1950_v63  ;;  %v963_v19 = vrot.slane %v468_v58, 2  ;;  %v1990_v58 = vld [vmem:[%s3329_s1 + $0x328] sm:$0xf0] }
  0x59   : > { %v1957_v26 = vor.u32 %v2274_v17, %v1956_v16  ;;  %v2269_v16 = vld [vmem:[%s3329_s1 + $0x2c4] sm:$0xf]  ;;  %v1942_v17 = vld [vmem:[%s3329_s1 + $0x2c8] sm:$0xf0]  ;;  %v967_v22 = vrot.slane %v965_v0, 1 }
  0x5a   : > { %919 = vmatpush.bf16.msra.mxu0 %v1867_v27  ;;  %v2275_v27 = vld [vmem:[%s3329_s1 + $0x2f4] sm:$0xf]  ;;  %v2316_v60 = vld [vmem:[%s3329_s1 + $0x434] sm:$0xf0]  ;;  %v2090_v0 = vld [vmem:[%s3329_s1 + $0x3b0] sm:$0xf] }
  0x5b   : > { %893 = vmatpush.bf16.msra.mxu1 %v1847_v30  ;;  %905 = vmatpush.bf16.msra.mxu2 %v1803_v40  ;;  %v1948_v30 = vld [vmem:[%s3329_s1 + $0x2d0] sm:$0xf]  ;;  %v1969_v39 = vor.u32 %v2275_v27, %v1966_v28  ;;  %v1940_v40 = vld [vmem:[%s3329_s1 + $0x2c0] sm:$0xf]  ;;  %v2313_v32 = vld [vmem:[%s3329_s1 + $0x424] sm:$0xf] }
  0x5c   : > { %879 = vmatpush.bf16.msra.mxu3 %v1783_v35  ;;  %v2025_v35 = vor.u32 %v2289_v24, %v2022_v25  ;;  %v3112_v24 = vsel %vm961_vm3, %v973_v3, %v978_v4  ;;  %v2266_v25 = vld [vmem:[%s3329_s1 + $0x2a4] sm:$0xf0]  ;;  %v2106_v27 = vld [vmem:[%s3329_s1 + $0x3d0] sm:$0xf]  ;;  %v2303_v3 = vld [vmem:[%s3329_s1 + $0x3d4] sm:$0xf] }
  0x5d   : > { %v2170_v28 = vld [vmem:[%s3329_s1 + $0x450] sm:$0xf]  ;;  %v2108_v4 = vld [vmem:[%s3329_s1 + $0x3d8] sm:$0xf0] }
  0x5e   : > { %920 = vmatpush.bf16.msra.mxu0 %v1859_v46  ;;  %1892 = vmatmul.msk.bf16.vlgmr.msra.gmra.mxu1 %vm366_vm0, %v727_v51  ;;  %v1988_v46 = vld [vmem:[%s3329_s1 + $0x320] sm:$0xf] }
  0x5f   : > { %1124 = vmatpush.bf16.msrb.mxu1 %v1981_v36  ;;  %880 = vmatmul.bf16.vlgmr.msra.gmra.mxu3 %v724_v52  ;;  %v1996_v36 = vld [vmem:[%s3329_s1 + $0x330] sm:$0xf]  ;;  %v1989_v1 = vor.u32 %v2282_v47, %v1988_v46  ;;  %v2302_v46 = vld [vmem:[%s3329_s1 + $0x3c4] sm:$0xf0]  ;;  %v1217_v47 = vrot.slane %v2664_v20, 2 }
  0x60   : > { %1140 = vmatpush.bf16.msrb.mxu3 %v2029_v41  ;;  %906 = vmatpush.bf16.msra.mxu2 %v1795_v57  ;;  %v1949_v41 = vor.u32 %v2272_v31, %v1948_v30  ;;  %v1997_v45 = vor.u32 %v2284_v38, %v1996_v36  ;;  %v2268_v57 = vld [vmem:[%s3329_s1 + $0x2b4] sm:$0xf0]  ;;  %v1945_v30 = vor.u32 %v2269_v16, %v1942_v17  ;;  %v2124_v36 = vld [vmem:[%s3329_s1 + $0x3f8] sm:$0xf0]  ;;  %v1926_v20 = vld [vmem:[%s3329_s1 + $0x2a8] sm:$0xf0] }
  0x61   : > { %v1933_v11 = vor.u32 %v2268_v57, %v1932_v55  ;;  %v2304_v31 = vld [vmem:[%s3329_s1 + $0x3d4] sm:$0xf0]  ;;  %v2172_v57 = vld [vmem:[%s3329_s1 + $0x458] sm:$0xf0]  ;;  %v2082_v16 = vld [vmem:[%s3329_s1 + $0x3a0] sm:$0xf] }
  0x62   : > { %921 = vmatpush.bf16.msra.mxu0 %v1851_v2  ;;  %v2283_v2 = vld [vmem:[%s3329_s1 + $0x334] sm:$0xf]  ;;  %v2298_v17 = vld [vmem:[%s3329_s1 + $0x3a4] sm:$0xf0] }
  0x63   : > { %1125 = vmatpush.bf16.msrb.mxu1 %v1973_v53  ;;  %v2122_v53 = vld [vmem:[%s3329_s1 + $0x3f0] sm:$0xf] }
  0x64   : > { %1141 = vmatpush.bf16.msrb.mxu3 %v2021_v59  ;;  %907 = vmatpush.bf16.msra.mxu2 %v1787_v14  ;;  %v1941_v59 = vor.u32 %v2270_v42, %v1940_v40  ;;  %v2123_v7 = vor.u32 %v2308_v37, %v2122_v53  ;;  %v2306_v14 = vld [vmem:[%s3329_s1 + $0x3e4] sm:$0xf0]  ;;  %v2162_v42 = vld [vmem:[%s3329_s1 + $0x440] sm:$0xf]  ;;  %v2265_v53 = vld [vmem:[%s3329_s1 + $0x2a4] sm:$0xf]  ;;  %v3185_v37 = vsel %vm1213_vm4, %v1217_v47, %v1218_v48 }
  0x65   : > { %1893 = vmatmul.msk.bf16.vlgmr.msra.gmra.mxu0 %vm366_vm0, %v727_v51  ;;  %v2285_v51 = vld [vmem:[%s3329_s1 + $0x344] sm:$0xf]  ;;  %v2295_v47 = vld [vmem:[%s3329_s1 + $0x394] sm:$0xf]  ;;  %v2076_v48 = vld [vmem:[%s3329_s1 + $0x398] sm:$0xf0] }
  0x66   : > { %1152 = vmatpush.bf16.msrb.mxu0 %v1985_v5 }
  0x67   : > { %1126 = vmatpush.bf16.msrb.mxu1 %v1965_v9  ;;  %908 = vmatmul.bf16.vlgmr.msra.gmra.mxu2 %v724_v52  ;;  %v2006_v52 = vld [vmem:[%s3329_s1 + $0x348] sm:$0xf0]  ;;  %v2114_v9 = vld [vmem:[%s3329_s1 + $0x3e0] sm:$0xf] }
  0x68   : > { %1142 = vmatpush.bf16.msrb.mxu3 %v2013_v15  ;;  %1168 = vmatpush.bf16.msrb.mxu2 %v2033_v18  ;;  %v2009_v5 = vor.u32 %v2285_v51, %v2006_v52  ;;  %v1924_v15 = vld [vmem:[%s3329_s1 + $0x2a0] sm:$0xf]  ;;  %v962_v18 = vrot.slane %v466_v10, 1  ;;  %v2001_v10 = vor.u32 %v2283_v2, %v1998_v8  ;;  %v2305_v51 = vld [vmem:[%s3329_s1 + $0x3e4] sm:$0xf]  ;;  %v1929_v2 = vor.u32 %v2265_v53, %v1926_v20 }
  0x69   : > { %v1925_v34 = vor.u32 %v2266_v25, %v1924_v15  ;;  %v2116_v52 = vld [vmem:[%s3329_s1 + $0x3e8] sm:$0xf0]  ;;  %v2111_v15 = vor.u32 %v2303_v3, %v2108_v4  ;;  %v2083_v25 = vor.u32 %v2298_v17, %v2082_v16  ;;  %v2293_v53 = vld [vmem:[%s3329_s1 + $0x384] sm:$0xf] }
  0x6a   : > { %1153 = vmatpush.bf16.msrb.mxu0 %v1977_v23  ;;  %v968_v23 = vrot.slane %v473_v12, 2  ;;  %v2115_v12 = vor.u32 %v2306_v14, %v2114_v9  ;;  %v964_v38 = vor.u32 %v963_v19, %v962_v18  ;;  %v2119_v63 = vor.u32 %v2305_v51, %v2116_v52  ;;  %v2314_v14 = vld [vmem:[%s3329_s1 + $0x424] sm:$0xf0]  ;;  %v2301_v18 = vld [vmem:[%s3329_s1 + $0x3c4] sm:$0xf] }
  0x6b   : > { %1127 = vmatpush.bf16.msrb.mxu1 %v1957_v26  ;;  %v2281_v26 = vld [vmem:[%s3329_s1 + $0x324] sm:$0xf]  ;;  %v2100_v19 = vld [vmem:[%s3329_s1 + $0x3c8] sm:$0xf0]  ;;  %v2079_v52 = vor.u32 %v2295_v47, %v2076_v48 }
  0x6c   : > { %1143 = vmatpush.bf16.msrb.mxu3 %v2005_v29  ;;  %1169 = vmatpush.bf16.msrb.mxu2 %v2025_v35  ;;  %v2320_v29 = vld [vmem:[%s3329_s1 + $0x454] sm:$0xf0]  ;;  %v2307_v35 = vld [vmem:[%s3329_s1 + $0x3f4] sm:$0xf]  ;;  %v1993_v40 = vor.u32 %v2281_v26, %v1990_v58  ;;  %v2156_v26 = vld [vmem:[%s3329_s1 + $0x438] sm:$0xf0] }
  0x6d   : > { %v2171_v56 = vor.u32 %v2320_v29, %v2170_v28  ;;  %v2127_v44 = vor.u32 %v2307_v35, %v2124_v36  ;;  %v2138_v58 = vld [vmem:[%s3329_s1 + $0x410] sm:$0xf]  ;;  %v2296_v28 = vld [vmem:[%s3329_s1 + $0x394] sm:$0xf0]  ;;  %v2299_v29 = vld [vmem:[%s3329_s1 + $0x3b4] sm:$0xf] }
  0x6e   : > { %1154 = vmatpush.bf16.msrb.mxu0 %v1969_v39  ;;  %v969_v39 = vor.u32 %v968_v23, %v967_v22  ;;  %v2315_v23 = vld [vmem:[%s3329_s1 + $0x434] sm:$0xf]  ;;  %v2148_v35 = vld [vmem:[%s3329_s1 + $0x428] sm:$0xf0]  ;;  %v2130_v36 = vld [vmem:[%s3329_s1 + $0x400] sm:$0xf] }
  0x6f   : > { %1128 = vmatpush.bf16.msrb.mxu1 %v1949_v41  ;;  %v2107_v41 = vor.u32 %v2304_v31, %v2106_v27  ;;  %v2074_v27 = vld [vmem:[%s3329_s1 + $0x390] sm:$0xf]  ;;  %v2159_v31 = vor.u32 %v2315_v23, %v2156_v26  ;;  %v2132_v51 = vld [vmem:[%s3329_s1 + $0x408] sm:$0xf0] }
  0x70   : > { %1144 = vmatpush.bf16.msrb.mxu3 %v1997_v45  ;;  %1170 = vmatpush.bf16.msrb.mxu2 %v2017_v50  ;;  %v2098_v45 = vld [vmem:[%s3329_s1 + $0x3c0] sm:$0xf]  ;;  %v970_v49 = vsel %vm961_vm3, %v964_v38, %v969_v39  ;;  %v1937_v50 = vor.u32 %v2267_v21, %v1934_v62  ;;  %v2310_v38 = vld [vmem:[%s3329_s1 + $0x404] sm:$0xf0]  ;;  %v2068_v20 = vld [vmem:[%s3329_s1 + $0x388] sm:$0xf0] }
  0x71   : > { %v2099_v55 = vor.u32 %v2302_v46, %v2098_v45  ;;  %v2066_v21 = vld [vmem:[%s3329_s1 + $0x380] sm:$0xf]  ;;  %v2294_v62 = vld [vmem:[%s3329_s1 + $0x384] sm:$0xf0]  ;;  %v2140_v45 = vld [vmem:[%s3329_s1 + $0x418] sm:$0xf0] }
  0x72   : > { %1155 = vmatpush.bf16.msrb.mxu0 %v1961_v54  ;;  %v2163_v54 = vor.u32 %v2318_v43, %v2162_v42  ;;  %v2131_v42 = vor.u32 %v2310_v38, %v2130_v36  ;;  %v2067_v43 = vor.u32 %v2294_v62, %v2066_v21 }
  0x73   : > { %1129 = vmatpush.bf16.msrb.mxu1 %v1941_v59  ;;  %v2154_v59 = vld [vmem:[%s3329_s1 + $0x430] sm:$0xf] }
  0x74   : > { %1145 = vmatpush.bf16.msrb.mxu3 %v1989_v1  ;;  %1171 = vmatpush.bf16.msrb.mxu2 %v2009_v5  ;;  %v2300_v1 = vld [vmem:[%s3329_s1 + $0x3b4] sm:$0xf0]  ;;  %v2175_v5 = vor.u32 %v2319_v61, %v2172_v57  ;;  %v2155_v8 = vor.u32 %v2316_v60, %v2154_v59 }
  0x75   : > { %v2091_v9 = vor.u32 %v2300_v1, %v2090_v0 }
  0x76   : > { %1156 = vmatpush.bf16.msrb.mxu0 %v1953_v13  ;;  %v2146_v13 = vld [vmem:[%s3329_s1 + $0x420] sm:$0xf] }
  0x77   : > { %1130 = vmatpush.bf16.msrb.mxu1 %v1933_v11  ;;  %2034 = vmatmul.msk.bf16.vlgmr.msrb.gmra.mxu3 %vm366_vm0, %v3112_v24  ;;  %v2164_v11 = vld [vmem:[%s3329_s1 + $0x448] sm:$0xf0] }
  0x78   : > { %1364 = vmatpush.bf16.msra.mxu3 %v2123_v7  ;;  %1172 = vmatpush.bf16.msrb.mxu2 %v2001_v10  ;;  %v2317_v7 = vld [vmem:[%s3329_s1 + $0x444] sm:$0xf]  ;;  %v2312_v10 = vld [vmem:[%s3329_s1 + $0x414] sm:$0xf0] }
  0x79   : > { %v2167_v22 = vor.u32 %v2317_v7, %v2164_v11  ;;  %v2139_v33 = vor.u32 %v2312_v10, %v2138_v58 }
  0x7a   : > { %1157 = vmatpush.bf16.msrb.mxu0 %v1945_v30  ;;  %v2092_v30 = vld [vmem:[%s3329_s1 + $0x3b8] sm:$0xf0] }
  0x7b   : > { %1131 = vmatpush.bf16.msrb.mxu1 %v1925_v34  ;;  %v2075_v34 = vor.u32 %v2296_v28, %v2074_v27  ;;  %v2095_v39 = vor.u32 %v2299_v29, %v2092_v30 }
  0x7c   : > { %1365 = vmatpush.bf16.msra.mxu3 %v2115_v12  ;;  %1173 = vmatpush.bf16.msrb.mxu2 %v1993_v40  ;;  %v2103_v12 = vor.u32 %v2301_v18, %v2100_v19  ;;  %v2084_v40 = vld [vmem:[%s3329_s1 + $0x3a8] sm:$0xf0] }
  0x7e   : > { %1132 = vmatmul.bf16.vlgmr.msrb.gmra.mxu1 %v970_v49  ;;  %1158 = vmatpush.bf16.msrb.mxu0 %v1937_v50  ;;  %v2309_v50 = vld [vmem:[%s3329_s1 + $0x404] sm:$0xf] }
  0x7f   : > { %1380 = vmatpush.bf16.msra.mxu1 %v2171_v56  ;;  %2035 = vmatmul.msk.bf16.vlgmr.msrb.gmra.mxu2 %vm366_vm0, %v3112_v24  ;;  %v2147_v24 = vor.u32 %v2314_v14, %v2146_v13  ;;  %v2297_v56 = vld [vmem:[%s3329_s1 + $0x3a4] sm:$0xf]  ;;  %v2135_v61 = vor.u32 %v2309_v50, %v2132_v51 }
  0x80   : > { %1366 = vmatpush.bf16.msra.mxu3 %v2107_v41  ;;  %1392 = vmatpush.bf16.msra.mxu2 %v2127_v44  ;;  %v2151_v41 = vor.u32 %v2313_v32, %v2148_v35  ;;  %v2311_v44 = vld [vmem:[%s3329_s1 + $0x414] sm:$0xf]  ;;  %v2087_v46 = vor.u32 %v2297_v56, %v2084_v40 }
  0x82   : > { %1159 = vmatpush.bf16.msrb.mxu0 %v1929_v2 }
  0x83   : > { %1381 = vmatpush.bf16.msra.mxu1 %v2163_v54  ;;  %v2071_v54 = vor.u32 %v2293_v53, %v2068_v20 }
  0x84   : > { %1367 = vmatpush.bf16.msra.mxu3 %v2099_v55  ;;  %1393 = vmatpush.bf16.msra.mxu2 %v2119_v63 }
  0x85   : > { %1160 = vmatmul.bf16.vlgmr.msrb.gmra.mxu0 %v970_v49  ;;  %v2143_v49 = vor.u32 %v2311_v44, %v2140_v45 }
  0x86   : > { %1408 = vmatpush.bf16.msra.mxu0 %v2175_v5 }
  0x87   : > { %1382 = vmatpush.bf16.msra.mxu1 %v2155_v8 }
  0x88   : > { %1368 = vmatpush.bf16.msra.mxu3 %v2091_v9  ;;  %1394 = vmatpush.bf16.msra.mxu2 %v2111_v15 }
  0x8a   : > { %1409 = vmatpush.bf16.msra.mxu0 %v2167_v22 }
  0x8b   : > { %1383 = vmatpush.bf16.msra.mxu1 %v2147_v24  ;;  %v181_v24 = vld [vmem:[%s3330_s2] sm:$0x3] }
  0x8c   : > { %1369 = vmatpush.bf16.msra.mxu3 %v2083_v25  ;;  %1395 = vmatpush.bf16.msra.mxu2 %v2103_v12  ;;  %v183_v26 = vperm.slane %v181_v24, 0  ;;  %v184_v38 = vperm.slane %v181_v24, 1 }
  0x8e   : > { %1410 = vmatpush.bf16.msra.mxu0 %v2159_v31 }
  0x8f   : > { %1384 = vmatpush.bf16.msra.mxu1 %v2139_v33 }
  0x90   : > { %1370 = vmatpush.bf16.msra.mxu3 %v2075_v34  ;;  %1396 = vmatpush.bf16.msra.mxu2 %v2095_v39 }
  0x92   : > { %1411 = vmatpush.bf16.msra.mxu0 %v2151_v41 }
  0x93   : > { %1385 = vmatpush.bf16.msra.mxu1 %v2131_v42 }
  0x94   : > { %1371 = vmatpush.bf16.msra.mxu3 %v2067_v43  ;;  %1397 = vmatpush.bf16.msra.mxu2 %v2087_v46 }
  0x96   : > { %2176 = vmatmul.msk.bf16.vlgmr.msra.gmra.mxu1 %vm366_vm0, %v3185_v37  ;;  %1412 = vmatpush.bf16.msra.mxu0 %v2143_v49 }
  0x97   : > { %1372 = vmatmul.bf16.vlgmr.msra.gmra.mxu3 %v3152_v6 }
  0x98   : > { %1398 = vmatpush.bf16.msra.mxu2 %v2079_v52 }
  0x9a   : > { %1413 = vmatpush.bf16.msra.mxu0 %v2135_v61 }
  0x9c   : > { %1399 = vmatpush.bf16.msra.mxu2 %v2071_v54 }
  0x9d   : > { %2177 = vmatmul.msk.bf16.vlgmr.msra.gmra.mxu0 %vm366_vm0, %v3185_v37 }
  0x9f   : > { %1400 = vmatmul.bf16.vlgmr.msra.gmra.mxu2 %v3152_v6 }
  0xae   : > { %v393_v55 = vpop.f32.mrf.mxu1 }
  0xb1   : > { %v379_v60 = vpop.f32.mrf.mxu0 }
  0xb2   : > { %v394_v58 = vadd.f32 %v393_v55, %v379_v60 }
  0xb3   : > { %v407_v63 = vpop.f32.mrf.mxu2 }
  0xb4   : > { %v421_v57 = vpop.f32.mrf.mxu3  ;;  %v426_v28 = vadd.f32 %v394_v58, %v183_v26 }
  0xb5   : > { %v422_v39 = vadd.f32 %v421_v57, %v407_v63 }
  0xb6   : > { %v395_v59 = vpop.f32.mrf.mxu1 }
  0xb7   : > { %v427_v46 = vadd.f32 %v422_v39, %v184_v38 }
  0xb9   : > { %v381_v2 = vpop.f32.mrf.mxu0 }
  0xba   : > { %v396_v32 = vadd.f32 %v395_v59, %v381_v2 }
  0xbb   : > { %v409_v3 = vpop.f32.mrf.mxu2 }
  0xbc   : > { %v423_v0 = vpop.f32.mrf.mxu3  ;;  %v428_v62 = vadd.f32 %v396_v32, %v183_v26 }
  0xbd   : > { %v424_v54 = vadd.f32 %v423_v0, %v409_v3 }
  0xc4   : > { %v655_v4 = vpop.f32.mrf.mxu3 }
  0xc5   : > { %v641_v1 = vpop.f32.mrf.mxu1 }
  0xc6   : > { %v656_v29 = vadd.f32 %v655_v4, %v641_v1 }
  0xc8   : > { %v688_v33 = vadd.f32 %v656_v29, %v426_v28 }
  0xc9   : > { %v683_v8 = vpop.f32.mrf.mxu2 }
  0xca   : > { %v669_v7 = vpop.f32.mrf.mxu0 }
  0xcb   : > { %v684_v43 = vadd.f32 %v683_v8, %v669_v7  ;;  %v429_v7 = vadd.f32 %v424_v54, %v184_v38 }
  0xcc   : > { %v657_v9 = vpop.f32.mrf.mxu3 }
  0xcd   : > { %v643_v5 = vpop.f32.mrf.mxu1  ;;  %v689_v51 = vadd.f32 %v684_v43, %v427_v46 }
  0xce   : > { %v658_v56 = vadd.f32 %v657_v9, %v643_v5 }
  0xd0   : > { %v690_v48 = vadd.f32 %v658_v56, %v428_v62 }
  0xd1   : > { %v685_v37 = vpop.f32.mrf.mxu2 }
  0xd2   : > { %v671_v13 = vpop.f32.mrf.mxu0 }
  0xd3   : > { %v686_v1 = vadd.f32 %v685_v37, %v671_v13 }
  0xdb   : > { %v895_v11 = vpop.f32.mrf.mxu1 }
  0xe2   : > { %v881_v14 = vpop.f32.mrf.mxu3  ;;  %v923_v6 = vpop.f32.mrf.mxu0 }
  0xe3   : > { %v897_v15 = vpop.f32.mrf.mxu1  ;;  %v896_v30 = vadd.f32 %v895_v11, %v881_v14  ;;  %v691_v14 = vadd.f32 %v686_v1, %v429_v7 }
  0xe5   : > { %v928_v35 = vadd.f32 %v896_v30, %v688_v33 }
  0xea   : > { %v909_v16 = vpop.f32.mrf.mxu2  ;;  %v883_v17 = vpop.f32.mrf.mxu3 }
  0xeb   : > { %v925_v19 = vpop.f32.mrf.mxu0  ;;  %v898_v44 = vadd.f32 %v897_v15, %v883_v17  ;;  %v924_v47 = vadd.f32 %v923_v6, %v909_v16 }
  0xed   : > { %v930_v20 = vadd.f32 %v898_v44, %v690_v48  ;;  %v929_v55 = vadd.f32 %v924_v47, %v689_v51 }
  0xf2   : > { %v911_v23 = vpop.f32.mrf.mxu2 }
  0xf3   : > { %v926_v8 = vadd.f32 %v925_v19, %v911_v23 }
  0xf5   : > { %v931_v3 = vadd.f32 %v926_v8, %v691_v14 }
  0xfa   : > { %v1147_v22 = vpop.f32.mrf.mxu3 }
  0xfb   : > { %v1133_v18 = vpop.f32.mrf.mxu1 }
  0xfc   : > { %v1148_v34 = vadd.f32 %v1147_v22, %v1133_v18 }
  0xfe   : > { %v1180_v40 = vadd.f32 %v1148_v34, %v928_v35 }
 0x102   : > { %v1161_v10 = vpop.f32.mrf.mxu0  ;;  %v1175_v12 = vpop.f32.mrf.mxu2 }
 0x103   : > { %v1135_v25 = vpop.f32.mrf.mxu1  ;;  %v1149_v27 = vpop.f32.mrf.mxu3  ;;  %v1176_v52 = vadd.f32 %v1175_v12, %v1161_v10 }
 0x104   : > { %v1150_v49 = vadd.f32 %v1149_v27, %v1135_v25 }
 0x105   : > { %v1181_v2 = vadd.f32 %v1176_v52, %v929_v55 }
 0x106   : > { %v1182_v59 = vadd.f32 %v1150_v49, %v930_v20 }
 0x10a   : > { %v1163_v36 = vpop.f32.mrf.mxu0  ;;  %v1177_v41 = vpop.f32.mrf.mxu2 }
 0x10b   : > { %v1178_v15 = vadd.f32 %v1177_v41, %v1163_v36 }
 0x10d   : > { %v1183_v17 = vadd.f32 %v1178_v15, %v931_v3 }
 0x113   : > { %v1387_v31 = vpop.f32.mrf.mxu1 }
 0x11a   : > { %v1373_v21 = vpop.f32.mrf.mxu3  ;;  %v1415_v61 = vpop.f32.mrf.mxu0 }
 0x11b   : > { %v1388_v42 = vadd.f32 %v1387_v31, %v1373_v21  ;;  %v1389_v53 = vpop.f32.mrf.mxu1 }
 0x11d   : > { %v1420_v45 = vadd.f32 %v1388_v42, %v1180_v40 }
 0x11f   : > { %v1424_v50 = vmax.f32 %v1420_v45, 0.0 }
 0x121   : > { %1428 = vst [vmem:[%s3319_s7] sm:$0xff] %v1424_v50 }
 0x122   : > { %v1375_v57 = vpop.f32.mrf.mxu3  ;;  %v1401_v63 = vpop.f32.mrf.mxu2 }
 0x123   : > { %v1390_v60 = vadd.f32 %v1389_v53, %v1375_v57  ;;  %v1416_v4 = vadd.f32 %v1415_v61, %v1401_v63  ;;  %v1417_v6 = vpop.f32.mrf.mxu0 }
 0x125   : > { %v1422_v5 = vadd.f32 %v1390_v60, %v1182_v59  ;;  %v1421_v9 = vadd.f32 %v1416_v4, %v1181_v2 }
 0x127   : > { %v1426_v11 = vmax.f32 %v1422_v5, 0.0  ;;  %v1425_v0 = vmax.f32 %v1421_v9, 0.0 }
 0x129   : > { %1431 = vst [vmem:[%s3319_s7 + $0x10] sm:$0xff] %v1426_v11 }
 0x12a   : > { %1430 = vst.msk [vmem:[%s3319_s7 + $0x8] sm:$0xff] %vm1429_vm5, %v1425_v0  ;;  %v1403_v16 = vpop.f32.mrf.mxu2 }
 0x12b   : > { %v1418_v18 = vadd.f32 %v1417_v6, %v1403_v16 }
 0x12d   : > { %v1423_v13 = vadd.f32 %v1418_v18, %v1183_v17 }
 0x12f   : > { %v1427_v37 = vmax.f32 %v1423_v13, 0.0 }
 0x131   : > { %1432 = vst.msk [vmem:[%s3319_s7 + $0x18] sm:$0xff] %vm1429_vm5, %v1427_v37 }
 0x132 PF: > { %s13_s12 = sadd.s32 1, %s2336_s12  }
 0x133   : > { %p10_p4 = scmp.ge.s32.totalorder %s13_s12, 4  }
 0x135   :  { %12 = sbr.rel (!%p10_p4) target bundleno = 1 (0x1), region = 66 }

// kernel: forward.18
= control target key start
LH: loop header
LB: loop body
LE: loop exit
PB: predicated region body
PF: predicated region fallthrough
CT: control target
= control target key end

     0   :  { %s571_s12 = smov 0   ;;  %s573_s13 = smov 0   ;;  %s641_s0 = inlined_call_operand.vmem [shape: f32[2,16], index: 0, kind: input, shape index: {}]   ;;  %s642_s1 = inlined_call_operand.vmem [shape: bf16[16,1536], index: 1, kind: input, shape index: {}]   ;;  %s643_s2 = inlined_call_operand.vmem [shape: f32[1,1536], index: 2, kind: input, shape index: {}]   ;;  %s644_s3 = inlined_call_operand.vmem [shape: f32[2,1536], index: 3, kind: output, shape index: {}]  }
   0x1   :  { %s575_s14 = smov 0  }
   0x2 LB: > { %s455_s15 = sadd.s32 4294967295, %s549_s14   ;;  %s588_s16 = sadd.s32 1, %s549_s14   ;;  %s549_s14 = sphi %s575_s14, %s647_s14   ;;  %s545_s13 = sphi %s573_s13, %s646_s13   ;;  %s541_s12 = sphi %s571_s12, %s645_s12  }
   0x3   : > { %s38_s17 = ssub.s32 %s549_s14, %s588_s16  ;;  %s41_s18 = sadd.s32 1, %s545_s13 }
   0x4   : > { %p39_p0 = scmp.eq.s32.totalorder %s38_s17, 0  ;;  %p48_p1 = scmp.ne.s32.totalorder %s545_s13, %s541_s12 }
   0x5   : > { %p49_p2 = scmp.eq.s32.totalorder %s549_s14, 0  ;;  %p458_p4 = scmp.ge.s32.totalorder %s549_s14, 2 }
   0x6   : > { %s597_s19 = scalar_select %p39_p0, %s545_s13, %s41_s18  }
   0x7   : > { %p50_p3 = por %p49_p2, %p48_p1  ;;  %129 = sbr.rel (%p458_p4) target bundleno = 23 (0x17), region = 20 }
   0xc   : > { %132 = sbr.rel (!%p50_p3) target bundleno = 23 (0x17), region = 24  ;;  %s134_s20 = sand.u32 (%p50_p3), 1, %s545_s13  }
   0xd   : > { %s494_s21 = smul.u32 (%p50_p3), 24, %s549_s14 }
   0xe   : > { %s501_s22 = smul.u32 (%p50_p3), 48, %s134_s20 }
   0xf   : > { %s139_s25 = scalar_lea.vmem (%p50_p3), %s642_s1, %s494_s21 }
  0x10   : > { %v152_v0 = vld [vmem:[%s139_s25] sm:$0xff] (%p50_p3)  ;;  %v154_v1 = vld [vmem:[%s139_s25 + $0x8] sm:$0xff] (%p50_p3)  ;;  %v156_v2 = vld [vmem:[%s139_s25 + $0x10] sm:$0xff] (%p50_p3)  ;;  %s136_s26 = scalar_lea.vmem (%p50_p3), [#allocation2], %s501_s22 }
  0x11   : > { %153 = vst [vmem:[%s136_s26] sm:$0xff] %v152_v0  ;;  %v158_v3 = vld [vmem:[%s139_s25 + $0x30] sm:$0xff]  ;;  %v160_v4 = vld [vmem:[%s139_s25 + $0x38] sm:$0xff]  ;;  %v162_v5 = vld [vmem:[%s139_s25 + $0x40] sm:$0xff] }
  0x12   : > { %155 = vst [vmem:[%s136_s26 + $0x8] sm:$0xff] %v154_v1 }
  0x13   : > { %157 = vst [vmem:[%s136_s26 + $0x10] sm:$0xff] %v156_v2 }
  0x14   : > { %159 = vst [vmem:[%s136_s26 + $0x18] sm:$0xff] %v158_v3 }
  0x15   : > { %161 = vst [vmem:[%s136_s26 + $0x20] sm:$0xff] %v160_v4 }
  0x16   : > { %163 = vst [vmem:[%s136_s26 + $0x28] sm:$0xff] %v162_v5 }
  0x17 PF: > { %p460_p5 = scmp.ge.s32.totalorder %s549_s14, 1  ;;  %p176_p6 = scmp.lt.s32.totalorder %s549_s14, 3 }
  0x19   : > { %p177_p7 = pnand %p460_p5, %p176_p6 }
  0x1a   : > { %s183_s27 = sand.u32 (!%p177_p7), 1, %s541_s12   ;;  %s211_s5 = smul.u32 (!%p177_p7), 6, %s455_s15 }
  0x1b   : > { %180 = sbr.rel (%p177_p7) target bundleno = 190 (0xbe), region = 51 }
  0x1c   : > { %s502_s28 = smul.u32 (!%p177_p7), 48, %s183_s27  ;;  %p212_p8 = scmp.lt.s32.totalorder (!%p177_p7), %s211_s5, 11 }
  0x1e   : > { %s185_s4 = scalar_lea.vmem (!%p177_p7), [#allocation2], %s502_s28 }
  0x20   : > { %v223_v6 = vld [vmem:[%s641_s0] sm:$0x3]  ;;  %vm275_vm0 = vcmask 130048   ;;  %v498_v8 = vld [vmem:[%s185_s4 + $0x14] sm:$0xf0]  ;;  %s649_s5 = smov (!%p212_p8, %s211_s5), 11 }
  0x21   : > { %v464_v7 = vld [vmem:[%s185_s4] sm:$0xf]  ;;  %v495_v9 = vld [vmem:[%s185_s4 + $0x4] sm:$0xf]  ;;  %v466_v11 = vld [vmem:[%s185_s4 + $0x18] sm:$0xf0]  ;;  %v224_v18 = vpack.c.bf16 %v223_v6, %v223_v6  ;;  %s214_s8 = scalar_lea.vmem %s643_s2, %s649_s5 }
  0x22   : > { %v465_v10 = vor.u32 %v498_v8, %v464_v7  ;;  %v472_v12 = vld [vmem:[%s185_s4 + $0x8] sm:$0xf]  ;;  %v499_v13 = vld [vmem:[%s185_s4 + $0x1c] sm:$0xf0]  ;;  %v469_v14 = vor.u32 %v495_v9, %v466_v11  ;;  %v496_v16 = vld [vmem:[%s185_s4 + $0xc] sm:$0xf] }
  0x23   : > { %v473_v15 = vor.u32 %v499_v13, %v472_v12  ;;  %v474_v17 = vld [vmem:[%s185_s4 + $0x20] sm:$0xf0]  ;;  %v480_v19 = vld [vmem:[%s185_s4 + $0x10] sm:$0xf]  ;;  %v500_v21 = vld [vmem:[%s185_s4 + $0x24] sm:$0xf0] }
  0x24   : > { %286 = vmatpush.bf16.msra.mxu0 %v465_v10  ;;  %v477_v20 = vor.u32 %v496_v16, %v474_v17  ;;  %v497_v22 = vld [vmem:[%s185_s4 + $0x14] sm:$0xf]  ;;  %v482_v23 = vld [vmem:[%s185_s4 + $0x28] sm:$0xf0]  ;;  %299 = vmatpush.bf16.msra.mxu1 %v469_v14  ;;  %v481_v24 = vor.u32 %v500_v21, %v480_v19  ;;  %s461_s9 = sshll.u32 %s649_s5, 1  ;;  %vm373_vm1 = vcmask 1041408  }
  0x25   : > { %312 = vmatpush.bf16.msra.mxu2 %v473_v15  ;;  %v485_v25 = vor.u32 %v497_v22, %v482_v23  ;;  %v231_v26 = vld [vmem:[%s214_s8] sm:$0x3f]  ;;  %vm375_vm2 = vcmask 1045508   ;;  %vm377_vm3 = vcmask 1043456   ;;  %s220_s12 = scalar_lea.vmem %s644_s3, %s461_s9 }
  0x26   : > { %325 = vmatpush.bf16.msra.mxu3 %v477_v20  ;;  %v234_v27 = vperm.slane %v231_v26, 1  ;;  %v235_v31 = vperm.slane %v231_v26, 2  ;;  %v233_v32 = vperm.slane %v231_v26, 0  ;;  %v236_v33 = vperm.slane %v231_v26, 3 }
  0x27   : > { %486 = vmatmul.msk.bf16.vlgmr.msra.gmra.mxu0 %vm275_vm0, %v224_v18  ;;  %487 = vmatmul.msk.bf16.vlgmr.msra.gmra.mxu1 %vm275_vm0, %v224_v18  ;;  %v237_v48 = vperm.slane %v231_v26, 4  ;;  %v238_v49 = vperm.slane %v231_v26, 5 }
  0x28   : > { %351 = vmatpush.bf16.msrb.mxu1 %v485_v25  ;;  %488 = vmatmul.msk.bf16.vlgmr.msra.gmra.mxu2 %vm275_vm0, %v224_v18 }
  0x29   : > { %489 = vmatmul.msk.bf16.vlgmr.msra.gmra.mxu3 %vm275_vm0, %v224_v18  ;;  %338 = vmatpush.bf16.msrb.mxu0 %v481_v24 }
  0x37   : > { %490 = vmatmul.msk.bf16.vlgmr.msrb.gmra.mxu0 %vm275_vm0, %v224_v18  ;;  %491 = vmatmul.msk.bf16.vlgmr.msrb.gmra.mxu1 %vm275_vm0, %v224_v18 }
  0xa4   : > { %v288_v28 = vpop.f32.mrf.mxu0  ;;  %v301_v29 = vpop.f32.mrf.mxu1 }
  0xa5   : > { %v302_v30 = vadd.f32 %v301_v29, %v234_v27  ;;  %v289_v39 = vadd.f32 %v288_v28, %v233_v32 }
  0xa7   : > { %v358_v34 = vmax.f32 %v302_v30, 0.0  ;;  %v357_v46 = vmax.f32 %v289_v39, 0.0 }
  0xa9   : > { %v369_v43 = vrot.slane %v358_v34, 6 }
  0xab   : > { %v314_v35 = vpop.f32.mrf.mxu2  ;;  %v374_v50 = vsel %vm373_vm1, %v357_v46, %v369_v43 }
  0xac   : > { %v315_v36 = vadd.f32 %v314_v35, %v235_v31  ;;  %v327_v37 = vpop.f32.mrf.mxu3  ;;  %v290_v38 = vpop.f32.mrf.mxu0 }
  0xad   : > { %v328_v40 = vadd.f32 %v327_v37, %v236_v33  ;;  %v303_v41 = vpop.f32.mrf.mxu1 }
  0xae   : > { %v359_v42 = vmax.f32 %v315_v36, 0.0 }
  0xaf   : > { %v360_v44 = vmax.f32 %v328_v40, 0.0 }
  0xb0   : > { %v370_v45 = vrot.slane %v359_v42, 4 }
  0xb1   : > { %v371_v47 = vrot.slane %v360_v44, 2 }
  0xb3   : > { %v376_v51 = vsel %vm375_vm2, %v370_v45, %v371_v47  ;;  %v316_v52 = vpop.f32.mrf.mxu2 }
  0xb4   : > { %v378_v53 = vsel %vm377_vm3, %v374_v50, %v376_v51  ;;  %v329_v54 = vpop.f32.mrf.mxu3  ;;  %v340_v55 = vpop.f32.mrf.mxu0 }
  0xb5   : > { %v353_v56 = vpop.f32.mrf.mxu1  ;;  %382 = vst [vmem:[%s220_s12] sm:$0xff] %v378_v53  ;;  %v341_v57 = vadd.f32 %v340_v55, %v237_v48 }
  0xb6   : > { %v354_v58 = vadd.f32 %v353_v56, %v238_v49 }
  0xb7   : > { %v361_v60 = vmax.f32 %v341_v57, 0.0 }
  0xb8   : > { %v362_v59 = vmax.f32 %v354_v58, 0.0 }
  0xba   : > { %v372_v61 = vrot.slane %v362_v59, 6 }
  0xbc   : > { %v379_v62 = vsel %vm373_vm1, %v361_v60, %v372_v61  ;;  %v342_v63 = vpop.f32.mrf.mxu0 }
  0xbd   : > { %383 = vst [vmem:[%s220_s12 + $0x8] sm:$0xf] %v379_v62  ;;  %v355_v0 = vpop.f32.mrf.mxu1 }
  0xbe PF: > { %p10_p9 = scmp.ge.s32.totalorder %s588_s16, 4   ;;  %s645_s12 = smov %s545_s13 }
  0xbf   : > { %s646_s13 = smov %s597_s19  ;;  %s647_s14 = smov %s588_s16 }
  0xc0   :  { %12 = sbr.rel (!%p10_p9) target bundleno = 2 (0x2), region = 93 }

// kernel: forward.16
= control target key start
LH: loop header
LB: loop body
LE: loop exit
PB: predicated region body
PF: predicated region fallthrough
CT: control target
= control target key end

     0   :  { %s2303_s12 = smov 0   ;;  %s3231_s0 = inlined_call_operand.vmem [shape: f32[2,20,224], index: 0, kind: input, shape index: {}]   ;;  %s3232_s1 = inlined_call_operand.vmem [shape: bf16[5,224,192], index: 1, kind: input, shape index: {}]   ;;  %s3233_s2 = inlined_call_operand.vmem [shape: f32[1,192], index: 2, kind: input, shape index: {}]   ;;  %s3234_s3 = inlined_call_operand.vmem [shape: f32[2,8,192], index: 3, kind: output, shape index: {}]  }
   0x1 LB: > { %s1433_s13 = sadd.s32 4294967295, %s2281_s12   ;;  %p1437_p0 = scmp.ge.s32.totalorder %s2281_s12, 1  ;;  %s2281_s12 = sphi %s2303_s12, %s13_s12  }
   0x2   : > { %p137_p1 = scmp.lt.s32.totalorder %s2281_s12, 3 }
   0x4   : > { %p138_p2 = pnand %p1437_p0, %p137_p1 }
   0x5   : > { %p161_p3 = scmp.lt.s32.totalorder (!%p138_p2), %s1433_s13, 1 }
   0x6   : > { %141 = sbr.rel (%p138_p2) target bundleno = 299 (0x12b), region = 32 }
   0xb   : > { %v1499_v0 = vld [vmem:[%s3232_s1 + $0x70] sm:$0xf]  ;;  %v2141_v1 = vld [vmem:[%s3232_s1 + $0x74] sm:$0xf0]  ;;  %v2140_v5 = vld [vmem:[%s3232_s1 + $0x74] sm:$0xf] }
   0xc   : > { %v1547_v2 = vld [vmem:[%s3232_s1 + $0xd0] sm:$0xf]  ;;  %v1500_v3 = vor.u32 %v2141_v1, %v1499_v0  ;;  %v2153_v4 = vld [vmem:[%s3232_s1 + $0xd4] sm:$0xf0]  ;;  %v1501_v6 = vld [vmem:[%s3232_s1 + $0x78] sm:$0xf0] }
   0xd   : > { %v1548_v7 = vor.u32 %v2153_v4, %v1547_v2  ;;  %v1504_v8 = vor.u32 %v2140_v5, %v1501_v6  ;;  %v2152_v9 = vld [vmem:[%s3232_s1 + $0xd4] sm:$0xf]  ;;  %v1549_v10 = vld [vmem:[%s3232_s1 + $0xd8] sm:$0xf0]  ;;  %v1491_v11 = vld [vmem:[%s3232_s1 + $0x60] sm:$0xf] }
   0xe   : > { %367 = vmatpush.bf16.msra.mxu0 %v1500_v3  ;;  %v1552_v12 = vor.u32 %v2152_v9, %v1549_v10  ;;  %v2139_v13 = vld [vmem:[%s3232_s1 + $0x64] sm:$0xf0]  ;;  %v1539_v14 = vld [vmem:[%s3232_s1 + $0xc0] sm:$0xf]  ;;  %v2138_v18 = vld [vmem:[%s3232_s1 + $0x64] sm:$0xf] }
   0xf   : > { %v2151_v15 = vld [vmem:[%s3232_s1 + $0xc4] sm:$0xf0]  ;;  %382 = vmatpush.bf16.msra.mxu1 %v1548_v7  ;;  %393 = vmatpush.bf16.msra.mxu2 %v1504_v8  ;;  %v1492_v16 = vor.u32 %v2139_v13, %v1491_v11  ;;  %v1493_v19 = vld [vmem:[%s3232_s1 + $0x68] sm:$0xf0]  ;;  %v2150_v20 = vld [vmem:[%s3232_s1 + $0xc4] sm:$0xf] }
  0x10   : > { %v1540_v17 = vor.u32 %v2151_v15, %v1539_v14  ;;  %408 = vmatpush.bf16.msra.mxu3 %v1552_v12  ;;  %v1496_v21 = vor.u32 %v2138_v18, %v1493_v19  ;;  %v1541_v22 = vld [vmem:[%s3232_s1 + $0xc8] sm:$0xf0]  ;;  %v1483_v23 = vld [vmem:[%s3232_s1 + $0x50] sm:$0xf]  ;;  %v2137_v24 = vld [vmem:[%s3232_s1 + $0x54] sm:$0xf0] }
  0x11   : > { %v1544_v25 = vor.u32 %v2150_v20, %v1541_v22  ;;  %v1531_v26 = vld [vmem:[%s3232_s1 + $0xb0] sm:$0xf]  ;;  %v2149_v27 = vld [vmem:[%s3232_s1 + $0xb4] sm:$0xf0]  ;;  %v2136_v28 = vld [vmem:[%s3232_s1 + $0x54] sm:$0xf]  ;;  %v1484_v29 = vor.u32 %v2137_v24, %v1483_v23 }
  0x12   : > { %368 = vmatpush.bf16.msra.mxu0 %v1492_v16  ;;  %v1485_v30 = vld [vmem:[%s3232_s1 + $0x58] sm:$0xf0]  ;;  %v2148_v31 = vld [vmem:[%s3232_s1 + $0xb4] sm:$0xf]  ;;  %v1532_v33 = vor.u32 %v2149_v27, %v1531_v26  ;;  %v1475_v35 = vld [vmem:[%s3232_s1 + $0x40] sm:$0xf] }
  0x13   : > { %v1533_v32 = vld [vmem:[%s3232_s1 + $0xb8] sm:$0xf0]  ;;  %383 = vmatpush.bf16.msra.mxu1 %v1540_v17  ;;  %394 = vmatpush.bf16.msra.mxu2 %v1496_v21  ;;  %v1488_v34 = vor.u32 %v2136_v28, %v1485_v30  ;;  %v2135_v36 = vld [vmem:[%s3232_s1 + $0x44] sm:$0xf0]  ;;  %v1523_v37 = vld [vmem:[%s3232_s1 + $0xa0] sm:$0xf] }
  0x14   : > { %409 = vmatpush.bf16.msra.mxu3 %v1544_v25  ;;  %v1536_v38 = vor.u32 %v2148_v31, %v1533_v32  ;;  %v2147_v39 = vld [vmem:[%s3232_s1 + $0xa4] sm:$0xf0]  ;;  %v2134_v40 = vld [vmem:[%s3232_s1 + $0x44] sm:$0xf]  ;;  %v1477_v41 = vld [vmem:[%s3232_s1 + $0x48] sm:$0xf0]  ;;  %v1476_v44 = vor.u32 %v2135_v36, %v1475_v35 }
  0x15   : > { %v2146_v42 = vld [vmem:[%s3232_s1 + $0xa4] sm:$0xf]  ;;  %v1525_v43 = vld [vmem:[%s3232_s1 + $0xa8] sm:$0xf0]  ;;  %v1524_v45 = vor.u32 %v2147_v39, %v1523_v37  ;;  %v1480_v46 = vor.u32 %v2134_v40, %v1477_v41  ;;  %v1467_v47 = vld [vmem:[%s3232_s1 + $0x30] sm:$0xf] }
  0x16   : > { %369 = vmatpush.bf16.msra.mxu0 %v1484_v29  ;;  %v2133_v48 = vld [vmem:[%s3232_s1 + $0x34] sm:$0xf0]  ;;  %v1515_v49 = vld [vmem:[%s3232_s1 + $0x90] sm:$0xf]  ;;  %v1528_v50 = vor.u32 %v2146_v42, %v1525_v43  ;;  %v2132_v52 = vld [vmem:[%s3232_s1 + $0x34] sm:$0xf] }
  0x17   : > { %384 = vmatpush.bf16.msra.mxu1 %v1532_v33  ;;  %395 = vmatpush.bf16.msra.mxu2 %v1488_v34  ;;  %v2145_v51 = vld [vmem:[%s3232_s1 + $0x94] sm:$0xf0]  ;;  %v1469_v53 = vld [vmem:[%s3232_s1 + $0x38] sm:$0xf0]  ;;  %v2144_v54 = vld [vmem:[%s3232_s1 + $0x94] sm:$0xf]  ;;  %v1468_v56 = vor.u32 %v2133_v48, %v1467_v47 }
  0x18   : > { %410 = vmatpush.bf16.msra.mxu3 %v1536_v38  ;;  %v1517_v55 = vld [vmem:[%s3232_s1 + $0x98] sm:$0xf0]  ;;  %v1459_v57 = vld [vmem:[%s3232_s1 + $0x20] sm:$0xf]  ;;  %v1516_v58 = vor.u32 %v2145_v51, %v1515_v49  ;;  %v1472_v59 = vor.u32 %v2132_v52, %v1469_v53  ;;  %v2131_v60 = vld [vmem:[%s3232_s1 + $0x24] sm:$0xf0] }
  0x19   : > { %v1507_v61 = vld [vmem:[%s3232_s1 + $0x80] sm:$0xf]  ;;  %v2143_v62 = vld [vmem:[%s3232_s1 + $0x84] sm:$0xf0]  ;;  %v1520_v63 = vor.u32 %v2144_v54, %v1517_v55  ;;  %v2130_v0 = vld [vmem:[%s3232_s1 + $0x24] sm:$0xf]  ;;  %v1460_v6 = vor.u32 %v2131_v60, %v1459_v57 }
  0x1a   : > { %370 = vmatpush.bf16.msra.mxu0 %v1476_v44  ;;  %v1461_v1 = vld [vmem:[%s3232_s1 + $0x28] sm:$0xf0]  ;;  %v2142_v2 = vld [vmem:[%s3232_s1 + $0x84] sm:$0xf]  ;;  %v1641_v4 = vld [vmem:[%s3232_s1 + $0x150] sm:$0xf]  ;;  %v1508_v9 = vor.u32 %v2143_v62, %v1507_v61 }
  0x1b   : > { %385 = vmatpush.bf16.msra.mxu1 %v1524_v45  ;;  %396 = vmatpush.bf16.msra.mxu2 %v1480_v46  ;;  %v1509_v3 = vld [vmem:[%s3232_s1 + $0x88] sm:$0xf0]  ;;  %v2169_v5 = vld [vmem:[%s3232_s1 + $0x154] sm:$0xf0]  ;;  %v1689_v7 = vld [vmem:[%s3232_s1 + $0x1b0] sm:$0xf]  ;;  %v1464_v10 = vor.u32 %v2130_v0, %v1461_v1 }
  0x1c   : > { %411 = vmatpush.bf16.msra.mxu3 %v1528_v50  ;;  %v2181_v8 = vld [vmem:[%s3232_s1 + $0x1b4] sm:$0xf0]  ;;  %v1451_v11 = vld [vmem:[%s3232_s1 + $0x10] sm:$0xf]  ;;  %v1512_v13 = vor.u32 %v2142_v2, %v1509_v3  ;;  %v1642_v14 = vor.u32 %v2169_v5, %v1641_v4  ;;  %v2128_v15 = vld [vmem:[%s3232_s1 + $0x14] sm:$0xf] }
  0x1d   : > { %v2129_v12 = vld [vmem:[%s3232_s1 + $0x14] sm:$0xf0]  ;;  %v1453_v16 = vld [vmem:[%s3232_s1 + $0x18] sm:$0xf0]  ;;  %v1690_v17 = vor.u32 %v2181_v8, %v1689_v7  ;;  %v1633_v18 = vld [vmem:[%s3232_s1 + $0x140] sm:$0xf] }
  0x1e   : > { %371 = vmatpush.bf16.msra.mxu0 %v1468_v56  ;;  %v2167_v19 = vld [vmem:[%s3232_s1 + $0x144] sm:$0xf0]  ;;  %v1452_v20 = vor.u32 %v2129_v12, %v1451_v11  ;;  %v1681_v21 = vld [vmem:[%s3232_s1 + $0x1a0] sm:$0xf]  ;;  %v1456_v24 = vor.u32 %v2128_v15, %v1453_v16  ;;  %v2126_v26 = vld [vmem:[%s3232_s1 + $0x4] sm:$0xf] }
  0x1f   : > { %386 = vmatpush.bf16.msra.mxu1 %v1516_v58  ;;  %397 = vmatpush.bf16.msra.mxu2 %v1472_v59  ;;  %v2179_v22 = vld [vmem:[%s3232_s1 + $0x1a4] sm:$0xf0]  ;;  %v1443_v23 = vld [vmem:[%s3232_s1] sm:$0xf]  ;;  %v1445_v27 = vld [vmem:[%s3232_s1 + $0x8] sm:$0xf0]  ;;  %v1634_v28 = vor.u32 %v2167_v19, %v1633_v18 }
  0x20   : > { %412 = vmatpush.bf16.msra.mxu3 %v1520_v63  ;;  %v2127_v25 = vld [vmem:[%s3232_s1 + $0x4] sm:$0xf0]  ;;  %v1625_v29 = vld [vmem:[%s3232_s1 + $0x130] sm:$0xf]  ;;  %v2168_v30 = vld [vmem:[%s3232_s1 + $0x154] sm:$0xf]  ;;  %v1682_v32 = vor.u32 %v2179_v22, %v1681_v21  ;;  %v1448_v39 = vor.u32 %v2126_v26, %v1445_v27 }
  0x21   : > { %v1643_v31 = vld [vmem:[%s3232_s1 + $0x158] sm:$0xf0]  ;;  %v2165_v33 = vld [vmem:[%s3232_s1 + $0x134] sm:$0xf0]  ;;  %v2180_v34 = vld [vmem:[%s3232_s1 + $0x1b4] sm:$0xf]  ;;  %v1444_v36 = vor.u32 %v2127_v25, %v1443_v23 }
  0x22   : > { %372 = vmatpush.bf16.msra.mxu0 %v1460_v6  ;;  %v1691_v35 = vld [vmem:[%s3232_s1 + $0x1b8] sm:$0xf0]  ;;  %v1673_v37 = vld [vmem:[%s3232_s1 + $0x190] sm:$0xf]  ;;  %v2177_v38 = vld [vmem:[%s3232_s1 + $0x194] sm:$0xf0]  ;;  %v1646_v40 = vor.u32 %v2168_v30, %v1643_v31  ;;  %v1626_v42 = vor.u32 %v2165_v33, %v1625_v29 }
  0x23   : > { %387 = vmatpush.bf16.msra.mxu1 %v1508_v9  ;;  %398 = vmatpush.bf16.msra.mxu2 %v1464_v10  ;;  %v1617_v41 = vld [vmem:[%s3232_s1 + $0x120] sm:$0xf]  ;;  %v1694_v43 = vor.u32 %v2180_v34, %v1691_v35  ;;  %v2166_v44 = vld [vmem:[%s3232_s1 + $0x144] sm:$0xf]  ;;  %v1635_v45 = vld [vmem:[%s3232_s1 + $0x148] sm:$0xf0]  ;;  %v1674_v46 = vor.u32 %v2177_v38, %v1673_v37 }
  0x24   : > { %413 = vmatpush.bf16.msra.mxu3 %v1512_v13  ;;  %v2163_v47 = vld [vmem:[%s3232_s1 + $0x124] sm:$0xf0]  ;;  %v2178_v48 = vld [vmem:[%s3232_s1 + $0x1a4] sm:$0xf]  ;;  %v1683_v49 = vld [vmem:[%s3232_s1 + $0x1a8] sm:$0xf0]  ;;  %v1638_v52 = vor.u32 %v2166_v44, %v1635_v45 }
  0x25   : > { %v1665_v50 = vld [vmem:[%s3232_s1 + $0x180] sm:$0xf]  ;;  %v2175_v51 = vld [vmem:[%s3232_s1 + $0x184] sm:$0xf0]  ;;  %s3236_s13 = smov (!%p161_p3, %s1433_s13), 1  ;;  %v1618_v54 = vor.u32 %v2163_v47, %v1617_v41  ;;  %v1686_v55 = vor.u32 %v2178_v48, %v1683_v49  ;;  %vm363_vm0 = vcmask 785408  }
  0x26   : > { %373 = vmatpush.bf16.msra.mxu0 %v1452_v20  ;;  %v1609_v53 = vld [vmem:[%s3232_s1 + $0x110] sm:$0xf]  ;;  %v2164_v56 = vld [vmem:[%s3232_s1 + $0x134] sm:$0xf]  ;;  %v1627_v57 = vld [vmem:[%s3232_s1 + $0x138] sm:$0xf0]  ;;  %v1666_v58 = vor.u32 %v2175_v51, %v1665_v50 }
  0x27   : > { %604 = vmatpush.bf16.msrb.mxu1 %v1642_v14  ;;  %399 = vmatpush.bf16.msra.mxu2 %v1456_v24  ;;  %s2266_s30 = smul.u32 48, %s3236_s13  ;;  %v2161_v59 = vld [vmem:[%s3232_s1 + $0x114] sm:$0xf0]  ;;  %v2176_v60 = vld [vmem:[%s3232_s1 + $0x194] sm:$0xf]  ;;  %v1630_v0 = vor.u32 %v2164_v56, %v1627_v57  ;;  %vm1376_vm1 = vcmask 523264  }
  0x28   : > { %619 = vmatpush.bf16.msrb.mxu3 %v1690_v17  ;;  %v1675_v61 = vld [vmem:[%s3232_s1 + $0x198] sm:$0xf0]  ;;  %v1657_v62 = vld [vmem:[%s3232_s1 + $0x170] sm:$0xf]  ;;  %v2173_v63 = vld [vmem:[%s3232_s1 + $0x174] sm:$0xf0]  ;;  %v1610_v4 = vor.u32 %v2161_v59, %v1609_v53 }
  0x29   : > { %s2585_s18 = scalar_lea.vmem %s3231_s0, %s2266_s30  ;;  %v1601_v3 = vld [vmem:[%s3232_s1 + $0x100] sm:$0xf]  ;;  %v1678_v5 = vor.u32 %v2176_v60, %v1675_v61  ;;  %v2159_v7 = vld [vmem:[%s3232_s1 + $0x104] sm:$0xf0]  ;;  %v2162_v8 = vld [vmem:[%s3232_s1 + $0x124] sm:$0xf]  ;;  %v1658_v10 = vor.u32 %v2173_v63, %v1657_v62 }
  0x2a   : > { %374 = vmatpush.bf16.msra.mxu0 %v1444_v36  ;;  %v172_v1 = vld [vmem:[%s2585_s18] sm:$0xff]  ;;  %v173_v2 = vld [vmem:[%s2585_s18 + $0x8] sm:$0xff]  ;;  %v1783_v17 = vld [vmem:[%s3232_s1 + $0x230] sm:$0xf]  ;;  %v1602_v21 = vor.u32 %v2159_v7, %v1601_v3 }
  0x2b   : > { %605 = vmatpush.bf16.msrb.mxu1 %v1634_v28  ;;  %400 = vmatpush.bf16.msra.mxu2 %v1448_v39  ;;  %v178_v6 = vpack.c.bf16 %v173_v2, %v172_v1  ;;  %v1619_v9 = vld [vmem:[%s3232_s1 + $0x128] sm:$0xf0]  ;;  %v1649_v11 = vld [vmem:[%s3232_s1 + $0x160] sm:$0xf]  ;;  %v2174_v12 = vld [vmem:[%s3232_s1 + $0x184] sm:$0xf] }
  0x2c   : > { %620 = vmatpush.bf16.msrb.mxu3 %v1682_v32  ;;  %v1667_v13 = vld [vmem:[%s3232_s1 + $0x188] sm:$0xf0]  ;;  %v2171_v16 = vld [vmem:[%s3232_s1 + $0x164] sm:$0xf0]  ;;  %v2197_v18 = vld [vmem:[%s3232_s1 + $0x234] sm:$0xf0]  ;;  %v1622_v22 = vor.u32 %v2162_v8, %v1619_v9 }
  0x2d   : > { %v2610_v14 = vunpack.c.l.b16 %v178_v6  ;;  %v2612_v15 = vunpack.c.h.b16 %v178_v6  ;;  %v174_v19 = vld [vmem:[%s2585_s18 + $0x10] sm:$0xff]  ;;  %v175_v20 = vld [vmem:[%s2585_s18 + $0x18] sm:$0xff]  ;;  %v1670_v27 = vor.u32 %v2174_v12, %v1667_v13  ;;  %v1650_v31 = vor.u32 %v2171_v16, %v1649_v11  ;;  %v176_v33 = vld [vmem:[%s2585_s18 + $0x20] sm:$0xf] }
  0x2e   : > { %630 = vmatpush.bf16.msrb.mxu0 %v1646_v40  ;;  %v1593_v23 = vld [vmem:[%s3232_s1 + $0xf0] sm:$0xf]  ;;  %v2157_v24 = vld [vmem:[%s3232_s1 + $0xf4] sm:$0xf0]  ;;  %v2160_v28 = vld [vmem:[%s3232_s1 + $0x114] sm:$0xf]  ;;  %v2649_v35 = vpack.c.bf16 %v175_v20, %v174_v19  ;;  %v1784_v36 = vor.u32 %v2197_v18, %v1783_v17 }
  0x2f   : > { %606 = vmatpush.bf16.msrb.mxu1 %v1626_v42  ;;  %645 = vmatpush.bf16.msrb.mxu2 %v1694_v43  ;;  %v220_v25 = vpack.c.b16 %v2610_v14, %v2610_v14  ;;  %v221_v26 = vpack.c.b16 %v2612_v15, %v2612_v15  ;;  %v1611_v29 = vld [vmem:[%s3232_s1 + $0x118] sm:$0xf0]  ;;  %v2172_v30 = vld [vmem:[%s3232_s1 + $0x174] sm:$0xf]  ;;  %v177_v34 = vld [vmem:[%s2585_s18 + $0x28] sm:$0xf]  ;;  %v1594_v42 = vor.u32 %v2157_v24, %v1593_v23 }
  0x30   : > { %621 = vmatpush.bf16.msrb.mxu3 %v1674_v46  ;;  %v1659_v32 = vld [vmem:[%s3232_s1 + $0x178] sm:$0xf0]  ;;  %v180_v37 = vpack.c.bf16 %v177_v34, %v176_v33  ;;  %v1614_v38 = vor.u32 %v2160_v28, %v1611_v29  ;;  %v1775_v39 = vld [vmem:[%s3232_s1 + $0x220] sm:$0xf]  ;;  %v2195_v40 = vld [vmem:[%s3232_s1 + $0x224] sm:$0xf0]  ;;  %v453_v50 = vunpack.c.h.b16 %v2649_v35  ;;  %v452_v59 = vunpack.c.l.b16 %v2649_v35 }
  0x31   : > { %401 = vmatmul.bf16.vlgmr.msra.gmra.mxu2 %v220_v25  ;;  %1554 = vmatmul.msk.bf16.vlgmr.msra.gmra.mxu3 %vm363_vm0, %v221_v26  ;;  %v1585_v41 = vld [vmem:[%s3232_s1 + $0xe0] sm:$0xf]  ;;  %v1662_v43 = vor.u32 %v2172_v30, %v1659_v32  ;;  %v2155_v44 = vld [vmem:[%s3232_s1 + $0xe4] sm:$0xf0]  ;;  %v2158_v45 = vld [vmem:[%s3232_s1 + $0x104] sm:$0xf]  ;;  %v1776_v51 = vor.u32 %v2195_v40, %v1775_v39 }
  0x32   : > { %631 = vmatpush.bf16.msrb.mxu0 %v1638_v52  ;;  %1553 = vmatmul.msk.bf16.vlgmr.msra.gmra.mxu1 %vm363_vm0, %v221_v26  ;;  %v1603_v46 = vld [vmem:[%s3232_s1 + $0x108] sm:$0xf0]  ;;  %v2170_v47 = vld [vmem:[%s3232_s1 + $0x164] sm:$0xf]  ;;  %v1831_v49 = vld [vmem:[%s3232_s1 + $0x290] sm:$0xf]  ;;  %v1586_v60 = vor.u32 %v2155_v44, %v1585_v41  ;;  %v2790_v44 = vpack.c.b16 %v453_v50, %v2612_v15 }
  0x33   : > { %607 = vmatpush.bf16.msrb.mxu1 %v1618_v54  ;;  %646 = vmatpush.bf16.msrb.mxu2 %v1686_v55  ;;  %v1651_v48 = vld [vmem:[%s3232_s1 + $0x168] sm:$0xf0]  ;;  %v2209_v52 = vld [vmem:[%s3232_s1 + $0x294] sm:$0xf0]  ;;  %v2196_v53 = vld [vmem:[%s3232_s1 + $0x234] sm:$0xf]  ;;  %v455_v55 = vunpack.c.h.b16 %v180_v37  ;;  %v1606_v56 = vor.u32 %v2158_v45, %v1603_v46  ;;  %v2795_v46 = vpack.c.b16 %v452_v59, %v2610_v14 }
  0x34   : > { %622 = vmatpush.bf16.msrb.mxu3 %v1666_v58  ;;  %375 = vmatmul.bf16.vlgmr.msra.gmra.mxu0 %v220_v25  ;;  %v1785_v54 = vld [vmem:[%s3232_s1 + $0x238] sm:$0xf0]  ;;  %v1767_v57 = vld [vmem:[%s3232_s1 + $0x210] sm:$0xf]  ;;  %v2193_v58 = vld [vmem:[%s3232_s1 + $0x214] sm:$0xf0]  ;;  %v1654_v61 = vor.u32 %v2170_v47, %v1651_v48  ;;  %v1832_v1 = vor.u32 %v2209_v52, %v1831_v49 }
  0x35   : > { %v2156_v62 = vld [vmem:[%s3232_s1 + $0xf4] sm:$0xf]  ;;  %v1595_v63 = vld [vmem:[%s3232_s1 + $0xf8] sm:$0xf0]  ;;  %v1788_v2 = vor.u32 %v2196_v53, %v1785_v54  ;;  %v1823_v3 = vld [vmem:[%s3232_s1 + $0x280] sm:$0xf] }
  0x36   : > { %632 = vmatpush.bf16.msrb.mxu0 %v1630_v0  ;;  %v454_v0 = vunpack.c.l.b16 %v180_v37  ;;  %v2207_v6 = vld [vmem:[%s3232_s1 + $0x284] sm:$0xf0]  ;;  %v2194_v7 = vld [vmem:[%s3232_s1 + $0x224] sm:$0xf]  ;;  %v1777_v8 = vld [vmem:[%s3232_s1 + $0x228] sm:$0xf0]  ;;  %v1598_v9 = vor.u32 %v2156_v62, %v1595_v63 }
  0x37   : > { %608 = vmatpush.bf16.msrb.mxu1 %v1610_v4  ;;  %647 = vmatpush.bf16.msrb.mxu2 %v1678_v5  ;;  %v1768_v4 = vor.u32 %v2193_v58, %v1767_v57  ;;  %v2708_v5 = vpack.c.b16 %v455_v55, %v453_v50  ;;  %v2191_v11 = vld [vmem:[%s3232_s1 + $0x204] sm:$0xf0]  ;;  %v2154_v12 = vld [vmem:[%s3232_s1 + $0xe4] sm:$0xf]  ;;  %v1587_v13 = vld [vmem:[%s3232_s1 + $0xe8] sm:$0xf0]  ;;  %v1824_v18 = vor.u32 %v2207_v6, %v1823_v3 }
  0x38   : > { %623 = vmatpush.bf16.msrb.mxu3 %v1658_v10  ;;  %v1759_v10 = vld [vmem:[%s3232_s1 + $0x200] sm:$0xf]  ;;  %v1815_v16 = vld [vmem:[%s3232_s1 + $0x270] sm:$0xf]  ;;  %v2736_v17 = vpack.c.b16 %v454_v0, %v452_v59  ;;  %v1780_v19 = vor.u32 %v2194_v7, %v1777_v8  ;;  %v2205_v20 = vld [vmem:[%s3232_s1 + $0x274] sm:$0xf0] }
  0x39   : > { %v459_v23 = vrot.slane %v2708_v5, 1  ;;  %v1760_v24 = vor.u32 %v2191_v11, %v1759_v10  ;;  %v2192_v25 = vld [vmem:[%s3232_s1 + $0x214] sm:$0xf]  ;;  %v1769_v26 = vld [vmem:[%s3232_s1 + $0x218] sm:$0xf0]  ;;  %v1816_v32 = vor.u32 %v2205_v20, %v1815_v16  ;;  %v699_v55 = vshll.u32 %v2790_v44, 16 }
  0x3a   : > { %633 = vmatpush.bf16.msrb.mxu0 %v1622_v22  ;;  %v1833_v22 = vld [vmem:[%s3232_s1 + $0x298] sm:$0xf0]  ;;  %v1751_v28 = vld [vmem:[%s3232_s1 + $0x1f0] sm:$0xf]  ;;  %v2189_v29 = vld [vmem:[%s3232_s1 + $0x1f4] sm:$0xf0]  ;;  %v1772_v33 = vor.u32 %v2192_v25, %v1769_v26 }
  0x3b   : > { %609 = vmatpush.bf16.msrb.mxu1 %v1602_v21  ;;  %648 = vmatpush.bf16.msrb.mxu2 %v1670_v27  ;;  %v2208_v21 = vld [vmem:[%s3232_s1 + $0x294] sm:$0xf]  ;;  %v1590_v27 = vor.u32 %v2154_v12, %v1587_v13  ;;  %v1807_v34 = vld [vmem:[%s3232_s1 + $0x260] sm:$0xf]  ;;  %v1825_v37 = vld [vmem:[%s3232_s1 + $0x288] sm:$0xf0] }
  0x3c   : > { %624 = vmatpush.bf16.msrb.mxu3 %v1650_v31  ;;  %v1836_v30 = vor.u32 %v2208_v21, %v1833_v22  ;;  %v458_v31 = vrot.slane %v2736_v17, 1  ;;  %v2203_v39 = vld [vmem:[%s3232_s1 + $0x264] sm:$0xf0]  ;;  %v2190_v40 = vld [vmem:[%s3232_s1 + $0x204] sm:$0xf]  ;;  %v692_v63 = vshll.u32 %v2795_v46, 16 }
  0x3d   : > { %v1761_v41 = vld [vmem:[%s3232_s1 + $0x208] sm:$0xf0]  ;;  %v1808_v47 = vor.u32 %v2203_v39, %v1807_v34  ;;  %v1799_v49 = vld [vmem:[%s3232_s1 + $0x250] sm:$0xf]  ;;  %v2204_v15 = vld [vmem:[%s3232_s1 + $0x274] sm:$0xf] }
  0x3e   : > { %634 = vmatpush.bf16.msrb.mxu0 %v1614_v38  ;;  %v1752_v38 = vor.u32 %v2189_v29, %v1751_v28  ;;  %v1764_v48 = vor.u32 %v2190_v40, %v1761_v41  ;;  %v1817_v50 = vld [vmem:[%s3232_s1 + $0x278] sm:$0xf0]  ;;  %v2201_v35 = vld [vmem:[%s3232_s1 + $0x254] sm:$0xf0]  ;;  %v1735_v53 = vld [vmem:[%s3232_s1 + $0x1d0] sm:$0xf] }
  0x3f   : > { %610 = vmatpush.bf16.msrb.mxu1 %v1594_v42  ;;  %649 = vmatpush.bf16.msrb.mxu2 %v1662_v43  ;;  %v1743_v42 = vld [vmem:[%s3232_s1 + $0x1e0] sm:$0xf]  ;;  %v2187_v43 = vld [vmem:[%s3232_s1 + $0x1e4] sm:$0xf0]  ;;  %v1753_v52 = vld [vmem:[%s3232_s1 + $0x1f8] sm:$0xf0]  ;;  %v1800_v58 = vor.u32 %v2201_v35, %v1799_v49 }
  0x40   : > { %847 = vmatpush.bf16.msra.mxu3 %v1784_v36  ;;  %v2206_v36 = vld [vmem:[%s3232_s1 + $0x284] sm:$0xf]  ;;  %v1744_v14 = vor.u32 %v2187_v43, %v1743_v42  ;;  %v2185_v54 = vld [vmem:[%s3232_s1 + $0x1d4] sm:$0xf0]  ;;  %v1791_v57 = vld [vmem:[%s3232_s1 + $0x240] sm:$0xf] }
  0x41   : > { %1695 = vmatmul.msk.bf16.vlgmr.msrb.gmra.mxu3 %vm363_vm0, %v459_v23  ;;  %v1828_v45 = vor.u32 %v2206_v36, %v1825_v37  ;;  %v1809_v62 = vld [vmem:[%s3232_s1 + $0x268] sm:$0xf0]  ;;  %v1736_v0 = vor.u32 %v2185_v54, %v1735_v53  ;;  %v1925_v6 = vld [vmem:[%s3232_s1 + $0x310] sm:$0xf]  ;;  %v2225_v7 = vld [vmem:[%s3232_s1 + $0x314] sm:$0xf0] }
  0x42   : > { %635 = vmatpush.bf16.msrb.mxu0 %v1606_v56  ;;  %v1820_v56 = vor.u32 %v2204_v15, %v1817_v50  ;;  %v1745_v3 = vld [vmem:[%s3232_s1 + $0x1e8] sm:$0xf0]  ;;  %v697_v8 = vshrl.u32 %v2790_v44, 16  ;;  %v1973_v11 = vld [vmem:[%s3232_s1 + $0x370] sm:$0xf]  ;;  %s2125_s18 = sshll.u32 %s3236_s13, 4 }
  0x43   : > { %611 = vmatpush.bf16.msrb.mxu1 %v1586_v60  ;;  %650 = vmatpush.bf16.msrb.mxu2 %v1654_v61  ;;  %v1727_v60 = vld [vmem:[%s3232_s1 + $0x1c0] sm:$0xf]  ;;  %v2202_v61 = vld [vmem:[%s3232_s1 + $0x264] sm:$0xf]  ;;  %v2237_v12 = vld [vmem:[%s3232_s1 + $0x374] sm:$0xf0]  ;;  %s170_s6 = scalar_lea.vmem %s3234_s3, %s2125_s18 }
  0x44   : > { %848 = vmatpush.bf16.msra.mxu3 %v1776_v51  ;;  %v2188_v51 = vld [vmem:[%s3232_s1 + $0x1f4] sm:$0xf]  ;;  %v1812_v10 = vor.u32 %v2202_v61, %v1809_v62  ;;  %v1801_v21 = vld [vmem:[%s3232_s1 + $0x258] sm:$0xf0]  ;;  %v1974_v26 = vor.u32 %v2237_v12, %v1973_v11  ;;  %v2223_v28 = vld [vmem:[%s3232_s1 + $0x304] sm:$0xf0] }
  0x45   : > { %v1756_v59 = vor.u32 %v2188_v51, %v1753_v52  ;;  %v2200_v20 = vld [vmem:[%s3232_s1 + $0x254] sm:$0xf]  ;;  %v1737_v25 = vld [vmem:[%s3232_s1 + $0x1d8] sm:$0xf0]  ;;  %v1729_v37 = vld [vmem:[%s3232_s1 + $0x1c8] sm:$0xf0] }
  0x46   : > { %636 = vmatpush.bf16.msrb.mxu0 %v1598_v9  ;;  %1696 = vmatmul.msk.bf16.vlgmr.msrb.gmra.mxu2 %vm363_vm0, %v459_v23  ;;  %v701_v9 = vrot.slane %v699_v55, 1  ;;  %v1926_v23 = vor.u32 %v2225_v7, %v1925_v6  ;;  %v1804_v29 = vor.u32 %v2200_v20, %v1801_v21  ;;  %v1793_v39 = vld [vmem:[%s3232_s1 + $0x248] sm:$0xf0]  ;;  %v1909_v41 = vld [vmem:[%s3232_s1 + $0x2f0] sm:$0xf] }
  0x47   : > { %862 = vmatpush.bf16.msra.mxu1 %v1832_v1  ;;  %873 = vmatpush.bf16.msra.mxu2 %v1788_v2  ;;  %v2199_v1 = vld [vmem:[%s3232_s1 + $0x244] sm:$0xf0]  ;;  %v2186_v2 = vld [vmem:[%s3232_s1 + $0x1e4] sm:$0xf]  ;;  %v2224_v42 = vld [vmem:[%s3232_s1 + $0x314] sm:$0xf] }
  0x48   : > { %849 = vmatpush.bf16.msra.mxu3 %v1768_v4  ;;  %612 = vmatmul.bf16.vlgmr.msrb.gmra.mxu1 %v458_v31  ;;  %v2183_v4 = vld [vmem:[%s3232_s1 + $0x1c4] sm:$0xf0]  ;;  %v1792_v13 = vor.u32 %v2199_v1, %v1791_v57  ;;  %v1748_v16 = vor.u32 %v2186_v2, %v1745_v3  ;;  %v1927_v43 = vld [vmem:[%s3232_s1 + $0x318] sm:$0xf0]  ;;  %v1957_v50 = vld [vmem:[%s3232_s1 + $0x350] sm:$0xf] }
  0x49   : > { %v1728_v22 = vor.u32 %v2183_v4, %v1727_v60  ;;  %v1975_v49 = vld [vmem:[%s3232_s1 + $0x378] sm:$0xf0]  ;;  %v1930_v51 = vor.u32 %v2224_v42, %v1927_v43  ;;  %v1901_v54 = vld [vmem:[%s3232_s1 + $0x2e0] sm:$0xf]  ;;  %v2222_v55 = vld [vmem:[%s3232_s1 + $0x304] sm:$0xf] }
  0x4a   : > { %637 = vmatpush.bf16.msrb.mxu0 %v1590_v27  ;;  %v1917_v27 = vld [vmem:[%s3232_s1 + $0x300] sm:$0xf]  ;;  %v1967_v60 = vld [vmem:[%s3232_s1 + $0x368] sm:$0xf0]  ;;  %v2231_v62 = vld [vmem:[%s3232_s1 + $0x344] sm:$0xf0] }
  0x4b   : > { %863 = vmatpush.bf16.msra.mxu1 %v1824_v18  ;;  %874 = vmatpush.bf16.msra.mxu2 %v1780_v19  ;;  %v690_v18 = vshrl.u32 %v2795_v46, 16  ;;  %v694_v19 = vrot.slane %v692_v63, 1  ;;  %v1918_v40 = vor.u32 %v2223_v28, %v1917_v27  ;;  %v1949_v61 = vld [vmem:[%s3232_s1 + $0x340] sm:$0xf]  ;;  %v1893_v2 = vld [vmem:[%s3232_s1 + $0x2d0] sm:$0xf] }
  0x4c   : > { %850 = vmatpush.bf16.msra.mxu3 %v1760_v24  ;;  %v2184_v24 = vld [vmem:[%s3232_s1 + $0x1d4] sm:$0xf]  ;;  %v1911_v4 = vld [vmem:[%s3232_s1 + $0x2f8] sm:$0xf0]  ;;  %v1950_v6 = vor.u32 %v2231_v62, %v1949_v61  ;;  %v2217_v7 = vld [vmem:[%s3232_s1 + $0x2d4] sm:$0xf0] }
  0x4d   : > { %638 = vmatmul.bf16.vlgmr.msrb.gmra.mxu0 %v458_v31  ;;  %v2235_v31 = vld [vmem:[%s3232_s1 + $0x364] sm:$0xf0]  ;;  %v695_v34 = vor.u32 %v694_v19, %v690_v18  ;;  %v1740_v36 = vor.u32 %v2184_v24, %v1737_v25  ;;  %v2220_v3 = vld [vmem:[%s3232_s1 + $0x2f4] sm:$0xf]  ;;  %v2229_v11 = vld [vmem:[%s3232_s1 + $0x334] sm:$0xf0] }
  0x4e   : > { %888 = vmatpush.bf16.msra.mxu0 %v1836_v30  ;;  %v1965_v30 = vld [vmem:[%s3232_s1 + $0x360] sm:$0xf]  ;;  %v1914_v12 = vor.u32 %v2220_v3, %v1911_v4  ;;  %v2215_v19 = vld [vmem:[%s3232_s1 + $0x2c4] sm:$0xf0]  ;;  %v2218_v20 = vld [vmem:[%s3232_s1 + $0x2e4] sm:$0xf] }
  0x4f   : > { %864 = vmatpush.bf16.msra.mxu1 %v1816_v32  ;;  %875 = vmatpush.bf16.msra.mxu2 %v1772_v33  ;;  %v2182_v32 = vld [vmem:[%s3232_s1 + $0x1c4] sm:$0xf]  ;;  %v702_v33 = vor.u32 %v701_v9, %v697_v8  ;;  %v2232_v8 = vld [vmem:[%s3232_s1 + $0x354] sm:$0xf]  ;;  %v1959_v9 = vld [vmem:[%s3232_s1 + $0x358] sm:$0xf0] }
  0x50   : > { %851 = vmatpush.bf16.msra.mxu3 %v1752_v38  ;;  %v2198_v38 = vld [vmem:[%s3232_s1 + $0x244] sm:$0xf]  ;;  %v1732_v35 = vor.u32 %v2182_v32, %v1729_v37  ;;  %v1962_v18 = vor.u32 %v2232_v8, %v1959_v9  ;;  %v1903_v21 = vld [vmem:[%s3232_s1 + $0x2e8] sm:$0xf0]  ;;  %v939_v25 = vshrl.u32 %v2708_v5, 16 }
  0x51   : > { %v1796_v15 = vor.u32 %v2198_v38, %v1793_v39  ;;  %v1951_v24 = vld [vmem:[%s3232_s1 + $0x348] sm:$0xf0]  ;;  %v1933_v27 = vld [vmem:[%s3232_s1 + $0x320] sm:$0xf]  ;;  %v2227_v28 = vld [vmem:[%s3232_s1 + $0x324] sm:$0xf0] }
  0x52   : > { %889 = vmatpush.bf16.msra.mxu0 %v1828_v45  ;;  %v1966_v45 = vor.u32 %v2235_v31, %v1965_v30  ;;  %v2067_v30 = vld [vmem:[%s3232_s1 + $0x3f0] sm:$0xf]  ;;  %v2253_v31 = vld [vmem:[%s3232_s1 + $0x3f4] sm:$0xf0]  ;;  %v1895_v37 = vld [vmem:[%s3232_s1 + $0x2d8] sm:$0xf0]  ;;  %v1934_v38 = vor.u32 %v2227_v28, %v1933_v27 }
  0x53   : > { %865 = vmatpush.bf16.msra.mxu1 %v1808_v47  ;;  %876 = vmatpush.bf16.msra.mxu2 %v1764_v48  ;;  %v2221_v47 = vld [vmem:[%s3232_s1 + $0x2f4] sm:$0xf0]  ;;  %v2236_v48 = vld [vmem:[%s3232_s1 + $0x374] sm:$0xf]  ;;  %v2068_v43 = vor.u32 %v2253_v31, %v2067_v30  ;;  %v2051_v62 = vld [vmem:[%s3232_s1 + $0x3d0] sm:$0xf] }
  0x54   : > { %852 = vmatpush.bf16.msra.mxu3 %v1744_v14  ;;  %v2233_v14 = vld [vmem:[%s3232_s1 + $0x354] sm:$0xf0]  ;;  %v1910_v52 = vor.u32 %v2221_v47, %v1909_v41  ;;  %v1978_v53 = vor.u32 %v2236_v48, %v1975_v49  ;;  %v2228_v39 = vld [vmem:[%s3232_s1 + $0x334] sm:$0xf]  ;;  %v941_v41 = vrot.slane %v939_v25, 1 }
  0x55   : > { %v1958_v57 = vor.u32 %v2233_v14, %v1957_v50  ;;  %v2251_v48 = vld [vmem:[%s3232_s1 + $0x3e4] sm:$0xf0]  ;;  %v1869_v49 = vld [vmem:[%s3232_s1 + $0x2a0] sm:$0xf]  ;;  %v934_v50 = vshll.u32 %v2736_v17, 16 }
  0x56   : > { %890 = vmatpush.bf16.msra.mxu0 %v1820_v56  ;;  %v1919_v56 = vld [vmem:[%s3232_s1 + $0x308] sm:$0xf0]  ;;  %v2212_v4 = vld [vmem:[%s3232_s1 + $0x2b4] sm:$0xf]  ;;  %v2250_v8 = vld [vmem:[%s3232_s1 + $0x3e4] sm:$0xf] }
  0x57   : > { %866 = vmatpush.bf16.msra.mxu1 %v1800_v58  ;;  %877 = vmatpush.bf16.msra.mxu2 %v1756_v59  ;;  %v2219_v58 = vld [vmem:[%s3232_s1 + $0x2e4] sm:$0xf0]  ;;  %v2234_v59 = vld [vmem:[%s3232_s1 + $0x364] sm:$0xf]  ;;  %v1922_v63 = vor.u32 %v2222_v55, %v1919_v56  ;;  %v1935_v55 = vld [vmem:[%s3232_s1 + $0x328] sm:$0xf0] }
  0x58   : > { %853 = vmatpush.bf16.msra.mxu3 %v1736_v0  ;;  %v1902_v0 = vor.u32 %v2219_v58, %v1901_v54  ;;  %v1970_v1 = vor.u32 %v2234_v59, %v1967_v60  ;;  %v2252_v56 = vld [vmem:[%s3232_s1 + $0x3f4] sm:$0xf]  ;;  %v2069_v58 = vld [vmem:[%s3232_s1 + $0x3f8] sm:$0xf0]  ;;  %v2115_v59 = vld [vmem:[%s3232_s1 + $0x450] sm:$0xf] }
  0x59   : > { %v2265_v60 = vld [vmem:[%s3232_s1 + $0x454] sm:$0xf0]  ;;  %v2264_v25 = vld [vmem:[%s3232_s1 + $0x454] sm:$0xf]  ;;  %v2099_v30 = vld [vmem:[%s3232_s1 + $0x430] sm:$0xf] }
  0x5a   : > { %891 = vmatpush.bf16.msra.mxu0 %v1812_v10  ;;  %v1941_v10 = vld [vmem:[%s3232_s1 + $0x330] sm:$0xf]  ;;  %v2116_v9 = vor.u32 %v2265_v60, %v2115_v59  ;;  %v2261_v31 = vld [vmem:[%s3232_s1 + $0x434] sm:$0xf0]  ;;  %v2242_v59 = vld [vmem:[%s3232_s1 + $0x3a4] sm:$0xf] }
  0x5b   : > { %867 = vmatpush.bf16.msra.mxu1 %v1792_v13  ;;  %878 = vmatpush.bf16.msra.mxu2 %v1748_v16  ;;  %v1885_v13 = vld [vmem:[%s3232_s1 + $0x2c0] sm:$0xf]  ;;  %v1894_v16 = vor.u32 %v2217_v7, %v1893_v2  ;;  %v2072_v7 = vor.u32 %v2252_v56, %v2069_v58  ;;  %v2241_v56 = vld [vmem:[%s3232_s1 + $0x394] sm:$0xf0]  ;;  %v2258_v60 = vld [vmem:[%s3232_s1 + $0x424] sm:$0xf] }
  0x5c   : > { %854 = vmatpush.bf16.msra.mxu3 %v1728_v22  ;;  %v1942_v22 = vor.u32 %v2229_v11, %v1941_v10  ;;  %v1886_v32 = vor.u32 %v2215_v19, %v1885_v13  ;;  %v2061_v11 = vld [vmem:[%s3232_s1 + $0x3e8] sm:$0xf0]  ;;  %v2263_v13 = vld [vmem:[%s3232_s1 + $0x444] sm:$0xf0]  ;;  %v2043_v19 = vld [vmem:[%s3232_s1 + $0x3c0] sm:$0xf] }
  0x5e   : > { %892 = vmatpush.bf16.msra.mxu0 %v1804_v29  ;;  %1837 = vmatmul.msk.bf16.vlgmr.msra.gmra.mxu1 %vm363_vm0, %v702_v33  ;;  %v1906_v29 = vor.u32 %v2218_v20, %v1903_v21  ;;  %v2247_v20 = vld [vmem:[%s3232_s1 + $0x3c4] sm:$0xf0]  ;;  %v2210_v21 = vld [vmem:[%s3232_s1 + $0x2a4] sm:$0xf] }
  0x5f   : > { %1090 = vmatpush.bf16.msrb.mxu1 %v1926_v23  ;;  %855 = vmatmul.bf16.vlgmr.msra.gmra.mxu3 %v695_v34  ;;  %v2230_v23 = vld [vmem:[%s3232_s1 + $0x344] sm:$0xf]  ;;  %v2044_v28 = vor.u32 %v2247_v20, %v2043_v19  ;;  %v1173_v19 = vrot.slane %v2795_v46, 1 }
  0x60   : > { %1105 = vmatpush.bf16.msrb.mxu3 %v1974_v26  ;;  %879 = vmatpush.bf16.msra.mxu2 %v1740_v36  ;;  %v942_v26 = vshll.u32 %v2708_v5, 16  ;;  %v1877_v5 = vld [vmem:[%s3232_s1 + $0x2b0] sm:$0xf]  ;;  %v2216_v36 = vld [vmem:[%s3232_s1 + $0x2d4] sm:$0xf] }
  0x61   : > { %v1898_v47 = vor.u32 %v2216_v36, %v1895_v37  ;;  %v2246_v37 = vld [vmem:[%s3232_s1 + $0x3c4] sm:$0xf] }
  0x62   : > { %893 = vmatpush.bf16.msra.mxu0 %v1796_v15  ;;  %v944_v42 = vrot.slane %v942_v26, 2  ;;  %v931_v15 = vshrl.u32 %v2736_v17, 16  ;;  %v2226_v17 = vld [vmem:[%s3232_s1 + $0x324] sm:$0xf]  ;;  %v2117_v26 = vld [vmem:[%s3232_s1 + $0x458] sm:$0xf0] }
  0x63   : > { %1091 = vmatpush.bf16.msrb.mxu1 %v1918_v40  ;;  %v1943_v40 = vld [vmem:[%s3232_s1 + $0x338] sm:$0xf0]  ;;  %v1938_v3 = vor.u32 %v2226_v17, %v1935_v55  ;;  %v2257_v17 = vld [vmem:[%s3232_s1 + $0x414] sm:$0xf0]  ;;  %v2019_v55 = vld [vmem:[%s3232_s1 + $0x390] sm:$0xf] }
  0x64   : > { %1106 = vmatpush.bf16.msrb.mxu3 %v1966_v45  ;;  %880 = vmatpush.bf16.msra.mxu2 %v1732_v35  ;;  %v2059_v45 = vld [vmem:[%s3232_s1 + $0x3e0] sm:$0xf]  ;;  %v1946_v35 = vor.u32 %v2228_v39, %v1943_v40  ;;  %v945_v54 = vor.u32 %v944_v42, %v941_v41  ;;  %v2109_v39 = vld [vmem:[%s3232_s1 + $0x448] sm:$0xf0]  ;;  %v2100_v40 = vor.u32 %v2261_v31, %v2099_v30 }
  0x65   : > { %1838 = vmatmul.msk.bf16.vlgmr.msra.gmra.mxu0 %vm363_vm0, %v702_v33  ;;  %v1954_v33 = vor.u32 %v2230_v23, %v1951_v24  ;;  %v2064_v23 = vor.u32 %v2250_v8, %v2061_v11  ;;  %v2248_v24 = vld [vmem:[%s3232_s1 + $0x3d4] sm:$0xf]  ;;  %v2045_v42 = vld [vmem:[%s3232_s1 + $0x3c8] sm:$0xf0] }
  0x66   : > { %1116 = vmatpush.bf16.msrb.mxu0 %v1930_v51  ;;  %v2211_v51 = vld [vmem:[%s3232_s1 + $0x2a4] sm:$0xf0]  ;;  %v2256_v8 = vld [vmem:[%s3232_s1 + $0x414] sm:$0xf] }
  0x67   : > { %1092 = vmatpush.bf16.msrb.mxu1 %v1910_v52  ;;  %881 = vmatmul.bf16.vlgmr.msra.gmra.mxu2 %v695_v34  ;;  %v2213_v34 = vld [vmem:[%s3232_s1 + $0x2b4] sm:$0xf0]  ;;  %v2214_v52 = vld [vmem:[%s3232_s1 + $0x2c4] sm:$0xf]  ;;  %v1870_v2 = vor.u32 %v2211_v51, %v1869_v49 }
  0x68   : > { %1131 = vmatpush.bf16.msrb.mxu2 %v1978_v53  ;;  %1107 = vmatpush.bf16.msrb.mxu3 %v1958_v57  ;;  %v1878_v14 = vor.u32 %v2213_v34, %v1877_v5  ;;  %v1887_v53 = vld [vmem:[%s3232_s1 + $0x2c8] sm:$0xf0]  ;;  %v2060_v57 = vor.u32 %v2251_v48, %v2059_v45  ;;  %v2120_v34 = vor.u32 %v2264_v25, %v2117_v26  ;;  %v2259_v45 = vld [vmem:[%s3232_s1 + $0x424] sm:$0xf0] }
  0x69   : > { %v1890_v61 = vor.u32 %v2214_v52, %v1887_v53  ;;  %v2243_v48 = vld [vmem:[%s3232_s1 + $0x3a4] sm:$0xf0]  ;;  %v2037_v53 = vld [vmem:[%s3232_s1 + $0x3b8] sm:$0xf0] }
  0x6a   : > { %1117 = vmatpush.bf16.msrb.mxu0 %v1922_v63  ;;  %v2249_v63 = vld [vmem:[%s3232_s1 + $0x3d4] sm:$0xf0] }
  0x6b   : > { %1093 = vmatpush.bf16.msrb.mxu1 %v1902_v0  ;;  %v933_v0 = vrot.slane %v931_v15, 1  ;;  %v2052_v10 = vor.u32 %v2249_v63, %v2051_v62  ;;  %v2048_v15 = vor.u32 %v2246_v37, %v2045_v42  ;;  %v2020_v63 = vor.u32 %v2241_v56, %v2019_v55 }
  0x6c   : > { %1132 = vmatpush.bf16.msrb.mxu2 %v1970_v1  ;;  %1108 = vmatpush.bf16.msrb.mxu3 %v1950_v6  ;;  %v936_v1 = vrot.slane %v934_v50, 2  ;;  %v1879_v6 = vld [vmem:[%s3232_s1 + $0x2b8] sm:$0xf0]  ;;  %v2244_v50 = vld [vmem:[%s3232_s1 + $0x3b4] sm:$0xf] }
  0x6d   : > { %v2040_v58 = vor.u32 %v2244_v50, %v2037_v53 }
  0x6e   : > { %1118 = vmatpush.bf16.msrb.mxu0 %v1914_v12  ;;  %v2107_v12 = vld [vmem:[%s3232_s1 + $0x440] sm:$0xf] }
  0x6f   : > { %1094 = vmatpush.bf16.msrb.mxu1 %v1894_v16  ;;  %v937_v16 = vor.u32 %v936_v1, %v933_v0  ;;  %v2108_v27 = vor.u32 %v2263_v13, %v2107_v12  ;;  %v2029_v0 = vld [vmem:[%s3232_s1 + $0x3a8] sm:$0xf0]  ;;  %v2075_v1 = vld [vmem:[%s3232_s1 + $0x400] sm:$0xf]  ;;  %v2240_v12 = vld [vmem:[%s3232_s1 + $0x394] sm:$0xf] }
  0x70   : > { %1133 = vmatpush.bf16.msrb.mxu2 %v1962_v18  ;;  %1109 = vmatpush.bf16.msrb.mxu3 %v1942_v22  ;;  %v1882_v18 = vor.u32 %v2212_v4, %v1879_v6  ;;  %v1871_v22 = vld [vmem:[%s3232_s1 + $0x2a8] sm:$0xf0]  ;;  %v2239_v4 = vld [vmem:[%s3232_s1 + $0x384] sm:$0xf0]  ;;  %v2021_v13 = vld [vmem:[%s3232_s1 + $0x398] sm:$0xf0] }
  0x71   : > { %v1874_v5 = vor.u32 %v2210_v21, %v1871_v22  ;;  %v2024_v20 = vor.u32 %v2240_v12, %v2021_v13  ;;  %v2254_v21 = vld [vmem:[%s3232_s1 + $0x404] sm:$0xf]  ;;  %v2077_v22 = vld [vmem:[%s3232_s1 + $0x408] sm:$0xf0] }
  0x72   : > { %1119 = vmatpush.bf16.msrb.mxu0 %v1906_v29  ;;  %v2053_v29 = vld [vmem:[%s3232_s1 + $0x3d8] sm:$0xf0]  ;;  %v2080_v46 = vor.u32 %v2254_v21, %v2077_v22 }
  0x73   : > { %1095 = vmatpush.bf16.msrb.mxu1 %v1886_v32  ;;  %v2035_v32 = vld [vmem:[%s3232_s1 + $0x3b0] sm:$0xf]  ;;  %v2056_v36 = vor.u32 %v2248_v24, %v2053_v29 }
  0x74   : > { %1134 = vmatpush.bf16.msrb.mxu2 %v1954_v33  ;;  %1110 = vmatpush.bf16.msrb.mxu3 %v1934_v38  ;;  %v2245_v33 = vld [vmem:[%s3232_s1 + $0x3b4] sm:$0xf0]  ;;  %v2262_v38 = vld [vmem:[%s3232_s1 + $0x444] sm:$0xf] }
  0x75   : > { %v2036_v41 = vor.u32 %v2245_v33, %v2035_v32  ;;  %v2112_v49 = vor.u32 %v2262_v38, %v2109_v39 }
  0x76   : > { %1120 = vmatpush.bf16.msrb.mxu0 %v1898_v47  ;;  %v2027_v47 = vld [vmem:[%s3232_s1 + $0x3a0] sm:$0xf] }
  0x77   : > { %1096 = vmatpush.bf16.msrb.mxu1 %v1878_v14  ;;  %1979 = vmatmul.msk.bf16.vlgmr.msrb.gmra.mxu3 %vm363_vm0, %v945_v54  ;;  %v2260_v14 = vld [vmem:[%s3232_s1 + $0x434] sm:$0xf]  ;;  %v2028_v52 = vor.u32 %v2243_v48, %v2027_v47 }
  0x78   : > { %1319 = vmatpush.bf16.msra.mxu3 %v2068_v43  ;;  %1135 = vmatpush.bf16.msrb.mxu2 %v1946_v35  ;;  %v2091_v43 = vld [vmem:[%s3232_s1 + $0x420] sm:$0xf]  ;;  %v2101_v35 = vld [vmem:[%s3232_s1 + $0x438] sm:$0xf0] }
  0x79   : > { %v2092_v51 = vor.u32 %v2259_v45, %v2091_v43 }
  0x7a   : > { %1121 = vmatpush.bf16.msrb.mxu0 %v1890_v61  ;;  %v2093_v61 = vld [vmem:[%s3232_s1 + $0x428] sm:$0xf0] }
  0x7b   : > { %1097 = vmatpush.bf16.msrb.mxu1 %v1870_v2  ;;  %v2255_v2 = vld [vmem:[%s3232_s1 + $0x404] sm:$0xf0]  ;;  %v2096_v6 = vor.u32 %v2258_v60, %v2093_v61 }
  0x7c   : > { %1320 = vmatpush.bf16.msra.mxu3 %v2060_v57  ;;  %1136 = vmatpush.bf16.msrb.mxu2 %v1938_v3  ;;  %v2104_v57 = vor.u32 %v2260_v14, %v2101_v35  ;;  %v2011_v3 = vld [vmem:[%s3232_s1 + $0x380] sm:$0xf] }
  0x7d   : > { %v2012_v11 = vor.u32 %v2239_v4, %v2011_v3 }
  0x7e   : > { %1098 = vmatmul.bf16.vlgmr.msrb.gmra.mxu1 %v937_v16  ;;  %1122 = vmatpush.bf16.msrb.mxu0 %v1882_v18  ;;  %v1174_v18 = vrot.slane %v2790_v44, 1  ;;  %v2013_v44 = vld [vmem:[%s3232_s1 + $0x388] sm:$0xf0] }
  0x7f   : > { %1334 = vmatpush.bf16.msra.mxu1 %v2116_v9  ;;  %1980 = vmatmul.msk.bf16.vlgmr.msrb.gmra.mxu2 %vm363_vm0, %v945_v54  ;;  %v2083_v54 = vld [vmem:[%s3232_s1 + $0x410] sm:$0xf]  ;;  %v2085_v9 = vld [vmem:[%s3232_s1 + $0x418] sm:$0xf0] }
  0x80   : > { %1345 = vmatpush.bf16.msra.mxu2 %v2072_v7  ;;  %1321 = vmatpush.bf16.msra.mxu3 %v2052_v10  ;;  %v2084_v62 = vor.u32 %v2257_v17, %v2083_v54  ;;  %v2032_v7 = vor.u32 %v2242_v59, %v2029_v0  ;;  %v2076_v10 = vor.u32 %v2255_v2, %v2075_v1 }
  0x82   : > { %1123 = vmatpush.bf16.msrb.mxu0 %v1874_v5 }
  0x83   : > { %1335 = vmatpush.bf16.msra.mxu1 %v2108_v27 }
  0x84   : > { %1346 = vmatpush.bf16.msra.mxu2 %v2064_v23  ;;  %1322 = vmatpush.bf16.msra.mxu3 %v2044_v28  ;;  %v2238_v23 = vld [vmem:[%s3232_s1 + $0x384] sm:$0xf] }
  0x85   : > { %1124 = vmatmul.bf16.vlgmr.msrb.gmra.mxu0 %v937_v16  ;;  %v2088_v16 = vor.u32 %v2256_v8, %v2085_v9  ;;  %v2016_v24 = vor.u32 %v2238_v23, %v2013_v44 }
  0x86   : > { %1360 = vmatpush.bf16.msra.mxu0 %v2120_v34  ;;  %v181_v34 = vld [vmem:[%s3233_s2] sm:$0x3] }
  0x87   : > { %1336 = vmatpush.bf16.msra.mxu1 %v2100_v40  ;;  %v184_v38 = vperm.slane %v181_v34, 1 }
  0x88   : > { %1347 = vmatpush.bf16.msra.mxu2 %v2056_v36  ;;  %1323 = vmatpush.bf16.msra.mxu3 %v2036_v41  ;;  %v183_v36 = vperm.slane %v181_v34, 0 }
  0x8a   : > { %1361 = vmatpush.bf16.msra.mxu0 %v2112_v49 }
  0x8b   : > { %1337 = vmatpush.bf16.msra.mxu1 %v2092_v51 }
  0x8c   : > { %1348 = vmatpush.bf16.msra.mxu2 %v2048_v15  ;;  %1324 = vmatpush.bf16.msra.mxu3 %v2028_v52 }
  0x8e   : > { %1362 = vmatpush.bf16.msra.mxu0 %v2104_v57 }
  0x8f   : > { %1338 = vmatpush.bf16.msra.mxu1 %v2084_v62 }
  0x90   : > { %1349 = vmatpush.bf16.msra.mxu2 %v2040_v58  ;;  %1325 = vmatpush.bf16.msra.mxu3 %v2020_v63 }
  0x92   : > { %1363 = vmatpush.bf16.msra.mxu0 %v2096_v6 }
  0x93   : > { %1339 = vmatpush.bf16.msra.mxu1 %v2076_v10 }
  0x94   : > { %1350 = vmatpush.bf16.msra.mxu2 %v2032_v7  ;;  %1326 = vmatpush.bf16.msra.mxu3 %v2012_v11 }
  0x96   : > { %1364 = vmatpush.bf16.msra.mxu0 %v2088_v16  ;;  %2121 = vmatmul.msk.bf16.vlgmr.msra.gmra.mxu1 %vm363_vm0, %v1174_v18 }
  0x97   : > { %1327 = vmatmul.bf16.vlgmr.msra.gmra.mxu3 %v1173_v19 }
  0x98   : > { %1351 = vmatpush.bf16.msra.mxu2 %v2024_v20 }
  0x9a   : > { %1365 = vmatpush.bf16.msra.mxu0 %v2080_v46 }
  0x9c   : > { %1352 = vmatpush.bf16.msra.mxu2 %v2016_v24 }
  0x9d   : > { %2122 = vmatmul.msk.bf16.vlgmr.msra.gmra.mxu0 %vm363_vm0, %v1174_v18 }
  0x9f   : > { %1353 = vmatmul.bf16.vlgmr.msra.gmra.mxu2 %v1173_v19 }
  0xaf   : > { %v389_v25 = vpop.f32.mrf.mxu1 }
  0xb1   : > { %v376_v26 = vpop.f32.mrf.mxu0 }
  0xb2   : > { %v390_v27 = vadd.f32 %v389_v25, %v376_v26 }
  0xb4   : > { %v402_v28 = vpop.f32.mrf.mxu2  ;;  %v415_v29 = vpop.f32.mrf.mxu3  ;;  %v419_v40 = vadd.f32 %v390_v27, %v183_v36 }
  0xb5   : > { %v416_v30 = vadd.f32 %v415_v29, %v402_v28 }
  0xb7   : > { %v391_v31 = vpop.f32.mrf.mxu1  ;;  %v420_v42 = vadd.f32 %v416_v30, %v184_v38 }
  0xb9   : > { %v378_v5 = vpop.f32.mrf.mxu0 }
  0xbc   : > { %v404_v32 = vpop.f32.mrf.mxu2  ;;  %v417_v33 = vpop.f32.mrf.mxu3 }
  0xc4   : > { %v626_v45 = vpop.f32.mrf.mxu3 }
  0xc5   : > { %v613_v37 = vpop.f32.mrf.mxu1 }
  0xc6   : > { %v627_v47 = vadd.f32 %v626_v45, %v613_v37 }
  0xc8   : > { %v656_v49 = vadd.f32 %v627_v47, %v419_v40 }
  0xc9   : > { %v652_v41 = vpop.f32.mrf.mxu2 }
  0xca   : > { %v639_v39 = vpop.f32.mrf.mxu0 }
  0xcb   : > { %v653_v43 = vadd.f32 %v652_v41, %v639_v39 }
  0xcc   : > { %v628_v35 = vpop.f32.mrf.mxu3 }
  0xcd   : > { %v657_v48 = vadd.f32 %v653_v43, %v420_v42  ;;  %v615_v15 = vpop.f32.mrf.mxu1 }
  0xd1   : > { %v654_v14 = vpop.f32.mrf.mxu2 }
  0xd2   : > { %v641_v50 = vpop.f32.mrf.mxu0 }
  0xdb   : > { %v869_v51 = vpop.f32.mrf.mxu1 }
  0xe2   : > { %v856_v52 = vpop.f32.mrf.mxu3  ;;  %v895_v53 = vpop.f32.mrf.mxu0 }
  0xe3   : > { %v871_v54 = vpop.f32.mrf.mxu1  ;;  %v870_v3 = vadd.f32 %v869_v51, %v856_v52 }
  0xe5   : > { %v899_v6 = vadd.f32 %v870_v3, %v656_v49 }
  0xea   : > { %v882_v17 = vpop.f32.mrf.mxu2  ;;  %v858_v55 = vpop.f32.mrf.mxu3 }
  0xeb   : > { %v897_v56 = vpop.f32.mrf.mxu0  ;;  %v896_v12 = vadd.f32 %v895_v53, %v882_v17 }
  0xed   : > { %v900_v19 = vadd.f32 %v896_v12, %v657_v48 }
  0xf2   : > { %v884_v57 = vpop.f32.mrf.mxu2 }
  0xfa   : > { %v1112_v59 = vpop.f32.mrf.mxu3 }
  0xfb   : > { %v1099_v58 = vpop.f32.mrf.mxu1 }
  0xfc   : > { %v1113_v4 = vadd.f32 %v1112_v59, %v1099_v58 }
  0xfe   : > { %v1142_v9 = vadd.f32 %v1113_v4, %v899_v6 }
 0x102   : > { %v1125_v60 = vpop.f32.mrf.mxu0  ;;  %v1138_v61 = vpop.f32.mrf.mxu2 }
 0x103   : > { %v1101_v62 = vpop.f32.mrf.mxu1  ;;  %v1114_v63 = vpop.f32.mrf.mxu3  ;;  %v1139_v16 = vadd.f32 %v1138_v61, %v1125_v60 }
 0x105   : > { %v1143_v21 = vadd.f32 %v1139_v16, %v900_v19 }
 0x10a   : > { %v1127_v0 = vpop.f32.mrf.mxu0  ;;  %v1140_v1 = vpop.f32.mrf.mxu2 }
 0x113   : > { %v1341_v2 = vpop.f32.mrf.mxu1 }
 0x11a   : > { %v1328_v7 = vpop.f32.mrf.mxu3  ;;  %v1367_v8 = vpop.f32.mrf.mxu0 }
 0x11b   : > { %v1342_v10 = vadd.f32 %v1341_v2, %v1328_v7  ;;  %v1343_v11 = vpop.f32.mrf.mxu1 }
 0x11d   : > { %v1371_v13 = vadd.f32 %v1342_v10, %v1142_v9 }
 0x11f   : > { %v1373_v18 = vmax.f32 %v1371_v13, 0.0 }
 0x121   : > { %1375 = vst [vmem:[%s170_s6] sm:$0xff] %v1373_v18 }
 0x122   : > { %v1354_v20 = vpop.f32.mrf.mxu2  ;;  %v1330_v22 = vpop.f32.mrf.mxu3 }
 0x123   : > { %v1368_v23 = vadd.f32 %v1367_v8, %v1354_v20  ;;  %v1369_v44 = vpop.f32.mrf.mxu0 }
 0x125   : > { %v1372_v46 = vadd.f32 %v1368_v23, %v1143_v21 }
 0x127   : > { %v1374_v24 = vmax.f32 %v1372_v46, 0.0 }
 0x129   : > { %1377 = vst.msk [vmem:[%s170_s6 + $0x8] sm:$0xff] %vm1376_vm1, %v1374_v24 }
 0x12a   : > { %v1356_v25 = vpop.f32.mrf.mxu2 }
 0x12b PF: > { %s13_s12 = sadd.s32 1, %s2281_s12  }
 0x12c   : > { %p10_p4 = scmp.ge.s32.totalorder %s13_s12, 4  }
 0x12e   :  { %12 = sbr.rel (!%p10_p4) target bundleno = 1 (0x1), region = 66 }

// kernel: forward.17
= control target key start
LH: loop header
LB: loop body
LE: loop exit
PB: predicated region body
PF: predicated region fallthrough
CT: control target
= control target key end

     0   :  { %15 = vsyncpa [#allocation3], 0  ;;  %s3752_s0 = inlined_call_operand.vmem [shape: f32[2,1536], index: 0, kind: input, shape index: {}]   ;;  %s3753_s1 = inlined_call_operand.vmem [shape: bf16[1536,16], index: 1, kind: input, shape index: {}]   ;;  %s3754_s2 = inlined_call_operand.vmem [shape: bf16[1536,16], index: 2, kind: input, shape index: {}]   ;;  %s3755_s3 = inlined_call_operand.vmem [shape: f32[1,16], index: 3, kind: input, shape index: {}]   ;;  %s3756_s4 = inlined_call_operand.vmem [shape: f32[1,16], index: 4, kind: input, shape index: {}]   ;;  %s3757_s5 = inlined_call_operand.vmem [shape: f32[2,16], index: 5, kind: input, shape index: {}]   ;;  %s3758_s6 = inlined_call_operand.hbm [shape: f32[2,16], index: 6, kind: output, shape index: {0}]   ;;  %s3759_s7 = inlined_call_operand.hbm [shape: f32[2,16], index: 7, kind: output, shape index: {1}]   ;;  %s3760_s8 = inlined_call_operand.hbm [shape: f32[2,16], index: 8, kind: output, shape index: {2}]   ;;  %s3761_s9 = inlined_call_operand.vmem [shape: f32[2,16], index: 9, kind: output, shape index: {3}]  }
   0x1   :  { %v2769_v0 = vld [vmem:[%s3753_s1 + $0x38] sm:$0xff]  ;;  %v2768_v4 = vld [vmem:[%s3753_s1 + $0x30] sm:$0xff]  ;;  %v2767_v8 = vld [vmem:[%s3753_s1 + $0x28] sm:$0xff] }
   0x2   :  { %v2777_v1 = vld [vmem:[%s3753_s1 + $0x78] sm:$0xff]  ;;  %847 = vmatpush.bf16.msra.mxu0 %v2769_v0  ;;  %v2776_v5 = vld [vmem:[%s3753_s1 + $0x70] sm:$0xff]  ;;  %v2775_v9 = vld [vmem:[%s3753_s1 + $0x68] sm:$0xff] }
   0x3   :  { %v2785_v2 = vld [vmem:[%s3753_s1 + $0xb8] sm:$0xff]  ;;  %860 = vmatpush.bf16.msra.mxu1 %v2777_v1  ;;  %v2784_v6 = vld [vmem:[%s3753_s1 + $0xb0] sm:$0xff]  ;;  %v2783_v10 = vld [vmem:[%s3753_s1 + $0xa8] sm:$0xff] }
   0x4   :  { %v2793_v3 = vld [vmem:[%s3753_s1 + $0xf8] sm:$0xff]  ;;  %873 = vmatpush.bf16.msra.mxu2 %v2785_v2  ;;  %v2792_v7 = vld [vmem:[%s3753_s1 + $0xf0] sm:$0xff]  ;;  %v2791_v11 = vld [vmem:[%s3753_s1 + $0xe8] sm:$0xff] }
   0x5   :  { %886 = vmatpush.bf16.msra.mxu3 %v2793_v3  ;;  %v2766_v12 = vld [vmem:[%s3753_s1 + $0x20] sm:$0xff]  ;;  %v2765_v16 = vld [vmem:[%s3753_s1 + $0x18] sm:$0xff]  ;;  %v2764_v20 = vld [vmem:[%s3753_s1 + $0x10] sm:$0xff] }
   0x6   :  { %848 = vmatpush.bf16.msra.mxu0 %v2768_v4  ;;  %v2774_v13 = vld [vmem:[%s3753_s1 + $0x60] sm:$0xff]  ;;  %v2773_v17 = vld [vmem:[%s3753_s1 + $0x58] sm:$0xff]  ;;  %v2772_v21 = vld [vmem:[%s3753_s1 + $0x50] sm:$0xff] }
   0x7   :  { %861 = vmatpush.bf16.msra.mxu1 %v2776_v5  ;;  %v2782_v14 = vld [vmem:[%s3753_s1 + $0xa0] sm:$0xff]  ;;  %v2781_v18 = vld [vmem:[%s3753_s1 + $0x98] sm:$0xff]  ;;  %v2780_v23 = vld [vmem:[%s3753_s1 + $0x90] sm:$0xff] }
   0x8   :  { %874 = vmatpush.bf16.msra.mxu2 %v2784_v6  ;;  %v2790_v15 = vld [vmem:[%s3753_s1 + $0xe0] sm:$0xff]  ;;  %v2789_v19 = vld [vmem:[%s3753_s1 + $0xd8] sm:$0xff]  ;;  %v2788_v24 = vld [vmem:[%s3753_s1 + $0xd0] sm:$0xff] }
   0x9   :  { %887 = vmatpush.bf16.msra.mxu3 %v2792_v7  ;;  %v29_v22 = vld [vmem:[%s3752_s0] sm:$0xff] }
   0xa   :  { %849 = vmatpush.bf16.msra.mxu0 %v2767_v8  ;;  %35 = vst [vmem:[#allocation1] ss:$4 sm:$0xff] %v29_v22 }
   0xb   :  { %862 = vmatpush.bf16.msra.mxu1 %v2775_v9 }
   0xc   :  { %875 = vmatpush.bf16.msra.mxu2 %v2783_v10 }
   0xd   :  { %888 = vmatpush.bf16.msra.mxu3 %v2791_v11 }
   0xe   :  { %850 = vmatpush.bf16.msra.mxu0 %v2766_v12 }
   0xf   :  { %863 = vmatpush.bf16.msra.mxu1 %v2774_v13 }
  0x10   :  { %876 = vmatpush.bf16.msra.mxu2 %v2782_v14 }
  0x11   :  { %889 = vmatpush.bf16.msra.mxu3 %v2790_v15 }
  0x12   :  { %851 = vmatpush.bf16.msra.mxu0 %v2765_v16 }
  0x13   :  { %864 = vmatpush.bf16.msra.mxu1 %v2773_v17 }
  0x14   :  { %877 = vmatpush.bf16.msra.mxu2 %v2781_v18 }
  0x15   :  { %890 = vmatpush.bf16.msra.mxu3 %v2789_v19 }
  0x16   :  { %16 = vsyncpa [#allocation5], 0  ;;  %852 = vmatpush.bf16.msra.mxu0 %v2764_v20  ;;  %v2763_v25 = vld [vmem:[%s3753_s1 + $0x8] sm:$0xff]  ;;  %v2762_v29 = vld [vmem:[%s3753_s1] sm:$0xff]  ;;  %s1950_s23 = sshll.u32 %s3758_s6, 4  ;;  %vm1938_vm0 = vcmask 123904   ;;  %s1951_s23 = int_to_ptr.hbm [resolvable:$true] %s1950_s23 }
  0x17   :  { %865 = vmatpush.bf16.msra.mxu1 %v2772_v21  ;;  %v2771_v26 = vld [vmem:[%s3753_s1 + $0x48] sm:$0xff]  ;;  %v2770_v30 = vld [vmem:[%s3753_s1 + $0x40] sm:$0xff]  ;;  %v40_v32 = vld.sshfl [vmem:[#allocation1 + $0x10] sm:$0xff pattern:$0x73625140]  ;;  %s1961_s27 = sshll.u32 %s3759_s7, 4  ;;  %s1962_s27 = int_to_ptr.hbm [resolvable:$true] %s1961_s27 }
  0x18   :  { %878 = vmatpush.bf16.msra.mxu2 %v2780_v23  ;;  %v2779_v27 = vld [vmem:[%s3753_s1 + $0x88] sm:$0xff]  ;;  %v2778_v31 = vld [vmem:[%s3753_s1 + $0x80] sm:$0xff]  ;;  %v31_v35 = vld [vmem:[%s3752_s0 + $0x10] sm:$0xff]  ;;  %v3207_v43 = vpack.c.bf16 %v40_v32, %v40_v32  ;;  %s3039_s28 = smov [#allocation6]   ;;  %s1972_s7 = sshll.u32 %s3760_s8, 4  ;;  %s1973_s7 = int_to_ptr.hbm [resolvable:$true] %s1972_s7 }
  0x19   :  { %891 = vmatpush.bf16.msra.mxu3 %v2788_v24  ;;  %v2787_v28 = vld [vmem:[%s3753_s1 + $0xc8] sm:$0xff]  ;;  %v2786_v33 = vld [vmem:[%s3753_s1 + $0xc0] sm:$0xff]  ;;  %v41_v36 = vld.sshfl [vmem:[#allocation1 + $0x18] sm:$0xff pattern:$0x73625140]  ;;  %s1970_s29 = sshll.u32 %s3039_s28, 4  ;;  %s1971_s29 = int_to_ptr.vmem [resolvable:$true] %s1970_s29 }
  0x1a   :  { %853 = vmatpush.bf16.msra.mxu0 %v2763_v25  ;;  %v38_v34 = vld.sshfl [vmem:[#allocation1] sm:$0xff pattern:$0x73625140]  ;;  %v39_v37 = vld.sshfl [vmem:[#allocation1 + $0x8] sm:$0xff pattern:$0x73625140]  ;;  %v3211_v45 = vpack.c.bf16 %v41_v36, %v41_v36 }
  0x1b   :  { %866 = vmatpush.bf16.msra.mxu1 %v2771_v26  ;;  %v2801_v38 = vld [vmem:[%s3753_s1 + $0x138] sm:$0xff]  ;;  %46 = vst [vmem:[#allocation1] ss:$4 sm:$0xff] %v31_v35  ;;  %v30_v42 = vld [vmem:[%s3752_s0 + $0x8] sm:$0xff]  ;;  %v3209_v44 = vpack.c.bf16 %v38_v34, %v38_v34  ;;  %v3213_v46 = vpack.c.bf16 %v39_v37, %v39_v37  ;;  %v2800_v47 = vld [vmem:[%s3753_s1 + $0x130] sm:$0xff] }
  0x1c   :  { %879 = vmatpush.bf16.msra.mxu2 %v2779_v27  ;;  %v2809_v39 = vld [vmem:[%s3753_s1 + $0x178] sm:$0xff]  ;;  %37 = vst [vmem:[#allocation1 + $0x20] ss:$4 sm:$0xff] %v30_v42  ;;  %v2808_v48 = vld [vmem:[%s3753_s1 + $0x170] sm:$0xff]  ;;  %v2799_v51 = vld [vmem:[%s3753_s1 + $0x128] sm:$0xff] }
  0x1d   :  { %892 = vmatpush.bf16.msra.mxu3 %v2787_v28  ;;  %v2817_v40 = vld [vmem:[%s3753_s1 + $0x1b8] sm:$0xff]  ;;  %v2816_v49 = vld [vmem:[%s3753_s1 + $0x1b0] sm:$0xff]  ;;  %v2807_v52 = vld [vmem:[%s3753_s1 + $0x168] sm:$0xff] }
  0x1e   :  { %v2825_v41 = vld [vmem:[%s3753_s1 + $0x1f8] sm:$0xff]  ;;  %854 = vmatpush.bf16.msra.mxu0 %v2762_v29  ;;  %v2824_v50 = vld [vmem:[%s3753_s1 + $0x1f0] sm:$0xff]  ;;  %v2815_v53 = vld [vmem:[%s3753_s1 + $0x1a8] sm:$0xff] }
  0x1f   :  { %867 = vmatpush.bf16.msra.mxu1 %v2770_v30  ;;  %v2823_v54 = vld [vmem:[%s3753_s1 + $0x1e8] sm:$0xff]  ;;  %v2798_v55 = vld [vmem:[%s3753_s1 + $0x120] sm:$0xff]  ;;  %v2797_v59 = vld [vmem:[%s3753_s1 + $0x118] sm:$0xff] }
  0x20   :  { %880 = vmatpush.bf16.msra.mxu2 %v2778_v31  ;;  %v2806_v56 = vld [vmem:[%s3753_s1 + $0x160] sm:$0xff]  ;;  %v2805_v60 = vld [vmem:[%s3753_s1 + $0x158] sm:$0xff]  ;;  %v2796_v63 = vld [vmem:[%s3753_s1 + $0x110] sm:$0xff] }
  0x21   :  { %893 = vmatpush.bf16.msra.mxu3 %v2786_v33  ;;  %855 = vmatmul.bf16.vlgmr.msra.gmra.mxu0 %v3209_v44  ;;  %v2814_v57 = vld [vmem:[%s3753_s1 + $0x1a0] sm:$0xff]  ;;  %v2813_v61 = vld [vmem:[%s3753_s1 + $0x198] sm:$0xff]  ;;  %v2804_v0 = vld [vmem:[%s3753_s1 + $0x150] sm:$0xff] }
  0x22   :  { %899 = vmatpush.bf16.msrb.mxu0 %v2801_v38  ;;  %868 = vmatmul.bf16.vlgmr.msra.gmra.mxu1 %v3213_v46  ;;  %v2822_v58 = vld [vmem:[%s3753_s1 + $0x1e0] sm:$0xff]  ;;  %v2821_v62 = vld [vmem:[%s3753_s1 + $0x1d8] sm:$0xff]  ;;  %v2812_v1 = vld [vmem:[%s3753_s1 + $0x190] sm:$0xff] }
  0x23   :  { %912 = vmatpush.bf16.msrb.mxu1 %v2809_v39  ;;  %881 = vmatmul.bf16.vlgmr.msra.gmra.mxu2 %v3207_v43  ;;  %v2820_v2 = vld [vmem:[%s3753_s1 + $0x1d0] sm:$0xff]  ;;  %v2795_v3 = vld [vmem:[%s3753_s1 + $0x108] sm:$0xff]  ;;  %v2794_v7 = vld [vmem:[%s3753_s1 + $0x100] sm:$0xff] }
  0x24   :  { %925 = vmatpush.bf16.msrb.mxu2 %v2817_v40  ;;  %894 = vmatmul.bf16.vlgmr.msra.gmra.mxu3 %v3211_v45  ;;  %v2803_v4 = vld [vmem:[%s3753_s1 + $0x148] sm:$0xff]  ;;  %v2802_v8 = vld [vmem:[%s3753_s1 + $0x140] sm:$0xff]  ;;  %v2833_v11 = vld [vmem:[%s3753_s1 + $0x238] sm:$0xff] }
  0x25   :  { %938 = vmatpush.bf16.msrb.mxu3 %v2825_v41  ;;  %v2811_v5 = vld [vmem:[%s3753_s1 + $0x188] sm:$0xff]  ;;  %v2810_v9 = vld [vmem:[%s3753_s1 + $0x180] sm:$0xff]  ;;  %v2841_v12 = vld [vmem:[%s3753_s1 + $0x278] sm:$0xff] }
  0x26   :  { %900 = vmatpush.bf16.msrb.mxu0 %v2800_v47  ;;  %v2819_v6 = vld [vmem:[%s3753_s1 + $0x1c8] sm:$0xff]  ;;  %v2818_v10 = vld [vmem:[%s3753_s1 + $0x1c0] sm:$0xff]  ;;  %v44_v13 = vld.sshfl [vmem:[#allocation1 + $0x30] sm:$0xff pattern:$0x73625140] }
  0x27   :  { %913 = vmatpush.bf16.msrb.mxu1 %v2808_v48  ;;  %v42_v14 = vld.sshfl [vmem:[#allocation1 + $0x20] sm:$0xff pattern:$0x73625140]  ;;  %v45_v15 = vld.sshfl [vmem:[#allocation1 + $0x38] sm:$0xff pattern:$0x73625140]  ;;  %v3315_v19 = vpack.c.bf16 %v44_v13, %v44_v13 }
  0x28   :  { %926 = vmatpush.bf16.msrb.mxu2 %v2816_v49  ;;  %v43_v16 = vld.sshfl [vmem:[#allocation1 + $0x28] sm:$0xff pattern:$0x73625140]  ;;  %v2849_v17 = vld [vmem:[%s3753_s1 + $0x2b8] sm:$0xff]  ;;  %v3317_v20 = vpack.c.bf16 %v42_v14, %v42_v14  ;;  %v3319_v21 = vpack.c.bf16 %v45_v15, %v45_v15  ;;  %v2832_v23 = vld [vmem:[%s3753_s1 + $0x230] sm:$0xff] }
  0x29   :  { %939 = vmatpush.bf16.msrb.mxu3 %v2824_v50  ;;  %v2857_v18 = vld [vmem:[%s3753_s1 + $0x2f8] sm:$0xff]  ;;  %v3321_v22 = vpack.c.bf16 %v43_v16, %v43_v16  ;;  %v2840_v24 = vld [vmem:[%s3753_s1 + $0x270] sm:$0xff]  ;;  %v2831_v27 = vld [vmem:[%s3753_s1 + $0x228] sm:$0xff] }
  0x2a   :  { %901 = vmatpush.bf16.msrb.mxu0 %v2799_v51  ;;  %v2848_v25 = vld [vmem:[%s3753_s1 + $0x2b0] sm:$0xff]  ;;  %v2839_v28 = vld [vmem:[%s3753_s1 + $0x268] sm:$0xff]  ;;  %v2830_v31 = vld [vmem:[%s3753_s1 + $0x220] sm:$0xff] }
  0x2b   :  { %914 = vmatpush.bf16.msrb.mxu1 %v2807_v52  ;;  %v2856_v26 = vld [vmem:[%s3753_s1 + $0x2f0] sm:$0xff]  ;;  %v2847_v29 = vld [vmem:[%s3753_s1 + $0x2a8] sm:$0xff]  ;;  %v2838_v32 = vld [vmem:[%s3753_s1 + $0x260] sm:$0xff] }
  0x2c   :  { %927 = vmatpush.bf16.msrb.mxu2 %v2815_v53  ;;  %v2855_v30 = vld [vmem:[%s3753_s1 + $0x2e8] sm:$0xff]  ;;  %v2846_v33 = vld [vmem:[%s3753_s1 + $0x2a0] sm:$0xff]  ;;  %v2829_v35 = vld [vmem:[%s3753_s1 + $0x218] sm:$0xff] }
  0x2d   :  { %940 = vmatpush.bf16.msrb.mxu3 %v2823_v54  ;;  %v2854_v34 = vld [vmem:[%s3753_s1 + $0x2e0] sm:$0xff]  ;;  %v2837_v36 = vld [vmem:[%s3753_s1 + $0x258] sm:$0xff]  ;;  %v2828_v39 = vld [vmem:[%s3753_s1 + $0x210] sm:$0xff] }
  0x2e   :  { %902 = vmatpush.bf16.msrb.mxu0 %v2798_v55  ;;  %v2845_v37 = vld [vmem:[%s3753_s1 + $0x298] sm:$0xff]  ;;  %v2836_v40 = vld [vmem:[%s3753_s1 + $0x250] sm:$0xff]  ;;  %v2827_v47 = vld [vmem:[%s3753_s1 + $0x208] sm:$0xff] }
  0x2f   :  { %915 = vmatpush.bf16.msrb.mxu1 %v2806_v56  ;;  %v2853_v38 = vld [vmem:[%s3753_s1 + $0x2d8] sm:$0xff]  ;;  %v2844_v41 = vld [vmem:[%s3753_s1 + $0x290] sm:$0xff]  ;;  %v2835_v48 = vld [vmem:[%s3753_s1 + $0x248] sm:$0xff] }
  0x30   :  { %928 = vmatpush.bf16.msrb.mxu2 %v2814_v57  ;;  %v2852_v42 = vld [vmem:[%s3753_s1 + $0x2d0] sm:$0xff]  ;;  %v2843_v49 = vld [vmem:[%s3753_s1 + $0x288] sm:$0xff]  ;;  %v2826_v51 = vld [vmem:[%s3753_s1 + $0x200] sm:$0xff] }
  0x31   :  { %941 = vmatpush.bf16.msrb.mxu3 %v2822_v58  ;;  %v2851_v50 = vld [vmem:[%s3753_s1 + $0x2c8] sm:$0xff]  ;;  %v2834_v52 = vld [vmem:[%s3753_s1 + $0x240] sm:$0xff]  ;;  %v2865_v55 = vld [vmem:[%s3754_s2 + $0x38] sm:$0xff] }
  0x32   :  { %903 = vmatpush.bf16.msrb.mxu0 %v2797_v59  ;;  %v2842_v53 = vld [vmem:[%s3753_s1 + $0x280] sm:$0xff]  ;;  %v2873_v56 = vld [vmem:[%s3754_s2 + $0x78] sm:$0xff]  ;;  %v49_v58 = vld.sshfl [vmem:[#allocation1 + $0x10] sm:$0xff pattern:$0x73625140] }
  0x33   :  { %916 = vmatpush.bf16.msrb.mxu1 %v2805_v60  ;;  %v2850_v54 = vld [vmem:[%s3753_s1 + $0x2c0] sm:$0xff]  ;;  %v48_v59 = vld.sshfl [vmem:[#allocation1 + $0x8] sm:$0xff pattern:$0x73625140]  ;;  %v2861_v15 = vld [vmem:[%s3754_s2 + $0x18] sm:$0xff] }
  0x34   :  { %929 = vmatpush.bf16.msrb.mxu2 %v2813_v61  ;;  %v47_v57 = vld.sshfl [vmem:[#allocation1] sm:$0xff pattern:$0x73625140]  ;;  %v50_v60 = vld.sshfl [vmem:[#allocation1 + $0x18] sm:$0xff pattern:$0x73625140] }
  0x35   :  { %942 = vmatpush.bf16.msrb.mxu3 %v2821_v62  ;;  %v2881_v61 = vld [vmem:[%s3754_s2 + $0xb8] sm:$0xff]  ;;  %v2878_v13 = vld [vmem:[%s3754_s2 + $0xa0] sm:$0xff] }
  0x36   :  { %904 = vmatpush.bf16.msrb.mxu0 %v2796_v63  ;;  %v2889_v62 = vld [vmem:[%s3754_s2 + $0xf8] sm:$0xff]  ;;  %v3423_v63 = vpack.c.bf16 %v47_v57, %v47_v57  ;;  %v2886_v14 = vld [vmem:[%s3754_s2 + $0xe0] sm:$0xff]  ;;  %v2908_v57 = vld [vmem:[%s3754_s2 + $0x190] sm:$0xff] }
  0x37   :  { %917 = vmatpush.bf16.msrb.mxu1 %v2804_v0  ;;  %v3425_v0 = vpack.c.bf16 %v49_v58, %v49_v58  ;;  %v2869_v16 = vld [vmem:[%s3754_s2 + $0x58] sm:$0xff]  ;;  %v2916_v58 = vld [vmem:[%s3754_s2 + $0x1d0] sm:$0xff] }
  0x38   :  { %930 = vmatpush.bf16.msrb.mxu2 %v2812_v1  ;;  %v3427_v1 = vpack.c.bf16 %v48_v59, %v48_v59  ;;  %v2891_v59 = vld [vmem:[%s3754_s2 + $0x108] sm:$0xff] }
  0x39   :  { %943 = vmatpush.bf16.msrb.mxu3 %v2820_v2  ;;  %v3429_v2 = vpack.c.bf16 %v50_v60, %v50_v60  ;;  %v2899_v60 = vld [vmem:[%s3754_s2 + $0x148] sm:$0xff] }
  0x3a   :  { %905 = vmatpush.bf16.msrb.mxu0 %v2795_v3  ;;  %v2864_v3 = vld [vmem:[%s3754_s2 + $0x30] sm:$0xff] }
  0x3b   :  { %918 = vmatpush.bf16.msrb.mxu1 %v2803_v4  ;;  %v2872_v4 = vld [vmem:[%s3754_s2 + $0x70] sm:$0xff] }
  0x3c   :  { %931 = vmatpush.bf16.msrb.mxu2 %v2811_v5  ;;  %v2880_v5 = vld [vmem:[%s3754_s2 + $0xb0] sm:$0xff] }
  0x3d   :  { %944 = vmatpush.bf16.msrb.mxu3 %v2819_v6  ;;  %v2888_v6 = vld [vmem:[%s3754_s2 + $0xf0] sm:$0xff] }
  0x3e   :  { %906 = vmatpush.bf16.msrb.mxu0 %v2794_v7  ;;  %v2863_v7 = vld [vmem:[%s3754_s2 + $0x28] sm:$0xff] }
  0x3f   :  { %919 = vmatpush.bf16.msrb.mxu1 %v2802_v8  ;;  %v2871_v8 = vld [vmem:[%s3754_s2 + $0x68] sm:$0xff] }
  0x40   :  { %932 = vmatpush.bf16.msrb.mxu2 %v2810_v9  ;;  %v2879_v9 = vld [vmem:[%s3754_s2 + $0xa8] sm:$0xff] }
  0x41   :  { %945 = vmatpush.bf16.msrb.mxu3 %v2818_v10  ;;  %907 = vmatmul.bf16.vlgmr.msrb.gmra.mxu0 %v3317_v20  ;;  %v2887_v10 = vld [vmem:[%s3754_s2 + $0xe8] sm:$0xff] }
  0x42   :  { %951 = vmatpush.bf16.msra.mxu0 %v2833_v11  ;;  %920 = vmatmul.bf16.vlgmr.msrb.gmra.mxu1 %v3321_v22  ;;  %v2862_v11 = vld [vmem:[%s3754_s2 + $0x20] sm:$0xff] }
  0x43   :  { %964 = vmatpush.bf16.msra.mxu1 %v2841_v12  ;;  %933 = vmatmul.bf16.vlgmr.msrb.gmra.mxu2 %v3315_v19  ;;  %v2870_v12 = vld [vmem:[%s3754_s2 + $0x60] sm:$0xff] }
  0x44   :  { %977 = vmatpush.bf16.msra.mxu2 %v2849_v17  ;;  %946 = vmatmul.bf16.vlgmr.msrb.gmra.mxu3 %v3319_v21  ;;  %v2877_v17 = vld [vmem:[%s3754_s2 + $0x98] sm:$0xff] }
  0x45   :  { %990 = vmatpush.bf16.msra.mxu3 %v2857_v18  ;;  %v2885_v18 = vld [vmem:[%s3754_s2 + $0xd8] sm:$0xff] }
  0x46   :  { %952 = vmatpush.bf16.msra.mxu0 %v2832_v23  ;;  %v2860_v23 = vld [vmem:[%s3754_s2 + $0x10] sm:$0xff] }
  0x47   :  { %965 = vmatpush.bf16.msra.mxu1 %v2840_v24  ;;  %v2868_v24 = vld [vmem:[%s3754_s2 + $0x50] sm:$0xff] }
  0x48   :  { %978 = vmatpush.bf16.msra.mxu2 %v2848_v25  ;;  %v2876_v25 = vld [vmem:[%s3754_s2 + $0x90] sm:$0xff] }
  0x49   :  { %991 = vmatpush.bf16.msra.mxu3 %v2856_v26  ;;  %v2884_v26 = vld [vmem:[%s3754_s2 + $0xd0] sm:$0xff] }
  0x4a   :  { %953 = vmatpush.bf16.msra.mxu0 %v2831_v27  ;;  %v2859_v27 = vld [vmem:[%s3754_s2 + $0x8] sm:$0xff] }
  0x4b   :  { %966 = vmatpush.bf16.msra.mxu1 %v2839_v28  ;;  %v2867_v28 = vld [vmem:[%s3754_s2 + $0x48] sm:$0xff] }
  0x4c   :  { %979 = vmatpush.bf16.msra.mxu2 %v2847_v29  ;;  %v2875_v29 = vld [vmem:[%s3754_s2 + $0x88] sm:$0xff] }
  0x4d   :  { %992 = vmatpush.bf16.msra.mxu3 %v2855_v30  ;;  %v2883_v30 = vld [vmem:[%s3754_s2 + $0xc8] sm:$0xff] }
  0x4e   :  { %954 = vmatpush.bf16.msra.mxu0 %v2830_v31  ;;  %v2858_v31 = vld [vmem:[%s3754_s2] sm:$0xff] }
  0x4f   :  { %967 = vmatpush.bf16.msra.mxu1 %v2838_v32  ;;  %v2866_v32 = vld [vmem:[%s3754_s2 + $0x40] sm:$0xff] }
  0x50   :  { %980 = vmatpush.bf16.msra.mxu2 %v2846_v33  ;;  %v2874_v33 = vld [vmem:[%s3754_s2 + $0x80] sm:$0xff] }
  0x51   :  { %993 = vmatpush.bf16.msra.mxu3 %v2854_v34  ;;  %v2882_v34 = vld [vmem:[%s3754_s2 + $0xc0] sm:$0xff] }
  0x52   :  { %955 = vmatpush.bf16.msra.mxu0 %v2829_v35  ;;  %v2897_v35 = vld [vmem:[%s3754_s2 + $0x138] sm:$0xff] }
  0x53   :  { %968 = vmatpush.bf16.msra.mxu1 %v2837_v36  ;;  %v2905_v36 = vld [vmem:[%s3754_s2 + $0x178] sm:$0xff] }
  0x54   :  { %981 = vmatpush.bf16.msra.mxu2 %v2845_v37  ;;  %v2913_v37 = vld [vmem:[%s3754_s2 + $0x1b8] sm:$0xff] }
  0x55   :  { %994 = vmatpush.bf16.msra.mxu3 %v2853_v38  ;;  %v2921_v38 = vld [vmem:[%s3754_s2 + $0x1f8] sm:$0xff] }
  0x56   :  { %956 = vmatpush.bf16.msra.mxu0 %v2828_v39  ;;  %v2896_v39 = vld [vmem:[%s3754_s2 + $0x130] sm:$0xff] }
  0x57   :  { %969 = vmatpush.bf16.msra.mxu1 %v2836_v40  ;;  %v2904_v40 = vld [vmem:[%s3754_s2 + $0x170] sm:$0xff] }
  0x58   :  { %982 = vmatpush.bf16.msra.mxu2 %v2844_v41  ;;  %v2912_v41 = vld [vmem:[%s3754_s2 + $0x1b0] sm:$0xff] }
  0x59   :  { %995 = vmatpush.bf16.msra.mxu3 %v2852_v42  ;;  %v2920_v42 = vld [vmem:[%s3754_s2 + $0x1f0] sm:$0xff] }
  0x5a   :  { %957 = vmatpush.bf16.msra.mxu0 %v2827_v47  ;;  %v2895_v47 = vld [vmem:[%s3754_s2 + $0x128] sm:$0xff] }
  0x5b   :  { %970 = vmatpush.bf16.msra.mxu1 %v2835_v48  ;;  %v2903_v48 = vld [vmem:[%s3754_s2 + $0x168] sm:$0xff] }
  0x5c   :  { %983 = vmatpush.bf16.msra.mxu2 %v2843_v49  ;;  %v2910_v49 = vld [vmem:[%s3754_s2 + $0x1a0] sm:$0xff] }
  0x5d   :  { %996 = vmatpush.bf16.msra.mxu3 %v2851_v50  ;;  %v2918_v50 = vld [vmem:[%s3754_s2 + $0x1e0] sm:$0xff] }
  0x5e   :  { %958 = vmatpush.bf16.msra.mxu0 %v2826_v51  ;;  %v2893_v51 = vld [vmem:[%s3754_s2 + $0x118] sm:$0xff] }
  0x5f   :  { %971 = vmatpush.bf16.msra.mxu1 %v2834_v52  ;;  %v2901_v52 = vld [vmem:[%s3754_s2 + $0x158] sm:$0xff] }
  0x60   :  { %984 = vmatpush.bf16.msra.mxu2 %v2842_v53  ;;  %v2909_v53 = vld [vmem:[%s3754_s2 + $0x198] sm:$0xff] }
  0x61   :  { %997 = vmatpush.bf16.msra.mxu3 %v2850_v54  ;;  %959 = vmatmul.bf16.vlgmr.msra.gmra.mxu0 %v3423_v63  ;;  %v2917_v54 = vld [vmem:[%s3754_s2 + $0x1d8] sm:$0xff] }
  0x62   :  { %1775 = vmatpush.bf16.msrb.mxu0 %v2865_v55  ;;  %972 = vmatmul.bf16.vlgmr.msra.gmra.mxu1 %v3427_v1  ;;  %v2892_v55 = vld [vmem:[%s3754_s2 + $0x110] sm:$0xff] }
  0x63   :  { %1788 = vmatpush.bf16.msrb.mxu1 %v2873_v56  ;;  %985 = vmatmul.bf16.vlgmr.msra.gmra.mxu2 %v3425_v0  ;;  %v2900_v56 = vld [vmem:[%s3754_s2 + $0x150] sm:$0xff] }
  0x64   :  { %1801 = vmatpush.bf16.msrb.mxu2 %v2881_v61  ;;  %998 = vmatmul.bf16.vlgmr.msra.gmra.mxu3 %v3429_v2  ;;  %v2907_v61 = vld [vmem:[%s3754_s2 + $0x188] sm:$0xff] }
  0x65   :  { %1814 = vmatpush.bf16.msrb.mxu3 %v2889_v62  ;;  %v2915_v62 = vld [vmem:[%s3754_s2 + $0x1c8] sm:$0xff] }
  0x66   :  { %1776 = vmatpush.bf16.msrb.mxu0 %v2864_v3  ;;  %v2890_v3 = vld [vmem:[%s3754_s2 + $0x100] sm:$0xff] }
  0x67   :  { %1789 = vmatpush.bf16.msrb.mxu1 %v2872_v4  ;;  %v2898_v4 = vld [vmem:[%s3754_s2 + $0x140] sm:$0xff] }
  0x68   :  { %1802 = vmatpush.bf16.msrb.mxu2 %v2880_v5  ;;  %v2906_v5 = vld [vmem:[%s3754_s2 + $0x180] sm:$0xff] }
  0x69   :  { %1815 = vmatpush.bf16.msrb.mxu3 %v2888_v6  ;;  %v2914_v6 = vld [vmem:[%s3754_s2 + $0x1c0] sm:$0xff] }
  0x6a   :  { %1777 = vmatpush.bf16.msrb.mxu0 %v2863_v7  ;;  %v2929_v7 = vld [vmem:[%s3754_s2 + $0x238] sm:$0xff] }
  0x6b   :  { %1790 = vmatpush.bf16.msrb.mxu1 %v2871_v8  ;;  %v2937_v8 = vld [vmem:[%s3754_s2 + $0x278] sm:$0xff] }
  0x6c   :  { %1803 = vmatpush.bf16.msrb.mxu2 %v2879_v9  ;;  %v2945_v9 = vld [vmem:[%s3754_s2 + $0x2b8] sm:$0xff] }
  0x6d   :  { %1816 = vmatpush.bf16.msrb.mxu3 %v2887_v10  ;;  %v2953_v10 = vld [vmem:[%s3754_s2 + $0x2f8] sm:$0xff] }
  0x6e   :  { %1778 = vmatpush.bf16.msrb.mxu0 %v2862_v11  ;;  %v2928_v11 = vld [vmem:[%s3754_s2 + $0x230] sm:$0xff] }
  0x6f   :  { %1791 = vmatpush.bf16.msrb.mxu1 %v2870_v12  ;;  %v2936_v12 = vld [vmem:[%s3754_s2 + $0x270] sm:$0xff] }
  0x70   :  { %1804 = vmatpush.bf16.msrb.mxu2 %v2878_v13  ;;  %v2944_v13 = vld [vmem:[%s3754_s2 + $0x2b0] sm:$0xff] }
  0x71   :  { %1817 = vmatpush.bf16.msrb.mxu3 %v2886_v14  ;;  %v2952_v14 = vld [vmem:[%s3754_s2 + $0x2f0] sm:$0xff] }
  0x72   :  { %1779 = vmatpush.bf16.msrb.mxu0 %v2861_v15  ;;  %v2927_v15 = vld [vmem:[%s3754_s2 + $0x228] sm:$0xff] }
  0x73   :  { %1792 = vmatpush.bf16.msrb.mxu1 %v2869_v16  ;;  %v2935_v16 = vld [vmem:[%s3754_s2 + $0x268] sm:$0xff] }
  0x74   :  { %1805 = vmatpush.bf16.msrb.mxu2 %v2877_v17  ;;  %v2934_v17 = vld [vmem:[%s3754_s2 + $0x260] sm:$0xff] }
  0x75   :  { %1818 = vmatpush.bf16.msrb.mxu3 %v2885_v18 }
  0x76   :  { %1780 = vmatpush.bf16.msrb.mxu0 %v2860_v23  ;;  %v2942_v23 = vld [vmem:[%s3754_s2 + $0x2a0] sm:$0xff] }
  0x77   :  { %1793 = vmatpush.bf16.msrb.mxu1 %v2868_v24  ;;  %v2950_v24 = vld [vmem:[%s3754_s2 + $0x2e0] sm:$0xff] }
  0x78   :  { %1806 = vmatpush.bf16.msrb.mxu2 %v2876_v25  ;;  %v2925_v25 = vld [vmem:[%s3754_s2 + $0x218] sm:$0xff] }
  0x79   :  { %1819 = vmatpush.bf16.msrb.mxu3 %v2884_v26  ;;  %v2933_v26 = vld [vmem:[%s3754_s2 + $0x258] sm:$0xff] }
  0x7a   :  { %1781 = vmatpush.bf16.msrb.mxu0 %v2859_v27  ;;  %v2941_v27 = vld [vmem:[%s3754_s2 + $0x298] sm:$0xff] }
  0x7b   :  { %1794 = vmatpush.bf16.msrb.mxu1 %v2867_v28  ;;  %v2949_v28 = vld [vmem:[%s3754_s2 + $0x2d8] sm:$0xff] }
  0x7c   :  { %1807 = vmatpush.bf16.msrb.mxu2 %v2875_v29 }
  0x7d   :  { %1820 = vmatpush.bf16.msrb.mxu3 %v2883_v30 }
  0x7e   :  { %1782 = vmatpush.bf16.msrb.mxu0 %v2858_v31 }
  0x7f   :  { %1795 = vmatpush.bf16.msrb.mxu1 %v2866_v32  ;;  %v2924_v32 = vld [vmem:[%s3754_s2 + $0x210] sm:$0xff] }
  0x80   :  { %1808 = vmatpush.bf16.msrb.mxu2 %v2874_v33  ;;  %v2932_v33 = vld [vmem:[%s3754_s2 + $0x250] sm:$0xff] }
  0x81   :  { %1821 = vmatpush.bf16.msrb.mxu3 %v2882_v34  ;;  %1783 = vmatmul.bf16.vlgmr.msrb.gmra.mxu0 %v3209_v44  ;;  %v2919_v44 = vld [vmem:[%s3754_s2 + $0x1e8] sm:$0xff] }
  0x82   :  { %1827 = vmatpush.bf16.msra.mxu0 %v2897_v35  ;;  %1796 = vmatmul.bf16.vlgmr.msrb.gmra.mxu1 %v3213_v46  ;;  %v2902_v46 = vld [vmem:[%s3754_s2 + $0x160] sm:$0xff]  ;;  %v2940_v35 = vld [vmem:[%s3754_s2 + $0x290] sm:$0xff] }
  0x83   :  { %1840 = vmatpush.bf16.msra.mxu1 %v2905_v36  ;;  %1809 = vmatmul.bf16.vlgmr.msrb.gmra.mxu2 %v3207_v43  ;;  %v2911_v43 = vld [vmem:[%s3754_s2 + $0x1a8] sm:$0xff]  ;;  %v2948_v36 = vld [vmem:[%s3754_s2 + $0x2d0] sm:$0xff] }
  0x84   :  { %1853 = vmatpush.bf16.msra.mxu2 %v2913_v37  ;;  %1822 = vmatmul.bf16.vlgmr.msrb.gmra.mxu3 %v3211_v45  ;;  %v2894_v45 = vld [vmem:[%s3754_s2 + $0x120] sm:$0xff]  ;;  %v2923_v37 = vld [vmem:[%s3754_s2 + $0x208] sm:$0xff] }
  0x85   :  { %1866 = vmatpush.bf16.msra.mxu3 %v2921_v38  ;;  %v2931_v38 = vld [vmem:[%s3754_s2 + $0x248] sm:$0xff] }
  0x86   :  { %1828 = vmatpush.bf16.msra.mxu0 %v2896_v39  ;;  %v2939_v39 = vld [vmem:[%s3754_s2 + $0x288] sm:$0xff] }
  0x87   :  { %1841 = vmatpush.bf16.msra.mxu1 %v2904_v40  ;;  %v2947_v40 = vld [vmem:[%s3754_s2 + $0x2c8] sm:$0xff] }
  0x88   :  { %1854 = vmatpush.bf16.msra.mxu2 %v2912_v41 }
  0x89   :  { %1867 = vmatpush.bf16.msra.mxu3 %v2920_v42 }
  0x8a   :  { %1829 = vmatpush.bf16.msra.mxu0 %v2895_v47  ;;  %v2922_v47 = vld [vmem:[%s3754_s2 + $0x200] sm:$0xff] }
  0x8b   :  { %1842 = vmatpush.bf16.msra.mxu1 %v2903_v48  ;;  %v2930_v48 = vld [vmem:[%s3754_s2 + $0x240] sm:$0xff] }
  0x8c   :  { %1855 = vmatpush.bf16.msra.mxu2 %v2911_v43  ;;  %v2938_v43 = vld [vmem:[%s3754_s2 + $0x280] sm:$0xff] }
  0x8d   :  { %1868 = vmatpush.bf16.msra.mxu3 %v2919_v44  ;;  %v2946_v44 = vld [vmem:[%s3754_s2 + $0x2c0] sm:$0xff] }
  0x8e   :  { %1830 = vmatpush.bf16.msra.mxu0 %v2894_v45  ;;  %v2957_v45 = vld [vmem:[%s3755_s3] ss:$0 sm:$0xff] }
  0x8f   :  { %1843 = vmatpush.bf16.msra.mxu1 %v2902_v46 }
  0x90   :  { %1856 = vmatpush.bf16.msra.mxu2 %v2910_v49 }
  0x91   :  { %1869 = vmatpush.bf16.msra.mxu3 %v2918_v50 }
  0x92   :  { %1831 = vmatpush.bf16.msra.mxu0 %v2893_v51 }
  0x93   :  { %1844 = vmatpush.bf16.msra.mxu1 %v2901_v52 }
  0x94   :  { %1857 = vmatpush.bf16.msra.mxu2 %v2909_v53 }
  0x95   :  { %1870 = vmatpush.bf16.msra.mxu3 %v2917_v54 }
  0x96   :  { %1832 = vmatpush.bf16.msra.mxu0 %v2892_v55 }
  0x97   :  { %1845 = vmatpush.bf16.msra.mxu1 %v2900_v56 }
  0x98   :  { %1858 = vmatpush.bf16.msra.mxu2 %v2908_v57 }
  0x99   :  { %1871 = vmatpush.bf16.msra.mxu3 %v2916_v58 }
  0x9a   :  { %1833 = vmatpush.bf16.msra.mxu0 %v2891_v59 }
  0x9b   :  { %1846 = vmatpush.bf16.msra.mxu1 %v2899_v60 }
  0x9c   :  { %1859 = vmatpush.bf16.msra.mxu2 %v2907_v61 }
  0x9d   :  { %1872 = vmatpush.bf16.msra.mxu3 %v2915_v62 }
  0x9e   :  { %1834 = vmatpush.bf16.msra.mxu0 %v2890_v3 }
  0x9f   :  { %1847 = vmatpush.bf16.msra.mxu1 %v2898_v4  ;;  %v869_v18 = vpop.f32.mrf.mxu1 }
  0xa0   :  { %1860 = vmatpush.bf16.msra.mxu2 %v2906_v5 }
  0xa1   :  { %1873 = vmatpush.bf16.msra.mxu3 %v2914_v6  ;;  %1835 = vmatmul.bf16.vlgmr.msra.gmra.mxu0 %v3317_v20  ;;  %v2951_v20 = vld [vmem:[%s3754_s2 + $0x2e8] sm:$0xff] }
  0xa2   :  { %1879 = vmatpush.bf16.msrb.mxu0 %v2929_v7  ;;  %1848 = vmatmul.bf16.vlgmr.msra.gmra.mxu1 %v3321_v22  ;;  %v2926_v22 = vld [vmem:[%s3754_s2 + $0x220] sm:$0xff] }
  0xa3   :  { %1892 = vmatpush.bf16.msrb.mxu1 %v2937_v8  ;;  %1861 = vmatmul.bf16.vlgmr.msra.gmra.mxu2 %v3315_v19  ;;  %v2943_v19 = vld [vmem:[%s3754_s2 + $0x2a8] sm:$0xff]  ;;  %s3037_s2 = smov [#allocation2]  }
  0xa4   :  { %1905 = vmatpush.bf16.msrb.mxu2 %v2945_v9  ;;  %1874 = vmatmul.bf16.vlgmr.msra.gmra.mxu3 %v3319_v21  ;;  %v856_v21 = vpop.f32.mrf.mxu0  ;;  %s1948_s3 = sshll.u32 %s3037_s2, 4  ;;  %s1949_s3 = int_to_ptr.vmem [resolvable:$true] %s1948_s3 }
  0xa5   :  { %1918 = vmatpush.bf16.msrb.mxu3 %v2953_v10  ;;  %v857_v49 = vadd.f32 %v2957_v45, %v856_v21 }
  0xa6   :  { %1880 = vmatpush.bf16.msrb.mxu0 %v2928_v11  ;;  %v882_v29 = vpop.f32.mrf.mxu2 }
  0xa7   :  { %1893 = vmatpush.bf16.msrb.mxu1 %v2936_v12  ;;  %v895_v30 = vpop.f32.mrf.mxu3  ;;  %v871_v34 = vpop.f32.mrf.mxu1  ;;  %v870_v51 = vadd.f32 %v869_v18, %v857_v49 }
  0xa8   :  { %1906 = vmatpush.bf16.msrb.mxu2 %v2944_v13 }
  0xa9   :  { %1919 = vmatpush.bf16.msrb.mxu3 %v2952_v14  ;;  %v883_v55 = vadd.f32 %v882_v29, %v870_v51 }
  0xaa   :  { %1881 = vmatpush.bf16.msrb.mxu0 %v2927_v15 }
  0xab   :  { %1894 = vmatpush.bf16.msrb.mxu1 %v2935_v16 }
  0xac   :  { %1907 = vmatpush.bf16.msrb.mxu2 %v2943_v19  ;;  %v858_v31 = vpop.f32.mrf.mxu0 }
  0xad   :  { %1920 = vmatpush.bf16.msrb.mxu3 %v2951_v20 }
  0xae   :  { %1882 = vmatpush.bf16.msrb.mxu0 %v2926_v22  ;;  %v884_v41 = vpop.f32.mrf.mxu2  ;;  %v2958_v22 = vld [vmem:[%s3756_s4] ss:$0 sm:$0xff]  ;;  %s3038_s4 = smov [#allocation4]  }
  0xaf   :  { %1895 = vmatpush.bf16.msrb.mxu1 %v2934_v17  ;;  %v897_v42 = vpop.f32.mrf.mxu3  ;;  %s1959_s25 = sshll.u32 %s3038_s4, 4  ;;  %s1960_s25 = int_to_ptr.vmem [resolvable:$true] %s1959_s25 }
  0xb0   :  { %1908 = vmatpush.bf16.msrb.mxu2 %v2942_v23 }
  0xb1   :  { %1921 = vmatpush.bf16.msrb.mxu3 %v2950_v24 }
  0xb2   :  { %1883 = vmatpush.bf16.msrb.mxu0 %v2925_v25 }
  0xb3   :  { %1896 = vmatpush.bf16.msrb.mxu1 %v2933_v26 }
  0xb4   :  { %1909 = vmatpush.bf16.msrb.mxu2 %v2941_v27 }
  0xb5   :  { %1922 = vmatpush.bf16.msrb.mxu3 %v2949_v28 }
  0xb6   :  { %1884 = vmatpush.bf16.msrb.mxu0 %v2924_v32 }
  0xb7   :  { %1897 = vmatpush.bf16.msrb.mxu1 %v2932_v33 }
  0xb8   :  { %1910 = vmatpush.bf16.msrb.mxu2 %v2940_v35 }
  0xb9   :  { %1923 = vmatpush.bf16.msrb.mxu3 %v2948_v36 }
  0xba   :  { %1885 = vmatpush.bf16.msrb.mxu0 %v2923_v37 }
  0xbb   :  { %1898 = vmatpush.bf16.msrb.mxu1 %v2931_v38 }
  0xbc   :  { %1911 = vmatpush.bf16.msrb.mxu2 %v2939_v39 }
  0xbd   :  { %1924 = vmatpush.bf16.msrb.mxu3 %v2947_v40 }
  0xbe   :  { %1886 = vmatpush.bf16.msrb.mxu0 %v2922_v47  ;;  %v908_v46 = vpop.f32.mrf.mxu0 }
  0xbf   :  { %1899 = vmatpush.bf16.msrb.mxu1 %v2930_v48  ;;  %v921_v50 = vpop.f32.mrf.mxu1 }
  0xc0   :  { %1912 = vmatpush.bf16.msrb.mxu2 %v2938_v43 }
  0xc1   :  { %1925 = vmatpush.bf16.msrb.mxu3 %v2946_v44  ;;  %1887 = vmatmul.bf16.vlgmr.msrb.gmra.mxu0 %v3423_v63  ;;  %v896_v63 = vadd.f32 %v895_v30, %v883_v55 }
  0xc2   :  { %1900 = vmatmul.bf16.vlgmr.msrb.gmra.mxu1 %v3427_v1 }
  0xc3   :  { %1913 = vmatmul.bf16.vlgmr.msrb.gmra.mxu2 %v3425_v0  ;;  %v909_v58 = vadd.f32 %v908_v46, %v896_v63 }
  0xc4   :  { %1926 = vmatmul.bf16.vlgmr.msrb.gmra.mxu3 %v3429_v2 }
  0xc5   :  { %v922_v0 = vadd.f32 %v921_v50, %v909_v58 }
  0xc6   :  { %v934_v52 = vpop.f32.mrf.mxu2  ;;  %v910_v54 = vpop.f32.mrf.mxu0 }
  0xc7   :  { %v947_v53 = vpop.f32.mrf.mxu3  ;;  %v923_v56 = vpop.f32.mrf.mxu1  ;;  %v935_v59 = vadd.f32 %v934_v52, %v922_v0  ;;  %v1935_v52 = vld [vmem:[%s3757_s5] sm:$0x3] }
  0xc9   :  { %v948_v2 = vadd.f32 %v947_v53, %v935_v59 }
  0xce   :  { %v936_v57 = vpop.f32.mrf.mxu2 }
  0xcf   :  { %v949_v1 = vpop.f32.mrf.mxu3 }
  0xde   :  { %v960_v60 = vpop.f32.mrf.mxu0 }
  0xdf   :  { %v961_v61 = vadd.f32 %v960_v60, %v948_v2  ;;  %v973_v62 = vpop.f32.mrf.mxu1 }
  0xe1   :  { %v974_v3 = vadd.f32 %v973_v62, %v961_v61 }
  0xe6   :  { %v986_v4 = vpop.f32.mrf.mxu2  ;;  %v962_v7 = vpop.f32.mrf.mxu0 }
  0xe7   :  { %v987_v5 = vadd.f32 %v986_v4, %v974_v3  ;;  %v999_v6 = vpop.f32.mrf.mxu3  ;;  %v975_v9 = vpop.f32.mrf.mxu1 }
  0xe9   :  { %v3729_v8 = vadd.f32 %v999_v6, %v987_v5 }
  0xeb   :  { %1939 = vst.msk [vmem:[#allocation2] sm:$0x3] %vm1938_vm0, %v3729_v8 }
  0xec   :  { %1953 = dma.vmem_to_hbm [thread:$0]  %s1949_s3, 32, %s1951_s23, [#allocation3]  }
  0xee   :  { %v988_v10 = vpop.f32.mrf.mxu2 }
  0xef   :  { %v1001_v11 = vpop.f32.mrf.mxu3 }
  0xfe   :  { %v1784_v12 = vpop.f32.mrf.mxu0 }
  0xff   :  { %v1797_v13 = vpop.f32.mrf.mxu1  ;;  %v1785_v18 = vadd.f32 %v2958_v22, %v1784_v12 }
 0x101   :  { %v1798_v24 = vadd.f32 %v1797_v13, %v1785_v18 }
 0x106   :  { %v1810_v14 = vpop.f32.mrf.mxu2  ;;  %v1786_v16 = vpop.f32.mrf.mxu0 }
 0x107   :  { %v1823_v15 = vpop.f32.mrf.mxu3  ;;  %v1799_v19 = vpop.f32.mrf.mxu1  ;;  %v1811_v28 = vadd.f32 %v1810_v14, %v1798_v24 }
 0x109   :  { %v1824_v30 = vadd.f32 %v1823_v15, %v1811_v28 }
 0x10e   :  { %v1812_v20 = vpop.f32.mrf.mxu2 }
 0x10f   :  { %v1825_v21 = vpop.f32.mrf.mxu3 }
 0x11e   :  { %v1836_v17 = vpop.f32.mrf.mxu0 }
 0x11f   :  { %v1849_v23 = vpop.f32.mrf.mxu1  ;;  %v1837_v33 = vadd.f32 %v1836_v17, %v1824_v30 }
 0x121   :  { %v1850_v34 = vadd.f32 %v1849_v23, %v1837_v33 }
 0x126   :  { %v1862_v25 = vpop.f32.mrf.mxu2  ;;  %v1838_v27 = vpop.f32.mrf.mxu0 }
 0x127   :  { %v1875_v26 = vpop.f32.mrf.mxu3  ;;  %v1851_v29 = vpop.f32.mrf.mxu1  ;;  %v1863_v35 = vadd.f32 %v1862_v25, %v1850_v34 }
 0x129   :  { %v1876_v36 = vadd.f32 %v1875_v26, %v1863_v35 }
 0x12e   :  { %v1864_v31 = vpop.f32.mrf.mxu2 }
 0x12f   :  { %v1877_v32 = vpop.f32.mrf.mxu3 }
 0x13e   :  { %v1888_v37 = vpop.f32.mrf.mxu0 }
 0x13f   :  { %v1901_v38 = vpop.f32.mrf.mxu1  ;;  %v1889_v39 = vadd.f32 %v1888_v37, %v1876_v36 }
 0x141   :  { %v1902_v40 = vadd.f32 %v1901_v38, %v1889_v39 }
 0x146   :  { %v1914_v41 = vpop.f32.mrf.mxu2  ;;  %v1890_v48 = vpop.f32.mrf.mxu0 }
 0x147   :  { %v1927_v42 = vpop.f32.mrf.mxu3  ;;  %v1915_v47 = vadd.f32 %v1914_v41, %v1902_v40  ;;  %v1903_v43 = vpop.f32.mrf.mxu1 }
 0x149   :  { %v1928_v44 = vadd.f32 %v1927_v42, %v1915_v47 }
 0x14b   :  { %v1931_v45 = vmul.f32 0.5, %v1928_v44  ;;  %1940 = vst.msk [vmem:[#allocation4] sm:$0x3] %vm1938_vm0, %v1928_v44 }
 0x14c   :  { %1964 = dma.vmem_to_hbm [thread:$0]  %s1960_s25, 32, %s1962_s27, [#allocation5]  }
 0x14d   :  { %v1932_v46 = vmul.f32 1.442695, %v1931_v45 }
 0x14e   :  { %v1916_v49 = vpop.f32.mrf.mxu2 }
 0x14f   :  { %v1929_v50 = vpop.f32.mrf.mxu3  ;;  %2959 = vpow2.f32 %v1932_v46 }
 0x155   :  { %v2960_v51 = vpop.eup %2959 }
 0x156   :  { %v1934_v53 = vmax.f32 %v2960_v51, 1.1920929e-07  ;;  %1941 = vst.msk [vmem:[#allocation6] sm:$0x3] %vm1938_vm0, %v2960_v51 }
 0x157   :  { %1975 = dma.vmem_to_hbm [thread:$0]  %s1971_s29, 32, %s1973_s7, [#allocation5]  }
 0x158   :  { %v1936_v54 = vmul.f32 %v1935_v52, %v1934_v53 }
 0x15a   :  { %v1937_v55 = vadd.f32 %v1936_v54, %v3729_v8 }
 0x15c   :  { %1942 = vst.msk [vmem:[%s3761_s9] sm:$0x3] %vm1938_vm0, %v1937_v55 }
 0x15d   :  { %3033 = dma.done.wait [#allocation3], 32  }
 0x15e   :  { %3034 = vsyncadd [#allocation3], 4294967264 }
 0x15f   :  { %3035 = dma.done.wait [#allocation5], 64  }
 0x160   :  { %3036 = vsyncadd [#allocation5], 4294967232 }
 0x161   :  { %1992 = vsyncpa [#allocation3], 1 }
 0x162   :  { %1993 = vsyncpa [#allocation5], 1 }

// kernel: forward.19
= control target key start
LH: loop header
LB: loop body
LE: loop exit
PB: predicated region body
PF: predicated region fallthrough
CT: control target
= control target key end

     0   :  { %s2173_s12 = smov 0   ;;  %s3005_s0 = inlined_call_operand.vmem [shape: f32[2,10,224], index: 0, kind: input, shape index: {}]   ;;  %s3006_s1 = inlined_call_operand.vmem [shape: bf16[3,224,384], index: 1, kind: input, shape index: {}]   ;;  %s3007_s2 = inlined_call_operand.vmem [shape: f32[1,384], index: 2, kind: input, shape index: {}]   ;;  %s3008_s3 = inlined_call_operand.vmem [shape: f32[2,8,384], index: 3, kind: output, shape index: {}]  }
   0x1 LB: > { %s1374_s13 = sadd.s32 4294967295, %s2151_s12   ;;  %p1378_p0 = scmp.ge.s32.totalorder %s2151_s12, 1  ;;  %s2151_s12 = sphi %s2173_s12, %s13_s12  }
   0x2   : > { %p137_p1 = scmp.lt.s32.totalorder %s2151_s12, 3 }
   0x4   : > { %p138_p2 = pnand %p1378_p0, %p137_p1 }
   0x5   : > { %p161_p3 = scmp.lt.s32.totalorder (!%p138_p2), %s1374_s13, 1 }
   0x6   : > { %141 = sbr.rel (%p138_p2) target bundleno = 291 (0x123), region = 32 }
   0xb   : > { %v1468_v0 = vld [vmem:[%s3006_s1 + $0xa8] sm:$0xf]  ;;  %v2032_v1 = vld [vmem:[%s3006_s1 + $0xb0] sm:$0xf0]  ;;  %v1540_v2 = vld [vmem:[%s3006_s1 + $0x138] sm:$0xf] }
   0xc   : > { %v1469_v3 = vor.u32 %v2032_v1, %v1468_v0  ;;  %v2050_v4 = vld [vmem:[%s3006_s1 + $0x140] sm:$0xf0]  ;;  %v2031_v5 = vld [vmem:[%s3006_s1 + $0xac] sm:$0xf]  ;;  %v1470_v6 = vld [vmem:[%s3006_s1 + $0xb4] sm:$0xf0] }
   0xd   : > { %v1541_v7 = vor.u32 %v2050_v4, %v1540_v2  ;;  %v1473_v8 = vor.u32 %v2031_v5, %v1470_v6  ;;  %v2049_v9 = vld [vmem:[%s3006_s1 + $0x13c] sm:$0xf]  ;;  %v1542_v10 = vld [vmem:[%s3006_s1 + $0x144] sm:$0xf0]  ;;  %v1456_v11 = vld [vmem:[%s3006_s1 + $0x90] sm:$0xf] }
   0xe   : > { %479 = vmatpush.bf16.msra.mxu0 %v1469_v3  ;;  %v1545_v12 = vor.u32 %v2049_v9, %v1542_v10  ;;  %v2029_v13 = vld [vmem:[%s3006_s1 + $0x98] sm:$0xf0]  ;;  %v1528_v14 = vld [vmem:[%s3006_s1 + $0x120] sm:$0xf]  ;;  %v2047_v15 = vld [vmem:[%s3006_s1 + $0x128] sm:$0xf0] }
   0xf   : > { %494 = vmatpush.bf16.msra.mxu1 %v1541_v7  ;;  %505 = vmatpush.bf16.msra.mxu2 %v1473_v8  ;;  %v1457_v16 = vor.u32 %v2029_v13, %v1456_v11  ;;  %v1529_v17 = vor.u32 %v2047_v15, %v1528_v14  ;;  %v2028_v18 = vld [vmem:[%s3006_s1 + $0x94] sm:$0xf]  ;;  %v1458_v19 = vld [vmem:[%s3006_s1 + $0x9c] sm:$0xf0]  ;;  %v2046_v20 = vld [vmem:[%s3006_s1 + $0x124] sm:$0xf] }
  0x10   : > { %520 = vmatpush.bf16.msra.mxu3 %v1545_v12  ;;  %v1461_v21 = vor.u32 %v2028_v18, %v1458_v19  ;;  %v1530_v22 = vld [vmem:[%s3006_s1 + $0x12c] sm:$0xf0]  ;;  %v1444_v23 = vld [vmem:[%s3006_s1 + $0x78] sm:$0xf]  ;;  %v2026_v24 = vld [vmem:[%s3006_s1 + $0x80] sm:$0xf0] }
  0x11   : > { %v1533_v25 = vor.u32 %v2046_v20, %v1530_v22  ;;  %v1516_v26 = vld [vmem:[%s3006_s1 + $0x108] sm:$0xf]  ;;  %v2044_v27 = vld [vmem:[%s3006_s1 + $0x110] sm:$0xf0]  ;;  %v2025_v28 = vld [vmem:[%s3006_s1 + $0x7c] sm:$0xf]  ;;  %v1445_v29 = vor.u32 %v2026_v24, %v1444_v23 }
  0x12   : > { %480 = vmatpush.bf16.msra.mxu0 %v1457_v16  ;;  %v1446_v30 = vld [vmem:[%s3006_s1 + $0x84] sm:$0xf0]  ;;  %v2043_v31 = vld [vmem:[%s3006_s1 + $0x10c] sm:$0xf]  ;;  %v1518_v32 = vld [vmem:[%s3006_s1 + $0x114] sm:$0xf0]  ;;  %v1517_v33 = vor.u32 %v2044_v27, %v1516_v26 }
  0x13   : > { %495 = vmatpush.bf16.msra.mxu1 %v1529_v17  ;;  %506 = vmatpush.bf16.msra.mxu2 %v1461_v21  ;;  %v1449_v34 = vor.u32 %v2025_v28, %v1446_v30  ;;  %v1432_v35 = vld [vmem:[%s3006_s1 + $0x60] sm:$0xf]  ;;  %v2023_v36 = vld [vmem:[%s3006_s1 + $0x68] sm:$0xf0]  ;;  %v1504_v37 = vld [vmem:[%s3006_s1 + $0xf0] sm:$0xf]  ;;  %v1521_v38 = vor.u32 %v2043_v31, %v1518_v32 }
  0x14   : > { %521 = vmatpush.bf16.msra.mxu3 %v1533_v25  ;;  %v2041_v39 = vld [vmem:[%s3006_s1 + $0xf8] sm:$0xf0]  ;;  %v2022_v40 = vld [vmem:[%s3006_s1 + $0x64] sm:$0xf]  ;;  %v1434_v41 = vld [vmem:[%s3006_s1 + $0x6c] sm:$0xf0]  ;;  %v1433_v44 = vor.u32 %v2023_v36, %v1432_v35 }
  0x15   : > { %v2040_v42 = vld [vmem:[%s3006_s1 + $0xf4] sm:$0xf]  ;;  %v1506_v43 = vld [vmem:[%s3006_s1 + $0xfc] sm:$0xf0]  ;;  %v1505_v45 = vor.u32 %v2041_v39, %v1504_v37  ;;  %v1437_v46 = vor.u32 %v2022_v40, %v1434_v41  ;;  %v1420_v47 = vld [vmem:[%s3006_s1 + $0x48] sm:$0xf] }
  0x16   : > { %481 = vmatpush.bf16.msra.mxu0 %v1445_v29  ;;  %v2020_v48 = vld [vmem:[%s3006_s1 + $0x50] sm:$0xf0]  ;;  %v1492_v49 = vld [vmem:[%s3006_s1 + $0xd8] sm:$0xf]  ;;  %v1509_v50 = vor.u32 %v2040_v42, %v1506_v43  ;;  %v2038_v51 = vld [vmem:[%s3006_s1 + $0xe0] sm:$0xf0] }
  0x17   : > { %496 = vmatpush.bf16.msra.mxu1 %v1517_v33  ;;  %507 = vmatpush.bf16.msra.mxu2 %v1449_v34  ;;  %v2019_v52 = vld [vmem:[%s3006_s1 + $0x4c] sm:$0xf]  ;;  %v1422_v53 = vld [vmem:[%s3006_s1 + $0x54] sm:$0xf0]  ;;  %v2037_v54 = vld [vmem:[%s3006_s1 + $0xdc] sm:$0xf]  ;;  %v1421_v56 = vor.u32 %v2020_v48, %v1420_v47  ;;  %v1493_v58 = vor.u32 %v2038_v51, %v1492_v49 }
  0x18   : > { %522 = vmatpush.bf16.msra.mxu3 %v1521_v38  ;;  %v1494_v55 = vld [vmem:[%s3006_s1 + $0xe4] sm:$0xf0]  ;;  %v1408_v57 = vld [vmem:[%s3006_s1 + $0x30] sm:$0xf]  ;;  %v1425_v59 = vor.u32 %v2019_v52, %v1422_v53  ;;  %v2017_v60 = vld [vmem:[%s3006_s1 + $0x38] sm:$0xf0] }
  0x19   : > { %v1480_v61 = vld [vmem:[%s3006_s1 + $0xc0] sm:$0xf]  ;;  %v2035_v62 = vld [vmem:[%s3006_s1 + $0xc8] sm:$0xf0]  ;;  %v1497_v63 = vor.u32 %v2037_v54, %v1494_v55  ;;  %v2016_v0 = vld [vmem:[%s3006_s1 + $0x34] sm:$0xf]  ;;  %v1409_v6 = vor.u32 %v2017_v60, %v1408_v57 }
  0x1a   : > { %482 = vmatpush.bf16.msra.mxu0 %v1433_v44  ;;  %v1410_v1 = vld [vmem:[%s3006_s1 + $0x3c] sm:$0xf0]  ;;  %v2034_v2 = vld [vmem:[%s3006_s1 + $0xc4] sm:$0xf]  ;;  %v1482_v3 = vld [vmem:[%s3006_s1 + $0xcc] sm:$0xf0]  ;;  %v1481_v9 = vor.u32 %v2035_v62, %v1480_v61 }
  0x1b   : > { %497 = vmatpush.bf16.msra.mxu1 %v1505_v45  ;;  %508 = vmatpush.bf16.msra.mxu2 %v1437_v46  ;;  %v1476_v4 = vld [vmem:[%s3006_s1 + $0xb0] sm:$0xf]  ;;  %v2033_v5 = vld [vmem:[%s3006_s1 + $0xb8] sm:$0xf0]  ;;  %v1548_v7 = vld [vmem:[%s3006_s1 + $0x140] sm:$0xf]  ;;  %v1413_v10 = vor.u32 %v2016_v0, %v1410_v1  ;;  %v1485_v13 = vor.u32 %v2034_v2, %v1482_v3 }
  0x1c   : > { %523 = vmatpush.bf16.msra.mxu3 %v1509_v50  ;;  %v2051_v8 = vld [vmem:[%s3006_s1 + $0x148] sm:$0xf0]  ;;  %v1396_v11 = vld [vmem:[%s3006_s1 + $0x18] sm:$0xf]  ;;  %v2014_v12 = vld [vmem:[%s3006_s1 + $0x20] sm:$0xf0]  ;;  %v1477_v14 = vor.u32 %v2033_v5, %v1476_v4 }
  0x1d   : > { %v2013_v15 = vld [vmem:[%s3006_s1 + $0x1c] sm:$0xf]  ;;  %v1398_v16 = vld [vmem:[%s3006_s1 + $0x24] sm:$0xf0]  ;;  %v1549_v17 = vor.u32 %v2051_v8, %v1548_v7  ;;  %v1464_v18 = vld [vmem:[%s3006_s1 + $0x98] sm:$0xf]  ;;  %v1397_v21 = vor.u32 %v2014_v12, %v1396_v11 }
  0x1e   : > { %483 = vmatpush.bf16.msra.mxu0 %v1421_v56  ;;  %v2030_v19 = vld [vmem:[%s3006_s1 + $0xa0] sm:$0xf0]  ;;  %v1536_v20 = vld [vmem:[%s3006_s1 + $0x128] sm:$0xf]  ;;  %v2048_v22 = vld [vmem:[%s3006_s1 + $0x130] sm:$0xf0]  ;;  %v1401_v25 = vor.u32 %v2013_v15, %v1398_v16 }
  0x1f   : > { %498 = vmatpush.bf16.msra.mxu1 %v1493_v58  ;;  %509 = vmatpush.bf16.msra.mxu2 %v1425_v59  ;;  %v1384_v23 = vld [vmem:[%s3006_s1] sm:$0xf]  ;;  %v2011_v24 = vld [vmem:[%s3006_s1 + $0x8] sm:$0xf0]  ;;  %v2010_v26 = vld [vmem:[%s3006_s1 + $0x4] sm:$0xf]  ;;  %v1465_v29 = vor.u32 %v2030_v19, %v1464_v18  ;;  %v1537_v33 = vor.u32 %v2048_v22, %v1536_v20 }
  0x20   : > { %524 = vmatpush.bf16.msra.mxu3 %v1497_v63  ;;  %v1386_v27 = vld [vmem:[%s3006_s1 + $0xc] sm:$0xf0]  ;;  %v1452_v28 = vld [vmem:[%s3006_s1 + $0x80] sm:$0xf]  ;;  %v2027_v30 = vld [vmem:[%s3006_s1 + $0x88] sm:$0xf0]  ;;  %v1385_v36 = vor.u32 %v2011_v24, %v1384_v23 }
  0x21   : > { %v1695_v31 = vld [vmem:[%s3006_s1 + $0x1f8] sm:$0xf]  ;;  %v2074_v32 = vld [vmem:[%s3006_s1 + $0x200] sm:$0xf0]  ;;  %v1767_v34 = vld [vmem:[%s3006_s1 + $0x288] sm:$0xf]  ;;  %v1389_v39 = vor.u32 %v2010_v26, %v1386_v27  ;;  %v1453_v43 = vor.u32 %v2027_v30, %v1452_v28 }
  0x22   : > { %484 = vmatpush.bf16.msra.mxu0 %v1409_v6  ;;  %v2092_v35 = vld [vmem:[%s3006_s1 + $0x290] sm:$0xf0]  ;;  %v1524_v37 = vld [vmem:[%s3006_s1 + $0x110] sm:$0xf]  ;;  %v2045_v38 = vld [vmem:[%s3006_s1 + $0x118] sm:$0xf0]  ;;  %v1696_v40 = vor.u32 %v2074_v32, %v1695_v31 }
  0x23   : > { %499 = vmatpush.bf16.msra.mxu1 %v1481_v9  ;;  %510 = vmatpush.bf16.msra.mxu2 %v1413_v10  ;;  %v1440_v41 = vld [vmem:[%s3006_s1 + $0x68] sm:$0xf]  ;;  %v2024_v42 = vld [vmem:[%s3006_s1 + $0x70] sm:$0xf0]  ;;  %s3010_s13 = smov (!%p161_p3, %s1374_s13), 1  ;;  %v1768_v44 = vor.u32 %v2092_v35, %v1767_v34  ;;  %v1525_v48 = vor.u32 %v2045_v38, %v1524_v37  ;;  %vm475_vm0 = vcmask 785408  }
  0x24   : > { %525 = vmatpush.bf16.msra.mxu3 %v1485_v13  ;;  %v1512_v45 = vld [vmem:[%s3006_s1 + $0xf8] sm:$0xf]  ;;  %v1683_v46 = vld [vmem:[%s3006_s1 + $0x1e0] sm:$0xf]  ;;  %v2071_v47 = vld [vmem:[%s3006_s1 + $0x1e8] sm:$0xf0]  ;;  %v1441_v58 = vor.u32 %v2024_v42, %v1440_v41 }
  0x25   : > { %v1755_v49 = vld [vmem:[%s3006_s1 + $0x270] sm:$0xf]  ;;  %v2089_v50 = vld [vmem:[%s3006_s1 + $0x278] sm:$0xf0]  ;;  %s2009_s22 = sshll.u32 %s3010_s13, 5  ;;  %v1684_v54 = vor.u32 %v2071_v47, %v1683_v46  ;;  %s2136_s24 = smul.u32 24, %s3010_s13 }
  0x26   : > { %485 = vmatpush.bf16.msra.mxu0 %v1397_v21  ;;  %v2042_v51 = vld [vmem:[%s3006_s1 + $0x100] sm:$0xf0]  ;;  %s165_s27 = scalar_lea.vmem %s3005_s0, %s2009_s22  ;;  %v1428_v52 = vld [vmem:[%s3006_s1 + $0x50] sm:$0xf]  ;;  %v2021_v53 = vld [vmem:[%s3006_s1 + $0x58] sm:$0xf0]  ;;  %v1756_v59 = vor.u32 %v2089_v50, %v1755_v49 }
  0x27   : > { %531 = vmatpush.bf16.msrb.mxu1 %v1477_v14  ;;  %511 = vmatpush.bf16.msra.mxu2 %v1401_v25  ;;  %v172_v55 = vld [vmem:[%s165_s27] sm:$0xff]  ;;  %v173_v56 = vld [vmem:[%s165_s27 + $0x8] sm:$0xff]  ;;  %v174_v57 = vld [vmem:[%s165_s27 + $0x10] sm:$0x3]  ;;  %v1513_v0 = vor.u32 %v2042_v51, %v1512_v45  ;;  %v1429_v9 = vor.u32 %v2021_v53, %v1428_v52 }
  0x28   : > { %546 = vmatpush.bf16.msrb.mxu3 %v1549_v17  ;;  %v175_v60 = vld [vmem:[%s165_s27 + $0x18] sm:$0x3]  ;;  %v176_v61 = vpack.c.bf16 %v173_v56, %v172_v55  ;;  %v1671_v62 = vld [vmem:[%s3006_s1 + $0x1c8] sm:$0xf]  ;;  %v2068_v63 = vld [vmem:[%s3006_s1 + $0x1d0] sm:$0xf0]  ;;  %s170_s27 = scalar_lea.vmem %s3008_s3, %s2136_s24 }
  0x29   : > { %v2443_v1 = vpack.c.bf16 %v175_v60, %v174_v57  ;;  %v1743_v2 = vld [vmem:[%s3006_s1 + $0x258] sm:$0xf]  ;;  %v2086_v3 = vld [vmem:[%s3006_s1 + $0x260] sm:$0xf0]  ;;  %v1500_v5 = vld [vmem:[%s3006_s1 + $0xe0] sm:$0xf]  ;;  %v1672_v10 = vor.u32 %v2068_v63, %v1671_v62 }
  0x2a   : > { %486 = vmatpush.bf16.msra.mxu0 %v1385_v36  ;;  %v247_v4 = vunpack.c.h.b16 %v176_v61  ;;  %v2039_v6 = vld [vmem:[%s3006_s1 + $0xe8] sm:$0xf0]  ;;  %v246_v7 = vunpack.c.l.b16 %v176_v61  ;;  %v1744_v12 = vor.u32 %v2086_v3, %v1743_v2  ;;  %v1416_v14 = vld [vmem:[%s3006_s1 + $0x38] sm:$0xf]  ;;  %v1659_v15 = vld [vmem:[%s3006_s1 + $0x1b0] sm:$0xf] }
  0x2b   : > { %532 = vmatpush.bf16.msrb.mxu1 %v1465_v29  ;;  %512 = vmatpush.bf16.msra.mxu2 %v1389_v39  ;;  %v619_v8 = vunpack.c.h.b16 %v2443_v1  ;;  %v2065_v16 = vld [vmem:[%s3006_s1 + $0x1b8] sm:$0xf0]  ;;  %v1501_v17 = vor.u32 %v2039_v6, %v1500_v5  ;;  %v2018_v18 = vld [vmem:[%s3006_s1 + $0x40] sm:$0xf0]  ;;  %v1731_v19 = vld [vmem:[%s3006_s1 + $0x240] sm:$0xf]  ;;  %v618_v36 = vunpack.c.l.b16 %v2443_v1 }
  0x2c   : > { %547 = vmatpush.bf16.msrb.mxu3 %v1537_v33  ;;  %v2458_v11 = vpack.c.b16 %v247_v4, %v247_v4  ;;  %v2460_v13 = vpack.c.b16 %v246_v7, %v246_v7  ;;  %v2083_v20 = vld [vmem:[%s3006_s1 + $0x248] sm:$0xf0]  ;;  %v1488_v21 = vld [vmem:[%s3006_s1 + $0xc8] sm:$0xf]  ;;  %v2036_v22 = vld [vmem:[%s3006_s1 + $0xd0] sm:$0xf0]  ;;  %v1660_v24 = vor.u32 %v2065_v16, %v1659_v15  ;;  %v1417_v27 = vor.u32 %v2018_v18, %v1416_v14 }
  0x2d   : > { %v2489_v23 = vpack.c.b16 %v619_v8, %v247_v4  ;;  %v2073_v25 = vld [vmem:[%s3006_s1 + $0x1fc] sm:$0xf]  ;;  %v1697_v26 = vld [vmem:[%s3006_s1 + $0x204] sm:$0xf0]  ;;  %v1732_v28 = vor.u32 %v2083_v20, %v1731_v19  ;;  %v1404_v29 = vld [vmem:[%s3006_s1 + $0x20] sm:$0xf]  ;;  %v1489_v32 = vor.u32 %v2036_v22, %v1488_v21  ;;  %v2547_v51 = vpack.c.b16 %v618_v36, %v246_v7 }
  0x2e   : > { %864 = vmatpush.bf16.msrb.mxu0 %v1696_v40  ;;  %1551 = vmatmul.msk.bf16.vlgmr.msra.gmra.mxu3 %vm475_vm0, %v2458_v11  ;;  %v1647_v30 = vld [vmem:[%s3006_s1 + $0x198] sm:$0xf]  ;;  %v2062_v31 = vld [vmem:[%s3006_s1 + $0x1a0] sm:$0xf0]  ;;  %v2015_v33 = vld [vmem:[%s3006_s1 + $0x28] sm:$0xf0]  ;;  %v1700_v37 = vor.u32 %v2073_v25, %v1697_v26 }
  0x2f   : > { %533 = vmatpush.bf16.msrb.mxu1 %v1453_v43  ;;  %879 = vmatpush.bf16.msrb.mxu2 %v1768_v44  ;;  %v1719_v34 = vld [vmem:[%s3006_s1 + $0x228] sm:$0xf]  ;;  %v2080_v35 = vld [vmem:[%s3006_s1 + $0x230] sm:$0xf0]  ;;  %v2070_v38 = vld [vmem:[%s3006_s1 + $0x1e4] sm:$0xf]  ;;  %v1648_v39 = vor.u32 %v2062_v31, %v1647_v30  ;;  %v1405_v43 = vor.u32 %v2015_v33, %v1404_v29 }
  0x30   : > { %548 = vmatpush.bf16.msrb.mxu3 %v1525_v48  ;;  %513 = vmatmul.bf16.vlgmr.msra.gmra.mxu2 %v2460_v13  ;;  %v1685_v40 = vld [vmem:[%s3006_s1 + $0x1ec] sm:$0xf0]  ;;  %v1392_v41 = vld [vmem:[%s3006_s1 + $0x8] sm:$0xf]  ;;  %v632_v42 = vshll.u32 %v2489_v23, 16  ;;  %v1720_v44 = vor.u32 %v2080_v35, %v1719_v34  ;;  %v625_v8 = vshll.u32 %v2547_v51, 16 }
  0x31   : > { %1550 = vmatmul.msk.bf16.vlgmr.msra.gmra.mxu1 %vm475_vm0, %v2458_v11  ;;  %487 = vmatmul.bf16.vlgmr.msra.gmra.mxu0 %v2460_v13  ;;  %v2012_v45 = vld [vmem:[%s3006_s1 + $0x10] sm:$0xf0]  ;;  %v1635_v46 = vld [vmem:[%s3006_s1 + $0x180] sm:$0xf]  ;;  %v2059_v47 = vld [vmem:[%s3006_s1 + $0x188] sm:$0xf0]  ;;  %v1688_v52 = vor.u32 %v2070_v38, %v1685_v40 }
  0x32   : > { %865 = vmatpush.bf16.msrb.mxu0 %v1684_v54  ;;  %v1707_v48 = vld [vmem:[%s3006_s1 + $0x210] sm:$0xf]  ;;  %v2077_v49 = vld [vmem:[%s3006_s1 + $0x218] sm:$0xf0]  ;;  %v2091_v50 = vld [vmem:[%s3006_s1 + $0x28c] sm:$0xf]  ;;  %v1636_v56 = vor.u32 %v2059_v47, %v1635_v46  ;;  %v1393_v61 = vor.u32 %v2012_v45, %v1392_v41 }
  0x33   : > { %534 = vmatpush.bf16.msrb.mxu1 %v1441_v58  ;;  %880 = vmatpush.bf16.msrb.mxu2 %v1756_v59  ;;  %v1769_v53 = vld [vmem:[%s3006_s1 + $0x294] sm:$0xf0]  ;;  %v1703_v54 = vld [vmem:[%s3006_s1 + $0x200] sm:$0xf]  ;;  %v2075_v55 = vld [vmem:[%s3006_s1 + $0x208] sm:$0xf0]  ;;  %v1708_v62 = vor.u32 %v2077_v49, %v1707_v48 }
  0x34   : > { %549 = vmatpush.bf16.msrb.mxu3 %v1513_v0  ;;  %v2067_v57 = vld [vmem:[%s3006_s1 + $0x1cc] sm:$0xf]  ;;  %v1673_v58 = vld [vmem:[%s3006_s1 + $0x1d4] sm:$0xf0]  ;;  %v630_v59 = vshrl.u32 %v2489_v23, 16  ;;  %v634_v60 = vrot.slane %v632_v42, 1  ;;  %v1772_v1 = vor.u32 %v2091_v50, %v1769_v53  ;;  %v1704_v2 = vor.u32 %v2075_v55, %v1703_v54 }
  0x35   : > { %v1623_v63 = vld [vmem:[%s3006_s1 + $0x168] sm:$0xf]  ;;  %v2056_v0 = vld [vmem:[%s3006_s1 + $0x170] sm:$0xf0]  ;;  %v1757_v4 = vld [vmem:[%s3006_s1 + $0x27c] sm:$0xf0]  ;;  %v1676_v5 = vor.u32 %v2067_v57, %v1673_v58 }
  0x36   : > { %866 = vmatpush.bf16.msrb.mxu0 %v1672_v10  ;;  %v2088_v3 = vld [vmem:[%s3006_s1 + $0x274] sm:$0xf]  ;;  %v1691_v6 = vld [vmem:[%s3006_s1 + $0x1e8] sm:$0xf]  ;;  %v2584_v10 = vor.u32 %v634_v60, %v630_v59  ;;  %v1661_v14 = vld [vmem:[%s3006_s1 + $0x1bc] sm:$0xf0] }
  0x37   : > { %535 = vmatpush.bf16.msrb.mxu1 %v1429_v9  ;;  %881 = vmatpush.bf16.msrb.mxu2 %v1744_v12  ;;  %v2072_v7 = vld [vmem:[%s3006_s1 + $0x1f0] sm:$0xf0]  ;;  %v1624_v9 = vor.u32 %v2056_v0, %v1623_v63  ;;  %v1611_v15 = vld [vmem:[%s3006_s1 + $0x150] sm:$0xf]  ;;  %v2053_v16 = vld [vmem:[%s3006_s1 + $0x158] sm:$0xf0]  ;;  %v1760_v18 = vor.u32 %v2088_v3, %v1757_v4 }
  0x38   : > { %550 = vmatpush.bf16.msrb.mxu3 %v1501_v17  ;;  %v2064_v12 = vld [vmem:[%s3006_s1 + $0x1b4] sm:$0xf]  ;;  %v2085_v17 = vld [vmem:[%s3006_s1 + $0x25c] sm:$0xf]  ;;  %v1692_v19 = vor.u32 %v2072_v7, %v1691_v6  ;;  %v1745_v20 = vld [vmem:[%s3006_s1 + $0x264] sm:$0xf0]  ;;  %v1612_v29 = vor.u32 %v2053_v16, %v1611_v15 }
  0x39   : > { %v1775_v21 = vld [vmem:[%s3006_s1 + $0x290] sm:$0xf]  ;;  %v2093_v22 = vld [vmem:[%s3006_s1 + $0x298] sm:$0xf0]  ;;  %v1649_v31 = vld [vmem:[%s3006_s1 + $0x1a4] sm:$0xf0]  ;;  %v1748_v33 = vor.u32 %v2085_v17, %v1745_v20 }
  0x3a   : > { %867 = vmatpush.bf16.msrb.mxu0 %v1660_v24  ;;  %v1664_v24 = vor.u32 %v2064_v12, %v1661_v14  ;;  %v1679_v25 = vld [vmem:[%s3006_s1 + $0x1d0] sm:$0xf]  ;;  %v2069_v26 = vld [vmem:[%s3006_s1 + $0x1d8] sm:$0xf0]  ;;  %v2082_v35 = vld [vmem:[%s3006_s1 + $0x244] sm:$0xf] }
  0x3b   : > { %536 = vmatpush.bf16.msrb.mxu1 %v1417_v27  ;;  %882 = vmatpush.bf16.msrb.mxu2 %v1732_v28  ;;  %v623_v27 = vshrl.u32 %v2547_v51, 16  ;;  %v627_v28 = vrot.slane %v625_v8, 1  ;;  %v2061_v30 = vld [vmem:[%s3006_s1 + $0x19c] sm:$0xf]  ;;  %v1680_v34 = vor.u32 %v2069_v26, %v1679_v25  ;;  %v1763_v36 = vld [vmem:[%s3006_s1 + $0x278] sm:$0xf] }
  0x3c   : > { %551 = vmatpush.bf16.msrb.mxu3 %v1489_v32  ;;  %v1776_v32 = vor.u32 %v2093_v22, %v1775_v21  ;;  %v2066_v40 = vld [vmem:[%s3006_s1 + $0x1c0] sm:$0xf0]  ;;  %v1637_v42 = vld [vmem:[%s3006_s1 + $0x18c] sm:$0xf0]  ;;  %v2079_v46 = vld [vmem:[%s3006_s1 + $0x22c] sm:$0xf] }
  0x3d   : > { %v2637_v38 = vor.u32 %v627_v28, %v623_v27  ;;  %v2058_v41 = vld [vmem:[%s3006_s1 + $0x184] sm:$0xf]  ;;  %v1751_v47 = vld [vmem:[%s3006_s1 + $0x260] sm:$0xf]  ;;  %v2087_v48 = vld [vmem:[%s3006_s1 + $0x268] sm:$0xf0] }
  0x3e   : > { %868 = vmatpush.bf16.msrb.mxu0 %v1648_v39  ;;  %v1667_v39 = vld [vmem:[%s3006_s1 + $0x1b8] sm:$0xf]  ;;  %v1640_v49 = vor.u32 %v2058_v41, %v1637_v42  ;;  %v2063_v53 = vld [vmem:[%s3006_s1 + $0x1a8] sm:$0xf0]  ;;  %v2052_v59 = vld [vmem:[%s3006_s1 + $0x154] sm:$0xf] }
  0x3f   : > { %537 = vmatpush.bf16.msrb.mxu1 %v1405_v43  ;;  %883 = vmatpush.bf16.msrb.mxu2 %v1720_v44  ;;  %v1668_v45 = vor.u32 %v2066_v40, %v1667_v39  ;;  %v1721_v50 = vld [vmem:[%s3006_s1 + $0x234] sm:$0xf0]  ;;  %v2055_v54 = vld [vmem:[%s3006_s1 + $0x16c] sm:$0xf]  ;;  %v2076_v60 = vld [vmem:[%s3006_s1 + $0x214] sm:$0xf] }
  0x40   : > { %890 = vmatpush.bf16.msra.mxu3 %v1700_v37  ;;  %v2090_v37 = vld [vmem:[%s3006_s1 + $0x280] sm:$0xf0]  ;;  %v1625_v55 = vld [vmem:[%s3006_s1 + $0x174] sm:$0xf0]  ;;  %v1724_v57 = vor.u32 %v2079_v46, %v1721_v50  ;;  %v1709_v0 = vld [vmem:[%s3006_s1 + $0x21c] sm:$0xf0] }
  0x41   : > { %1552 = vmatmul.msk.bf16.vlgmr.msrb.gmra.mxu3 %vm475_vm0, %v2458_v11  ;;  %v1652_v11 = vor.u32 %v2061_v30, %v1649_v31  ;;  %v1764_v43 = vor.u32 %v2090_v37, %v1763_v36  ;;  %v1628_v63 = vor.u32 %v2055_v54, %v1625_v55  ;;  %v1613_v3 = vld [vmem:[%s3006_s1 + $0x15c] sm:$0xf0]  ;;  %v1922_v4 = vld [vmem:[%s3006_s1 + $0x348] sm:$0xf]  ;;  %v1994_v7 = vld [vmem:[%s3006_s1 + $0x3d8] sm:$0xf] }
  0x42   : > { %869 = vmatpush.bf16.msrb.mxu0 %v1636_v56  ;;  %v1752_v56 = vor.u32 %v2087_v48, %v1751_v47  ;;  %v2134_v8 = vld [vmem:[%s3006_s1 + $0x3e0] sm:$0xf0]  ;;  %v1727_v14 = vld [vmem:[%s3006_s1 + $0x230] sm:$0xf]  ;;  %v2081_v15 = vld [vmem:[%s3006_s1 + $0x238] sm:$0xf0]  ;;  %v1616_v16 = vor.u32 %v2052_v59, %v1613_v3 }
  0x43   : > { %538 = vmatpush.bf16.msrb.mxu1 %v1393_v61  ;;  %884 = vmatpush.bf16.msrb.mxu2 %v1708_v62  ;;  %v1739_v61 = vld [vmem:[%s3006_s1 + $0x248] sm:$0xf]  ;;  %v2084_v62 = vld [vmem:[%s3006_s1 + $0x250] sm:$0xf0]  ;;  %v1995_v20 = vor.u32 %v2134_v8, %v1994_v7  ;;  %v1910_v21 = vld [vmem:[%s3006_s1 + $0x330] sm:$0xf] }
  0x44   : > { %891 = vmatpush.bf16.msra.mxu3 %v1688_v52  ;;  %v1655_v52 = vld [vmem:[%s3006_s1 + $0x1a0] sm:$0xf]  ;;  %v1740_v6 = vor.u32 %v2084_v62, %v1739_v61  ;;  %v2113_v22 = vld [vmem:[%s3006_s1 + $0x338] sm:$0xf0]  ;;  %v2131_v26 = vld [vmem:[%s3006_s1 + $0x3c8] sm:$0xf0] }
  0x45   : > { %v1656_v58 = vor.u32 %v2063_v53, %v1655_v52  ;;  %v1982_v25 = vld [vmem:[%s3006_s1 + $0x3c0] sm:$0xf]  ;;  %v1619_v27 = vld [vmem:[%s3006_s1 + $0x158] sm:$0xf]  ;;  %v2078_v31 = vld [vmem:[%s3006_s1 + $0x220] sm:$0xf0] }
  0x46   : > { %870 = vmatpush.bf16.msrb.mxu0 %v1624_v9  ;;  %1777 = vmatmul.msk.bf16.vlgmr.msrb.gmra.mxu2 %vm475_vm0, %v2584_v10  ;;  %v1712_v9 = vor.u32 %v2076_v60, %v1709_v0  ;;  %v1715_v30 = vld [vmem:[%s3006_s1 + $0x218] sm:$0xf]  ;;  %v1983_v36 = vor.u32 %v2131_v26, %v1982_v25  ;;  %v2110_v37 = vld [vmem:[%s3006_s1 + $0x320] sm:$0xf0]  ;;  %v1970_v40 = vld [vmem:[%s3006_s1 + $0x3a8] sm:$0xf] }
  0x47   : > { %905 = vmatpush.bf16.msra.mxu1 %v1772_v1  ;;  %916 = vmatpush.bf16.msra.mxu2 %v1704_v2  ;;  %v1643_v1 = vld [vmem:[%s3006_s1 + $0x188] sm:$0xf]  ;;  %v2060_v2 = vld [vmem:[%s3006_s1 + $0x190] sm:$0xf0]  ;;  %v1716_v39 = vor.u32 %v2078_v31, %v1715_v30  ;;  %v1886_v46 = vld [vmem:[%s3006_s1 + $0x300] sm:$0xf] }
  0x48   : > { %892 = vmatpush.bf16.msra.mxu3 %v1676_v5  ;;  %539 = vmatmul.bf16.vlgmr.msrb.gmra.mxu1 %v2460_v13  ;;  %v1733_v13 = vld [vmem:[%s3006_s1 + $0x24c] sm:$0xf0]  ;;  %v2116_v5 = vld [vmem:[%s3006_s1 + $0x350] sm:$0xf0]  ;;  %v1644_v12 = vor.u32 %v2060_v2, %v1643_v1  ;;  %v1912_v48 = vld [vmem:[%s3006_s1 + $0x33c] sm:$0xf0] }
  0x49   : > { %v1736_v44 = vor.u32 %v2082_v35, %v1733_v13  ;;  %v1923_v17 = vor.u32 %v2116_v5, %v1922_v4  ;;  %v1924_v35 = vld [vmem:[%s3006_s1 + $0x354] sm:$0xf0]  ;;  %v1996_v13 = vld [vmem:[%s3006_s1 + $0x3e4] sm:$0xf0]  ;;  %v2128_v41 = vld [vmem:[%s3006_s1 + $0x3b0] sm:$0xf0] }
  0x4a   : > { %871 = vmatpush.bf16.msrb.mxu0 %v1612_v29  ;;  %v2054_v29 = vld [vmem:[%s3006_s1 + $0x160] sm:$0xf0]  ;;  %v2112_v47 = vld [vmem:[%s3006_s1 + $0x334] sm:$0xf]  ;;  %v2107_v50 = vld [vmem:[%s3006_s1 + $0x308] sm:$0xf0] }
  0x4b   : > { %906 = vmatpush.bf16.msra.mxu1 %v1760_v18  ;;  %917 = vmatpush.bf16.msra.mxu2 %v1692_v19  ;;  %v1631_v18 = vld [vmem:[%s3006_s1 + $0x170] sm:$0xf]  ;;  %v2057_v19 = vld [vmem:[%s3006_s1 + $0x178] sm:$0xf0]  ;;  %v1620_v42 = vor.u32 %v2054_v29, %v1619_v27  ;;  %v2130_v52 = vld [vmem:[%s3006_s1 + $0x3c4] sm:$0xf] }
  0x4c   : > { %893 = vmatpush.bf16.msra.mxu3 %v1664_v24  ;;  %v1728_v24 = vor.u32 %v2081_v15, %v1727_v14  ;;  %v1632_v28 = vor.u32 %v2057_v19, %v1631_v18  ;;  %v1984_v53 = vld [vmem:[%s3006_s1 + $0x3cc] sm:$0xf0]  ;;  %v2125_v55 = vld [vmem:[%s3006_s1 + $0x398] sm:$0xf0]  ;;  %v1874_v59 = vld [vmem:[%s3006_s1 + $0x2e8] sm:$0xf] }
  0x4d   : > { %872 = vmatmul.bf16.vlgmr.msrb.gmra.mxu0 %v2637_v38  ;;  %v1958_v54 = vld [vmem:[%s3006_s1 + $0x390] sm:$0xf]  ;;  %v2109_v60 = vld [vmem:[%s3006_s1 + $0x31c] sm:$0xf]  ;;  %v1900_v61 = vld [vmem:[%s3006_s1 + $0x324] sm:$0xf0] }
  0x4e   : > { %931 = vmatpush.bf16.msra.mxu0 %v1776_v32  ;;  %v1911_v32 = vor.u32 %v2113_v22, %v1910_v21  ;;  %v1959_v62 = vor.u32 %v2125_v55, %v1958_v54  ;;  %v2127_v0 = vld [vmem:[%s3006_s1 + $0x3ac] sm:$0xf]  ;;  %v1972_v1 = vld [vmem:[%s3006_s1 + $0x3b4] sm:$0xf0]  ;;  %v1903_v3 = vor.u32 %v2109_v60, %v1900_v61  ;;  %v1888_v7 = vld [vmem:[%s3006_s1 + $0x30c] sm:$0xf0] }
  0x4f   : > { %907 = vmatpush.bf16.msra.mxu1 %v1748_v33  ;;  %918 = vmatpush.bf16.msra.mxu2 %v1680_v34  ;;  %v1898_v33 = vld [vmem:[%s3006_s1 + $0x318] sm:$0xf]  ;;  %v2115_v34 = vld [vmem:[%s3006_s1 + $0x34c] sm:$0xf]  ;;  %v1975_v5 = vor.u32 %v2127_v0, %v1972_v1  ;;  %v1960_v14 = vld [vmem:[%s3006_s1 + $0x39c] sm:$0xf0] }
  0x50   : > { %894 = vmatpush.bf16.msra.mxu3 %v1652_v11  ;;  %v2133_v11 = vld [vmem:[%s3006_s1 + $0x3dc] sm:$0xf]  ;;  %v1946_v2 = vld [vmem:[%s3006_s1 + $0x378] sm:$0xf]  ;;  %v1934_v15 = vld [vmem:[%s3006_s1 + $0x360] sm:$0xf] }
  0x51   : > { %v1930_v18 = vld [vmem:[%s3006_s1 + $0x350] sm:$0xf]  ;;  %v2117_v19 = vld [vmem:[%s3006_s1 + $0x358] sm:$0xf0]  ;;  %v2103_v22 = vld [vmem:[%s3006_s1 + $0x2ec] sm:$0xf] }
  0x52   : > { %932 = vmatpush.bf16.msra.mxu0 %v1764_v43  ;;  %v1927_v43 = vor.u32 %v2115_v34, %v1924_v35  ;;  %v1850_v26 = vld [vmem:[%s3006_s1 + $0x2b8] sm:$0xf]  ;;  %v2098_v27 = vld [vmem:[%s3006_s1 + $0x2c0] sm:$0xf0]  ;;  %v2121_v29 = vld [vmem:[%s3006_s1 + $0x37c] sm:$0xf] }
  0x53   : > { %908 = vmatpush.bf16.msra.mxu1 %v1736_v44  ;;  %919 = vmatpush.bf16.msra.mxu2 %v1668_v45  ;;  %v1899_v44 = vor.u32 %v2110_v37, %v1898_v33  ;;  %v1999_v45 = vor.u32 %v2133_v11, %v1996_v13  ;;  %v1948_v30 = vld [vmem:[%s3006_s1 + $0x384] sm:$0xf0]  ;;  %v2114_v33 = vld [vmem:[%s3006_s1 + $0x340] sm:$0xf0]  ;;  %v1851_v34 = vor.u32 %v2098_v27, %v1850_v26  ;;  %v2884_v35 = vrot.slane %v2489_v23, 1 }
  0x54   : > { %895 = vmatpush.bf16.msra.mxu3 %v1640_v49  ;;  %v1971_v49 = vor.u32 %v2128_v41, %v1970_v40  ;;  %v1864_v37 = vld [vmem:[%s3006_s1 + $0x2dc] sm:$0xf0]  ;;  %v1951_v11 = vor.u32 %v2121_v29, %v1948_v30  ;;  %v2135_v41 = vld [vmem:[%s3006_s1 + $0x3e8] sm:$0xf0]  ;;  %v1990_v54 = vld [vmem:[%s3006_s1 + $0x3c8] sm:$0xf] }
  0x55   : > { %v1838_v13 = vld [vmem:[%s3006_s1 + $0x2a0] sm:$0xf]  ;;  %v2132_v55 = vld [vmem:[%s3006_s1 + $0x3d0] sm:$0xf0]  ;;  %v2094_v60 = vld [vmem:[%s3006_s1 + $0x2a4] sm:$0xf] }
  0x56   : > { %933 = vmatpush.bf16.msra.mxu0 %v1752_v56  ;;  %v1915_v56 = vor.u32 %v2112_v47, %v1912_v48  ;;  %v2002_v23 = vld [vmem:[%s3006_s1 + $0x3e0] sm:$0xf]  ;;  %v2097_v48 = vld [vmem:[%s3006_s1 + $0x2bc] sm:$0xf]  ;;  %v1840_v61 = vld [vmem:[%s3006_s1 + $0x2ac] sm:$0xf0] }
  0x57   : > { %909 = vmatpush.bf16.msra.mxu1 %v1724_v57  ;;  %920 = vmatpush.bf16.msra.mxu2 %v1656_v58  ;;  %v1887_v57 = vor.u32 %v2107_v50, %v1886_v46  ;;  %v1987_v58 = vor.u32 %v2130_v52, %v1984_v53  ;;  %v2111_v46 = vld [vmem:[%s3006_s1 + $0x328] sm:$0xf0]  ;;  %v2003_v50 = vor.u32 %v2135_v41, %v2002_v23  ;;  %v2129_v0 = vld [vmem:[%s3006_s1 + $0x3b8] sm:$0xf0] }
  0x58   : > { %896 = vmatpush.bf16.msra.mxu3 %v1628_v63  ;;  %v2104_v63 = vld [vmem:[%s3006_s1 + $0x2f0] sm:$0xf0]  ;;  %v1843_v1 = vor.u32 %v2094_v60, %v1840_v61 }
  0x59   : > { %v1875_v4 = vor.u32 %v2104_v63, %v1874_v59  ;;  %v2108_v59 = vld [vmem:[%s3006_s1 + $0x310] sm:$0xf0]  ;;  %v1978_v63 = vld [vmem:[%s3006_s1 + $0x3b0] sm:$0xf] }
  0x5a   : > { %934 = vmatpush.bf16.msra.mxu0 %v1740_v6  ;;  %v1862_v6 = vld [vmem:[%s3006_s1 + $0x2d0] sm:$0xf] }
  0x5b   : > { %910 = vmatpush.bf16.msra.mxu1 %v1712_v9  ;;  %921 = vmatpush.bf16.msra.mxu2 %v1644_v12  ;;  %v2101_v9 = vld [vmem:[%s3006_s1 + $0x2d8] sm:$0xf0]  ;;  %v2124_v12 = vld [vmem:[%s3006_s1 + $0x394] sm:$0xf] }
  0x5c   : > { %897 = vmatpush.bf16.msra.mxu3 %v1616_v16  ;;  %v2119_v16 = vld [vmem:[%s3006_s1 + $0x368] sm:$0xf0]  ;;  %v1963_v21 = vor.u32 %v2124_v12, %v1960_v14  ;;  %v1954_v12 = vld [vmem:[%s3006_s1 + $0x380] sm:$0xf] }
  0x5d   : > { %v1935_v25 = vor.u32 %v2119_v16, %v1934_v15  ;;  %v2123_v14 = vld [vmem:[%s3006_s1 + $0x388] sm:$0xf0]  ;;  %v1858_v15 = vld [vmem:[%s3006_s1 + $0x2c0] sm:$0xf] }
  0x5e   : > { %935 = vmatpush.bf16.msra.mxu0 %v1728_v24  ;;  %1778 = vmatmul.msk.bf16.vlgmr.msra.gmra.mxu1 %vm475_vm0, %v2584_v10  ;;  %v1876_v24 = vld [vmem:[%s3006_s1 + $0x2f4] sm:$0xf0]  ;;  %v2099_v16 = vld [vmem:[%s3006_s1 + $0x2c8] sm:$0xf0] }
  0x5f   : > { %1232 = vmatpush.bf16.msrb.mxu1 %v1923_v17  ;;  %898 = vmatmul.bf16.vlgmr.msra.gmra.mxu3 %v2637_v38  ;;  %v1879_v31 = vor.u32 %v2103_v22, %v1876_v24  ;;  %v2096_v22 = vld [vmem:[%s3006_s1 + $0x2b0] sm:$0xf0] }
  0x60   : > { %1247 = vmatpush.bf16.msrb.mxu3 %v1995_v20  ;;  %922 = vmatpush.bf16.msra.mxu2 %v1632_v28  ;;  %v1863_v20 = vor.u32 %v2101_v9, %v1862_v6  ;;  %v1931_v28 = vor.u32 %v2117_v19, %v1930_v18  ;;  %v2126_v6 = vld [vmem:[%s3006_s1 + $0x3a0] sm:$0xf0]  ;;  %v1859_v18 = vor.u32 %v2099_v16, %v1858_v15  ;;  %v1942_v19 = vld [vmem:[%s3006_s1 + $0x368] sm:$0xf] }
  0x62   : > { %936 = vmatpush.bf16.msra.mxu0 %v1716_v39  ;;  %v2095_v39 = vld [vmem:[%s3006_s1 + $0x2a8] sm:$0xf0] }
  0x63   : > { %1233 = vmatpush.bf16.msrb.mxu1 %v1911_v32  ;;  %v1918_v32 = vld [vmem:[%s3006_s1 + $0x338] sm:$0xf]  ;;  %v1839_v47 = vor.u32 %v2095_v39, %v1838_v13 }
  0x64   : > { %1248 = vmatpush.bf16.msrb.mxu3 %v1983_v36  ;;  %923 = vmatpush.bf16.msra.mxu2 %v1620_v42  ;;  %v2100_v36 = vld [vmem:[%s3006_s1 + $0x2d4] sm:$0xf]  ;;  %v1919_v40 = vor.u32 %v2114_v33, %v1918_v32  ;;  %v2118_v42 = vld [vmem:[%s3006_s1 + $0x364] sm:$0xf] }
  0x65   : > { %1779 = vmatmul.msk.bf16.vlgmr.msra.gmra.mxu0 %vm475_vm0, %v2584_v10  ;;  %v2122_v10 = vld [vmem:[%s3006_s1 + $0x380] sm:$0xf0] }
  0x66   : > { %1258 = vmatpush.bf16.msrb.mxu0 %v1927_v43  ;;  %v1947_v8 = vor.u32 %v2122_v10, %v1946_v2  ;;  %v1936_v43 = vld [vmem:[%s3006_s1 + $0x36c] sm:$0xf0]  ;;  %v2105_v10 = vld [vmem:[%s3006_s1 + $0x2f8] sm:$0xf0] }
  0x67   : > { %1234 = vmatpush.bf16.msrb.mxu1 %v1899_v44  ;;  %924 = vmatmul.bf16.vlgmr.msra.gmra.mxu2 %v2637_v38  ;;  %v2106_v38 = vld [vmem:[%s3006_s1 + $0x304] sm:$0xf]  ;;  %v1867_v44 = vor.u32 %v2100_v36, %v1864_v37  ;;  %v1939_v52 = vor.u32 %v2118_v42, %v1936_v43  ;;  %v1882_v2 = vld [vmem:[%s3006_s1 + $0x2f0] sm:$0xf] }
  0x68   : > { %1273 = vmatpush.bf16.msrb.mxu2 %v1999_v45  ;;  %1249 = vmatpush.bf16.msrb.mxu3 %v1971_v49  ;;  %v1891_v17 = vor.u32 %v2106_v38, %v1888_v7  ;;  %v1906_v45 = vld [vmem:[%s3006_s1 + $0x320] sm:$0xf]  ;;  %v1852_v49 = vld [vmem:[%s3006_s1 + $0x2c4] sm:$0xf0]  ;;  %v1870_v38 = vld [vmem:[%s3006_s1 + $0x2d8] sm:$0xf] }
  0x69   : > { %v1907_v53 = vor.u32 %v2111_v46, %v1906_v45  ;;  %v2102_v7 = vld [vmem:[%s3006_s1 + $0x2e0] sm:$0xf0] }
  0x6a   : > { %1259 = vmatpush.bf16.msrb.mxu0 %v1915_v56  ;;  %v1002_v56 = vrot.slane %v2547_v51, 1  ;;  %v1991_v51 = vor.u32 %v2132_v55, %v1990_v54  ;;  %v1871_v9 = vor.u32 %v2102_v7, %v1870_v38 }
  0x6b   : > { %1235 = vmatpush.bf16.msrb.mxu1 %v1887_v57  ;;  %v1855_v57 = vor.u32 %v2097_v48, %v1852_v49 }
  0x6c   : > { %1274 = vmatpush.bf16.msrb.mxu2 %v1987_v58  ;;  %1250 = vmatpush.bf16.msrb.mxu3 %v1959_v62  ;;  %v1894_v58 = vld [vmem:[%s3006_s1 + $0x308] sm:$0xf] }
  0x6d   : > { %v1895_v62 = vor.u32 %v2108_v59, %v1894_v58 }
  0x6e   : > { %1260 = vmatpush.bf16.msrb.mxu0 %v1903_v3  ;;  %v1979_v3 = vor.u32 %v2129_v0, %v1978_v63 }
  0x6f   : > { %1236 = vmatpush.bf16.msrb.mxu1 %v1875_v4  ;;  %v1883_v4 = vor.u32 %v2105_v10, %v1882_v2 }
  0x70   : > { %1275 = vmatpush.bf16.msrb.mxu2 %v1975_v5  ;;  %1251 = vmatpush.bf16.msrb.mxu3 %v1947_v8  ;;  %v1966_v5 = vld [vmem:[%s3006_s1 + $0x398] sm:$0xf] }
  0x71   : > { %v1967_v8 = vor.u32 %v2126_v6, %v1966_v5 }
  0x72   : > { %1261 = vmatpush.bf16.msrb.mxu0 %v1891_v17  ;;  %v1955_v17 = vor.u32 %v2123_v14, %v1954_v12 }
  0x73   : > { %1237 = vmatpush.bf16.msrb.mxu1 %v1863_v20  ;;  %v2120_v20 = vld [vmem:[%s3006_s1 + $0x370] sm:$0xf0] }
  0x74   : > { %1276 = vmatpush.bf16.msrb.mxu2 %v1963_v21  ;;  %1252 = vmatpush.bf16.msrb.mxu3 %v1935_v25  ;;  %v1846_v21 = vld [vmem:[%s3006_s1 + $0x2a8] sm:$0xf]  ;;  %v1943_v24 = vor.u32 %v2120_v20, %v1942_v19 }
  0x75   : > { %v1847_v25 = vor.u32 %v2096_v22, %v1846_v21 }
  0x76   : > { %1262 = vmatpush.bf16.msrb.mxu0 %v1879_v31 }
  0x77   : > { %1238 = vmatpush.bf16.msrb.mxu1 %v1851_v34  ;;  %2004 = vmatmul.msk.bf16.vlgmr.msrb.gmra.mxu3 %vm475_vm0, %v2884_v35 }
  0x78   : > { %1284 = vmatpush.bf16.msra.mxu3 %v1931_v28  ;;  %1277 = vmatpush.bf16.msrb.mxu2 %v1951_v11 }
  0x7a   : > { %1263 = vmatpush.bf16.msrb.mxu0 %v1867_v44 }
  0x7b   : > { %1239 = vmatpush.bf16.msrb.mxu1 %v1839_v47 }
  0x7c   : > { %1285 = vmatpush.bf16.msra.mxu3 %v1919_v40  ;;  %1278 = vmatpush.bf16.msrb.mxu2 %v1939_v52 }
  0x7e   : > { %1240 = vmatmul.bf16.vlgmr.msrb.gmra.mxu1 %v1002_v56  ;;  %1264 = vmatpush.bf16.msrb.mxu0 %v1855_v57 }
  0x7f   : > { %1299 = vmatpush.bf16.msra.mxu1 %v2003_v50  ;;  %2005 = vmatmul.msk.bf16.vlgmr.msrb.gmra.mxu2 %vm475_vm0, %v2884_v35  ;;  %v178_v50 = vld [vmem:[%s3007_s2] sm:$0x7] }
  0x80   : > { %1286 = vmatpush.bf16.msra.mxu3 %v1907_v53  ;;  %v180_v52 = vperm.slane %v178_v50, 0  ;;  %v181_v60 = vperm.slane %v178_v50, 1 }
  0x82   : > { %1265 = vmatpush.bf16.msrb.mxu0 %v1843_v1 }
  0x83   : > { %1300 = vmatpush.bf16.msra.mxu1 %v1991_v51 }
  0x84   : > { %1287 = vmatpush.bf16.msra.mxu3 %v1895_v62 }
  0x85   : > { %1266 = vmatmul.bf16.vlgmr.msrb.gmra.mxu0 %v1002_v56 }
  0x87   : > { %1301 = vmatpush.bf16.msra.mxu1 %v1979_v3 }
  0x88   : > { %1288 = vmatpush.bf16.msra.mxu3 %v1883_v4 }
  0x8b   : > { %1302 = vmatpush.bf16.msra.mxu1 %v1967_v8 }
  0x8c   : > { %1289 = vmatpush.bf16.msra.mxu3 %v1871_v9  ;;  %v182_v9 = vperm.slane %v178_v50, 2 }
  0x8f   : > { %1303 = vmatpush.bf16.msra.mxu1 %v1955_v17 }
  0x90   : > { %1290 = vmatpush.bf16.msra.mxu3 %v1859_v18 }
  0x93   : > { %1304 = vmatpush.bf16.msra.mxu1 %v1943_v24 }
  0x94   : > { %1291 = vmatpush.bf16.msra.mxu3 %v1847_v25 }
  0x96   : > { %2006 = vmatmul.msk.bf16.vlgmr.msra.gmra.mxu1 %vm475_vm0, %v2884_v35 }
  0x97   : > { %1292 = vmatmul.bf16.vlgmr.msra.gmra.mxu3 %v1002_v56 }
  0xae   : > { %v501_v26 = vpop.f32.mrf.mxu1  ;;  %v488_v27 = vpop.f32.mrf.mxu0 }
  0xaf   : > { %v502_v53 = vadd.f32 %v501_v26, %v488_v27 }
  0xb1   : > { %v527_v28 = vpop.f32.mrf.mxu3  ;;  %v557_v55 = vadd.f32 %v502_v53, %v180_v52 }
  0xb3   : > { %v514_v29 = vpop.f32.mrf.mxu2 }
  0xb4   : > { %v528_v30 = vadd.f32 %v527_v28, %v514_v29 }
  0xb6   : > { %v503_v31 = vpop.f32.mrf.mxu1  ;;  %v490_v32 = vpop.f32.mrf.mxu0  ;;  %v558_v63 = vadd.f32 %v528_v30, %v181_v60 }
  0xb9   : > { %v529_v33 = vpop.f32.mrf.mxu3 }
  0xbb   : > { %v516_v34 = vpop.f32.mrf.mxu2 }
  0xc4   : > { %v553_v13 = vpop.f32.mrf.mxu3 }
  0xc5   : > { %v540_v36 = vpop.f32.mrf.mxu1 }
  0xc6   : > { %v554_v39 = vadd.f32 %v553_v13, %v540_v36 }
  0xc8   : > { %v559_v14 = vadd.f32 %v554_v39, %v182_v9 }
  0xc9   : > { %v886_v37 = vpop.f32.mrf.mxu2 }
  0xca   : > { %v873_v11 = vpop.f32.mrf.mxu0 }
  0xcb   : > { %v887_v54 = vadd.f32 %v886_v37, %v873_v11 }
  0xcc   : > { %v555_v41 = vpop.f32.mrf.mxu3 }
  0xcd   : > { %v542_v23 = vpop.f32.mrf.mxu1  ;;  %v942_v58 = vadd.f32 %v887_v54, %v557_v55 }
  0xd1   : > { %v888_v40 = vpop.f32.mrf.mxu2 }
  0xd2   : > { %v875_v42 = vpop.f32.mrf.mxu0 }
  0xdb   : > { %v912_v35 = vpop.f32.mrf.mxu1 }
  0xe2   : > { %v899_v43 = vpop.f32.mrf.mxu3  ;;  %v938_v44 = vpop.f32.mrf.mxu0 }
  0xe3   : > { %v914_v45 = vpop.f32.mrf.mxu1  ;;  %v913_v51 = vadd.f32 %v912_v35, %v899_v43 }
  0xe5   : > { %v943_v2 = vadd.f32 %v913_v51, %v558_v63 }
  0xea   : > { %v925_v46 = vpop.f32.mrf.mxu2  ;;  %v901_v47 = vpop.f32.mrf.mxu3 }
  0xeb   : > { %v940_v48 = vpop.f32.mrf.mxu0  ;;  %v939_v12 = vadd.f32 %v938_v44, %v925_v46 }
  0xed   : > { %v944_v16 = vadd.f32 %v939_v12, %v559_v14 }
  0xf2   : > { %v927_v49 = vpop.f32.mrf.mxu2 }
  0xfa   : > { %v1254_v56 = vpop.f32.mrf.mxu3 }
  0xfb   : > { %v1241_v57 = vpop.f32.mrf.mxu1 }
  0xfc   : > { %v1255_v59 = vadd.f32 %v1254_v56, %v1241_v57 }
  0xfe   : > { %v1310_v61 = vadd.f32 %v1255_v59, %v942_v58 }
 0x100   : > { %v1313_v62 = vmax.f32 %v1310_v61, 0.0 }
 0x102   : > { %1316 = vst [vmem:[%s170_s27] sm:$0xff] %v1313_v62  ;;  %v1267_v0 = vpop.f32.mrf.mxu0  ;;  %v1280_v1 = vpop.f32.mrf.mxu2 }
 0x103   : > { %v1281_v10 = vadd.f32 %v1280_v1, %v1267_v0  ;;  %v1243_v3 = vpop.f32.mrf.mxu1  ;;  %v1256_v4 = vpop.f32.mrf.mxu3 }
 0x105   : > { %v1311_v5 = vadd.f32 %v1281_v10, %v943_v2 }
 0x107   : > { %v1314_v6 = vmax.f32 %v1311_v5, 0.0 }
 0x109   : > { %1317 = vst [vmem:[%s170_s27 + $0x8] sm:$0xff] %v1314_v6 }
 0x10a   : > { %v1269_v38 = vpop.f32.mrf.mxu0  ;;  %v1282_v7 = vpop.f32.mrf.mxu2 }
 0x113   : > { %v1306_v8 = vpop.f32.mrf.mxu1 }
 0x11a   : > { %v1293_v15 = vpop.f32.mrf.mxu3 }
 0x11b   : > { %v1307_v17 = vadd.f32 %v1306_v8, %v1293_v15  ;;  %v1308_v18 = vpop.f32.mrf.mxu1 }
 0x11d   : > { %v1312_v19 = vadd.f32 %v1307_v17, %v944_v16 }
 0x11f   : > { %v1315_v20 = vmax.f32 %v1312_v19, 0.0 }
 0x121   : > { %1318 = vst [vmem:[%s170_s27 + $0x10] sm:$0xff] %v1315_v20 }
 0x122   : > { %v1295_v21 = vpop.f32.mrf.mxu3 }
 0x123 PF: > { %s13_s12 = sadd.s32 1, %s2151_s12  }
 0x124   : > { %p10_p4 = scmp.ge.s32.totalorder %s13_s12, 4  }
 0x126   :  { %12 = sbr.rel (!%p10_p4) target bundleno = 1 (0x1), region = 64 }

// kernel: forward.21
= control target key start
LH: loop header
LB: loop body
LE: loop exit
PB: predicated region body
PF: predicated region fallthrough
CT: control target
= control target key end

     0   :  { %s2112_s12 = smov 0   ;;  %s2919_s0 = inlined_call_operand.vmem [shape: f32[2,18,208], index: 0, kind: input, shape index: {}]   ;;  %s2920_s1 = inlined_call_operand.vmem [shape: bf16[3,208,384], index: 1, kind: input, shape index: {}]   ;;  %s2921_s2 = inlined_call_operand.vmem [shape: f32[1,384], index: 2, kind: input, shape index: {}]   ;;  %s2922_s3 = inlined_call_operand.vmem [shape: f32[2,16,384], index: 3, kind: output, shape index: {}]  }
   0x1 LB: > { %s1368_s13 = sadd.s32 4294967295, %s2090_s12   ;;  %p1372_p0 = scmp.ge.s32.totalorder %s2090_s12, 1  ;;  %s2090_s12 = sphi %s2112_s12, %s13_s12  }
   0x2   : > { %p137_p1 = scmp.lt.s32.totalorder %s2090_s12, 3 }
   0x4   : > { %p138_p2 = pnand %p1372_p0, %p137_p1 }
   0x5   : > { %p161_p3 = scmp.lt.s32.totalorder (!%p138_p2), %s1368_s13, 1 }
   0x6   : > { %141 = sbr.rel (%p138_p2) target bundleno = 286 (0x11e), region = 32 }
   0xb   : > { %v1461_v0 = vld [vmem:[%s2920_s1 + $0xa8] sm:$0xf]  ;;  %v1980_v1 = vld [vmem:[%s2920_s1 + $0xb0] sm:$0xf0]  ;;  %v1521_v2 = vld [vmem:[%s2920_s1 + $0x120] sm:$0xf] }
   0xc   : > { %v1462_v3 = vor.u32 %v1980_v1, %v1461_v0  ;;  %v1995_v4 = vld [vmem:[%s2920_s1 + $0x128] sm:$0xf0]  ;;  %v1463_v6 = vld [vmem:[%s2920_s1 + $0xb4] sm:$0xf0]  ;;  %v1994_v9 = vld [vmem:[%s2920_s1 + $0x124] sm:$0xf] }
   0xd   : > { %v1979_v5 = vld [vmem:[%s2920_s1 + $0xac] sm:$0xf]  ;;  %v1522_v7 = vor.u32 %v1995_v4, %v1521_v2  ;;  %v1523_v10 = vld [vmem:[%s2920_s1 + $0x12c] sm:$0xf0]  ;;  %v1977_v13 = vld [vmem:[%s2920_s1 + $0x98] sm:$0xf0] }
   0xe   : > { %v1466_v8 = vor.u32 %v1979_v5, %v1463_v6  ;;  %v1449_v11 = vld [vmem:[%s2920_s1 + $0x90] sm:$0xf]  ;;  %465 = vmatpush.bf16.msra.mxu0 %v1462_v3  ;;  %v1526_v12 = vor.u32 %v1994_v9, %v1523_v10  ;;  %v1509_v14 = vld [vmem:[%s2920_s1 + $0x108] sm:$0xf]  ;;  %v1992_v15 = vld [vmem:[%s2920_s1 + $0x110] sm:$0xf0] }
   0xf   : > { %482 = vmatpush.bf16.msra.mxu1 %v1522_v7  ;;  %v1450_v16 = vor.u32 %v1977_v13, %v1449_v11  ;;  %v1510_v17 = vor.u32 %v1992_v15, %v1509_v14  ;;  %v1976_v18 = vld [vmem:[%s2920_s1 + $0x94] sm:$0xf]  ;;  %v1451_v19 = vld [vmem:[%s2920_s1 + $0x9c] sm:$0xf0]  ;;  %v1991_v20 = vld [vmem:[%s2920_s1 + $0x10c] sm:$0xf] }
  0x10   : > { %493 = vmatpush.bf16.msra.mxu2 %v1466_v8  ;;  %510 = vmatpush.bf16.msra.mxu3 %v1526_v12  ;;  %v1454_v21 = vor.u32 %v1976_v18, %v1451_v19  ;;  %v1511_v22 = vld [vmem:[%s2920_s1 + $0x114] sm:$0xf0]  ;;  %v1974_v24 = vld [vmem:[%s2920_s1 + $0x80] sm:$0xf0]  ;;  %v1497_v26 = vld [vmem:[%s2920_s1 + $0xf0] sm:$0xf] }
  0x11   : > { %v1437_v23 = vld [vmem:[%s2920_s1 + $0x78] sm:$0xf]  ;;  %v1514_v25 = vor.u32 %v1991_v20, %v1511_v22  ;;  %v1989_v27 = vld [vmem:[%s2920_s1 + $0xf8] sm:$0xf0]  ;;  %v1439_v30 = vld [vmem:[%s2920_s1 + $0x84] sm:$0xf0] }
  0x12   : > { %v1973_v28 = vld [vmem:[%s2920_s1 + $0x7c] sm:$0xf]  ;;  %466 = vmatpush.bf16.msra.mxu0 %v1450_v16  ;;  %v1438_v29 = vor.u32 %v1974_v24, %v1437_v23  ;;  %v1988_v31 = vld [vmem:[%s2920_s1 + $0xf4] sm:$0xf]  ;;  %v1499_v32 = vld [vmem:[%s2920_s1 + $0xfc] sm:$0xf0]  ;;  %v1498_v33 = vor.u32 %v1989_v27, %v1497_v26 }
  0x13   : > { %483 = vmatpush.bf16.msra.mxu1 %v1510_v17  ;;  %v1442_v34 = vor.u32 %v1973_v28, %v1439_v30  ;;  %v1425_v35 = vld [vmem:[%s2920_s1 + $0x60] sm:$0xf]  ;;  %v1971_v36 = vld [vmem:[%s2920_s1 + $0x68] sm:$0xf0]  ;;  %v1485_v37 = vld [vmem:[%s2920_s1 + $0xd8] sm:$0xf]  ;;  %v1502_v38 = vor.u32 %v1988_v31, %v1499_v32 }
  0x14   : > { %494 = vmatpush.bf16.msra.mxu2 %v1454_v21  ;;  %511 = vmatpush.bf16.msra.mxu3 %v1514_v25  ;;  %v1986_v39 = vld [vmem:[%s2920_s1 + $0xe0] sm:$0xf0]  ;;  %v1427_v41 = vld [vmem:[%s2920_s1 + $0x6c] sm:$0xf0]  ;;  %v1985_v42 = vld [vmem:[%s2920_s1 + $0xdc] sm:$0xf]  ;;  %v1426_v44 = vor.u32 %v1971_v36, %v1425_v35 }
  0x15   : > { %v1970_v40 = vld [vmem:[%s2920_s1 + $0x64] sm:$0xf]  ;;  %v1487_v43 = vld [vmem:[%s2920_s1 + $0xe4] sm:$0xf0]  ;;  %v1486_v46 = vor.u32 %v1986_v39, %v1485_v37  ;;  %v1968_v48 = vld [vmem:[%s2920_s1 + $0x50] sm:$0xf0] }
  0x16   : > { %467 = vmatpush.bf16.msra.mxu0 %v1438_v29  ;;  %v1413_v45 = vld [vmem:[%s2920_s1 + $0x48] sm:$0xf]  ;;  %v1430_v47 = vor.u32 %v1970_v40, %v1427_v41  ;;  %v1473_v49 = vld [vmem:[%s2920_s1 + $0xc0] sm:$0xf]  ;;  %v1983_v50 = vld [vmem:[%s2920_s1 + $0xc8] sm:$0xf0]  ;;  %v1490_v51 = vor.u32 %v1985_v42, %v1487_v43 }
  0x17   : > { %484 = vmatpush.bf16.msra.mxu1 %v1498_v33  ;;  %v1967_v52 = vld [vmem:[%s2920_s1 + $0x4c] sm:$0xf]  ;;  %v1415_v53 = vld [vmem:[%s2920_s1 + $0x54] sm:$0xf0]  ;;  %v1982_v54 = vld [vmem:[%s2920_s1 + $0xc4] sm:$0xf]  ;;  %v1414_v58 = vor.u32 %v1968_v48, %v1413_v45  ;;  %v1474_v61 = vor.u32 %v1983_v50, %v1473_v49 }
  0x18   : > { %495 = vmatpush.bf16.msra.mxu2 %v1442_v34  ;;  %512 = vmatpush.bf16.msra.mxu3 %v1502_v38  ;;  %v1475_v55 = vld [vmem:[%s2920_s1 + $0xcc] sm:$0xf0]  ;;  %v1981_v57 = vld [vmem:[%s2920_s1 + $0xb8] sm:$0xf0]  ;;  %v1529_v59 = vld [vmem:[%s2920_s1 + $0x128] sm:$0xf]  ;;  %v1418_v62 = vor.u32 %v1967_v52, %v1415_v53 }
  0x19   : > { %v1469_v56 = vld [vmem:[%s2920_s1 + $0xb0] sm:$0xf]  ;;  %v1996_v60 = vld [vmem:[%s2920_s1 + $0x130] sm:$0xf0]  ;;  %v1965_v0 = vld [vmem:[%s2920_s1 + $0x38] sm:$0xf0]  ;;  %v1478_v1 = vor.u32 %v1982_v54, %v1475_v55 }
  0x1a   : > { %468 = vmatpush.bf16.msra.mxu0 %v1426_v44  ;;  %v1401_v63 = vld [vmem:[%s2920_s1 + $0x30] sm:$0xf]  ;;  %v1470_v2 = vor.u32 %v1981_v57, %v1469_v56  ;;  %v1964_v3 = vld [vmem:[%s2920_s1 + $0x34] sm:$0xf]  ;;  %v1403_v4 = vld [vmem:[%s2920_s1 + $0x3c] sm:$0xf0]  ;;  %v1530_v5 = vor.u32 %v1996_v60, %v1529_v59 }
  0x1b   : > { %485 = vmatpush.bf16.msra.mxu1 %v1486_v46  ;;  %v1457_v6 = vld [vmem:[%s2920_s1 + $0x98] sm:$0xf]  ;;  %v1978_v7 = vld [vmem:[%s2920_s1 + $0xa0] sm:$0xf0]  ;;  %v1517_v8 = vld [vmem:[%s2920_s1 + $0x110] sm:$0xf]  ;;  %v1402_v9 = vor.u32 %v1965_v0, %v1401_v63  ;;  %v1406_v13 = vor.u32 %v1964_v3, %v1403_v4 }
  0x1c   : > { %496 = vmatpush.bf16.msra.mxu2 %v1430_v47  ;;  %513 = vmatpush.bf16.msra.mxu3 %v1490_v51  ;;  %v1993_v10 = vld [vmem:[%s2920_s1 + $0x118] sm:$0xf0]  ;;  %v1389_v11 = vld [vmem:[%s2920_s1 + $0x18] sm:$0xf]  ;;  %v1962_v12 = vld [vmem:[%s2920_s1 + $0x20] sm:$0xf0]  ;;  %v1458_v16 = vor.u32 %v1978_v7, %v1457_v6 }
  0x1d   : > { %v1961_v14 = vld [vmem:[%s2920_s1 + $0x1c] sm:$0xf]  ;;  %v1391_v15 = vld [vmem:[%s2920_s1 + $0x24] sm:$0xf0]  ;;  %v1445_v17 = vld [vmem:[%s2920_s1 + $0x80] sm:$0xf]  ;;  %v1518_v20 = vor.u32 %v1993_v10, %v1517_v8  ;;  %v1390_v23 = vor.u32 %v1962_v12, %v1389_v11 }
  0x1e   : > { %469 = vmatpush.bf16.msra.mxu0 %v1414_v58  ;;  %v1975_v18 = vld [vmem:[%s2920_s1 + $0x88] sm:$0xf0]  ;;  %v1505_v19 = vld [vmem:[%s2920_s1 + $0xf8] sm:$0xf]  ;;  %v1990_v21 = vld [vmem:[%s2920_s1 + $0x100] sm:$0xf0]  ;;  %v1394_v27 = vor.u32 %v1961_v14, %v1391_v15 }
  0x1f   : > { %486 = vmatpush.bf16.msra.mxu1 %v1474_v61  ;;  %s2924_s13 = smov (!%p161_p3, %s1368_s13), 1  ;;  %v1377_v22 = vld [vmem:[%s2920_s1] sm:$0xf]  ;;  %v1959_v24 = vld [vmem:[%s2920_s1 + $0x8] sm:$0xf0]  ;;  %v1446_v30 = vor.u32 %v1975_v18, %v1445_v17  ;;  %v1506_v34 = vor.u32 %v1990_v21, %v1505_v19  ;;  %vm461_vm0 = vcmask 654336  }
  0x20   : > { %497 = vmatpush.bf16.msra.mxu2 %v1418_v62  ;;  %514 = vmatpush.bf16.msra.mxu3 %v1478_v1  ;;  %v1958_v25 = vld [vmem:[%s2920_s1 + $0x4] sm:$0xf]  ;;  %v1379_v26 = vld [vmem:[%s2920_s1 + $0xc] sm:$0xf0]  ;;  %s2075_s17 = smul.u32 48, %s2924_s13  ;;  %v1378_v41 = vor.u32 %v1959_v24, %v1377_v22  ;;  %vm992_vm2 = vcmask 1046528  }
  0x21   : > { %v1433_v28 = vld [vmem:[%s2920_s1 + $0x68] sm:$0xf]  ;;  %v1972_v29 = vld [vmem:[%s2920_s1 + $0x70] sm:$0xf0]  ;;  %v1493_v31 = vld [vmem:[%s2920_s1 + $0xe0] sm:$0xf]  ;;  %v1382_v44 = vor.u32 %v1958_v25, %v1379_v26 }
  0x22   : > { %470 = vmatpush.bf16.msra.mxu0 %v1402_v9  ;;  %v1672_v32 = vld [vmem:[%s2920_s1 + $0x1e0] sm:$0xf]  ;;  %v2019_v33 = vld [vmem:[%s2920_s1 + $0x1e8] sm:$0xf0]  ;;  %s2339_s30 = scalar_lea.vmem %s2919_s0, %s2075_s17  ;;  %v1732_v36 = vld [vmem:[%s2920_s1 + $0x258] sm:$0xf]  ;;  %v1434_v48 = vor.u32 %v1972_v29, %v1433_v28  ;;  %s2906_s5 = scalar_lea.vmem %s2922_s3, %s2075_s17 }
  0x23   : > { %521 = vmatpush.bf16.msrb.mxu1 %v1470_v2  ;;  %v1987_v35 = vld [vmem:[%s2920_s1 + $0xe8] sm:$0xf0]  ;;  %v2034_v37 = vld [vmem:[%s2920_s1 + $0x260] sm:$0xf0]  ;;  %v174_v40 = vld [vmem:[%s2339_s30 + $0x10] sm:$0xff]  ;;  %v1673_v45 = vor.u32 %v2019_v33, %v1672_v32 }
  0x24   : > { %538 = vmatpush.bf16.msrb.mxu3 %v1530_v5  ;;  %498 = vmatpush.bf16.msra.mxu2 %v1406_v13  ;;  %v172_v38 = vld [vmem:[%s2339_s30] sm:$0xff]  ;;  %v173_v39 = vld [vmem:[%s2339_s30 + $0x8] sm:$0xff]  ;;  %v175_v42 = vld [vmem:[%s2339_s30 + $0x18] sm:$0xff]  ;;  %v1733_v49 = vor.u32 %v2034_v37, %v1732_v36  ;;  %v1494_v54 = vor.u32 %v1987_v35, %v1493_v31  ;;  %vm613_vm1 = vsmask.f32 7424 }
  0x25   : > { %v178_v43 = vpack.c.bf16 %v173_v39, %v172_v38  ;;  %v1421_v46 = vld [vmem:[%s2920_s1 + $0x50] sm:$0xf]  ;;  %v179_v47 = vpack.c.bf16 %v175_v42, %v174_v40  ;;  %v1969_v50 = vld [vmem:[%s2920_s1 + $0x58] sm:$0xf0]  ;;  %v1660_v51 = vld [vmem:[%s2920_s1 + $0x1c8] sm:$0xf] }
  0x26   : > { %471 = vmatpush.bf16.msra.mxu0 %v1390_v23  ;;  %v2016_v52 = vld [vmem:[%s2920_s1 + $0x1d0] sm:$0xf0]  ;;  %v1720_v56 = vld [vmem:[%s2920_s1 + $0x240] sm:$0xf]  ;;  %v2031_v57 = vld [vmem:[%s2920_s1 + $0x248] sm:$0xf0]  ;;  %v1422_v62 = vor.u32 %v1969_v50, %v1421_v46 }
  0x27   : > { %522 = vmatpush.bf16.msrb.mxu1 %v1458_v16  ;;  %v247_v53 = vunpack.c.h.b16 %v178_v43  ;;  %v246_v55 = vunpack.c.l.b16 %v178_v43  ;;  %v249_v58 = vunpack.c.h.b16 %v179_v47  ;;  %v248_v59 = vunpack.c.l.b16 %v179_v47  ;;  %v1481_v60 = vld [vmem:[%s2920_s1 + $0xc8] sm:$0xf]  ;;  %v1984_v61 = vld [vmem:[%s2920_s1 + $0xd0] sm:$0xf0]  ;;  %v2018_v0 = vld [vmem:[%s2920_s1 + $0x1e4] sm:$0xf] }
  0x28   : > { %539 = vmatpush.bf16.msrb.mxu3 %v1518_v20  ;;  %499 = vmatpush.bf16.msra.mxu2 %v1394_v27  ;;  %v1661_v63 = vor.u32 %v2016_v52, %v1660_v51  ;;  %v1674_v1 = vld [vmem:[%s2920_s1 + $0x1ec] sm:$0xf0]  ;;  %v1721_v4 = vor.u32 %v2031_v57, %v1720_v56  ;;  %v1409_v5 = vld [vmem:[%s2920_s1 + $0x38] sm:$0xf]  ;;  %v2013_v7 = vld [vmem:[%s2920_s1 + $0x1b8] sm:$0xf0]  ;;  %v1482_v8 = vor.u32 %v1984_v61, %v1481_v60 }
  0x29   : > { %v2384_v2 = vpack.c.b16 %v249_v58, %v247_v53  ;;  %v2386_v3 = vpack.c.b16 %v248_v59, %v246_v55  ;;  %v1648_v6 = vld [vmem:[%s2920_s1 + $0x1b0] sm:$0xf]  ;;  %v1966_v9 = vld [vmem:[%s2920_s1 + $0x40] sm:$0xf0]  ;;  %v1708_v10 = vld [vmem:[%s2920_s1 + $0x228] sm:$0xf]  ;;  %v1677_v12 = vor.u32 %v2018_v0, %v1674_v1 }
  0x2a   : > { %472 = vmatpush.bf16.msra.mxu0 %v1378_v41  ;;  %v2028_v11 = vld [vmem:[%s2920_s1 + $0x230] sm:$0xf0]  ;;  %v1649_v13 = vor.u32 %v2013_v7, %v1648_v6  ;;  %v2015_v14 = vld [vmem:[%s2920_s1 + $0x1cc] sm:$0xf]  ;;  %v1662_v15 = vld [vmem:[%s2920_s1 + $0x1d4] sm:$0xf0]  ;;  %v1410_v16 = vor.u32 %v1966_v9, %v1409_v5 }
  0x2b   : > { %523 = vmatpush.bf16.msrb.mxu1 %v1446_v30  ;;  %1532 = vmatmul.msk.bf16.vlgmr.msra.gmra.mxu3 %vm461_vm0, %v2384_v2  ;;  %v1709_v17 = vor.u32 %v2028_v11, %v1708_v10  ;;  %v1397_v18 = vld [vmem:[%s2920_s1 + $0x20] sm:$0xf]  ;;  %v1636_v19 = vld [vmem:[%s2920_s1 + $0x198] sm:$0xf]  ;;  %v2010_v20 = vld [vmem:[%s2920_s1 + $0x1a0] sm:$0xf0]  ;;  %v1665_v24 = vor.u32 %v2015_v14, %v1662_v15 }
  0x2c   : > { %540 = vmatpush.bf16.msrb.mxu3 %v1506_v34  ;;  %500 = vmatpush.bf16.msra.mxu2 %v1382_v44  ;;  %v1963_v21 = vld [vmem:[%s2920_s1 + $0x28] sm:$0xf0]  ;;  %v1696_v22 = vld [vmem:[%s2920_s1 + $0x210] sm:$0xf]  ;;  %v2025_v23 = vld [vmem:[%s2920_s1 + $0x218] sm:$0xf0]  ;;  %v1637_v28 = vor.u32 %v2010_v20, %v1636_v19 }
  0x2d   : > { %1531 = vmatmul.msk.bf16.vlgmr.msra.gmra.mxu1 %vm461_vm0, %v2384_v2  ;;  %473 = vmatmul.bf16.vlgmr.msra.gmra.mxu0 %v2386_v3  ;;  %v2012_v25 = vld [vmem:[%s2920_s1 + $0x1b4] sm:$0xf]  ;;  %v1650_v26 = vld [vmem:[%s2920_s1 + $0x1bc] sm:$0xf0]  ;;  %v1385_v27 = vld [vmem:[%s2920_s1 + $0x8] sm:$0xf]  ;;  %v1398_v32 = vor.u32 %v1963_v21, %v1397_v18  ;;  %v1697_v33 = vor.u32 %v2025_v23, %v1696_v22 }
  0x2e   : > { %849 = vmatpush.bf16.msrb.mxu0 %v1673_v45  ;;  %v1960_v29 = vld [vmem:[%s2920_s1 + $0x10] sm:$0xf0]  ;;  %v1624_v30 = vld [vmem:[%s2920_s1 + $0x180] sm:$0xf]  ;;  %v2007_v31 = vld [vmem:[%s2920_s1 + $0x188] sm:$0xf0]  ;;  %v1653_v40 = vor.u32 %v2012_v25, %v1650_v26 }
  0x2f   : > { %524 = vmatpush.bf16.msrb.mxu1 %v1434_v48  ;;  %501 = vmatmul.bf16.vlgmr.msra.gmra.mxu2 %v2386_v3  ;;  %v1684_v34 = vld [vmem:[%s2920_s1 + $0x1f8] sm:$0xf]  ;;  %v2022_v35 = vld [vmem:[%s2920_s1 + $0x200] sm:$0xf0]  ;;  %v2033_v36 = vld [vmem:[%s2920_s1 + $0x25c] sm:$0xf]  ;;  %v1386_v45 = vor.u32 %v1960_v29, %v1385_v27  ;;  %v1625_v46 = vor.u32 %v2007_v31, %v1624_v30 }
  0x30   : > { %866 = vmatpush.bf16.msrb.mxu2 %v1733_v49  ;;  %541 = vmatpush.bf16.msrb.mxu3 %v1494_v54  ;;  %v1734_v37 = vld [vmem:[%s2920_s1 + $0x264] sm:$0xf0]  ;;  %v176_v38 = vld [vmem:[%s2339_s30 + $0x20] sm:$0x3]  ;;  %v2020_v42 = vld [vmem:[%s2920_s1 + $0x1f0] sm:$0xf0]  ;;  %v1685_v47 = vor.u32 %v2022_v35, %v1684_v34 }
  0x31   : > { %v177_v39 = vld [vmem:[%s2339_s30 + $0x28] sm:$0x3]  ;;  %v628_v44 = vshll.u32 %v2384_v2, 16  ;;  %v2009_v48 = vld [vmem:[%s2920_s1 + $0x19c] sm:$0xf]  ;;  %v626_v53 = vshrl.u32 %v2384_v2, 16  ;;  %v1737_v56 = vor.u32 %v2033_v36, %v1734_v37 }
  0x32   : > { %850 = vmatpush.bf16.msrb.mxu0 %v1661_v63  ;;  %v1680_v41 = vld [vmem:[%s2920_s1 + $0x1e8] sm:$0xf]  ;;  %v180_v43 = vpack.c.bf16 %v177_v39, %v176_v38  ;;  %v2004_v51 = vld [vmem:[%s2920_s1 + $0x170] sm:$0xf0]  ;;  %v2030_v58 = vld [vmem:[%s2920_s1 + $0x244] sm:$0xf] }
  0x33   : > { %525 = vmatpush.bf16.msrb.mxu1 %v1422_v62  ;;  %v1638_v49 = vld [vmem:[%s2920_s1 + $0x1a4] sm:$0xf0]  ;;  %v630_v54 = vrot.slane %v628_v44, 1  ;;  %v1681_v57 = vor.u32 %v2020_v42, %v1680_v41  ;;  %v1722_v60 = vld [vmem:[%s2920_s1 + $0x24c] sm:$0xf0]  ;;  %v617_v15 = vshll.u32 %v2386_v3, 16 }
  0x34   : > { %867 = vmatpush.bf16.msrb.mxu2 %v1721_v4  ;;  %542 = vmatpush.bf16.msrb.mxu3 %v1482_v8  ;;  %v1612_v50 = vld [vmem:[%s2920_s1 + $0x168] sm:$0xf]  ;;  %v610_v52 = vunpack.c.h.b16 %v180_v43  ;;  %v609_v55 = vunpack.c.l.b16 %v180_v43  ;;  %v1641_v59 = vor.u32 %v2009_v48, %v1638_v49  ;;  %v1668_v61 = vld [vmem:[%s2920_s1 + $0x1d0] sm:$0xf]  ;;  %v2017_v62 = vld [vmem:[%s2920_s1 + $0x1d8] sm:$0xf0]  ;;  %v1725_v10 = vor.u32 %v2030_v58, %v1722_v60 }
  0x35   : > { %v1613_v0 = vor.u32 %v2004_v51, %v1612_v50  ;;  %v2006_v1 = vld [vmem:[%s2920_s1 + $0x184] sm:$0xf]  ;;  %v1626_v4 = vld [vmem:[%s2920_s1 + $0x18c] sm:$0xf0]  ;;  %v2001_v7 = vld [vmem:[%s2920_s1 + $0x158] sm:$0xf0]  ;;  %v631_v8 = vor.u32 %v630_v54, %v626_v53  ;;  %v1669_v11 = vor.u32 %v2017_v62, %v1668_v61 }
  0x36   : > { %851 = vmatpush.bf16.msrb.mxu0 %v1649_v13  ;;  %v2500_v63 = vpack.c.b16 %v610_v52, %v610_v52  ;;  %v2508_v5 = vpack.c.b16 %v609_v55, %v609_v55  ;;  %v1600_v6 = vld [vmem:[%s2920_s1 + $0x150] sm:$0xf]  ;;  %v2027_v13 = vld [vmem:[%s2920_s1 + $0x22c] sm:$0xf]  ;;  %v1710_v14 = vld [vmem:[%s2920_s1 + $0x234] sm:$0xf0] }
  0x37   : > { %526 = vmatpush.bf16.msrb.mxu1 %v1410_v16  ;;  %v1629_v16 = vor.u32 %v2006_v1, %v1626_v4  ;;  %v1656_v18 = vld [vmem:[%s2920_s1 + $0x1b8] sm:$0xf]  ;;  %v2014_v19 = vld [vmem:[%s2920_s1 + $0x1c0] sm:$0xf0]  ;;  %v1601_v20 = vor.u32 %v2001_v7, %v1600_v6  ;;  %v615_v22 = vshrl.u32 %v2386_v3, 16  ;;  %v619_v23 = vrot.slane %v617_v15, 1 }
  0x38   : > { %877 = vmatpush.bf16.msra.mxu3 %v1677_v12  ;;  %868 = vmatpush.bf16.msrb.mxu2 %v1709_v17  ;;  %v633_v9 = vshll.u32 %v2500_v63, 16  ;;  %v2003_v12 = vld [vmem:[%s2920_s1 + $0x16c] sm:$0xf]  ;;  %v1614_v21 = vld [vmem:[%s2920_s1 + $0x174] sm:$0xf0]  ;;  %v1657_v29 = vor.u32 %v2014_v19, %v1656_v18 }
  0x39   : > { %v1588_v26 = vld [vmem:[%s2920_s1 + $0x138] sm:$0xf]  ;;  %v1998_v27 = vld [vmem:[%s2920_s1 + $0x140] sm:$0xf0]  ;;  %v2024_v30 = vld [vmem:[%s2920_s1 + $0x214] sm:$0xf] }
  0x3a   : > { %852 = vmatpush.bf16.msrb.mxu0 %v1637_v28  ;;  %v635_v17 = vrot.slane %v633_v9, 1  ;;  %v1713_v28 = vor.u32 %v2027_v13, %v1710_v14  ;;  %v1740_v31 = vld [vmem:[%s2920_s1 + $0x260] sm:$0xf]  ;;  %v2011_v36 = vld [vmem:[%s2920_s1 + $0x1a8] sm:$0xf0]  ;;  %v1589_v37 = vor.u32 %v1998_v27, %v1588_v26 }
  0x3b   : > { %527 = vmatpush.bf16.msrb.mxu1 %v1398_v32  ;;  %1533 = vmatmul.msk.bf16.vlgmr.msrb.gmra.mxu3 %vm461_vm0, %v2384_v2  ;;  %v2035_v32 = vld [vmem:[%s2920_s1 + $0x268] sm:$0xf0]  ;;  %v1698_v34 = vld [vmem:[%s2920_s1 + $0x21c] sm:$0xf0]  ;;  %v2000_v38 = vld [vmem:[%s2920_s1 + $0x154] sm:$0xf] }
  0x3c   : > { %878 = vmatpush.bf16.msra.mxu3 %v1665_v24  ;;  %869 = vmatpush.bf16.msrb.mxu2 %v1697_v33  ;;  %v622_v24 = vshll.u32 %v2508_v5, 16  ;;  %v2541_v25 = vsel %vm613_vm1, %v631_v8, %v635_v17  ;;  %v1617_v33 = vor.u32 %v2003_v12, %v1614_v21  ;;  %v1644_v35 = vld [vmem:[%s2920_s1 + $0x1a0] sm:$0xf]  ;;  %v1741_v42 = vor.u32 %v2035_v32, %v1740_v31  ;;  %v2032_v48 = vld [vmem:[%s2920_s1 + $0x250] sm:$0xf0] }
  0x3d   : > { %v1602_v39 = vld [vmem:[%s2920_s1 + $0x15c] sm:$0xf0]  ;;  %v1701_v43 = vor.u32 %v2024_v30, %v1698_v34  ;;  %v1645_v44 = vor.u32 %v2011_v36, %v1644_v35  ;;  %v1686_v50 = vld [vmem:[%s2920_s1 + $0x204] sm:$0xf0]  ;;  %v2008_v52 = vld [vmem:[%s2920_s1 + $0x190] sm:$0xf0] }
  0x3e   : > { %853 = vmatpush.bf16.msrb.mxu0 %v1625_v46  ;;  %v624_v41 = vrot.slane %v622_v24, 1  ;;  %v2021_v46 = vld [vmem:[%s2920_s1 + $0x1fc] sm:$0xf]  ;;  %v1605_v49 = vor.u32 %v2000_v38, %v1602_v39  ;;  %v1632_v51 = vld [vmem:[%s2920_s1 + $0x188] sm:$0xf] }
  0x3f   : > { %528 = vmatpush.bf16.msrb.mxu1 %v1386_v45  ;;  %v1997_v45 = vld [vmem:[%s2920_s1 + $0x13c] sm:$0xf]  ;;  %v1590_v54 = vld [vmem:[%s2920_s1 + $0x144] sm:$0xf0]  ;;  %v1883_v55 = vld [vmem:[%s2920_s1 + $0x318] sm:$0xf]  ;;  %v1689_v60 = vor.u32 %v2021_v46, %v1686_v50  ;;  %v1633_v61 = vor.u32 %v2008_v52, %v1632_v51 }
  0x40   : > { %879 = vmatpush.bf16.msra.mxu3 %v1653_v40  ;;  %870 = vmatpush.bf16.msrb.mxu2 %v1685_v47  ;;  %v620_v40 = vor.u32 %v619_v23, %v615_v22  ;;  %v1728_v47 = vld [vmem:[%s2920_s1 + $0x248] sm:$0xf]  ;;  %v1943_v58 = vld [vmem:[%s2920_s1 + $0x390] sm:$0xf]  ;;  %v1593_v1 = vor.u32 %v1997_v45, %v1590_v54  ;;  %v2005_v7 = vld [vmem:[%s2920_s1 + $0x178] sm:$0xf0] }
  0x41   : > { %v1716_v62 = vld [vmem:[%s2920_s1 + $0x230] sm:$0xf]  ;;  %v1871_v9 = vld [vmem:[%s2920_s1 + $0x300] sm:$0xf]  ;;  %v1931_v12 = vld [vmem:[%s2920_s1 + $0x378] sm:$0xf] }
  0x42   : > { %854 = vmatpush.bf16.msrb.mxu0 %v1613_v0  ;;  %529 = vmatmul.bf16.vlgmr.msrb.gmra.mxu1 %v2386_v3  ;;  %v2598_v53 = vsel %vm613_vm1, %v620_v40, %v624_v41  ;;  %v2029_v0 = vld [vmem:[%s2920_s1 + $0x238] sm:$0xf0]  ;;  %v1620_v6 = vld [vmem:[%s2920_s1 + $0x170] sm:$0xf]  ;;  %v2070_v13 = vld [vmem:[%s2920_s1 + $0x380] sm:$0xf0] }
  0x43   : > { %894 = vmatpush.bf16.msra.mxu1 %v1737_v56  ;;  %1742 = vmatmul.msk.bf16.vlgmr.msrb.gmra.mxu2 %vm461_vm0, %v2541_v25  ;;  %v2058_v56 = vld [vmem:[%s2920_s1 + $0x320] sm:$0xf0]  ;;  %v1621_v14 = vor.u32 %v2005_v7, %v1620_v6  ;;  %v1704_v15 = vld [vmem:[%s2920_s1 + $0x218] sm:$0xf]  ;;  %v1859_v21 = vld [vmem:[%s2920_s1 + $0x2e8] sm:$0xf] }
  0x44   : > { %905 = vmatpush.bf16.msra.mxu2 %v1681_v57  ;;  %880 = vmatpush.bf16.msra.mxu3 %v1641_v59  ;;  %v1729_v57 = vor.u32 %v2032_v48, %v1728_v47  ;;  %v2073_v59 = vld [vmem:[%s2920_s1 + $0x398] sm:$0xf0]  ;;  %v1884_v4 = vor.u32 %v2058_v56, %v1883_v55  ;;  %v1608_v18 = vld [vmem:[%s2920_s1 + $0x158] sm:$0xf]  ;;  %v2002_v19 = vld [vmem:[%s2920_s1 + $0x160] sm:$0xf0] }
  0x45   : > { %v1944_v8 = vor.u32 %v2073_v59, %v1943_v58  ;;  %v2052_v22 = vld [vmem:[%s2920_s1 + $0x2f0] sm:$0xf0]  ;;  %v1919_v24 = vld [vmem:[%s2920_s1 + $0x360] sm:$0xf]  ;;  %v2067_v26 = vld [vmem:[%s2920_s1 + $0x368] sm:$0xf0] }
  0x46   : > { %855 = vmatpush.bf16.msrb.mxu0 %v1601_v20  ;;  %v1932_v20 = vor.u32 %v2070_v13, %v1931_v12  ;;  %v1596_v27 = vld [vmem:[%s2920_s1 + $0x140] sm:$0xf]  ;;  %v2023_v31 = vld [vmem:[%s2920_s1 + $0x208] sm:$0xf0]  ;;  %v1860_v32 = vor.u32 %v2052_v22, %v1859_v21  ;;  %v2057_v34 = vld [vmem:[%s2920_s1 + $0x31c] sm:$0xf]  ;;  %v1920_v36 = vor.u32 %v2067_v26, %v1919_v24 }
  0x47   : > { %895 = vmatpush.bf16.msra.mxu1 %v1725_v10  ;;  %v2055_v10 = vld [vmem:[%s2920_s1 + $0x308] sm:$0xf0]  ;;  %v1692_v30 = vld [vmem:[%s2920_s1 + $0x200] sm:$0xf]  ;;  %v1885_v35 = vld [vmem:[%s2920_s1 + $0x324] sm:$0xf0] }
  0x48   : > { %906 = vmatpush.bf16.msra.mxu2 %v1669_v11  ;;  %881 = vmatpush.bf16.msra.mxu3 %v1629_v16  ;;  %v1717_v11 = vor.u32 %v2029_v0, %v1716_v62  ;;  %v2026_v16 = vld [vmem:[%s2920_s1 + $0x220] sm:$0xf0]  ;;  %v1872_v17 = vor.u32 %v2055_v10, %v1871_v9  ;;  %v2072_v38 = vld [vmem:[%s2920_s1 + $0x394] sm:$0xf]  ;;  %v1945_v39 = vld [vmem:[%s2920_s1 + $0x39c] sm:$0xf0]  ;;  %v1693_v40 = vor.u32 %v2023_v31, %v1692_v30 }
  0x49   : > { %v1705_v23 = vor.u32 %v2026_v16, %v1704_v15  ;;  %v1907_v41 = vld [vmem:[%s2920_s1 + $0x348] sm:$0xf]  ;;  %v1835_v46 = vld [vmem:[%s2920_s1 + $0x2b8] sm:$0xf]  ;;  %v2054_v47 = vld [vmem:[%s2920_s1 + $0x304] sm:$0xf] }
  0x4a   : > { %856 = vmatpush.bf16.msrb.mxu0 %v1589_v37  ;;  %v2049_v37 = vld [vmem:[%s2920_s1 + $0x2d8] sm:$0xf0]  ;;  %v1873_v48 = vld [vmem:[%s2920_s1 + $0x30c] sm:$0xf0]  ;;  %v2046_v51 = vld [vmem:[%s2920_s1 + $0x2c0] sm:$0xf0] }
  0x4b   : > { %896 = vmatpush.bf16.msra.mxu1 %v1713_v28  ;;  %v1609_v28 = vor.u32 %v2002_v19, %v1608_v18  ;;  %v2069_v52 = vld [vmem:[%s2920_s1 + $0x37c] sm:$0xf]  ;;  %v1933_v54 = vld [vmem:[%s2920_s1 + $0x384] sm:$0xf0]  ;;  %v1895_v55 = vld [vmem:[%s2920_s1 + $0x330] sm:$0xf] }
  0x4c   : > { %907 = vmatpush.bf16.msra.mxu2 %v1657_v29  ;;  %882 = vmatpush.bf16.msra.mxu3 %v1617_v33  ;;  %v1999_v29 = vld [vmem:[%s2920_s1 + $0x148] sm:$0xf0]  ;;  %v1847_v33 = vld [vmem:[%s2920_s1 + $0x2d0] sm:$0xf]  ;;  %v2061_v56 = vld [vmem:[%s2920_s1 + $0x338] sm:$0xf0]  ;;  %v1936_v0 = vor.u32 %v2069_v52, %v1933_v54 }
  0x4d   : > { %857 = vmatmul.bf16.vlgmr.msrb.gmra.mxu0 %v2598_v53  ;;  %v1848_v45 = vor.u32 %v2049_v37, %v1847_v33  ;;  %v1891_v58 = vld [vmem:[%s2920_s1 + $0x320] sm:$0xf]  ;;  %v2059_v59 = vld [vmem:[%s2920_s1 + $0x328] sm:$0xf0]  ;;  %v1861_v62 = vld [vmem:[%s2920_s1 + $0x2f4] sm:$0xf0] }
  0x4e   : > { %922 = vmatpush.bf16.msra.mxu0 %v1741_v42  ;;  %v2064_v42 = vld [vmem:[%s2920_s1 + $0x350] sm:$0xf0]  ;;  %v2043_v6 = vld [vmem:[%s2920_s1 + $0x2a8] sm:$0xf0]  ;;  %v996_v7 = vrot.slane %v2384_v2, 1  ;;  %v1892_v9 = vor.u32 %v2059_v59, %v1891_v58 }
  0x4f   : > { %897 = vmatpush.bf16.msra.mxu1 %v1701_v43  ;;  %v1597_v43 = vor.u32 %v1999_v29, %v1596_v27  ;;  %v1908_v50 = vor.u32 %v2064_v42, %v1907_v41  ;;  %v1921_v10 = vld [vmem:[%s2920_s1 + $0x36c] sm:$0xf0]  ;;  %v1879_v2 = vld [vmem:[%s2920_s1 + $0x308] sm:$0xf]  ;;  %v2048_v12 = vld [vmem:[%s2920_s1 + $0x2d4] sm:$0xf] }
  0x50   : > { %908 = vmatpush.bf16.msra.mxu2 %v1645_v44  ;;  %883 = vmatpush.bf16.msra.mxu3 %v1605_v49  ;;  %v1888_v44 = vor.u32 %v2057_v34, %v1885_v35  ;;  %v1948_v49 = vor.u32 %v2072_v38, %v1945_v39  ;;  %v1849_v13 = vld [vmem:[%s2920_s1 + $0x2dc] sm:$0xf0]  ;;  %v2040_v15 = vld [vmem:[%s2920_s1 + $0x290] sm:$0xf0]  ;;  %v2063_v19 = vld [vmem:[%s2920_s1 + $0x34c] sm:$0xf] }
  0x51   : > { %v1852_v21 = vor.u32 %v2048_v12, %v1849_v13  ;;  %v1867_v22 = vld [vmem:[%s2920_s1 + $0x2f0] sm:$0xf]  ;;  %v2045_v26 = vld [vmem:[%s2920_s1 + $0x2bc] sm:$0xf]  ;;  %v1837_v27 = vld [vmem:[%s2920_s1 + $0x2c4] sm:$0xf0] }
  0x52   : > { %923 = vmatpush.bf16.msra.mxu0 %v1729_v57  ;;  %v1876_v57 = vor.u32 %v2054_v47, %v1873_v48  ;;  %v2037_v29 = vld [vmem:[%s2920_s1 + $0x278] sm:$0xf0]  ;;  %v1951_v30 = vld [vmem:[%s2920_s1 + $0x398] sm:$0xf]  ;;  %v2074_v33 = vld [vmem:[%s2920_s1 + $0x3a0] sm:$0xf0] }
  0x53   : > { %898 = vmatpush.bf16.msra.mxu1 %v1689_v60  ;;  %v1836_v60 = vor.u32 %v2046_v51, %v1835_v46  ;;  %v2060_v34 = vld [vmem:[%s2920_s1 + $0x334] sm:$0xf]  ;;  %v1897_v35 = vld [vmem:[%s2920_s1 + $0x33c] sm:$0xf0]  ;;  %v1855_v37 = vld [vmem:[%s2920_s1 + $0x2d8] sm:$0xf] }
  0x54   : > { %909 = vmatpush.bf16.msra.mxu2 %v1633_v61  ;;  %884 = vmatpush.bf16.msra.mxu3 %v1593_v1  ;;  %v2051_v61 = vld [vmem:[%s2920_s1 + $0x2ec] sm:$0xf]  ;;  %v1896_v1 = vor.u32 %v2061_v56, %v1895_v55  ;;  %v2050_v38 = vld [vmem:[%s2920_s1 + $0x2e0] sm:$0xf0]  ;;  %v994_v41 = vrot.slane %v2508_v5, 1 }
  0x55   : > { %v2042_v42 = vld [vmem:[%s2920_s1 + $0x2a4] sm:$0xf]  ;;  %v1856_v46 = vor.u32 %v2050_v38, %v1855_v37  ;;  %v1939_v47 = vld [vmem:[%s2920_s1 + $0x380] sm:$0xf]  ;;  %v2039_v51 = vld [vmem:[%s2920_s1 + $0x28c] sm:$0xf] }
  0x56   : > { %924 = vmatpush.bf16.msra.mxu0 %v1717_v11  ;;  %1743 = vmatmul.msk.bf16.vlgmr.msra.gmra.mxu1 %vm461_vm0, %v2541_v25  ;;  %v1864_v11 = vor.u32 %v2051_v61, %v1861_v62  ;;  %v1843_v48 = vld [vmem:[%s2920_s1 + $0x2c0] sm:$0xf]  ;;  %v1813_v52 = vld [vmem:[%s2920_s1 + $0x294] sm:$0xf0]  ;;  %v1927_v56 = vld [vmem:[%s2920_s1 + $0x368] sm:$0xf] }
  0x57   : > { %1211 = vmatpush.bf16.msrb.mxu1 %v1884_v4  ;;  %885 = vmatmul.bf16.vlgmr.msra.gmra.mxu3 %v2598_v53  ;;  %v1823_v4 = vld [vmem:[%s2920_s1 + $0x2a0] sm:$0xf]  ;;  %v1816_v58 = vor.u32 %v2039_v51, %v1813_v52  ;;  %v1831_v59 = vld [vmem:[%s2920_s1 + $0x2a8] sm:$0xf]  ;;  %v2036_v61 = vld [vmem:[%s2920_s1 + $0x274] sm:$0xf] }
  0x58   : > { %1228 = vmatpush.bf16.msrb.mxu3 %v1944_v8  ;;  %910 = vmatpush.bf16.msra.mxu2 %v1621_v14  ;;  %v997_v8 = vrot.slane %v2500_v63, 1  ;;  %v2056_v63 = vld [vmem:[%s2920_s1 + $0x310] sm:$0xf0]  ;;  %v1811_v14 = vld [vmem:[%s2920_s1 + $0x288] sm:$0xf] }
  0x59   : > { %v1880_v18 = vor.u32 %v2056_v63, %v1879_v2  ;;  %v1812_v24 = vor.u32 %v2040_v15, %v1811_v14  ;;  %v1801_v62 = vld [vmem:[%s2920_s1 + $0x27c] sm:$0xf0]  ;;  %v2062_v2 = vld [vmem:[%s2920_s1 + $0x340] sm:$0xf0]  ;;  %v1807_v63 = vld [vmem:[%s2920_s1 + $0x278] sm:$0xf] }
  0x5a   : > { %925 = vmatpush.bf16.msra.mxu0 %v1705_v23  ;;  %v2775_v16 = vsel %vm992_vm2, %v996_v7, %v997_v8  ;;  %v2053_v23 = vld [vmem:[%s2920_s1 + $0x2f8] sm:$0xf0]  ;;  %v1804_v7 = vor.u32 %v2036_v61, %v1801_v62  ;;  %v1819_v8 = vld [vmem:[%s2920_s1 + $0x290] sm:$0xf]  ;;  %v181_v37 = vld [vmem:[%s2921_s2] sm:$0x7] }
  0x5b   : > { %1212 = vmatpush.bf16.msrb.mxu1 %v1872_v17  ;;  %v183_v38 = vperm.slane %v181_v37, 0 }
  0x5c   : > { %1229 = vmatpush.bf16.msrb.mxu3 %v1932_v20  ;;  %911 = vmatpush.bf16.msra.mxu2 %v1609_v28  ;;  %v1909_v20 = vld [vmem:[%s2920_s1 + $0x354] sm:$0xf0]  ;;  %v1799_v28 = vld [vmem:[%s2920_s1 + $0x270] sm:$0xf] }
  0x5d   : > { %v1912_v31 = vor.u32 %v2063_v19, %v1909_v20  ;;  %v1800_v39 = vor.u32 %v2037_v29, %v1799_v28 }
  0x5e   : > { %926 = vmatpush.bf16.msra.mxu0 %v1693_v40  ;;  %v993_v40 = vrot.slane %v2386_v3, 1  ;;  %v2071_v3 = vld [vmem:[%s2920_s1 + $0x388] sm:$0xf0] }
  0x5f   : > { %1213 = vmatpush.bf16.msrb.mxu1 %v1860_v32  ;;  %v1868_v32 = vor.u32 %v2053_v23, %v1867_v22  ;;  %v1940_v54 = vor.u32 %v2071_v3, %v1939_v47 }
  0x60   : > { %1230 = vmatpush.bf16.msrb.mxu3 %v1920_v36  ;;  %912 = vmatpush.bf16.msra.mxu2 %v1597_v43  ;;  %v1840_v36 = vor.u32 %v2045_v26, %v1837_v27  ;;  %v1825_v43 = vld [vmem:[%s2920_s1 + $0x2ac] sm:$0xf0] }
  0x61   : > { %1744 = vmatmul.msk.bf16.vlgmr.msra.gmra.mxu0 %vm461_vm0, %v2541_v25  ;;  %v2066_v25 = vld [vmem:[%s2920_s1 + $0x364] sm:$0xf]  ;;  %v1828_v5 = vor.u32 %v2042_v42, %v1825_v43 }
  0x62   : > { %1239 = vmatpush.bf16.msrb.mxu0 %v1888_v44  ;;  %v1924_v17 = vor.u32 %v2066_v25, %v1921_v10  ;;  %v1952_v44 = vor.u32 %v2074_v33, %v1951_v30 }
  0x63   : > { %1214 = vmatpush.bf16.msrb.mxu1 %v1848_v45  ;;  %913 = vmatmul.bf16.vlgmr.msra.gmra.mxu2 %v2598_v53  ;;  %v1824_v53 = vor.u32 %v2043_v6, %v1823_v4  ;;  %v1900_v45 = vor.u32 %v2060_v34, %v1897_v35  ;;  %v1915_v4 = vld [vmem:[%s2920_s1 + $0x350] sm:$0xf]  ;;  %v2065_v6 = vld [vmem:[%s2920_s1 + $0x358] sm:$0xf0] }
  0x64   : > { %1256 = vmatpush.bf16.msrb.mxu2 %v1948_v49  ;;  %1231 = vmatpush.bf16.msrb.mxu3 %v1908_v50  ;;  %v2047_v49 = vld [vmem:[%s2920_s1 + $0x2c8] sm:$0xf0]  ;;  %v995_v50 = vsel %vm992_vm2, %v993_v40, %v994_v41  ;;  %v1916_v25 = vor.u32 %v2065_v6, %v1915_v4 }
  0x65   : > { %v1844_v55 = vor.u32 %v2047_v49, %v1843_v48 }
  0x66   : > { %1240 = vmatpush.bf16.msrb.mxu0 %v1876_v57  ;;  %v2068_v57 = vld [vmem:[%s2920_s1 + $0x370] sm:$0xf0] }
  0x67   : > { %1215 = vmatpush.bf16.msrb.mxu1 %v1836_v60  ;;  %v2044_v60 = vld [vmem:[%s2920_s1 + $0x2b0] sm:$0xf0] }
  0x68   : > { %1257 = vmatpush.bf16.msrb.mxu2 %v1936_v0  ;;  %1232 = vmatpush.bf16.msrb.mxu3 %v1896_v1  ;;  %v1928_v0 = vor.u32 %v2068_v57, %v1927_v56  ;;  %v1832_v1 = vor.u32 %v2044_v60, %v1831_v59 }
  0x6a   : > { %1241 = vmatpush.bf16.msrb.mxu0 %v1864_v11  ;;  %v1903_v11 = vld [vmem:[%s2920_s1 + $0x338] sm:$0xf] }
  0x6b   : > { %1216 = vmatpush.bf16.msrb.mxu1 %v1824_v53  ;;  %1953 = vmatmul.msk.bf16.vlgmr.msrb.gmra.mxu3 %vm461_vm0, %v2775_v16  ;;  %v2038_v53 = vld [vmem:[%s2920_s1 + $0x280] sm:$0xf0]  ;;  %v1904_v12 = vor.u32 %v2062_v2, %v1903_v11  ;;  %v185_v11 = vperm.slane %v181_v37, 2 }
  0x6c   : > { %1267 = vmatpush.bf16.msra.mxu3 %v1892_v9  ;;  %1258 = vmatpush.bf16.msrb.mxu2 %v1924_v17  ;;  %v2041_v9 = vld [vmem:[%s2920_s1 + $0x298] sm:$0xf0]  ;;  %v1808_v13 = vor.u32 %v2038_v53, %v1807_v63 }
  0x6d   : > { %v1820_v10 = vor.u32 %v2041_v9, %v1819_v8 }
  0x6e   : > { %1242 = vmatpush.bf16.msrb.mxu0 %v1852_v21 }
  0x6f   : > { %1217 = vmatpush.bf16.msrb.mxu1 %v1812_v24 }
  0x70   : > { %1268 = vmatpush.bf16.msra.mxu3 %v1880_v18  ;;  %1259 = vmatpush.bf16.msrb.mxu2 %v1912_v31 }
  0x72   : > { %1243 = vmatpush.bf16.msrb.mxu0 %v1840_v36 }
  0x73   : > { %1218 = vmatpush.bf16.msrb.mxu1 %v1800_v39 }
  0x74   : > { %1269 = vmatpush.bf16.msra.mxu3 %v1868_v32  ;;  %1260 = vmatpush.bf16.msrb.mxu2 %v1900_v45 }
  0x76   : > { %1219 = vmatmul.bf16.vlgmr.msrb.gmra.mxu1 %v995_v50  ;;  %1244 = vmatpush.bf16.msrb.mxu0 %v1828_v5 }
  0x77   : > { %1284 = vmatpush.bf16.msra.mxu1 %v1952_v44  ;;  %1954 = vmatmul.msk.bf16.vlgmr.msrb.gmra.mxu2 %vm461_vm0, %v2775_v16 }
  0x78   : > { %1270 = vmatpush.bf16.msra.mxu3 %v1856_v46 }
  0x7a   : > { %1245 = vmatpush.bf16.msrb.mxu0 %v1816_v58 }
  0x7b   : > { %1285 = vmatpush.bf16.msra.mxu1 %v1940_v54 }
  0x7c   : > { %1271 = vmatpush.bf16.msra.mxu3 %v1844_v55 }
  0x7e   : > { %1246 = vmatpush.bf16.msrb.mxu0 %v1804_v7 }
  0x7f   : > { %1286 = vmatpush.bf16.msra.mxu1 %v1928_v0 }
  0x80   : > { %1272 = vmatpush.bf16.msra.mxu3 %v1832_v1 }
  0x81   : > { %1247 = vmatmul.bf16.vlgmr.msrb.gmra.mxu0 %v995_v50 }
  0x83   : > { %1287 = vmatpush.bf16.msra.mxu1 %v1916_v25 }
  0x84   : > { %1273 = vmatpush.bf16.msra.mxu3 %v1820_v10 }
  0x87   : > { %1288 = vmatpush.bf16.msra.mxu1 %v1904_v12 }
  0x88   : > { %1274 = vmatpush.bf16.msra.mxu3 %v1808_v13 }
  0x8a   : > { %1955 = vmatmul.msk.bf16.vlgmr.msra.gmra.mxu1 %vm461_vm0, %v2775_v16 }
  0x8b   : > { %1275 = vmatmul.bf16.vlgmr.msra.gmra.mxu3 %v995_v50  ;;  %v184_v50 = vperm.slane %v181_v37, 1 }
  0xaa   : > { %v488_v14 = vpop.f32.mrf.mxu1  ;;  %v474_v20 = vpop.f32.mrf.mxu0 }
  0xab   : > { %v489_v39 = vadd.f32 %v488_v14, %v474_v20 }
  0xad   : > { %v549_v42 = vadd.f32 %v489_v39, %v183_v38 }
  0xae   : > { %v516_v15 = vpop.f32.mrf.mxu3 }
  0xb2   : > { %v490_v18 = vpop.f32.mrf.mxu1  ;;  %v502_v19 = vpop.f32.mrf.mxu2 }
  0xb3   : > { %v476_v24 = vpop.f32.mrf.mxu0  ;;  %v517_v51 = vadd.f32 %v516_v15, %v502_v19 }
  0xb4   : > { %v491_v47 = vadd.f32 %v490_v18, %v476_v24 }
  0xb5   : > { %v550_v60 = vadd.f32 %v517_v51, %v184_v50 }
  0xb6   : > { %v518_v17 = vpop.f32.mrf.mxu3  ;;  %v552_v54 = vadd.f32 %v491_v47, %v183_v38 }
  0xba   : > { %v504_v23 = vpop.f32.mrf.mxu2 }
  0xbb   : > { %v519_v6 = vadd.f32 %v518_v17, %v504_v23 }
  0xbd   : > { %v553_v10 = vadd.f32 %v519_v6, %v184_v50 }
  0xbe   : > { %v544_v21 = vpop.f32.mrf.mxu3 }
  0xbf   : > { %v530_v22 = vpop.f32.mrf.mxu1 }
  0xc0   : > { %v545_v2 = vadd.f32 %v544_v21, %v530_v22 }
  0xc2   : > { %v551_v18 = vadd.f32 %v545_v2, %v185_v11 }
  0xc6   : > { %v2894_v26 = vpop.f32.mrf.mxu3  ;;  %v872_v27 = vpop.f32.mrf.mxu2 }
  0xc7   : > { %v2896_v28 = vpop.f32.mrf.mxu1 }
  0xc8   : > { %v547_v24 = vadd.f32 %v2894_v26, %v2896_v28 }
  0xca   : > { %v858_v29 = vpop.f32.mrf.mxu0  ;;  %v554_v22 = vadd.f32 %v547_v24, %v185_v11 }
  0xcb   : > { %v873_v41 = vadd.f32 %v872_v27, %v858_v29 }
  0xcd   : > { %v933_v45 = vadd.f32 %v873_v41, %v549_v42 }
  0xce   : > { %v874_v31 = vpop.f32.mrf.mxu2 }
  0xd2   : > { %v860_v32 = vpop.f32.mrf.mxu0 }
  0xd3   : > { %v900_v16 = vpop.f32.mrf.mxu1  ;;  %v875_v48 = vadd.f32 %v874_v31, %v860_v32 }
  0xd5   : > { %v936_v58 = vadd.f32 %v875_v48, %v552_v54 }
  0xda   : > { %v886_v30 = vpop.f32.mrf.mxu3 }
  0xdb   : > { %v902_v35 = vpop.f32.mrf.mxu1  ;;  %v901_v56 = vadd.f32 %v900_v16, %v886_v30 }
  0xdd   : > { %v934_v0 = vadd.f32 %v901_v56, %v550_v60 }
  0xde   : > { %v928_v36 = vpop.f32.mrf.mxu0 }
  0xe2   : > { %v888_v33 = vpop.f32.mrf.mxu3 }
  0xe3   : > { %v903_v8 = vadd.f32 %v902_v35, %v888_v33 }
  0xe5   : > { %v937_v53 = vadd.f32 %v903_v8, %v553_v10 }
  0xe6   : > { %v914_v34 = vpop.f32.mrf.mxu2  ;;  %v930_v3 = vpop.f32.mrf.mxu0 }
  0xe7   : > { %v929_v13 = vadd.f32 %v928_v36, %v914_v34 }
  0xe9   : > { %v935_v20 = vadd.f32 %v929_v13, %v551_v18 }
  0xee   : > { %v1234_v40 = vpop.f32.mrf.mxu3  ;;  %v916_v43 = vpop.f32.mrf.mxu2 }
  0xef   : > { %v931_v29 = vadd.f32 %v930_v3, %v916_v43 }
  0xf1   : > { %v938_v16 = vadd.f32 %v931_v29, %v554_v22 }
  0xf3   : > { %v1220_v44 = vpop.f32.mrf.mxu1 }
  0xf4   : > { %v1235_v46 = vadd.f32 %v1234_v40, %v1220_v44 }
  0xf6   : > { %v1295_v5 = vadd.f32 %v1235_v46, %v933_v45  ;;  %v1236_v52 = vpop.f32.mrf.mxu3 }
  0xf8   : > { %v1301_v49 = vmax.f32 %v1295_v5, 0.0 }
  0xfa   : > { %1307 = vst [vmem:[%s2906_s5] sm:$0xff] %v1301_v49  ;;  %v1262_v55 = vpop.f32.mrf.mxu2 }
  0xfb   : > { %v1222_v57 = vpop.f32.mrf.mxu1 }
  0xfc   : > { %v1237_v59 = vadd.f32 %v1236_v52, %v1222_v57 }
  0xfe   : > { %v1298_v61 = vadd.f32 %v1237_v59, %v936_v58  ;;  %v1248_v62 = vpop.f32.mrf.mxu0 }
  0xff   : > { %v1263_v1 = vadd.f32 %v1262_v55, %v1248_v62 }
 0x100   : > { %v1304_v4 = vmax.f32 %v1298_v61, 0.0 }
 0x101   : > { %v1296_v7 = vadd.f32 %v1263_v1, %v934_v0 }
 0x102   : > { %1310 = vst [vmem:[%s2906_s5 + $0x18] sm:$0xff] %v1304_v4  ;;  %v1264_v25 = vpop.f32.mrf.mxu2 }
 0x103   : > { %v1302_v9 = vmax.f32 %v1296_v7, 0.0 }
 0x105   : > { %1308 = vst [vmem:[%s2906_s5 + $0x8] sm:$0xff] %v1302_v9 }
 0x106   : > { %v1250_v63 = vpop.f32.mrf.mxu0 }
 0x107   : > { %v1265_v12 = vadd.f32 %v1264_v25, %v1250_v63  ;;  %v1290_v14 = vpop.f32.mrf.mxu1 }
 0x109   : > { %v1299_v15 = vadd.f32 %v1265_v12, %v937_v53 }
 0x10b   : > { %v1305_v19 = vmax.f32 %v1299_v15, 0.0 }
 0x10d   : > { %1311 = vst [vmem:[%s2906_s5 + $0x20] sm:$0xff] %v1305_v19 }
 0x10e   : > { %v1276_v17 = vpop.f32.mrf.mxu3 }
 0x10f   : > { %v1291_v23 = vadd.f32 %v1290_v14, %v1276_v17  ;;  %v1292_v30 = vpop.f32.mrf.mxu1 }
 0x111   : > { %v1297_v27 = vadd.f32 %v1291_v23, %v935_v20 }
 0x113   : > { %v1303_v21 = vmax.f32 %v1297_v27, 0.0 }
 0x115   : > { %1309 = vst [vmem:[%s2906_s5 + $0x10] sm:$0xff] %v1303_v21 }
 0x116   : > { %v1278_v31 = vpop.f32.mrf.mxu3 }
 0x117   : > { %v1293_v32 = vadd.f32 %v1292_v30, %v1278_v31 }
 0x119   : > { %v1300_v33 = vadd.f32 %v1293_v32, %v938_v16 }
 0x11b   : > { %v1306_v34 = vmax.f32 %v1300_v33, 0.0 }
 0x11d   : > { %1312 = vst [vmem:[%s2906_s5 + $0x28] sm:$0xff] %v1306_v34 }
 0x11e PF: > { %s13_s12 = sadd.s32 1, %s2090_s12  }
 0x11f   : > { %p10_p4 = scmp.ge.s32.totalorder %s13_s12, 4  }
 0x121   :  { %12 = sbr.rel (!%p10_p4) target bundleno = 1 (0x1), region = 64 }

// kernel: forward.23
= control target key start
LH: loop header
LB: loop body
LE: loop exit
PB: predicated region body
PF: predicated region fallthrough
CT: control target
= control target key end

     0   :  { %s2237_s12 = smov 0   ;;  %s3164_s0 = inlined_call_operand.vmem [shape: f32[2,34,200], index: 0, kind: input, shape index: {}]   ;;  %s3165_s1 = inlined_call_operand.vmem [shape: bf16[3,200,384], index: 1, kind: input, shape index: {}]   ;;  %s3166_s2 = inlined_call_operand.vmem [shape: f32[1,384], index: 2, kind: input, shape index: {}]   ;;  %s3167_s3 = inlined_call_operand.vmem [shape: f32[2,32,384], index: 3, kind: output, shape index: {}]  }
   0x1 LB: > { %s1519_s13 = sadd.s32 4294967295, %s2215_s12   ;;  %p1523_p0 = scmp.ge.s32.totalorder %s2215_s12, 1  ;;  %s2215_s12 = sphi %s2237_s12, %s13_s12  }
   0x2   : > { %p137_p1 = scmp.lt.s32.totalorder %s2215_s12, 3 }
   0x4   : > { %p138_p2 = pnand %p1523_p0, %p137_p1 }
   0x5   : > { %p161_p3 = scmp.lt.s32.totalorder (!%p138_p2), %s1519_s13, 1 }
   0x6   : > { %141 = sbr.rel (%p138_p2) target bundleno = 321 (0x141), region = 32 }
   0xb   : > { %v1612_v0 = vld [vmem:[%s3165_s1 + $0xa8] sm:$0xf]  ;;  %v2100_v1 = vld [vmem:[%s3165_s1 + $0xb0] sm:$0xf0]  ;;  %v2099_v2 = vld [vmem:[%s3165_s1 + $0xac] sm:$0xf] }
   0xc   : > { %v1613_v3 = vor.u32 %v2100_v1, %v1612_v0  ;;  %v1614_v4 = vld [vmem:[%s3165_s1 + $0xb4] sm:$0xf0]  ;;  %v246_v5 = vld [vmem:[%s3165_s1 + $0x120] sm:$0xff]  ;;  %v1600_v6 = vld [vmem:[%s3165_s1 + $0x90] sm:$0xf]  ;;  %vm473_vm0 = vcmask 1043456  }
   0xd   : > { %v1617_v7 = vor.u32 %v2099_v2, %v1614_v4  ;;  %v389_v8 = vunpack.c.h.b16 %v246_v5  ;;  %v2097_v9 = vld [vmem:[%s3165_s1 + $0x98] sm:$0xf0]  ;;  %v2096_v10 = vld [vmem:[%s3165_s1 + $0x94] sm:$0xf]  ;;  %v1602_v11 = vld [vmem:[%s3165_s1 + $0x9c] sm:$0xf0]  ;;  %v388_v12 = vunpack.c.l.b16 %v246_v5 }
   0xe   : > { %483 = vmatpush.bf16.msra.mxu0 %v1613_v3  ;;  %v1601_v13 = vor.u32 %v2097_v9, %v1600_v6  ;;  %v2111_v14 = vld [vmem:[%s3165_s1 + $0x10c] sm:$0xf]  ;;  %v1605_v16 = vor.u32 %v2096_v10, %v1602_v11  ;;  %v1662_v17 = vld [vmem:[%s3165_s1 + $0x114] sm:$0xf0]  ;;  %v2094_v19 = vld [vmem:[%s3165_s1 + $0x80] sm:$0xf0] }
   0xf   : > { %521 = vmatpush.bf16.msra.mxu2 %v1617_v7  ;;  %v428_v15 = vpack.c.b16 %v389_v8, %v389_v8  ;;  %v1588_v18 = vld [vmem:[%s3165_s1 + $0x78] sm:$0xf]  ;;  %v427_v20 = vpack.c.b16 %v388_v12, %v388_v12  ;;  %v2093_v21 = vld [vmem:[%s3165_s1 + $0x7c] sm:$0xf]  ;;  %v1590_v22 = vld [vmem:[%s3165_s1 + $0x84] sm:$0xf0]  ;;  %v1665_v25 = vor.u32 %v2111_v14, %v1662_v17 }
  0x10   : > { %v1589_v26 = vor.u32 %v2094_v19, %v1588_v18  ;;  %v2108_v27 = vld [vmem:[%s3165_s1 + $0xf4] sm:$0xf]  ;;  %v1660_v28 = vld [vmem:[%s3165_s1 + $0x108] sm:$0xf]  ;;  %v1593_v30 = vor.u32 %v2093_v21, %v1590_v22  ;;  %v1650_v31 = vld [vmem:[%s3165_s1 + $0xfc] sm:$0xf0] }
  0x11   : > { %v478_v23 = vsel %vm473_vm0, %v428_v15, 0  ;;  %v475_v24 = vsel %vm473_vm0, %v427_v20, 0  ;;  %v2112_v29 = vld [vmem:[%s3165_s1 + $0x110] sm:$0xf0]  ;;  %v1576_v32 = vld [vmem:[%s3165_s1 + $0x60] sm:$0xf]  ;;  %v1653_v39 = vor.u32 %v2108_v27, %v1650_v31 }
  0x12   : > { %543 = vmatpush.bf16.msra.mxu3 %v478_v23  ;;  %484 = vmatpush.bf16.msra.mxu0 %v1601_v13  ;;  %v2091_v33 = vld [vmem:[%s3165_s1 + $0x68] sm:$0xf0]  ;;  %v1661_v34 = vor.u32 %v2112_v29, %v1660_v28  ;;  %v2090_v35 = vld [vmem:[%s3165_s1 + $0x64] sm:$0xf]  ;;  %v1578_v36 = vld [vmem:[%s3165_s1 + $0x6c] sm:$0xf0] }
  0x13   : > { %522 = vmatpush.bf16.msra.mxu2 %v1605_v16  ;;  %505 = vmatpush.bf16.msra.mxu1 %v475_v24  ;;  %v1648_v37 = vld [vmem:[%s3165_s1 + $0xf0] sm:$0xf]  ;;  %v2109_v38 = vld [vmem:[%s3165_s1 + $0xf8] sm:$0xf0]  ;;  %v1577_v40 = vor.u32 %v2091_v33, %v1576_v32  ;;  %v1638_v42 = vld [vmem:[%s3165_s1 + $0xe4] sm:$0xf0]  ;;  %v1581_v44 = vor.u32 %v2090_v35, %v1578_v36 }
  0x14   : > { %v2105_v41 = vld [vmem:[%s3165_s1 + $0xdc] sm:$0xf]  ;;  %v1564_v43 = vld [vmem:[%s3165_s1 + $0x48] sm:$0xf]  ;;  %v2088_v45 = vld [vmem:[%s3165_s1 + $0x50] sm:$0xf0]  ;;  %v1649_v48 = vor.u32 %v2109_v38, %v1648_v37 }
  0x15   : > { %v2087_v46 = vld [vmem:[%s3165_s1 + $0x4c] sm:$0xf]  ;;  %v1566_v47 = vld [vmem:[%s3165_s1 + $0x54] sm:$0xf0]  ;;  %v2106_v50 = vld [vmem:[%s3165_s1 + $0xe0] sm:$0xf0]  ;;  %v1641_v52 = vor.u32 %v2105_v41, %v1638_v42  ;;  %v1565_v53 = vor.u32 %v2088_v45, %v1564_v43 }
  0x16   : > { %544 = vmatpush.bf16.msra.mxu3 %v1665_v25  ;;  %485 = vmatpush.bf16.msra.mxu0 %v1589_v26  ;;  %v1636_v49 = vld [vmem:[%s3165_s1 + $0xd8] sm:$0xf]  ;;  %v2102_v51 = vld [vmem:[%s3165_s1 + $0xc4] sm:$0xf]  ;;  %v1626_v54 = vld [vmem:[%s3165_s1 + $0xcc] sm:$0xf0]  ;;  %v1569_v56 = vor.u32 %v2087_v46, %v1566_v47 }
  0x17   : > { %523 = vmatpush.bf16.msra.mxu2 %v1593_v30  ;;  %506 = vmatpush.bf16.msra.mxu1 %v1661_v34  ;;  %v1552_v55 = vld [vmem:[%s3165_s1 + $0x30] sm:$0xf]  ;;  %s3169_s13 = smov (!%p161_p3, %s1519_s13), 1  ;;  %v2085_v57 = vld [vmem:[%s3165_s1 + $0x38] sm:$0xf0]  ;;  %v1637_v60 = vor.u32 %v2106_v50, %v1636_v49  ;;  %v1629_v3 = vor.u32 %v2102_v51, %v1626_v54  ;;  %vm466_vm1 = vcmask 588800  }
  0x18   : > { %v2084_v58 = vld [vmem:[%s3165_s1 + $0x34] sm:$0xf]  ;;  %v1554_v59 = vld [vmem:[%s3165_s1 + $0x3c] sm:$0xf0]  ;;  %s2199_s17 = smul.u32 80, %s3169_s13  ;;  %v2380_v63 = vld [vmem:[%s3165_s1 + $0x24c] sm:$0xff]  ;;  %v1553_v4 = vor.u32 %v2085_v57, %v1552_v55 }
  0x19   : > { %v1624_v61 = vld [vmem:[%s3165_s1 + $0xc0] sm:$0xf]  ;;  %v2103_v62 = vld [vmem:[%s3165_s1 + $0xc8] sm:$0xf0]  ;;  %v1620_v0 = vld [vmem:[%s3165_s1 + $0xb0] sm:$0xf]  ;;  %v1557_v8 = vor.u32 %v2084_v58, %v1554_v59  ;;  %v828_v19 = vunpack.c.l.b16 %v2380_v63 }
  0x1a   : > { %545 = vmatpush.bf16.msra.mxu3 %v1653_v39  ;;  %486 = vmatpush.bf16.msra.mxu0 %v1577_v40  ;;  %v2101_v1 = vld [vmem:[%s3165_s1 + $0xb8] sm:$0xf0]  ;;  %v247_v2 = vld [vmem:[%s3165_s1 + $0x128] sm:$0xf]  ;;  %s2394_s5 = scalar_lea.vmem %s3164_s0, %s2199_s17  ;;  %v1540_v5 = vld [vmem:[%s3165_s1 + $0x18] sm:$0xf]  ;;  %v1625_v12 = vor.u32 %v2103_v62, %v1624_v61 }
  0x1b   : > { %524 = vmatpush.bf16.msra.mxu2 %v1581_v44  ;;  %507 = vmatpush.bf16.msra.mxu1 %v1649_v48  ;;  %v2082_v6 = vld [vmem:[%s3165_s1 + $0x20] sm:$0xf0]  ;;  %v390_v7 = vunpack.c.l.b16 %v247_v2  ;;  %v173_v10 = vld [vmem:[%s2394_s5 + $0x8] sm:$0xff]  ;;  %v174_v11 = vld [vmem:[%s2394_s5 + $0x10] sm:$0xff]  ;;  %v1621_v17 = vor.u32 %v2101_v1, %v1620_v0  ;;  %v867_v34 = vpack.c.b16 %v828_v19, %v828_v19  ;;  %v829_v0 = vunpack.c.h.b16 %v2380_v63  ;;  %s2200_s19 = smul.u32 96, %s3169_s13 }
  0x1c   : > { %v172_v9 = vld [vmem:[%s2394_s5] sm:$0xff]  ;;  %v175_v13 = vld [vmem:[%s2394_s5 + $0x18] sm:$0xff]  ;;  %v1542_v16 = vld [vmem:[%s3165_s1 + $0x24] sm:$0xf0]  ;;  %v1541_v24 = vor.u32 %v2082_v6, %v1540_v5  ;;  %vm665_vm2 = vsmask.f32 7424 }
  0x1d   : > { %v182_v14 = vpack.c.bf16 %v173_v10, %v172_v9  ;;  %v2081_v15 = vld [vmem:[%s3165_s1 + $0x1c] sm:$0xf]  ;;  %v429_v18 = vpack.c.b16 %v390_v7, %v390_v7  ;;  %v183_v20 = vpack.c.bf16 %v175_v13, %v174_v11  ;;  %v1528_v21 = vld [vmem:[%s3165_s1] sm:$0xf]  ;;  %v2079_v22 = vld [vmem:[%s3165_s1 + $0x8] sm:$0xf0]  ;;  %s3124_s22 = scalar_lea.vmem %s3167_s3, %s2200_s19 }
  0x1e   : > { %546 = vmatpush.bf16.msra.mxu3 %v1641_v52  ;;  %487 = vmatpush.bf16.msra.mxu0 %v1565_v53  ;;  %v1608_v26 = vld [vmem:[%s3165_s1 + $0x98] sm:$0xf]  ;;  %v2098_v27 = vld [vmem:[%s3165_s1 + $0xa0] sm:$0xf0]  ;;  %v1545_v29 = vor.u32 %v2081_v15, %v1542_v16  ;;  %v1668_v31 = vld [vmem:[%s3165_s1 + $0x110] sm:$0xf]  ;;  %v1529_v43 = vor.u32 %v2079_v22, %v1528_v21  ;;  %v868_v16 = vpack.c.b16 %v829_v0, %v829_v0 }
  0x1f   : > { %525 = vmatpush.bf16.msra.mxu2 %v1569_v56  ;;  %508 = vmatpush.bf16.msra.mxu1 %v1637_v60  ;;  %v253_v23 = vunpack.c.h.b16 %v182_v14  ;;  %v481_v25 = vsel %vm473_vm0, %v429_v18, 0  ;;  %v255_v28 = vunpack.c.h.b16 %v183_v20  ;;  %v2078_v30 = vld [vmem:[%s3165_s1 + $0x4] sm:$0xf]  ;;  %v2113_v32 = vld [vmem:[%s3165_s1 + $0x118] sm:$0xf0]  ;;  %v252_v39 = vunpack.c.l.b16 %v182_v14  ;;  %v177_v52 = vld [vmem:[%s2394_s5 + $0x28] sm:$0xff] }
  0x20   : > { %v1530_v33 = vld [vmem:[%s3165_s1 + $0xc] sm:$0xf0]  ;;  %v1812_v35 = vld [vmem:[%s3165_s1 + $0x1d4] sm:$0xf]  ;;  %v2136_v36 = vld [vmem:[%s3165_s1 + $0x1dc] sm:$0xf0]  ;;  %v1669_v37 = vor.u32 %v2113_v32, %v1668_v31  ;;  %v254_v40 = vunpack.c.l.b16 %v183_v20  ;;  %v1609_v41 = vor.u32 %v2098_v27, %v1608_v26 }
  0x21   : > { %v2444_v38 = vpack.c.b16 %v255_v28, %v253_v23  ;;  %v1656_v42 = vld [vmem:[%s3165_s1 + $0xf8] sm:$0xf]  ;;  %v1800_v44 = vld [vmem:[%s3165_s1 + $0x1bc] sm:$0xf]  ;;  %v1596_v45 = vld [vmem:[%s3165_s1 + $0x80] sm:$0xf]  ;;  %v1533_v48 = vor.u32 %v2078_v30, %v1530_v33  ;;  %v1813_v49 = vor.u32 %v2136_v36, %v1812_v35 }
  0x22   : > { %547 = vmatpush.bf16.msra.mxu3 %v1629_v3  ;;  %488 = vmatpush.bf16.msra.mxu0 %v1553_v4  ;;  %v2095_v46 = vld [vmem:[%s3165_s1 + $0x88] sm:$0xf0]  ;;  %v2110_v47 = vld [vmem:[%s3165_s1 + $0x100] sm:$0xf0]  ;;  %v2133_v50 = vld [vmem:[%s3165_s1 + $0x1c4] sm:$0xf0]  ;;  %v2476_v58 = vpack.c.b16 %v254_v40, %v252_v39 }
  0x23   : > { %526 = vmatpush.bf16.msra.mxu2 %v1557_v8  ;;  %509 = vmatpush.bf16.msra.mxu1 %v1625_v12  ;;  %v176_v51 = vld [vmem:[%s2394_s5 + $0x20] sm:$0xff]  ;;  %v913_v53 = vsel %vm473_vm0, %v867_v34, 0  ;;  %v178_v54 = vld [vmem:[%s2394_s5 + $0x30] sm:$0xff]  ;;  %v179_v55 = vld [vmem:[%s2394_s5 + $0x38] sm:$0xff]  ;;  %v1657_v57 = vor.u32 %v2110_v47, %v1656_v42  ;;  %v1597_v59 = vor.u32 %v2095_v46, %v1596_v45  ;;  %v1801_v3 = vor.u32 %v2133_v50, %v1800_v44 }
  0x24   : > { %v1860_v56 = vld [vmem:[%s3165_s1 + $0x234] sm:$0xf]  ;;  %v2148_v60 = vld [vmem:[%s3165_s1 + $0x23c] sm:$0xf0]  ;;  %v2107_v62 = vld [vmem:[%s3165_s1 + $0xe8] sm:$0xf0]  ;;  %v2494_v4 = vpack.c.bf16 %v177_v52, %v176_v51  ;;  %v2496_v5 = vpack.c.bf16 %v179_v55, %v178_v54 }
  0x25   : > { %1672 = vmatmul.msk.bf16.vlgmr.msra.gmra.mxu3 %vm466_vm1, %v2444_v38  ;;  %v1644_v61 = vld [vmem:[%s3165_s1 + $0xe0] sm:$0xf]  ;;  %v1584_v1 = vld [vmem:[%s3165_s1 + $0x68] sm:$0xf]  ;;  %v2092_v2 = vld [vmem:[%s3165_s1 + $0x70] sm:$0xf0]  ;;  %v1861_v6 = vor.u32 %v2148_v60, %v1860_v56 }
  0x26   : > { %581 = vmatpush.bf16.msrb.mxu3 %v481_v25  ;;  %489 = vmatpush.bf16.msra.mxu0 %v1541_v24  ;;  %v1788_v63 = vld [vmem:[%s3165_s1 + $0x1a4] sm:$0xf]  ;;  %v2130_v7 = vld [vmem:[%s3165_s1 + $0x1ac] sm:$0xf0]  ;;  %v1848_v8 = vld [vmem:[%s3165_s1 + $0x21c] sm:$0xf]  ;;  %v1645_v9 = vor.u32 %v2107_v62, %v1644_v61  ;;  %v1585_v10 = vor.u32 %v2092_v2, %v1584_v1  ;;  %v259_v18 = vunpack.c.h.b16 %v2496_v5  ;;  %v258_v39 = vunpack.c.l.b16 %v2496_v5 }
  0x27   : > { %559 = vmatpush.bf16.msrb.mxu1 %v1621_v17  ;;  %527 = vmatpush.bf16.msra.mxu2 %v1545_v29  ;;  %v2145_v11 = vld [vmem:[%s3165_s1 + $0x224] sm:$0xf0]  ;;  %v2104_v13 = vld [vmem:[%s3165_s1 + $0xd0] sm:$0xf0]  ;;  %v1572_v14 = vld [vmem:[%s3165_s1 + $0x50] sm:$0xf]  ;;  %v257_v17 = vunpack.c.h.b16 %v2494_v4  ;;  %v1789_v19 = vor.u32 %v2130_v7, %v1788_v63 }
  0x28   : > { %1670 = vmatmul.msk.bf16.vlgmr.msra.gmra.mxu1 %vm466_vm1, %v2444_v38  ;;  %v1632_v12 = vld [vmem:[%s3165_s1 + $0xc8] sm:$0xf]  ;;  %v2089_v15 = vld [vmem:[%s3165_s1 + $0x58] sm:$0xf0]  ;;  %v1776_v20 = vld [vmem:[%s3165_s1 + $0x18c] sm:$0xf]  ;;  %v1849_v22 = vor.u32 %v2145_v11, %v1848_v8 }
  0x29   : > { %v2127_v21 = vld [vmem:[%s3165_s1 + $0x194] sm:$0xf0]  ;;  %v1633_v23 = vor.u32 %v2104_v13, %v1632_v12  ;;  %v1573_v24 = vor.u32 %v2089_v15, %v1572_v14  ;;  %v1836_v25 = vld [vmem:[%s3165_s1 + $0x204] sm:$0xf]  ;;  %v2142_v26 = vld [vmem:[%s3165_s1 + $0x20c] sm:$0xf0]  ;;  %v2548_v31 = vpack.c.b16 %v259_v18, %v257_v17 }
  0x2a   : > { %582 = vmatpush.bf16.msrb.mxu3 %v1669_v37  ;;  %490 = vmatpush.bf16.msra.mxu0 %v1529_v43  ;;  %v1725_v27 = vld [vmem:[%s3165_s1 + $0x254] sm:$0xf]  ;;  %v1560_v28 = vld [vmem:[%s3165_s1 + $0x38] sm:$0xf]  ;;  %v2086_v29 = vld [vmem:[%s3165_s1 + $0x40] sm:$0xf0]  ;;  %v1777_v32 = vor.u32 %v2127_v21, %v1776_v20  ;;  %v1837_v35 = vor.u32 %v2142_v26, %v1836_v25  ;;  %v256_v37 = vunpack.c.l.b16 %v2494_v4 }
  0x2b   : > { %560 = vmatpush.bf16.msrb.mxu1 %v1609_v41  ;;  %528 = vmatpush.bf16.msra.mxu2 %v1533_v48  ;;  %v916_v30 = vsel %vm473_vm0, %v868_v16, 0  ;;  %v1764_v33 = vld [vmem:[%s3165_s1 + $0x174] sm:$0xf]  ;;  %v2124_v34 = vld [vmem:[%s3165_s1 + $0x17c] sm:$0xf0]  ;;  %v830_v36 = vunpack.c.l.b16 %v1725_v27  ;;  %v1561_v40 = vor.u32 %v2086_v29, %v1560_v28  ;;  %v680_v7 = vshll.u32 %v2444_v38, 16 }
  0x2c   : > { %v1548_v41 = vld [vmem:[%s3165_s1 + $0x20] sm:$0xf]  ;;  %v1824_v42 = vld [vmem:[%s3165_s1 + $0x1ec] sm:$0xf]  ;;  %v2139_v43 = vld [vmem:[%s3165_s1 + $0x1f4] sm:$0xf0]  ;;  %v1765_v47 = vor.u32 %v2124_v34, %v1764_v33 }
  0x2d   : > { %491 = vmatmul.bf16.vlgmr.msra.gmra.mxu0 %v2476_v58  ;;  %v2083_v44 = vld [vmem:[%s3165_s1 + $0x28] sm:$0xf0]  ;;  %v2147_v45 = vld [vmem:[%s3165_s1 + $0x238] sm:$0xf]  ;;  %v1862_v46 = vld [vmem:[%s3165_s1 + $0x240] sm:$0xf0]  ;;  %v1825_v51 = vor.u32 %v2139_v43, %v1824_v42  ;;  %v869_v52 = vpack.c.b16 %v830_v36, %v830_v36 }
  0x2e   : > { %921 = vmatpush.bf16.msrb.mxu0 %v1813_v49  ;;  %583 = vmatpush.bf16.msrb.mxu3 %v1657_v57  ;;  %v1865_v48 = vor.u32 %v2147_v45, %v1862_v46  ;;  %v1752_v49 = vld [vmem:[%s3165_s1 + $0x15c] sm:$0xf]  ;;  %v2121_v50 = vld [vmem:[%s3165_s1 + $0x164] sm:$0xf0]  ;;  %v1549_v54 = vor.u32 %v2083_v44, %v1548_v41  ;;  %v2144_v55 = vld [vmem:[%s3165_s1 + $0x220] sm:$0xf] }
  0x2f   : > { %943 = vmatpush.bf16.msrb.mxu2 %v913_v53  ;;  %561 = vmatpush.bf16.msrb.mxu1 %v1597_v59  ;;  %v2586_v53 = vpack.c.b16 %v258_v39, %v256_v37  ;;  %v1850_v56 = vld [vmem:[%s3165_s1 + $0x228] sm:$0xf0]  ;;  %v1740_v57 = vld [vmem:[%s3165_s1 + $0x144] sm:$0xf]  ;;  %v1536_v59 = vld [vmem:[%s3165_s1 + $0x8] sm:$0xf]  ;;  %v1753_v62 = vor.u32 %v2121_v50, %v1752_v49 }
  0x30   : > { %529 = vmatmul.bf16.vlgmr.msra.gmra.mxu2 %v2476_v58  ;;  %v2080_v60 = vld [vmem:[%s3165_s1 + $0x10] sm:$0xf0]  ;;  %v1853_v61 = vor.u32 %v2144_v55, %v1850_v56  ;;  %v2118_v0 = vld [vmem:[%s3165_s1 + $0x14c] sm:$0xf0]  ;;  %v2135_v1 = vld [vmem:[%s3165_s1 + $0x1d8] sm:$0xf] }
  0x31   : > { %v1814_v2 = vld [vmem:[%s3165_s1 + $0x1e0] sm:$0xf0]  ;;  %v919_v4 = vsel %vm473_vm0, %v869_v52, 0  ;;  %v1868_v5 = vld [vmem:[%s3165_s1 + $0x23c] sm:$0xf]  ;;  %v1537_v63 = vor.u32 %v2080_v60, %v1536_v59  ;;  %v1741_v14 = vor.u32 %v2118_v0, %v1740_v57  ;;  %v667_v20 = vshrl.u32 %v2476_v58, 16 }
  0x32   : > { %922 = vmatpush.bf16.msrb.mxu0 %v1801_v3  ;;  %584 = vmatpush.bf16.msrb.mxu3 %v1645_v9  ;;  %v669_v3 = vshll.u32 %v2476_v58, 16  ;;  %v2141_v8 = vld [vmem:[%s3165_s1 + $0x208] sm:$0xf]  ;;  %v1838_v9 = vld [vmem:[%s3165_s1 + $0x210] sm:$0xf0]  ;;  %v1817_v11 = vor.u32 %v2135_v1, %v1814_v2  ;;  %v684_v25 = vshll.u32 %v2548_v31, 16 }
  0x33   : > { %944 = vmatpush.bf16.msrb.mxu2 %v1861_v6  ;;  %562 = vmatpush.bf16.msrb.mxu1 %v1585_v10  ;;  %v2149_v6 = vld [vmem:[%s3165_s1 + $0x244] sm:$0xf0]  ;;  %v1728_v10 = vld [vmem:[%s3165_s1 + $0x12c] sm:$0xf]  ;;  %v2132_v12 = vld [vmem:[%s3165_s1 + $0x1c0] sm:$0xf]  ;;  %v1841_v13 = vor.u32 %v2141_v8, %v1838_v9 }
  0x34   : > { %v1802_v15 = vld [vmem:[%s3165_s1 + $0x1c8] sm:$0xf0]  ;;  %v1869_v16 = vor.u32 %v2149_v6, %v1868_v5  ;;  %v2138_v17 = vld [vmem:[%s3165_s1 + $0x1f0] sm:$0xf]  ;;  %v1826_v18 = vld [vmem:[%s3165_s1 + $0x1f8] sm:$0xf0] }
  0x35   : > { %1673 = vmatmul.msk.bf16.gmra.mxu3 %vm466_vm1, %v2548_v31  ;;  %v671_v21 = vrot.slane %v669_v3, 1  ;;  %v1820_v26 = vld [vmem:[%s3165_s1 + $0x1dc] sm:$0xf]  ;;  %v2137_v27 = vld [vmem:[%s3165_s1 + $0x1e4] sm:$0xf0]  ;;  %v1805_v28 = vor.u32 %v2132_v12, %v1802_v15  ;;  %v1829_v33 = vor.u32 %v2138_v17, %v1826_v18  ;;  %v2687_v50 = vrot.slane %v684_v25, 1 }
  0x36   : > { %923 = vmatpush.bf16.msrb.mxu0 %v1789_v19  ;;  %585 = vmatpush.bf16.msrb.mxu3 %v1633_v23  ;;  %v2115_v19 = vld [vmem:[%s3165_s1 + $0x134] sm:$0xf0]  ;;  %v678_v23 = vshrl.u32 %v2444_v38, 16  ;;  %v2129_v29 = vld [vmem:[%s3165_s1 + $0x1a8] sm:$0xf]  ;;  %v1821_v39 = vor.u32 %v2137_v27, %v1820_v26  ;;  %v688_v17 = vshrl.u32 %v2586_v53, 16 }
  0x37   : > { %945 = vmatpush.bf16.msrb.mxu2 %v1849_v22  ;;  %563 = vmatpush.bf16.msrb.mxu1 %v1573_v24  ;;  %v674_v22 = vshll.u32 %v2586_v53, 16  ;;  %v682_v24 = vrot.slane %v680_v7, 1  ;;  %v1729_v34 = vor.u32 %v2115_v19, %v1728_v10  ;;  %v180_v36 = vld [vmem:[%s2394_s5 + $0x40] sm:$0x3]  ;;  %v181_v37 = vld [vmem:[%s2394_s5 + $0x48] sm:$0x3]  ;;  %v672_v43 = vor.u32 %v671_v21, %v667_v20 }
  0x38   : > { %1671 = vmatmul.msk.bf16.gmra.mxu1 %vm466_vm1, %v2548_v31  ;;  %v2134_v41 = vld [vmem:[%s3165_s1 + $0x1cc] sm:$0xf0]  ;;  %v186_v46 = vpack.c.bf16 %v181_v37, %v180_v36  ;;  %v1778_v52 = vld [vmem:[%s3165_s1 + $0x198] sm:$0xf0]  ;;  %v1796_v55 = vld [vmem:[%s3165_s1 + $0x1ac] sm:$0xf] }
  0x39   : > { %v2677_v44 = vrot.slane %v674_v22, 1  ;;  %v683_v49 = vor.u32 %v682_v24, %v678_v23  ;;  %v2131_v56 = vld [vmem:[%s3165_s1 + $0x1b4] sm:$0xf0]  ;;  %v1832_v0 = vld [vmem:[%s3165_s1 + $0x1f4] sm:$0xf]  ;;  %v696_v23 = vshrl.u32 %v2548_v31, 16 }
  0x3a   : > { %981 = vmatpush.bf16.msra.mxu3 %v916_v30  ;;  %924 = vmatpush.bf16.msrb.mxu0 %v1777_v32  ;;  %v1856_v30 = vld [vmem:[%s3165_s1 + $0x224] sm:$0xf]  ;;  %v2146_v32 = vld [vmem:[%s3165_s1 + $0x22c] sm:$0xf0]  ;;  %v2140_v1 = vld [vmem:[%s3165_s1 + $0x1fc] sm:$0xf0]  ;;  %v1797_v5 = vor.u32 %v2131_v56, %v1796_v55 }
  0x3b   : > { %946 = vmatpush.bf16.msrb.mxu2 %v1837_v35  ;;  %564 = vmatpush.bf16.msrb.mxu1 %v1561_v40  ;;  %v1790_v35 = vld [vmem:[%s3165_s1 + $0x1b0] sm:$0xf0]  ;;  %v1808_v40 = vld [vmem:[%s3165_s1 + $0x1c4] sm:$0xf]  ;;  %v1857_v42 = vor.u32 %v2146_v32, %v1856_v30  ;;  %v2704_v59 = vsel %vm665_vm2, %v672_v43, %v2677_v44  ;;  %v2714_v2 = vsel %vm665_vm2, %v683_v49, %v2687_v50  ;;  %v2123_v3 = vld [vmem:[%s3165_s1 + $0x178] sm:$0xf] }
  0x3c   : > { %v1793_v45 = vor.u32 %v2129_v29, %v1790_v35  ;;  %v1784_v6 = vld [vmem:[%s3165_s1 + $0x194] sm:$0xf]  ;;  %v1833_v7 = vor.u32 %v2140_v1, %v1832_v0  ;;  %v2120_v12 = vld [vmem:[%s3165_s1 + $0x160] sm:$0xf]  ;;  %v1772_v18 = vld [vmem:[%s3165_s1 + $0x17c] sm:$0xf] }
  0x3d   : > { %496 = vmatmul.bf16.gmra.mxu0 %v2586_v53  ;;  %v2125_v19 = vld [vmem:[%s3165_s1 + $0x184] sm:$0xf0]  ;;  %v1742_v27 = vld [vmem:[%s3165_s1 + $0x150] sm:$0xf0]  ;;  %v1760_v32 = vld [vmem:[%s3165_s1 + $0x164] sm:$0xf] }
  0x3e   : > { %982 = vmatpush.bf16.msra.mxu3 %v1865_v48  ;;  %925 = vmatpush.bf16.msrb.mxu0 %v1765_v47  ;;  %v1844_v47 = vld [vmem:[%s3165_s1 + $0x20c] sm:$0xf]  ;;  %v2143_v48 = vld [vmem:[%s3165_s1 + $0x214] sm:$0xf0]  ;;  %v2117_v26 = vld [vmem:[%s3165_s1 + $0x148] sm:$0xf]  ;;  %v1773_v30 = vor.u32 %v2125_v19, %v1772_v18 }
  0x3f   : > { %947 = vmatpush.bf16.msrb.mxu2 %v1825_v51  ;;  %565 = vmatpush.bf16.msrb.mxu1 %v1549_v54  ;;  %v2126_v51 = vld [vmem:[%s3165_s1 + $0x190] sm:$0xf]  ;;  %v1809_v54 = vor.u32 %v2134_v41, %v1808_v40  ;;  %v1845_v57 = vor.u32 %v2143_v48, %v1844_v47  ;;  %v2060_v35 = vld [vmem:[%s3165_s1 + $0x360] sm:$0xf]  ;;  %v2184_v36 = vld [vmem:[%s3165_s1 + $0x368] sm:$0xf0]  ;;  %v1745_v40 = vor.u32 %v2117_v26, %v1742_v27 }
  0x40   : > { %534 = vmatmul.bf16.gmra.mxu2 %v2586_v53  ;;  %v1781_v60 = vor.u32 %v2126_v51, %v1778_v52  ;;  %v2114_v41 = vld [vmem:[%s3165_s1 + $0x130] sm:$0xf]  ;;  %v2061_v43 = vor.u32 %v2184_v36, %v2060_v35  ;;  %v2172_v49 = vld [vmem:[%s3165_s1 + $0x308] sm:$0xf0]  ;;  %v2048_v51 = vld [vmem:[%s3165_s1 + $0x348] sm:$0xf] }
  0x41   : > { %v2062_v47 = vld [vmem:[%s3165_s1 + $0x36c] sm:$0xf0]  ;;  %v2181_v52 = vld [vmem:[%s3165_s1 + $0x350] sm:$0xf0]  ;;  %v2119_v55 = vld [vmem:[%s3165_s1 + $0x154] sm:$0xf0] }
  0x42   : > { %983 = vmatpush.bf16.msra.mxu3 %v1853_v61  ;;  %926 = vmatpush.bf16.msrb.mxu0 %v1753_v62  ;;  %v661_v61 = vunpack.c.l.b16 %v186_v46  ;;  %v662_v62 = vunpack.c.h.b16 %v186_v46  ;;  %v2183_v46 = vld [vmem:[%s3165_s1 + $0x364] sm:$0xf]  ;;  %v2049_v56 = vor.u32 %v2181_v52, %v2048_v51  ;;  %v2168_v26 = vld [vmem:[%s3165_s1 + $0x2ec] sm:$0xf]  ;;  %v2002_v27 = vld [vmem:[%s3165_s1 + $0x2f4] sm:$0xf0] }
  0x43   : > { %1019 = vmatpush.bf16.msra.mxu2 %v919_v4  ;;  %566 = vmatpush.bf16.msrb.mxu1 %v1537_v63  ;;  %v1766_v4 = vld [vmem:[%s3165_s1 + $0x180] sm:$0xf0]  ;;  %v2128_v63 = vld [vmem:[%s3165_s1 + $0x19c] sm:$0xf0]  ;;  %vm1098_vm3 = vcmask 1046528  }
  0x44   : > { %v1769_v8 = vor.u32 %v2123_v3, %v1766_v4  ;;  %v2731_v9 = vpack.c.b16 %v661_v61, %v661_v61  ;;  %v2733_v10 = vpack.c.b16 %v662_v62, %v662_v62  ;;  %v2050_v62 = vld [vmem:[%s3165_s1 + $0x354] sm:$0xf0]  ;;  %v2175_v18 = vld [vmem:[%s3165_s1 + $0x320] sm:$0xf0]  ;;  %v2165_v35 = vld [vmem:[%s3165_s1 + $0x2d4] sm:$0xf] }
  0x45   : > { %1674 = vmatmul.msk.bf16.vlgmr.msrb.gmra.mxu3 %vm466_vm1, %v2444_v38  ;;  %v1990_v36 = vld [vmem:[%s3165_s1 + $0x2dc] sm:$0xf0]  ;;  %v2157_v51 = vld [vmem:[%s3165_s1 + $0x290] sm:$0xf0] }
  0x46   : > { %984 = vmatpush.bf16.msra.mxu3 %v1841_v13  ;;  %927 = vmatpush.bf16.msrb.mxu0 %v1741_v14  ;;  %v1754_v13 = vld [vmem:[%s3165_s1 + $0x168] sm:$0xf0]  ;;  %v692_v22 = vshll.u32 %v2731_v9, 16  ;;  %v700_v24 = vshll.u32 %v2733_v10, 16 }
  0x47   : > { %959 = vmatpush.bf16.msra.mxu1 %v1817_v11  ;;  %1020 = vmatpush.bf16.msra.mxu2 %v1869_v16  ;;  %v1924_v11 = vld [vmem:[%s3165_s1 + $0x378] sm:$0xff]  ;;  %v1785_v16 = vor.u32 %v2128_v63, %v1784_v6  ;;  %v1757_v25 = vor.u32 %v2120_v12, %v1754_v13  ;;  %v2000_v6 = vld [vmem:[%s3165_s1 + $0x2e8] sm:$0xf]  ;;  %v2169_v63 = vld [vmem:[%s3165_s1 + $0x2f0] sm:$0xf0] }
  0x48   : > { %567 = vmatmul.bf16.vlgmr.msrb.gmra.mxu1 %v2476_v58  ;;  %v1233_v14 = vunpack.c.l.b16 %v1924_v11  ;;  %v1234_v15 = vunpack.c.h.b16 %v1924_v11  ;;  %v694_v37 = vrot.slane %v692_v22, 1  ;;  %v2178_v11 = vld [vmem:[%s3165_s1 + $0x338] sm:$0xf0]  ;;  %v2171_v12 = vld [vmem:[%s3165_s1 + $0x304] sm:$0xf] }
  0x49   : > { %v2014_v13 = vld [vmem:[%s3165_s1 + $0x30c] sm:$0xf0]  ;;  %v2038_v22 = vld [vmem:[%s3165_s1 + $0x33c] sm:$0xf0] }
  0x4a   : > { %985 = vmatpush.bf16.msra.mxu3 %v1829_v33  ;;  %928 = vmatpush.bf16.msrb.mxu0 %v1729_v34  ;;  %v1272_v20 = vpack.c.b16 %v1233_v14, %v1233_v14  ;;  %v1273_v21 = vpack.c.b16 %v1234_v15, %v1234_v15  ;;  %v690_v33 = vor.u32 %v688_v17, %v2677_v44  ;;  %v2122_v34 = vld [vmem:[%s3165_s1 + $0x16c] sm:$0xf0]  ;;  %v2024_v17 = vld [vmem:[%s3165_s1 + $0x318] sm:$0xf] }
  0x4b   : > { %960 = vmatpush.bf16.msra.mxu1 %v1805_v28  ;;  %1021 = vmatpush.bf16.msra.mxu2 %v1857_v42  ;;  %v1730_v42 = vld [vmem:[%s3165_s1 + $0x138] sm:$0xf0]  ;;  %v698_v44 = vor.u32 %v696_v23, %v2687_v50  ;;  %v1761_v48 = vor.u32 %v2122_v34, %v1760_v32  ;;  %v2065_v50 = vor.u32 %v2183_v46, %v2062_v47  ;;  %v1976_v32 = vld [vmem:[%s3165_s1 + $0x2b8] sm:$0xf] }
  0x4c   : > { %v1318_v28 = vsel %vm473_vm0, %v1272_v20, 0  ;;  %v1321_v29 = vsel %vm473_vm0, %v1273_v21, 0  ;;  %v1733_v61 = vor.u32 %v2114_v41, %v1730_v42  ;;  %v2001_v15 = vor.u32 %v2169_v63, %v2000_v6  ;;  %v2166_v20 = vld [vmem:[%s3165_s1 + $0x2d8] sm:$0xf0]  ;;  %v2177_v21 = vld [vmem:[%s3165_s1 + $0x334] sm:$0xf] }
  0x4d   : > { %929 = vmatmul.bf16.vlgmr.msrb.gmra.mxu0 %v2704_v59  ;;  %v2017_v23 = vor.u32 %v2171_v12, %v2014_v13  ;;  %v2005_v34 = vor.u32 %v2168_v26, %v2002_v27  ;;  %v2160_v41 = vld [vmem:[%s3165_s1 + $0x2a8] sm:$0xf0]  ;;  %v2026_v42 = vld [vmem:[%s3165_s1 + $0x324] sm:$0xf0]  ;;  %v1993_v46 = vor.u32 %v2165_v35, %v1990_v36  ;;  %v1928_v63 = vld [vmem:[%s3165_s1 + $0x258] sm:$0xf] }
  0x4e   : > { %997 = vmatpush.bf16.msra.mxu0 %v1821_v39  ;;  %1348 = vmatpush.bf16.msrb.mxu3 %v1318_v28  ;;  %v702_v39 = vrot.slane %v700_v24, 1  ;;  %v2025_v24 = vor.u32 %v2175_v18, %v2024_v17  ;;  %v1102_v28 = vrot.slane %v2444_v38, 1  ;;  %v2068_v12 = vld [vmem:[%s3165_s1 + $0x368] sm:$0xf]  ;;  %v2185_v13 = vld [vmem:[%s3165_s1 + $0x370] sm:$0xf0] }
  0x4f   : > { %961 = vmatpush.bf16.msra.mxu1 %v1793_v45  ;;  %1022 = vmatpush.bf16.msra.mxu2 %v1845_v57  ;;  %v2012_v45 = vld [vmem:[%s3165_s1 + $0x300] sm:$0xf]  ;;  %v2180_v57 = vld [vmem:[%s3165_s1 + $0x34c] sm:$0xf]  ;;  %v2150_v26 = vld [vmem:[%s3165_s1 + $0x25c] sm:$0xf] }
  0x50   : > { %1870 = vmatmul.msk.bf16.vlgmr.msrb.gmra.mxu2 %vm466_vm1, %v2714_v2  ;;  %v2819_v0 = vsel %vm665_vm2, %v698_v44, %v702_v39  ;;  %v2013_v1 = vor.u32 %v2172_v49, %v2012_v45  ;;  %v2053_v3 = vor.u32 %v2180_v57, %v2050_v62  ;;  %v1964_v39 = vld [vmem:[%s3165_s1 + $0x2a0] sm:$0xf]  ;;  %v1100_v44 = vrot.slane %v2586_v53, 1  ;;  %v1978_v49 = vld [vmem:[%s3165_s1 + $0x2c4] sm:$0xf0] }
  0x51   : > { %v1942_v17 = vld [vmem:[%s3165_s1 + $0x27c] sm:$0xf0]  ;;  %v1930_v27 = vld [vmem:[%s3165_s1 + $0x264] sm:$0xf0] }
  0x52   : > { %998 = vmatpush.bf16.msra.mxu0 %v1809_v54  ;;  %v1748_v54 = vld [vmem:[%s3165_s1 + $0x14c] sm:$0xf]  ;;  %1349 = vmatpush.bf16.msrb.mxu3 %v2061_v43  ;;  %v1099_v43 = vrot.slane %v2476_v58, 1  ;;  %v1965_v58 = vor.u32 %v2160_v41, %v1964_v39  ;;  %v1933_v35 = vor.u32 %v2150_v26, %v1930_v27 }
  0x53   : > { %962 = vmatpush.bf16.msra.mxu1 %v1781_v60  ;;  %1023 = vmatpush.bf16.msra.mxu2 %v1833_v7  ;;  %v2813_v60 = vsel %vm665_vm2, %v690_v33, %v694_v37  ;;  %v1749_v4 = vor.u32 %v2119_v55, %v1748_v54  ;;  %v2116_v7 = vld [vmem:[%s3165_s1 + $0x13c] sm:$0xf0]  ;;  %v2163_v33 = vld [vmem:[%s3165_s1 + $0x2c0] sm:$0xf0]  ;;  %v2164_v41 = vld [vmem:[%s3165_s1 + $0x2c8] sm:$0xf0] }
  0x54   : > { %v1977_v37 = vor.u32 %v2163_v33, %v1976_v32  ;;  %v2911_v47 = vsel %vm1098_vm3, %v1099_v43, %v1100_v44  ;;  %v1925_v54 = vld [vmem:[%s3165_s1 + $0x380] sm:$0xf]  ;;  %v2159_v55 = vld [vmem:[%s3165_s1 + $0x2a4] sm:$0xf]  ;;  %v2044_v33 = vld [vmem:[%s3165_s1 + $0x338] sm:$0xf] }
  0x55   : > { %1675 = vmatmul.msk.bf16.gmra.mxu3 %vm466_vm1, %v2548_v31  ;;  %v2167_v32 = vld [vmem:[%s3165_s1 + $0x2e0] sm:$0xf0]  ;;  %v1972_v43 = vld [vmem:[%s3165_s1 + $0x2a8] sm:$0xf] }
  0x56   : > { %999 = vmatpush.bf16.msra.mxu0 %v1797_v5  ;;  %v1736_v5 = vld [vmem:[%s3165_s1 + $0x134] sm:$0xf]  ;;  %1350 = vmatpush.bf16.msrb.mxu3 %v2049_v56  ;;  %v1966_v56 = vld [vmem:[%s3165_s1 + $0x2ac] sm:$0xf0] }
  0x57   : > { %963 = vmatpush.bf16.msra.mxu1 %v1769_v8  ;;  %1386 = vmatpush.bf16.msrb.mxu2 %v1321_v29  ;;  %v2036_v8 = vld [vmem:[%s3165_s1 + $0x330] sm:$0xf]  ;;  %v1737_v19 = vor.u32 %v2116_v7, %v1736_v5  ;;  %v2151_v7 = vld [vmem:[%s3165_s1 + $0x260] sm:$0xf0] }
  0x58   : > { %572 = vmatmul.bf16.gmra.mxu1 %v2586_v53  ;;  %v2037_v14 = vor.u32 %v2178_v11, %v2036_v8  ;;  %v2020_v8 = vld [vmem:[%s3165_s1 + $0x308] sm:$0xf]  ;;  %v2173_v11 = vld [vmem:[%s3165_s1 + $0x310] sm:$0xf0]  ;;  %v1929_v18 = vor.u32 %v2151_v7, %v1928_v63 }
  0x5a   : > { %1000 = vmatpush.bf16.msra.mxu0 %v1785_v16  ;;  %v1988_v16 = vld [vmem:[%s3165_s1 + $0x2d0] sm:$0xf]  ;;  %1351 = vmatpush.bf16.msrb.mxu3 %v2037_v14 }
  0x5b   : > { %964 = vmatpush.bf16.msra.mxu1 %v1757_v25  ;;  %1387 = vmatpush.bf16.msrb.mxu2 %v2065_v50  ;;  %v2041_v25 = vor.u32 %v2177_v21, %v2038_v22  ;;  %v1989_v29 = vor.u32 %v2166_v20, %v1988_v16  ;;  %v1952_v50 = vld [vmem:[%s3165_s1 + $0x288] sm:$0xf]  ;;  %v2153_v16 = vld [vmem:[%s3165_s1 + $0x274] sm:$0xf]  ;;  %v2021_v20 = vor.u32 %v2173_v11, %v2020_v8  ;;  %v2182_v21 = vld [vmem:[%s3165_s1 + $0x358] sm:$0xf0] }
  0x5c   : > { %v1953_v57 = vor.u32 %v2157_v51, %v1952_v50  ;;  %v2008_v22 = vld [vmem:[%s3165_s1 + $0x2f0] sm:$0xf]  ;;  %v1948_v50 = vld [vmem:[%s3165_s1 + $0x278] sm:$0xf]  ;;  %v2155_v51 = vld [vmem:[%s3165_s1 + $0x280] sm:$0xf0] }
  0x5d   : > { %934 = vmatmul.bf16.gmra.mxu0 %v2813_v60 }
  0x5e   : > { %1001 = vmatpush.bf16.msra.mxu0 %v1773_v30  ;;  %v1103_v30 = vrot.slane %v2548_v31, 1  ;;  %1352 = vmatpush.bf16.msrb.mxu3 %v2025_v24 }
  0x5f   : > { %965 = vmatpush.bf16.msra.mxu1 %v1745_v40  ;;  %1388 = vmatpush.bf16.msrb.mxu2 %v2053_v3  ;;  %v2174_v40 = vld [vmem:[%s3165_s1 + $0x31c] sm:$0xf]  ;;  %v2156_v3 = vld [vmem:[%s3165_s1 + $0x28c] sm:$0xf] }
  0x60   : > { %1871 = vmatmul.msk.bf16.gmra.mxu2 %vm466_vm1, %v2819_v0  ;;  %v2883_v38 = vsel %vm1098_vm3, %v1102_v28, %v1103_v30  ;;  %v2029_v45 = vor.u32 %v2174_v40, %v2026_v42 }
  0x62   : > { %1002 = vmatpush.bf16.msra.mxu0 %v1761_v48  ;;  %v2162_v48 = vld [vmem:[%s3165_s1 + $0x2bc] sm:$0xf] }
  0x63   : > { %966 = vmatpush.bf16.msra.mxu1 %v1733_v61  ;;  %1389 = vmatpush.bf16.msrb.mxu2 %v2041_v25  ;;  %v1981_v52 = vor.u32 %v2162_v48, %v1978_v49  ;;  %v2154_v61 = vld [vmem:[%s3165_s1 + $0x278] sm:$0xf0]  ;;  %v1945_v25 = vor.u32 %v2153_v16, %v1942_v17  ;;  %v1960_v48 = vld [vmem:[%s3165_s1 + $0x290] sm:$0xf] }
  0x64   : > { %v2158_v49 = vld [vmem:[%s3165_s1 + $0x298] sm:$0xf0] }
  0x65   : > { %1872 = vmatmul.msk.bf16.vlgmr.msra.gmra.mxu3 %vm466_vm1, %v2714_v2 }
  0x66   : > { %1003 = vmatpush.bf16.msra.mxu0 %v1749_v4  ;;  %v1954_v4 = vld [vmem:[%s3165_s1 + $0x294] sm:$0xf0] }
  0x67   : > { %1326 = vmatpush.bf16.msrb.mxu1 %v2013_v1  ;;  %1390 = vmatpush.bf16.msrb.mxu2 %v2029_v45  ;;  %v1969_v1 = vor.u32 %v2159_v55, %v1966_v56  ;;  %v1957_v14 = vor.u32 %v2156_v3, %v1954_v4  ;;  %v2161_v45 = vld [vmem:[%s3165_s1 + $0x2b0] sm:$0xf0]  ;;  %v1949_v55 = vor.u32 %v2155_v51, %v1948_v50  ;;  %v1936_v56 = vld [vmem:[%s3165_s1 + $0x260] sm:$0xf] }
  0x68   : > { %967 = vmatmul.bf16.vlgmr.msra.gmra.mxu1 %v2704_v59 }
  0x6a   : > { %1004 = vmatpush.bf16.msra.mxu0 %v1737_v19  ;;  %v2056_v19 = vld [vmem:[%s3165_s1 + $0x350] sm:$0xf] }
  0x6b   : > { %1327 = vmatpush.bf16.msrb.mxu1 %v2001_v15  ;;  %v2069_v15 = vor.u32 %v2185_v13, %v2068_v12  ;;  %v2057_v24 = vor.u32 %v2182_v21, %v2056_v19 }
  0x6d   : > { %1005 = vmatmul.bf16.vlgmr.msra.gmra.mxu0 %v2704_v59  ;;  %v1235_v59 = vunpack.c.l.b16 %v1925_v54  ;;  %v1105_v54 = vrot.slane %v2731_v9, 1 }
  0x6e   : > { %1364 = vmatpush.bf16.msrb.mxu0 %v2017_v23  ;;  %v2170_v23 = vld [vmem:[%s3165_s1 + $0x2f8] sm:$0xf0] }
  0x6f   : > { %1328 = vmatpush.bf16.msrb.mxu1 %v1989_v29  ;;  %v1274_v62 = vpack.c.b16 %v1235_v59, %v1235_v59  ;;  %v2009_v28 = vor.u32 %v2170_v23, %v2008_v22  ;;  %v1996_v29 = vld [vmem:[%s3165_s1 + $0x2d8] sm:$0xf] }
  0x70   : > { %1874 = vmatmul.msk.bf16.vlgmr.msra.gmra.mxu2 %vm466_vm1, %v2714_v2  ;;  %v1940_v2 = vld [vmem:[%s3165_s1 + $0x270] sm:$0xf]  ;;  %v1997_v39 = vor.u32 %v2167_v32, %v1996_v29 }
  0x71   : > { %v1941_v5 = vor.u32 %v2154_v61, %v1940_v2  ;;  %v1324_v6 = vsel %vm473_vm0, %v1274_v62, 0 }
  0x72   : > { %1365 = vmatpush.bf16.msrb.mxu0 %v2005_v34  ;;  %1424 = vmatpush.bf16.msra.mxu2 %v1324_v6  ;;  %v2179_v34 = vld [vmem:[%s3165_s1 + $0x340] sm:$0xf0] }
  0x73   : > { %1329 = vmatpush.bf16.msrb.mxu1 %v1977_v37  ;;  %2194 = vmatpush.bf16.msra.mxu3 %v1324_v6  ;;  %v2045_v36 = vor.u32 %v2179_v34, %v2044_v33  ;;  %v2176_v37 = vld [vmem:[%s3165_s1 + $0x328] sm:$0xf0] }
  0x75   : > { %1873 = vmatmul.msk.bf16.gmra.mxu3 %vm466_vm1, %v2819_v0 }
  0x76   : > { %1366 = vmatpush.bf16.msrb.mxu0 %v1993_v46  ;;  %1425 = vmatpush.bf16.msra.mxu2 %v2069_v15  ;;  %v1973_v46 = vor.u32 %v2161_v45, %v1972_v43 }
  0x77   : > { %1330 = vmatpush.bf16.msrb.mxu1 %v1965_v58  ;;  %2195 = vmatpush.bf16.msra.mxu3 %v2069_v15  ;;  %v1961_v58 = vor.u32 %v2158_v49, %v1960_v48 }
  0x78   : > { %972 = vmatmul.bf16.gmra.mxu1 %v2813_v60 }
  0x7a   : > { %1367 = vmatpush.bf16.msrb.mxu0 %v1981_v52  ;;  %1426 = vmatpush.bf16.msra.mxu2 %v2057_v24  ;;  %v1107_v52 = vrot.slane %v2733_v10, 1  ;;  %v1106_v10 = vsel %vm1098_vm3, %v1100_v44, %v1105_v54  ;;  %v3111_v54 = vld [vmem:[%s3166_s2] sm:$0x7] }
  0x7b   : > { %1331 = vmatpush.bf16.msrb.mxu1 %v1953_v57  ;;  %2196 = vmatpush.bf16.msra.mxu3 %v2057_v24  ;;  %v2152_v57 = vld [vmem:[%s3165_s1 + $0x268] sm:$0xf0] }
  0x7c   : > { %v1108_v59 = vsel %vm1098_vm3, %v1103_v30, %v1107_v52  ;;  %v1937_v9 = vor.u32 %v2152_v57, %v1936_v56  ;;  %v189_v57 = vperm.slane %v3111_v54, 0 }
  0x7d   : > { %1010 = vmatmul.bf16.gmra.mxu0 %v2813_v60  ;;  %v2032_v60 = vld [vmem:[%s3165_s1 + $0x320] sm:$0xf] }
  0x7e   : > { %1368 = vmatpush.bf16.msrb.mxu0 %v1969_v1  ;;  %1427 = vmatpush.bf16.msra.mxu2 %v2045_v36  ;;  %v2033_v40 = vor.u32 %v2176_v37, %v2032_v60 }
  0x7f   : > { %1332 = vmatpush.bf16.msrb.mxu1 %v1941_v5  ;;  %2197 = vmatpush.bf16.msra.mxu3 %v2045_v36 }
  0x80   : > { %1875 = vmatmul.msk.bf16.gmra.mxu2 %vm466_vm1, %v2819_v0  ;;  %v1984_v0 = vld [vmem:[%s3165_s1 + $0x2c0] sm:$0xf] }
  0x81   : > { %v1985_v42 = vor.u32 %v2164_v41, %v1984_v0 }
  0x82   : > { %1369 = vmatpush.bf16.msrb.mxu0 %v1957_v14  ;;  %1428 = vmatpush.bf16.msra.mxu2 %v2033_v40 }
  0x83   : > { %1333 = vmatpush.bf16.msrb.mxu1 %v1929_v18  ;;  %2198 = vmatpush.bf16.msra.mxu3 %v2033_v40 }
  0x85   : > { %2070 = vmatmul.msk.bf16.vlgmr.msrb.gmra.mxu3 %vm466_vm1, %v2883_v38 }
  0x86   : > { %1370 = vmatpush.bf16.msrb.mxu0 %v1945_v25 }
  0x87   : > { %2186 = vmatpush.bf16.msra.mxu1 %v2021_v20 }
  0x88   : > { %1334 = vmatmul.bf16.vlgmr.msrb.gmra.mxu1 %v2911_v47 }
  0x8a   : > { %1371 = vmatpush.bf16.msrb.mxu0 %v1933_v35 }
  0x8b   : > { %2187 = vmatpush.bf16.msra.mxu1 %v2009_v28 }
  0x8d   : > { %1372 = vmatmul.bf16.vlgmr.msrb.gmra.mxu0 %v2911_v47 }
  0x8e   : > { %1402 = vmatpush.bf16.msra.mxu0 %v2021_v20 }
  0x8f   : > { %2188 = vmatpush.bf16.msra.mxu1 %v1997_v39 }
  0x90   : > { %2072 = vmatmul.msk.bf16.vlgmr.msrb.gmra.mxu2 %vm466_vm1, %v2883_v38 }
  0x92   : > { %1403 = vmatpush.bf16.msra.mxu0 %v2009_v28 }
  0x93   : > { %2189 = vmatpush.bf16.msra.mxu1 %v1985_v42 }
  0x95   : > { %2071 = vmatmul.msk.bf16.gmra.mxu3 %vm466_vm1, %v1108_v59 }
  0x96   : > { %1404 = vmatpush.bf16.msra.mxu0 %v1997_v39 }
  0x97   : > { %2190 = vmatpush.bf16.msra.mxu1 %v1973_v46 }
  0x98   : > { %1339 = vmatmul.bf16.gmra.mxu1 %v1106_v10 }
  0x9a   : > { %1405 = vmatpush.bf16.msra.mxu0 %v1985_v42 }
  0x9b   : > { %2191 = vmatpush.bf16.msra.mxu1 %v1961_v58 }
  0x9d   : > { %1377 = vmatmul.bf16.gmra.mxu0 %v1106_v10 }
  0x9e   : > { %1406 = vmatpush.bf16.msra.mxu0 %v1973_v46 }
  0x9f   : > { %2192 = vmatpush.bf16.msra.mxu1 %v1949_v55 }
  0xa0   : > { %2073 = vmatmul.msk.bf16.gmra.mxu2 %vm466_vm1, %v1108_v59 }
  0xa2   : > { %1407 = vmatpush.bf16.msra.mxu0 %v1961_v58 }
  0xa3   : > { %2193 = vmatpush.bf16.msra.mxu1 %v1937_v9 }
  0xa5   : > { %v511_v2 = vpop.f32.mrf.mxu1  ;;  %2075 = vmatmul.msk.bf16.vlgmr.msra.gmra.mxu3 %vm466_vm1, %v1108_v59 }
  0xa6   : > { %1408 = vmatpush.bf16.msra.mxu0 %v1949_v55 }
  0xa8   : > { %1415 = vmatmul.bf16.vlgmr.msra.gmra.mxu1 %v1106_v10  ;;  %v549_v31 = vpop.f32.mrf.mxu3 }
  0xaa   : > { %1409 = vmatpush.bf16.msra.mxu0 %v1937_v9  ;;  %v492_v53 = vpop.f32.mrf.mxu0 }
  0xab   : > { %v3063_v30 = vadd.f32 %v511_v2, %v492_v53 }
  0xad   : > { %1410 = vmatmul.bf16.vlgmr.msra.gmra.mxu0 %v2911_v47  ;;  %v513_v44 = vpop.f32.mrf.mxu1  ;;  %v597_v9 = vadd.f32 %v3063_v30, %v189_v57 }
  0xb0   : > { %2074 = vmatmul.msk.bf16.vlgmr.msra.gmra.mxu2 %vm466_vm1, %v2883_v38  ;;  %v551_v62 = vpop.f32.mrf.mxu3 }
  0xb2   : > { %v494_v3 = vpop.f32.mrf.mxu0 }
  0xb3   : > { %v530_v61 = vpop.f32.mrf.mxu2  ;;  %v3070_v4 = vadd.f32 %v513_v44, %v494_v3 }
  0xb4   : > { %v3068_v1 = vadd.f32 %v549_v31, %v530_v61 }
  0xb5   : > { %v516_v5 = vpop.f32.mrf.mxu1 }
  0xb8   : > { %v554_v63 = vpop.f32.mrf.mxu3 }
  0xba   : > { %v497_v8 = vpop.f32.mrf.mxu0 }
  0xbb   : > { %v532_v6 = vpop.f32.mrf.mxu2  ;;  %v3074_v11 = vadd.f32 %v516_v5, %v497_v8  ;;  %v600_v8 = vadd.f32 %v3070_v4, %v189_v57 }
  0xbc   : > { %v3072_v7 = vadd.f32 %v551_v62, %v532_v6  ;;  %v190_v62 = vperm.slane %v3111_v54, 1 }
  0xbd   : > { %v518_v47 = vpop.f32.mrf.mxu1  ;;  %v603_v4 = vadd.f32 %v3074_v11, %v189_v57 }
  0xbe   : > { %v598_v30 = vadd.f32 %v3068_v1, %v190_v62  ;;  %v601_v1 = vadd.f32 %v3072_v7, %v190_v62 }
  0xc0   : > { %v556_v13 = vpop.f32.mrf.mxu3 }
  0xc2   : > { %v499_v38 = vpop.f32.mrf.mxu0 }
  0xc3   : > { %v535_v12 = vpop.f32.mrf.mxu2  ;;  %v3078_v15 = vadd.f32 %v518_v47, %v499_v38 }
  0xc4   : > { %v3076_v14 = vadd.f32 %v554_v63, %v535_v12 }
  0xc5   : > { %v568_v16 = vpop.f32.mrf.mxu1  ;;  %v606_v11 = vadd.f32 %v3078_v15, %v189_v57 }
  0xc6   : > { %v604_v7 = vadd.f32 %v3076_v14, %v190_v62 }
  0xc8   : > { %v587_v18 = vpop.f32.mrf.mxu3 }
  0xc9   : > { %v3082_v21 = vadd.f32 %v587_v18, %v568_v16 }
  0xca   : > { %v930_v20 = vpop.f32.mrf.mxu0 }
  0xcb   : > { %v537_v17 = vpop.f32.mrf.mxu2 }
  0xcc   : > { %v3080_v19 = vadd.f32 %v556_v13, %v537_v17 }
  0xcd   : > { %v570_v22 = vpop.f32.mrf.mxu1 }
  0xce   : > { %v607_v15 = vadd.f32 %v3080_v19, %v190_v62 }
  0xd0   : > { %v589_v24 = vpop.f32.mrf.mxu3 }
  0xd1   : > { %v3084_v26 = vadd.f32 %v589_v24, %v570_v22 }
  0xd2   : > { %v932_v25 = vpop.f32.mrf.mxu0 }
  0xd3   : > { %v949_v23 = vpop.f32.mrf.mxu2 }
  0xd4   : > { %v950_v10 = vadd.f32 %v949_v23, %v930_v20 }
  0xd5   : > { %v573_v27 = vpop.f32.mrf.mxu1 }
  0xd6   : > { %v1035_v44 = vadd.f32 %v950_v10, %v597_v9 }
  0xd8   : > { %v592_v29 = vpop.f32.mrf.mxu3 }
  0xd9   : > { %v3086_v33 = vadd.f32 %v592_v29, %v573_v27 }
  0xda   : > { %v935_v32 = vpop.f32.mrf.mxu0 }
  0xdb   : > { %v951_v28 = vpop.f32.mrf.mxu2 }
  0xdc   : > { %v952_v63 = vadd.f32 %v951_v28, %v932_v25 }
  0xdd   : > { %v575_v34 = vpop.f32.mrf.mxu1 }
  0xde   : > { %v1038_v17 = vadd.f32 %v952_v63, %v600_v8 }
  0xe0   : > { %v594_v36 = vpop.f32.mrf.mxu3 }
  0xe1   : > { %v3090_v37 = vadd.f32 %v594_v36, %v575_v34 }
  0xe2   : > { %v3088_v60 = vpop.f32.mrf.mxu0 }
  0xe3   : > { %v954_v35 = vpop.f32.mrf.mxu2 }
  0xe4   : > { %v955_v25 = vadd.f32 %v954_v35, %v935_v32 }
  0xe5   : > { %v968_v39 = vpop.f32.mrf.mxu1 }
  0xe6   : > { %v1041_v36 = vadd.f32 %v955_v25, %v603_v4 }
  0xe8   : > { %v987_v0 = vpop.f32.mrf.mxu3 }
  0xe9   : > { %v988_v6 = vadd.f32 %v987_v0, %v968_v39 }
  0xea   : > { %v3094_v41 = vpop.f32.mrf.mxu0 }
  0xeb   : > { %v3092_v40 = vpop.f32.mrf.mxu2  ;;  %v1036_v12 = vadd.f32 %v988_v6, %v598_v30 }
  0xec   : > { %v957_v32 = vadd.f32 %v3092_v40, %v3088_v60  ;;  %v191_v40 = vperm.slane %v3111_v54, 2 }
  0xed   : > { %v970_v42 = vpop.f32.mrf.mxu1 }
  0xee   : > { %v605_v57 = vadd.f32 %v3086_v33, %v191_v40  ;;  %v599_v33 = vadd.f32 %v3082_v21, %v191_v40  ;;  %v608_v62 = vadd.f32 %v3090_v37, %v191_v40 }
  0xf0   : > { %v989_v45 = vpop.f32.mrf.mxu3 }
  0xf1   : > { %v990_v24 = vadd.f32 %v989_v45, %v970_v42 }
  0xf2   : > { %v3098_v46 = vpop.f32.mrf.mxu0 }
  0xf3   : > { %v3096_v43 = vpop.f32.mrf.mxu2  ;;  %v1039_v28 = vadd.f32 %v990_v24, %v601_v1 }
  0xf4   : > { %v1026_v54 = vadd.f32 %v3096_v43, %v3094_v41 }
  0xf5   : > { %v973_v48 = vpop.f32.mrf.mxu1 }
  0xf8   : > { %v992_v58 = vpop.f32.mrf.mxu3 }
  0xf9   : > { %v993_v42 = vadd.f32 %v992_v58, %v973_v48 }
  0xfa   : > { %v3102_v50 = vpop.f32.mrf.mxu0 }
  0xfb   : > { %v3100_v49 = vpop.f32.mrf.mxu2  ;;  %v1042_v45 = vadd.f32 %v993_v42, %v604_v7 }
  0xfd   : > { %v3104_v51 = vpop.f32.mrf.mxu1 }
 0x100   : > { %v994_v55 = vpop.f32.mrf.mxu3 }
 0x101   : > { %v995_v58 = vadd.f32 %v994_v55, %v3104_v51 }
 0x102   : > { %v3113_v56 = vpop.f32.mrf.mxu0 }
 0x103   : > { %v3106_v52 = vpop.f32.mrf.mxu2  ;;  %v1045_v63 = vadd.f32 %v995_v58, %v607_v15 }
 0x104   : > { %v1031_v14 = vadd.f32 %v3106_v52, %v3102_v50 }
 0x105   : > { %v1335_v59 = vpop.f32.mrf.mxu1 }
 0x108   : > { %v1354_v31 = vpop.f32.mrf.mxu3 }
 0x109   : > { %v1355_v61 = vadd.f32 %v1354_v31, %v1335_v59 }
 0x10a   : > { %v1373_v53 = vpop.f32.mrf.mxu0 }
 0x10b   : > { %v3118_v2 = vpop.f32.mrf.mxu2  ;;  %v1440_v3 = vadd.f32 %v1355_v61, %v1035_v44  ;;  %v1044_v44 = vadd.f32 %v957_v32, %v606_v11 }
 0x10c   : > { %v1033_v50 = vadd.f32 %v3118_v2, %v3113_v56  ;;  %v1028_v56 = vadd.f32 %v3100_v49, %v3098_v46  ;;  %v602_v2 = vadd.f32 %v3084_v26, %v191_v40 }
 0x10d   : > { %v1337_v5 = vpop.f32.mrf.mxu1  ;;  %1452 = vst [vmem:[%s3124_s22] sm:$0xff] %v1440_v3 }
 0x110   : > { %v1356_v13 = vpop.f32.mrf.mxu3 }
 0x111   : > { %v1357_v18 = vadd.f32 %v1356_v13, %v1337_v5 }
 0x112   : > { %v1375_v16 = vpop.f32.mrf.mxu0 }
 0x113   : > { %v1392_v47 = vpop.f32.mrf.mxu2  ;;  %v1443_v22 = vadd.f32 %v1357_v18, %v1038_v17  ;;  %v1046_v18 = vadd.f32 %v1033_v50, %v608_v62 }
 0x114   : > { %v1393_v38 = vadd.f32 %v1392_v47, %v1373_v53  ;;  %v1043_v47 = vadd.f32 %v1031_v14, %v605_v57 }
 0x115   : > { %v1340_v23 = vpop.f32.mrf.mxu1  ;;  %1455 = vst [vmem:[%s3124_s22 + $0x18] sm:$0xff] %v1443_v22 }
 0x116   : > { %v1441_v20 = vadd.f32 %v1393_v38, %v1036_v12  ;;  %v1037_v38 = vadd.f32 %v1026_v54, %v599_v33 }
 0x118   : > { %1453 = vst [vmem:[%s3124_s22 + $0x8] sm:$0xff] %v1441_v20  ;;  %v1359_v29 = vpop.f32.mrf.mxu3 }
 0x119   : > { %v1360_v39 = vadd.f32 %v1359_v29, %v1340_v23  ;;  %v1040_v23 = vadd.f32 %v1028_v56, %v602_v2 }
 0x11a   : > { %v1378_v0 = vpop.f32.mrf.mxu0 }
 0x11b   : > { %v1394_v27 = vpop.f32.mrf.mxu2  ;;  %v1446_v10 = vadd.f32 %v1360_v39, %v1041_v36 }
 0x11c   : > { %v1395_v34 = vadd.f32 %v1394_v27, %v1375_v16 }
 0x11d   : > { %v1342_v9 = vpop.f32.mrf.mxu1  ;;  %1458 = vst [vmem:[%s3124_s22 + $0x30] sm:$0xff] %v1446_v10 }
 0x11e   : > { %v1444_v59 = vadd.f32 %v1395_v34, %v1039_v28 }
 0x120   : > { %1456 = vst [vmem:[%s3124_s22 + $0x20] sm:$0xff] %v1444_v59  ;;  %v1361_v31 = vpop.f32.mrf.mxu3 }
 0x121   : > { %v1362_v61 = vadd.f32 %v1361_v31, %v1342_v9 }
 0x122   : > { %v1380_v48 = vpop.f32.mrf.mxu0 }
 0x123   : > { %v1397_v35 = vpop.f32.mrf.mxu2  ;;  %v1449_v5 = vadd.f32 %v1362_v61, %v1044_v44 }
 0x124   : > { %v1398_v53 = vadd.f32 %v1397_v35, %v1378_v0 }
 0x125   : > { %v1416_v60 = vpop.f32.mrf.mxu1  ;;  %1461 = vst [vmem:[%s3124_s22 + $0x48] sm:$0xff] %v1449_v5 }
 0x126   : > { %v1447_v3 = vadd.f32 %v1398_v53, %v1042_v45 }
 0x128   : > { %1459 = vst [vmem:[%s3124_s22 + $0x38] sm:$0xff] %v1447_v3  ;;  %v1435_v30 = vpop.f32.mrf.mxu3 }
 0x129   : > { %v1436_v51 = vadd.f32 %v1435_v30, %v1416_v60 }
 0x12a   : > { %v1411_v19 = vpop.f32.mrf.mxu0 }
 0x12b   : > { %v1399_v6 = vpop.f32.mrf.mxu2  ;;  %v1448_v12 = vadd.f32 %v1436_v51, %v1043_v47 }
 0x12c   : > { %v1400_v8 = vadd.f32 %v1399_v6, %v1380_v48 }
 0x12d   : > { %1460 = vst [vmem:[%s3124_s22 + $0x40] sm:$0xff] %v1448_v12  ;;  %v1418_v52 = vpop.f32.mrf.mxu1 }
 0x12e   : > { %v1450_v55 = vadd.f32 %v1400_v8, %v1045_v63 }
 0x130   : > { %1462 = vst [vmem:[%s3124_s22 + $0x50] sm:$0xff] %v1450_v55  ;;  %v1437_v16 = vpop.f32.mrf.mxu3 }
 0x131   : > { %v1438_v41 = vadd.f32 %v1437_v16, %v1418_v52 }
 0x132   : > { %v1413_v21 = vpop.f32.mrf.mxu0 }
 0x133   : > { %v1430_v13 = vpop.f32.mrf.mxu2  ;;  %v1451_v20 = vadd.f32 %v1438_v41, %v1046_v18 }
 0x134   : > { %v1431_v17 = vadd.f32 %v1430_v13, %v1411_v19 }
 0x135   : > { %1463 = vst [vmem:[%s3124_s22 + $0x58] sm:$0xff] %v1451_v20 }
 0x136   : > { %v1442_v43 = vadd.f32 %v1431_v17, %v1037_v38 }
 0x138   : > { %1454 = vst [vmem:[%s3124_s22 + $0x10] sm:$0xff] %v1442_v43 }
 0x13b   : > { %v1432_v22 = vpop.f32.mrf.mxu2 }
 0x13c   : > { %v1433_v37 = vadd.f32 %v1432_v22, %v1413_v21 }
 0x13e   : > { %v1445_v24 = vadd.f32 %v1433_v37, %v1040_v23 }
 0x140   : > { %1457 = vst [vmem:[%s3124_s22 + $0x28] sm:$0xff] %v1445_v24 }
 0x141 PF: > { %s13_s12 = sadd.s32 1, %s2215_s12  }
 0x142   : > { %p10_p4 = scmp.ge.s32.totalorder %s13_s12, 4  }
 0x144   :  { %12 = sbr.rel (!%p10_p4) target bundleno = 1 (0x1), region = 64 }

</bundles_post_ra>
